<compile_context>
chip_gen: v5e
topology: v5e:2x2
jax: 0.10.0
libtpu: 0.0.40
codegen_flags: <defaults>
</compile_context>

<pallas_src>
from functools import partial

import jax
import jax.numpy as jnp
from jax.experimental import pallas as pl
from jax.experimental.pallas import tpu as pltpu

HEAD_DIM = 1280   # EfficientNet-b0 head width
FC_DIM = 256      # replaced model._fc output
OUT_DIM = 2       # out_layer output


# ----------------------------- Pallas kernels ------------------------------ #

def _stem_head_pool_kernel(p_ref, ws_ref, bs_ref, wh_ref, bh_ref, psum_ref, *, bf16_swish):
    """stem conv (matmul) + swish -> head conv (matmul) + swish -> streamed pooled partial sum."""
    step = pl.program_id(2)

    @pl.when(step == 0)
    def _():                                              # new (sample, split) -> reset pooled sum
        psum_ref[...] = jnp.zeros_like(psum_ref)

    patches = p_ref[0]                                    # (ts, 32) bf16 im2col patches
    ts = patches.shape[0]

    # stem conv 3x3 s2 (3->32) as matmul + bias + swish (f32 accumulation / activation; tiny)
    stem = jnp.dot(patches, ws_ref[...], preferred_element_type=jnp.float32) + bs_ref[...]
    stem = stem * jax.nn.sigmoid(stem)                    # MemoryEfficientSwish

    # head conv 1x1 (32->1280) as matmul + bias; activation stays in VMEM only
    head = jnp.dot(stem.astype(jnp.bfloat16), wh_ref[...],
                   preferred_element_type=jnp.float32) + bh_ref[...]   # (ts, 1280) f32
    if bf16_swish:
        # v6e / v7x: bf16 EUP packs 2 elems/lane -> halves the EUP-bound swish cost
        hb = head.astype(jnp.bfloat16)
        head = (hb * jax.nn.sigmoid(hb)).astype(jnp.float32)
    else:
        # v5e and older: no bf16 EUP/VPU -> keep f32 (cast work would buy nothing)
        head = head * jax.nn.sigmoid(head)

    # streamed adaptive-avg-pool partial sum.  Keep 8 sublane rows so the per-step work is
    # pure VPU adds; the cross-sublane reduce is deferred to the tiny fc/out kernel.
    if ts % 8 == 0:
        psum_ref[0] += jnp.sum(head.reshape(ts // 8, 8, HEAD_DIM), axis=0)
    else:
        psum_ref[0, 0:1, :] += jnp.sum(head, axis=0, keepdims=True)


def _fc_out_kernel(psum_ref, wfc_ref, bfc_ref, wo_ref, bo_ref, feat_ref, logit_ref, *, inv_s):
    """Combine pooled partial sums -> mean -> _fc (features) -> out_layer (logits). All f32."""
    pooled = jnp.sum(psum_ref[0], axis=0, keepdims=True) * inv_s       # (1, 1280) mean
    # replaced model._fc: Linear(1280, 256)  (== get_features output; dropout = identity, eval)
    h = jnp.dot(pooled, wfc_ref[...], preferred_element_type=jnp.float32) + bfc_ref[...]
    feat_ref[0] = h.astype(feat_ref.dtype)
    # out_layer: Linear(256, 2)
    logits = jnp.dot(h, wo_ref[...], preferred_element_type=jnp.float32) + bo_ref[...]
    logit_ref[0] = logits.astype(logit_ref.dtype)


# ----------------------------- wrapper / tiling ------------------------------ #

def _choose_spatial_tile(s, cap=1536):
    """Largest spatial tile: full extent if small, else a divisor of S (prefer multiple of 16)."""
    if s <= cap:
        return s
    for mult in (16, 8, 1):
        start = cap - cap % mult
        for ts in range(start, mult - 1, -mult):
            if s % ts == 0:
                return ts
    return s  # unreachable (ts=1 always divides)


def _bf16_swish_supported():
    try:
        kind = jax.devices()[0].device_kind.lower()
    except Exception:
        return True
    # v5e and older lack a bf16 EUP/VPU -- keep the head swish in f32 there.
    return not any(tag in kind for tag in ("v2", "v3", "v4", "v5"))


def fused_forward(patches, w_stem, b_stem, w_head, b_head, w_fc, b_fc, w_out, b_out,
                  *, bf16_swish=True, splits=None):
    """patches: (N, S, 32) bf16 -> (features (N,256), logits (N,2))."""
    n, s, kp = patches.shape
    ts = _choose_spatial_tile(s)
    steps = s // ts
    if splits is None:
        # v7x has 2 TensorCores per chip: with per-chip batch of 1 the batch-"parallel" axis
        # leaves a core idle, so split the spatial sum-reduction 2-way ("parallel") instead.
        splits = 2 if (n == 1 and steps % 2 == 0 and steps >= 2) else 1
    spp = steps // splits                                  # spatial steps per split

    flops = 2 * n * s * (kp * 32 + 32 * HEAD_DIM)
    transcendentals = n * s * (32 + HEAD_DIM)
    bytes_accessed = (n * s * kp * 2                       # bf16 patches
                      + kp * 32 * 2 + 32 * HEAD_DIM * 2    # bf16 conv weights
                      + (32 + HEAD_DIM) * 4                # f32 biases
                      + n * splits * 8 * HEAD_DIM * 4)     # f32 pooled partial sums

    # Stage 1: stem + head + swish + streamed pooled partial sums.
    psum = pl.pallas_call(
        partial(_stem_head_pool_kernel, bf16_swish=bf16_swish),
        out_shape=jax.ShapeDtypeStruct((n, splits * 8, HEAD_DIM), jnp.float32),
        grid_spec=pltpu.PrefetchScalarGridSpec(
            num_scalar_prefetch=0,
            grid=(n, splits, spp),
            in_specs=[
                pl.BlockSpec((1, ts, kp),    lambda b, sp, st: (b, sp * spp + st, 0)),  # patches
                pl.BlockSpec((kp, 32),       lambda b, sp, st: (0, 0)),                 # stem W
                pl.BlockSpec((1, 32),        lambda b, sp, st: (0, 0)),                 # stem b
                pl.BlockSpec((32, HEAD_DIM), lambda b, sp, st: (0, 0)),                 # head W
                pl.BlockSpec((1, HEAD_DIM),  lambda b, sp, st: (0, 0)),                 # head b
            ],
            out_specs=pl.BlockSpec((1, 8, HEAD_DIM), lambda b, sp, st: (b, sp, 0)),
        ),
        compiler_params=pltpu.CompilerParams(
            dimension_semantics=("parallel", "parallel", "arbitrary"),
            vmem_limit_bytes=64 * 1024 * 1024),
        cost_estimate=pl.CostEstimate(flops=flops, transcendentals=transcendentals,
                                      bytes_accessed=bytes_accessed),
    )(patches, w_stem, b_stem, w_head, b_head)

    # Stage 2: tiny per-sample kernel -- combine splits, mean, _fc, out_layer (all f32).
    feat, logits = pl.pallas_call(
        partial(_fc_out_kernel, inv_s=1.0 / s),
        out_shape=(jax.ShapeDtypeStruct((n, 1, FC_DIM), jnp.float32),
                   jax.ShapeDtypeStruct((n, 1, OUT_DIM), jnp.float32)),
        grid_spec=pltpu.PrefetchScalarGridSpec(
            num_scalar_prefetch=0,
            grid=(n,),
            in_specs=[
                pl.BlockSpec((1, splits * 8, HEAD_DIM), lambda b: (b, 0, 0)),  # pooled partials
                pl.BlockSpec((HEAD_DIM, FC_DIM),        lambda b: (0, 0)),     # _fc weight
                pl.BlockSpec((1, FC_DIM),               lambda b: (0, 0)),     # _fc bias
                pl.BlockSpec((FC_DIM, OUT_DIM),         lambda b: (0, 0)),     # out_layer weight
                pl.BlockSpec((1, OUT_DIM),              lambda b: (0, 0)),     # out_layer bias
            ],
            out_specs=[
                pl.BlockSpec((1, 1, FC_DIM),  lambda b: (b, 0, 0)),            # features
                pl.BlockSpec((1, 1, OUT_DIM), lambda b: (b, 0, 0)),            # logits
            ],
        ),
        compiler_params=pltpu.CompilerParams(dimension_semantics=("parallel",)),
    )(psum, w_fc, b_fc, w_out, b_out)

    return feat[:, 0, :], logits[:, 0, :]


# ------------------------------- JAX glue ---------------------------------- #

def im2col_3x3_s2(x_nhwc, k_pad=32):
    """3x3 / stride 2 / pad 1 patch extraction; K zero-padded to 32 for lane alignment."""
    n, h, w, c = x_nhwc.shape
    xp = jnp.pad(x_nhwc, ((0, 0), (1, 1), (1, 1), (0, 0)))
    ho = (h + 2 - 3) // 2 + 1
    wo = (w + 2 - 3) // 2 + 1
    cols = [xp[:, i:i + 2 * ho:2, j:j + 2 * wo:2, :] for i in range(3) for j in range(3)]
    patches = jnp.concatenate(cols, axis=-1).reshape(n, ho * wo, 9 * c)   # (N, S, 27)
    if 9 * c < k_pad:
        patches = jnp.pad(patches, ((0, 0), (0, 0), (0, k_pad - 9 * c)))  # (N, S, 32)
    return patches, (n, ho, wo)


class FEModelPallas:
    """Pallas port of FEModel.forward / get_features (synthetic deterministic weights).

    get_features(x) == _fc(avg_pool(features))   (no activation after _fc; dropout = identity)
    __call__(x)     == out_layer(get_features(x))
    """

    def __init__(self, key):
        k = jax.random.split(key, 8)
        # stem conv 3x3 s2: 3 -> 32 (EfficientNet-b0 stem); (kh*kw*Cin, Cout), K padded 27->32
        w_stem = 0.10 * jax.random.normal(k[0], (3 * 3 * 3, 32), jnp.float32)
        self.w_stem = jnp.pad(w_stem, ((0, 5), (0, 0))).astype(jnp.bfloat16)
        self.b_stem = (0.01 * jax.random.normal(k[1], (32,), jnp.float32)).reshape(1, 32)
        # head 1x1 conv: 32 -> 1280 (b0 head width)
        self.w_head = (0.05 * jax.random.normal(k[2], (32, HEAD_DIM), jnp.float32)).astype(jnp.bfloat16)
        self.b_head = (0.01 * jax.random.normal(k[3], (HEAD_DIM,), jnp.float32)).reshape(1, HEAD_DIM)
        # _fc / out_layer kept in f32: they run once per sample, so f32 costs nothing and
        # removes the most error-sensitive bf16 cast (pooled vector before the 1280-deep fc).
        self.w_fc = 0.02 * jax.random.normal(k[4], (HEAD_DIM, FC_DIM), jnp.float32)
        self.b_fc = (0.01 * jax.random.normal(k[5], (FC_DIM,), jnp.float32)).reshape(1, FC_DIM)
        self.w_out = 0.05 * jax.random.normal(k[6], (FC_DIM, OUT_DIM), jnp.float32)
        self.b_out = (0.01 * jax.random.normal(k[7], (OUT_DIM,), jnp.float32)).reshape(1, OUT_DIM)
        self._bf16_swish = _bf16_swish_supported()
        self._jit_run = jax.jit(self._run)

    def _run(self, x_nchw):
        # Cast to bf16 BEFORE im2col: the 9x-expanded patch tensor is only ever materialized
        # in bf16 (halves the input-side HBM traffic vs f32-patches-then-cast).
        x_nhwc = jnp.transpose(x_nchw, (0, 2, 3, 1)).astype(jnp.bfloat16)   # NCHW -> NHWC
        patches, _ = im2col_3x3_s2(x_nhwc)
        return fused_forward(patches, self.w_stem, self.b_stem,
                             self.w_head, self.b_head,
                             self.w_fc, self.b_fc,
                             self.w_out, self.b_out,
                             bf16_swish=self._bf16_swish)

    def get_features(self, x_nchw):
        feats, _ = self._jit_run(x_nchw)                  # _fc(avg_pool(features))
        return feats

    def __call__(self, x_nchw):
        _, logits = self._jit_run(x_nchw)                 # out_layer(_fc(...))
        return logits


# --------------------------------- main ------------------------------------ #

if __name__ == "__main__":
    key = jax.random.PRNGKey(0)
    pkey, xkey = jax.random.split(key)
    model = FEModelPallas(pkey)

    # PyTorch-convention NCHW input: batch=2, RGB, 32x32 spatial.
    x = jax.random.normal(xkey, (2, 3, 32, 32), jnp.float32)

    logits = model(x)
    jax.block_until_ready(logits)
    assert logits.shape == (2, 2) and logits.dtype == jnp.float32

    feats = model.get_features(x)
    jax.block_until_ready(feats)
    assert feats.shape == (2, 256) and feats.dtype == jnp.float32

    print("KERNEL_OK")
</pallas_src>

<mosaic_0001>
module attributes {stable_mosaic.version = 11 : i64} {
  func.func @_stem_head_pool_kernel(%arg0: i32, %arg1: i32, %arg2: i32, %arg3: memref<1x256x32xbf16, #tpu.memory_space<vmem>>, %arg4: memref<32x32xbf16, #tpu.memory_space<vmem>>, %arg5: memref<1x32xf32, #tpu.memory_space<vmem>>, %arg6: memref<32x1280xbf16, #tpu.memory_space<vmem>>, %arg7: memref<1x1280xf32, #tpu.memory_space<vmem>>, %arg8: memref<1x8x1280xf32, #tpu.memory_space<vmem>>) attributes {dimension_semantics = [#tpu.dimension_semantics<parallel>, #tpu.dimension_semantics<parallel>, #tpu.dimension_semantics<arbitrary>], iteration_bounds = array<i64: 2, 1, 1>, scalar_prefetch = 0 : i64, scratch_operands = 0 : i64, tpu.core_type = #tpu.core_type<tc>, window_params = [{transform_indices = @transform_0, window_bounds = array<i64: 1, 256, 32>}, {pipeline_mode = #tpu.pipeline_mode<synchronous>, transform_indices = @transform_1, window_bounds = array<i64: 32, 32>}, {pipeline_mode = #tpu.pipeline_mode<synchronous>, transform_indices = @transform_2, window_bounds = array<i64: 1, 32>}, {pipeline_mode = #tpu.pipeline_mode<synchronous>, transform_indices = @transform_3, window_bounds = array<i64: 32, 1280>}, {pipeline_mode = #tpu.pipeline_mode<synchronous>, transform_indices = @transform_4, window_bounds = array<i64: 1, 1280>}, {transform_indices = @transform_5, window_bounds = array<i64: 1, 8, 1280>}]} {
    %c0_i32 = arith.constant 0 : i32
    %0 = arith.cmpi eq, %arg2, %c0_i32 : i32
    %1 = arith.extui %0 : i1 to i32
    %c0_i32_0 = arith.constant 0 : i32
    %2 = arith.cmpi ne, %1, %c0_i32_0 : i32
    scf.if %2 {
      %cst_21 = arith.constant 0.000000e+00 : f32
      %38 = vector.broadcast %cst_21 : f32 to vector<1x8x1280xf32>
      %c0_22 = arith.constant 0 : index
      %c0_23 = arith.constant 0 : index
      %c0_24 = arith.constant 0 : index
      %39 = vector.load %arg8[%c0_22, %c0_23, %c0_24] : memref<1x8x1280xf32, #tpu.memory_space<vmem>>, vector<1x8x1280xf32>
      tpu.vector_store %arg8[%c0_22, %c0_23, %c0_24], %38 {strides = array<i32>} : memref<1x8x1280xf32, #tpu.memory_space<vmem>>, vector<1x8x1280xf32>,
    } else {
    }
    %c0 = arith.constant 0 : index
    %c0_1 = arith.constant 0 : index
    %c0_2 = arith.constant 0 : index
    %3 = vector.load %arg3[%c0, %c0_1, %c0_2] : memref<1x256x32xbf16, #tpu.memory_space<vmem>>, vector<1x256x32xbf16>
    %4 = vector.shape_cast %3 : vector<1x256x32xbf16> to vector<256x32xbf16>
    %c0_3 = arith.constant 0 : index
    %c0_4 = arith.constant 0 : index
    %5 = vector.load %arg4[%c0_3, %c0_4] : memref<32x32xbf16, #tpu.memory_space<vmem>>, vector<32x32xbf16>
    %cst = arith.constant dense<0.000000e+00> : vector<256x32xf32>
    %6 = tpu.matmul %4, %5, %cst {dimension_numbers = #tpu.dot_dimension_numbers<[1], [0], [0], [1], [0, 0, 1, 1], [], []>} : vector<256x32xbf16>, vector<32x32xbf16>, vector<256x32xf32> -> vector<256x32xf32>
    %c0_5 = arith.constant 0 : index
    %c0_6 = arith.constant 0 : index
    %7 = vector.load %arg5[%c0_5, %c0_6] : memref<1x32xf32, #tpu.memory_space<vmem>>, vector<1x32xf32>
    %8 = vector.broadcast %7 : vector<1x32xf32> to vector<256x32xf32>
    %9 = arith.addf %6, %8 : vector<256x32xf32>
    %10 = arith.negf %9 : vector<256x32xf32>
    %11 = math.exp %10 : vector<256x32xf32>
    %cst_7 = arith.constant 1.000000e+00 : f32
    %12 = vector.broadcast %cst_7 : f32 to vector<256x32xf32>
    %13 = arith.addf %12, %11 : vector<256x32xf32>
    %14 = arith.divf %12, %13 : vector<256x32xf32>
    %15 = arith.mulf %9, %14 : vector<256x32xf32>
    %16 = arith.truncf %15 : vector<256x32xf32> to vector<256x32xbf16>
    %c0_8 = arith.constant 0 : index
    %c0_9 = arith.constant 0 : index
    %17 = vector.load %arg6[%c0_8, %c0_9] : memref<32x1280xbf16, #tpu.memory_space<vmem>>, vector<32x1280xbf16>
    %cst_10 = arith.constant dense<0.000000e+00> : vector<256x1280xf32>
    %18 = tpu.matmul %16, %17, %cst_10 {dimension_numbers = #tpu.dot_dimension_numbers<[1], [0], [0], [1], [0, 0, 1, 1], [], []>} : vector<256x32xbf16>, vector<32x1280xbf16>, vector<256x1280xf32> -> vector<256x1280xf32>
    %c0_11 = arith.constant 0 : index
    %c0_12 = arith.constant 0 : index
    %19 = vector.load %arg7[%c0_11, %c0_12] : memref<1x1280xf32, #tpu.memory_space<vmem>>, vector<1x1280xf32>
    %20 = vector.broadcast %19 : vector<1x1280xf32> to vector<256x1280xf32>
    %21 = arith.addf %18, %20 : vector<256x1280xf32>
    %22 = arith.truncf %21 : vector<256x1280xf32> to vector<256x1280xbf16>
    %23 = arith.negf %22 : vector<256x1280xbf16>
    %24 = math.exp %23 : vector<256x1280xbf16>
    %cst_13 = arith.constant 1.000000e+00 : bf16
    %25 = vector.broadcast %cst_13 : bf16 to vector<256x1280xbf16>
    %26 = arith.addf %25, %24 : vector<256x1280xbf16>
    %27 = arith.divf %25, %26 : vector<256x1280xbf16>
    %28 = arith.mulf %22, %27 : vector<256x1280xbf16>
    %29 = arith.extf %28 : vector<256x1280xbf16> to vector<256x1280xf32>
    %c0_14 = arith.constant 0 : index
    %c0_15 = arith.constant 0 : index
    %c0_16 = arith.constant 0 : index
    %30 = vector.load %arg8[%c0_14, %c0_15, %c0_16] : memref<1x8x1280xf32, #tpu.memory_space<vmem>>, vector<1x8x1280xf32>
    %31 = vector.shape_cast %30 : vector<1x8x1280xf32> to vector<8x1280xf32>
    %32 = vector.shape_cast %29 : vector<256x1280xf32> to vector<32x8x1280xf32>
    %cst_17 = arith.constant dense<0.000000e+00> : vector<8x1280xf32>
    %33 = vector.multi_reduction <add>, %32, %cst_17 [0] : vector<32x8x1280xf32> to vector<8x1280xf32>
    %34 = arith.addf %31, %33 : vector<8x1280xf32>
    %c0_18 = arith.constant 0 : index
    %c0_19 = arith.constant 0 : index
    %c0_20 = arith.constant 0 : index
    %35 = vector.load %arg8[%c0_18, %c0_19, %c0_20] : memref<1x8x1280xf32, #tpu.memory_space<vmem>>, vector<1x8x1280xf32>
    %36 = vector.shape_cast %35 : vector<1x8x1280xf32> to vector<8x1280xf32>
    %37 = vector.shape_cast %34 : vector<8x1280xf32> to vector<1x8x1280xf32>
    tpu.vector_store %arg8[%c0_18, %c0_19, %c0_20], %37 {strides = array<i32>} : memref<1x8x1280xf32, #tpu.memory_space<vmem>>, vector<1x8x1280xf32>,
    return
  }
  func.func @transform_0(%arg0: i32, %arg1: i32, %arg2: i32) -> (i32, i32, i32) {
    %c1_i32 = arith.constant 1 : i32
    %0 = arith.muli %arg1, %c1_i32 : i32
    %1 = arith.addi %0, %arg2 : i32
    %c0_i32 = arith.constant 0 : i32
    %c0_i32_0 = arith.constant 0 : i32
    return %arg0, %1, %c0_i32 : i32, i32, i32
  }
  func.func @transform_1(%arg0: i32, %arg1: i32, %arg2: i32) -> (i32, i32) {
    %c0_i32 = arith.constant 0 : i32
    %c0_i32_0 = arith.constant 0 : i32
    %c0_i32_1 = arith.constant 0 : i32
    return %c0_i32, %c0_i32_0 : i32, i32
  }
  func.func @transform_2(%arg0: i32, %arg1: i32, %arg2: i32) -> (i32, i32) {
    %c0_i32 = arith.constant 0 : i32
    %c0_i32_0 = arith.constant 0 : i32
    %c0_i32_1 = arith.constant 0 : i32
    return %c0_i32, %c0_i32_0 : i32, i32
  }
  func.func @transform_3(%arg0: i32, %arg1: i32, %arg2: i32) -> (i32, i32) {
    %c0_i32 = arith.constant 0 : i32
    %c0_i32_0 = arith.constant 0 : i32
    %c0_i32_1 = arith.constant 0 : i32
    return %c0_i32, %c0_i32_0 : i32, i32
  }
  func.func @transform_4(%arg0: i32, %arg1: i32, %arg2: i32) -> (i32, i32) {
    %c0_i32 = arith.constant 0 : i32
    %c0_i32_0 = arith.constant 0 : i32
    %c0_i32_1 = arith.constant 0 : i32
    return %c0_i32, %c0_i32_0 : i32, i32
  }
  func.func @transform_5(%arg0: i32, %arg1: i32, %arg2: i32) -> (i32, i32, i32) {
    %c0_i32 = arith.constant 0 : i32
    %c0_i32_0 = arith.constant 0 : i32
    return %arg0, %arg1, %c0_i32 : i32, i32, i32
  }
}

module attributes {stable_mosaic.version = 11 : i64} {
  func.func @_fc_out_kernel(%arg0: i32, %arg1: memref<1x8x1280xf32, #tpu.memory_space<vmem>>, %arg2: memref<1280x256xf32, #tpu.memory_space<vmem>>, %arg3: memref<1x256xf32, #tpu.memory_space<vmem>>, %arg4: memref<256x2xf32, #tpu.memory_space<vmem>>, %arg5: memref<1x2xf32, #tpu.memory_space<vmem>>, %arg6: memref<1x1x256xf32, #tpu.memory_space<vmem>>, %arg7: memref<1x1x2xf32, #tpu.memory_space<vmem>>) attributes {dimension_semantics = [#tpu.dimension_semantics<parallel>], iteration_bounds = array<i64: 2>, scalar_prefetch = 0 : i64, scratch_operands = 0 : i64, tpu.core_type = #tpu.core_type<tc>, window_params = [{transform_indices = @transform_0, window_bounds = array<i64: 1, 8, 1280>}, {pipeline_mode = #tpu.pipeline_mode<synchronous>, transform_indices = @transform_1, window_bounds = array<i64: 1280, 256>}, {pipeline_mode = #tpu.pipeline_mode<synchronous>, transform_indices = @transform_2, window_bounds = array<i64: 1, 256>}, {pipeline_mode = #tpu.pipeline_mode<synchronous>, transform_indices = @transform_3, window_bounds = array<i64: 256, 2>}, {pipeline_mode = #tpu.pipeline_mode<synchronous>, transform_indices = @transform_4, window_bounds = array<i64: 1, 2>}, {transform_indices = @transform_5, window_bounds = array<i64: 1, 1, 256>}, {transform_indices = @transform_6, window_bounds = array<i64: 1, 1, 2>}]} {
    %c0 = arith.constant 0 : index
    %c0_0 = arith.constant 0 : index
    %c0_1 = arith.constant 0 : index
    %0 = vector.load %arg1[%c0, %c0_0, %c0_1] : memref<1x8x1280xf32, #tpu.memory_space<vmem>>, vector<1x8x1280xf32>
    %1 = vector.shape_cast %0 : vector<1x8x1280xf32> to vector<8x1280xf32>
    %cst = arith.constant dense<0.000000e+00> : vector<1280xf32>
    %2 = vector.multi_reduction <add>, %1, %cst [0] : vector<8x1280xf32> to vector<1280xf32>
    %3 = vector.shape_cast %2 : vector<1280xf32> to vector<1x1280xf32>
    %cst_2 = arith.constant 3.906250e-03 : f32
    %4 = vector.broadcast %cst_2 : f32 to vector<1x1280xf32>
    %5 = arith.mulf %3, %4 : vector<1x1280xf32>
    %c0_3 = arith.constant 0 : index
    %c0_4 = arith.constant 0 : index
    %6 = vector.load %arg2[%c0_3, %c0_4] : memref<1280x256xf32, #tpu.memory_space<vmem>>, vector<1280x256xf32>
    %cst_5 = arith.constant dense<0.000000e+00> : vector<1x256xf32>
    %7 = tpu.matmul %5, %6, %cst_5 {dimension_numbers = #tpu.dot_dimension_numbers<[1], [0], [0], [1], [0, 0, 1, 1], [], []>} : vector<1x1280xf32>, vector<1280x256xf32>, vector<1x256xf32> -> vector<1x256xf32>
    %c0_6 = arith.constant 0 : index
    %c0_7 = arith.constant 0 : index
    %8 = vector.load %arg3[%c0_6, %c0_7] : memref<1x256xf32, #tpu.memory_space<vmem>>, vector<1x256xf32>
    %9 = arith.addf %7, %8 : vector<1x256xf32>
    %c0_8 = arith.constant 0 : index
    %c0_9 = arith.constant 0 : index
    %c0_10 = arith.constant 0 : index
    %10 = vector.load %arg6[%c0_8, %c0_9, %c0_10] : memref<1x1x256xf32, #tpu.memory_space<vmem>>, vector<1x1x256xf32>
    %11 = vector.shape_cast %10 : vector<1x1x256xf32> to vector<1x256xf32>
    %12 = vector.shape_cast %9 : vector<1x256xf32> to vector<1x1x256xf32>
    tpu.vector_store %arg6[%c0_8, %c0_9, %c0_10], %12 {strides = array<i32>} : memref<1x1x256xf32, #tpu.memory_space<vmem>>, vector<1x1x256xf32>,
    %c0_11 = arith.constant 0 : index
    %c0_12 = arith.constant 0 : index
    %13 = vector.load %arg4[%c0_11, %c0_12] : memref<256x2xf32, #tpu.memory_space<vmem>>, vector<256x2xf32>
    %cst_13 = arith.constant dense<0.000000e+00> : vector<1x2xf32>
    %14 = tpu.matmul %9, %13, %cst_13 {dimension_numbers = #tpu.dot_dimension_numbers<[1], [0], [0], [1], [0, 0, 1, 1], [], []>} : vector<1x256xf32>, vector<256x2xf32>, vector<1x2xf32> -> vector<1x2xf32>
    %c0_14 = arith.constant 0 : index
    %c0_15 = arith.constant 0 : index
    %15 = vector.load %arg5[%c0_14, %c0_15] : memref<1x2xf32, #tpu.memory_space<vmem>>, vector<1x2xf32>
    %16 = arith.addf %14, %15 : vector<1x2xf32>
    %c0_16 = arith.constant 0 : index
    %c0_17 = arith.constant 0 : index
    %c0_18 = arith.constant 0 : index
    %17 = vector.load %arg7[%c0_16, %c0_17, %c0_18] : memref<1x1x2xf32, #tpu.memory_space<vmem>>, vector<1x1x2xf32>
    %18 = vector.shape_cast %17 : vector<1x1x2xf32> to vector<1x2xf32>
    %19 = vector.shape_cast %16 : vector<1x2xf32> to vector<1x1x2xf32>
    tpu.vector_store %arg7[%c0_16, %c0_17, %c0_18], %19 {strides = array<i32>} : memref<1x1x2xf32, #tpu.memory_space<vmem>>, vector<1x1x2xf32>,
    return
  }
  func.func @transform_0(%arg0: i32) -> (i32, i32, i32) {
    %c0_i32 = arith.constant 0 : i32
    %c0_i32_0 = arith.constant 0 : i32
    %c0_i32_1 = arith.constant 0 : i32
    return %arg0, %c0_i32, %c0_i32_0 : i32, i32, i32
  }
  func.func @transform_1(%arg0: i32) -> (i32, i32) {
    %c0_i32 = arith.constant 0 : i32
    %c0_i32_0 = arith.constant 0 : i32
    %c0_i32_1 = arith.constant 0 : i32
    return %c0_i32, %c0_i32_0 : i32, i32
  }
  func.func @transform_2(%arg0: i32) -> (i32, i32) {
    %c0_i32 = arith.constant 0 : i32
    %c0_i32_0 = arith.constant 0 : i32
    %c0_i32_1 = arith.constant 0 : i32
    return %c0_i32, %c0_i32_0 : i32, i32
  }
  func.func @transform_3(%arg0: i32) -> (i32, i32) {
    %c0_i32 = arith.constant 0 : i32
    %c0_i32_0 = arith.constant 0 : i32
    %c0_i32_1 = arith.constant 0 : i32
    return %c0_i32, %c0_i32_0 : i32, i32
  }
  func.func @transform_4(%arg0: i32) -> (i32, i32) {
    %c0_i32 = arith.constant 0 : i32
    %c0_i32_0 = arith.constant 0 : i32
    %c0_i32_1 = arith.constant 0 : i32
    return %c0_i32, %c0_i32_0 : i32, i32
  }
  func.func @transform_5(%arg0: i32) -> (i32, i32, i32) {
    %c0_i32 = arith.constant 0 : i32
    %c0_i32_0 = arith.constant 0 : i32
    %c0_i32_1 = arith.constant 0 : i32
    return %arg0, %c0_i32, %c0_i32_0 : i32, i32, i32
  }
  func.func @transform_6(%arg0: i32) -> (i32, i32, i32) {
    %c0_i32 = arith.constant 0 : i32
    %c0_i32_0 = arith.constant 0 : i32
    %c0_i32_1 = arith.constant 0 : i32
    return %arg0, %c0_i32, %c0_i32_0 : i32, i32, i32
  }
}

</mosaic_0001>

<bundles_post_ra>
// kernel: _run.3
= control target key start
LH: loop header
LB: loop body
LE: loop exit
PB: predicated region body
PF: predicated region fallthrough
CT: control target
= control target key end

     0   :  { %12 = vsyncpa [#allocation3], 0  ;;  %s2614_s0 = inlined_call_operand.vmem [shape: f32[2,8,1280], index: 0, kind: input, shape index: {}]   ;;  %s2615_s1 = inlined_call_operand.vmem [shape: f32[1280,256], index: 1, kind: input, shape index: {}]   ;;  %s2616_s2 = inlined_call_operand.vmem [shape: f32[1,256], index: 2, kind: input, shape index: {}]   ;;  %s2617_s3 = inlined_call_operand.vmem [shape: f32[256,2], index: 3, kind: input, shape index: {}]   ;;  %s2618_s4 = inlined_call_operand.vmem [shape: f32[1,2], index: 4, kind: input, shape index: {}]   ;;  %s2619_s5 = inlined_call_operand.vmem [shape: f32[2,1,256], index: 5, kind: output, shape index: {0}]   ;;  %s2620_s6 = inlined_call_operand.hbm [shape: f32[2,1,2], index: 6, kind: output, shape index: {1}]  }
   0x1   :  { %14 = vsyncpa [#allocation3 + $0x1], 0  ;;  %s1398_s21 = smov 0   ;;  %s1400_s22 = smov 0  }
   0x2   :  { %s1402_s23 = smov 0   ;;  %s1404_s24 = smov 0  }
   0x3 LB: > { %s1419_s25 = sadd.s32 4294967295, %s1361_s24   ;;  %s1251_s26 = sadd.s32 4294967294, %s1361_s24   ;;  %s1361_s24 = sphi %s1404_s24, %s2626_s24   ;;  %s1357_s23 = sphi %s1402_s23, %s2625_s23   ;;  %s1353_s22 = sphi %s1400_s22, %s2624_s22   ;;  %s1349_s21 = sphi %s1398_s21, %s2623_s21  }
   0x4   : > { %s1423_s27 = sadd.s32 1, %s1361_s24   ;;  %s163_s28 = sadd.s32 1, %s1357_s23 }
   0x5   : > { %s160_s29 = ssub.s32 %s1361_s24, %s1423_s27  ;;  %p173_p0 = scmp.ne.s32.totalorder %s1357_s23, %s1353_s22 }
   0x6   : > { %p161_p1 = scmp.eq.s32.totalorder %s160_s29, 0  ;;  %p174_p2 = scmp.eq.s32.totalorder %s1419_s25, 1 }
   0x7   : > { %p179_p3 = scmp.ne.s32.totalorder %s1353_s22, %s1349_s21  ;;  %p180_p4 = scmp.eq.s32.totalorder %s1251_s26, 1 }
   0x8   : > { %s1434_s30 = scalar_select %p161_p1, %s1357_s23, %s163_s28  }
   0x9   : > { %p1436_p5 = por %p174_p2, %p173_p0  ;;  %p1440_p6 = por %p180_p4, %p179_p3 }
   0xa   : > { %p1254_p7 = scmp.ge.s32.totalorder %s1361_s24, 1  ;;  %p218_p8 = scmp.lt.s32.totalorder %s1361_s24, 3 }
   0xc   : > { %p219_p9 = pnand %p1254_p7, %p218_p8 }
   0xd   : > { %p251_p10 = scmp.lt.s32.totalorder (!%p219_p9), %s1419_s25, 1  ;;  %s249_s11 = sand.u32 (!%p219_p9), 1, %s1353_s22  }
   0xe   : > { %222 = sbr.rel (%p219_p9) target bundleno = 457 (0x1c9), region = 40  ;;  %s1168_s12 = scalar_lea.hbm (!%p219_p9), %s2620_s6, %s1419_s25 }
   0xf   : > { %s250_s15 = scalar_lea.vmem (!%p219_p9), [#allocation2], %s249_s11  ;;  %s1172_s17 = sshll.u32 (!%p219_p9), %s1168_s12, 4  ;;  %s1173_s17 = int_to_ptr.hbm [resolvable:$true] %s1172_s17 }
  0x10   : > { %s1170_s16 = sshll.u32 (!%p219_p9), %s250_s15, 4  ;;  %s1157_s18 = scalar_lea.sflag (!%p219_p9), [#allocation3], %s249_s11  ;;  %s1171_s16 = int_to_ptr.vmem [resolvable:$true] %s1170_s16 }
  0x11   : > { %s1313_s20 = sshra.s32 (!%p219_p9), %s1173_s17, 4  ;;  %s1319_s29 = scalar_lea.hbm (!%p219_p9), %s2620_s6, 2  ;;  %s1314_s20 = int_to_ptr.hbm [resolvable:$true] %s1313_s20 }
  0x12   : > { %p1320_p0 = scmp.lt.s32.totalorder (!%p219_p9), %s1314_s20, %s2620_s6 }
  0x13   : > { %v370_v0 = vld [vmem:[%s2615_s1 + $0xf0] sm:$0xff]  ;;  %v368_v2 = vld [vmem:[%s2615_s1 + $0xe0] sm:$0xff]  ;;  %s1654_s10 = scalar_select %p251_p10, %s1419_s25, 1  ;;  %vm1069_vm0 = vcmask 1040384   ;;  %vm1150_vm2 = vcmask 8192  }
  0x14   : > { %v434_v1 = vld [vmem:[%s2615_s1 + $0x2f0] sm:$0xff]  ;;  %666 = vmatpush.msra.mxu0 %v370_v0  ;;  %v432_v4 = vld [vmem:[%s2615_s1 + $0x2e0] sm:$0xff]  ;;  %s1315_s25 = scalar_lea.hbm %s1314_s20, 1 }
  0x15   : > { %706 = vmatpush.msra.mxu2 %v434_v1  ;;  %v402_v3 = vld [vmem:[%s2615_s1 + $0x1f0] sm:$0xff]  ;;  %v400_v7 = vld [vmem:[%s2615_s1 + $0x1e0] sm:$0xff]  ;;  %s1259_s13 = smul.u32 80, %s1654_s10  ;;  %s1256_s26 = sshll.u32 %s1654_s10, 1 }
  0x16   : > { %v466_v5 = vld [vmem:[%s2615_s1 + $0x3f0] sm:$0xff]  ;;  %686 = vmatpush.msra.mxu1 %v402_v3  ;;  %667 = vmatpush.msra.mxu0 %v368_v2  ;;  %v464_v9 = vld [vmem:[%s2615_s1 + $0x3e0] sm:$0xff]  ;;  %s259_s9 = scalar_lea.vmem %s2619_s5, %s1256_s26  ;;  %p1316_p11 = scmp.ne.s32.totalorder %s1314_s20, %s1315_s25 }
  0x17   : > { %726 = vmatpush.msra.mxu3 %v466_v5  ;;  %v366_v6 = vld [vmem:[%s2615_s1 + $0xd0] sm:$0xff]  ;;  %707 = vmatpush.msra.mxu2 %v432_v4  ;;  %v364_v11 = vld [vmem:[%s2615_s1 + $0xc0] sm:$0xff]  ;;  %s1708_s19 = scalar_lea.vmem %s2614_s0, %s1259_s13  ;;  %p1321_p1 = scmp.lt.s32.totalorder %s1319_s29, %s1315_s25 }
  0x18   : > { %v430_v8 = vld [vmem:[%s2615_s1 + $0x2d0] sm:$0xff]  ;;  %687 = vmatpush.msra.mxu1 %v400_v7  ;;  %v428_v12 = vld [vmem:[%s2615_s1 + $0x2c0] sm:$0xff]  ;;  %668 = vmatpush.msra.mxu0 %v366_v6  ;;  %p1317_p12 = pnand %p1316_p11, %p1436_p5 }
  0x19   : > { %v398_v10 = vld [vmem:[%s2615_s1 + $0x1d0] sm:$0xff]  ;;  %727 = vmatpush.msra.mxu3 %v464_v9  ;;  %708 = vmatpush.msra.mxu2 %v430_v8  ;;  %v396_v14 = vld [vmem:[%s2615_s1 + $0x1c0] sm:$0xff]  ;;  %p1322_p2 = por %p1321_p1, %p1320_p0 }
  0x1a   : > { %v462_v13 = vld [vmem:[%s2615_s1 + $0x3d0] sm:$0xff]  ;;  %v460_v15 = vld [vmem:[%s2615_s1 + $0x3c0] sm:$0xff]  ;;  %688 = vmatpush.msra.mxu1 %v398_v10  ;;  %669 = vmatpush.msra.mxu0 %v364_v11  ;;  %p1318_p13 = pneg %p1317_p12 }
  0x1b   : > { %728 = vmatpush.msra.mxu3 %v462_v13  ;;  %v362_v16 = vld [vmem:[%s2615_s1 + $0xb0] sm:$0xff]  ;;  %709 = vmatpush.msra.mxu2 %v428_v12  ;;  %v360_v20 = vld [vmem:[%s2615_s1 + $0xa0] sm:$0xff] }
  0x1c   : > { %v426_v17 = vld [vmem:[%s2615_s1 + $0x2b0] sm:$0xff]  ;;  %689 = vmatpush.msra.mxu1 %v396_v14  ;;  %v424_v21 = vld [vmem:[%s2615_s1 + $0x2a0] sm:$0xff]  ;;  %670 = vmatpush.msra.mxu0 %v362_v16  ;;  %p1323_p3 = pnand %p1322_p2, %p1318_p13 }
  0x1d   : > { %v394_v18 = vld [vmem:[%s2615_s1 + $0x1b0] sm:$0xff]  ;;  %729 = vmatpush.msra.mxu3 %v460_v15  ;;  %710 = vmatpush.msra.mxu2 %v426_v17  ;;  %v392_v22 = vld [vmem:[%s2615_s1 + $0x1a0] sm:$0xff] }
  0x1e   : > { %v458_v19 = vld [vmem:[%s2615_s1 + $0x3b0] sm:$0xff]  ;;  %v456_v23 = vld [vmem:[%s2615_s1 + $0x3a0] sm:$0xff]  ;;  %690 = vmatpush.msra.mxu1 %v394_v18  ;;  %671 = vmatpush.msra.mxu0 %v360_v20 }
  0x1f   : > { %730 = vmatpush.msra.mxu3 %v458_v19  ;;  %v358_v24 = vld [vmem:[%s2615_s1 + $0x90] sm:$0xff]  ;;  %711 = vmatpush.msra.mxu2 %v424_v21  ;;  %v356_v28 = vld [vmem:[%s2615_s1 + $0x80] sm:$0xff] }
  0x20   : > { %v422_v25 = vld [vmem:[%s2615_s1 + $0x290] sm:$0xff]  ;;  %691 = vmatpush.msra.mxu1 %v392_v22  ;;  %v420_v29 = vld [vmem:[%s2615_s1 + $0x280] sm:$0xff]  ;;  %672 = vmatpush.msra.mxu0 %v358_v24 }
  0x21   : > { %v390_v26 = vld [vmem:[%s2615_s1 + $0x190] sm:$0xff]  ;;  %731 = vmatpush.msra.mxu3 %v456_v23  ;;  %712 = vmatpush.msra.mxu2 %v422_v25  ;;  %v388_v30 = vld [vmem:[%s2615_s1 + $0x180] sm:$0xff] }
  0x22   : > { %v454_v27 = vld [vmem:[%s2615_s1 + $0x390] sm:$0xff]  ;;  %v452_v31 = vld [vmem:[%s2615_s1 + $0x380] sm:$0xff]  ;;  %692 = vmatpush.msra.mxu1 %v390_v26  ;;  %673 = vmatpush.msra.mxu0 %v356_v28 }
  0x23   : > { %732 = vmatpush.msra.mxu3 %v454_v27  ;;  %v354_v32 = vld [vmem:[%s2615_s1 + $0x70] sm:$0xff]  ;;  %713 = vmatpush.msra.mxu2 %v420_v29  ;;  %v352_v36 = vld [vmem:[%s2615_s1 + $0x60] sm:$0xff] }
  0x24   : > { %v418_v33 = vld [vmem:[%s2615_s1 + $0x270] sm:$0xff]  ;;  %693 = vmatpush.msra.mxu1 %v388_v30  ;;  %v416_v37 = vld [vmem:[%s2615_s1 + $0x260] sm:$0xff]  ;;  %674 = vmatpush.msra.mxu0 %v354_v32 }
  0x25   : > { %v386_v34 = vld [vmem:[%s2615_s1 + $0x170] sm:$0xff]  ;;  %733 = vmatpush.msra.mxu3 %v452_v31  ;;  %714 = vmatpush.msra.mxu2 %v418_v33  ;;  %v384_v38 = vld [vmem:[%s2615_s1 + $0x160] sm:$0xff] }
  0x26   : > { %v450_v35 = vld [vmem:[%s2615_s1 + $0x370] sm:$0xff]  ;;  %v448_v39 = vld [vmem:[%s2615_s1 + $0x360] sm:$0xff]  ;;  %694 = vmatpush.msra.mxu1 %v386_v34  ;;  %675 = vmatpush.msra.mxu0 %v352_v36  ;;  %v261_v34 = vld [vmem:[%s1708_s19 + $0x8] sm:$0xff] }
  0x27   : > { %734 = vmatpush.msra.mxu3 %v450_v35  ;;  %v350_v40 = vld [vmem:[%s2615_s1 + $0x50] sm:$0xff]  ;;  %715 = vmatpush.msra.mxu2 %v416_v37  ;;  %v348_v44 = vld [vmem:[%s2615_s1 + $0x40] sm:$0xff]  ;;  %v263_v35 = vld [vmem:[%s1708_s19 + $0x18] sm:$0xff] }
  0x28   : > { %v414_v41 = vld [vmem:[%s2615_s1 + $0x250] sm:$0xff]  ;;  %695 = vmatpush.msra.mxu1 %v384_v38  ;;  %v412_v45 = vld [vmem:[%s2615_s1 + $0x240] sm:$0xff]  ;;  %676 = vmatpush.msra.mxu0 %v350_v40  ;;  %v276_v40 = vrot.slane %v261_v34, 4 }
  0x29   : > { %v382_v42 = vld [vmem:[%s2615_s1 + $0x150] sm:$0xff]  ;;  %735 = vmatpush.msra.mxu3 %v448_v39  ;;  %716 = vmatpush.msra.mxu2 %v414_v41  ;;  %v380_v46 = vld [vmem:[%s2615_s1 + $0x140] sm:$0xff]  ;;  %v288_v41 = vrot.slane %v263_v35, 4 }
  0x2a   : > { %v446_v43 = vld [vmem:[%s2615_s1 + $0x350] sm:$0xff]  ;;  %v444_v47 = vld [vmem:[%s2615_s1 + $0x340] sm:$0xff]  ;;  %696 = vmatpush.msra.mxu1 %v382_v42  ;;  %677 = vmatpush.msra.mxu0 %v348_v44 }
  0x2b   : > { %736 = vmatpush.msra.mxu3 %v446_v43  ;;  %v346_v48 = vld [vmem:[%s2615_s1 + $0x30] sm:$0xff]  ;;  %717 = vmatpush.msra.mxu2 %v412_v45  ;;  %v344_v52 = vld [vmem:[%s2615_s1 + $0x20] sm:$0xff] }
  0x2c   : > { %v410_v49 = vld [vmem:[%s2615_s1 + $0x230] sm:$0xff]  ;;  %697 = vmatpush.msra.mxu1 %v380_v46  ;;  %v408_v53 = vld [vmem:[%s2615_s1 + $0x220] sm:$0xff]  ;;  %678 = vmatpush.msra.mxu0 %v346_v48  ;;  %v277_v48 = vadd.f32 %v276_v40, %v261_v34 }
  0x2d   : > { %v378_v50 = vld [vmem:[%s2615_s1 + $0x130] sm:$0xff]  ;;  %737 = vmatpush.msra.mxu3 %v444_v47  ;;  %718 = vmatpush.msra.mxu2 %v410_v49  ;;  %v376_v54 = vld [vmem:[%s2615_s1 + $0x120] sm:$0xff]  ;;  %v289_v49 = vadd.f32 %v288_v41, %v263_v35 }
  0x2e   : > { %v442_v51 = vld [vmem:[%s2615_s1 + $0x330] sm:$0xff]  ;;  %v440_v55 = vld [vmem:[%s2615_s1 + $0x320] sm:$0xff]  ;;  %698 = vmatpush.msra.mxu1 %v378_v50  ;;  %679 = vmatpush.msra.mxu0 %v344_v52 }
  0x2f   : > { %738 = vmatpush.msra.mxu3 %v442_v51  ;;  %v342_v56 = vld [vmem:[%s2615_s1 + $0x10] sm:$0xff]  ;;  %719 = vmatpush.msra.mxu2 %v408_v53  ;;  %v340_v60 = vld [vmem:[%s2615_s1] sm:$0xff] }
  0x30   : > { %v406_v57 = vld [vmem:[%s2615_s1 + $0x210] sm:$0xff]  ;;  %699 = vmatpush.msra.mxu1 %v376_v54  ;;  %v404_v61 = vld [vmem:[%s2615_s1 + $0x200] sm:$0xff]  ;;  %680 = vmatpush.msra.mxu0 %v342_v56 }
  0x31   : > { %v374_v58 = vld [vmem:[%s2615_s1 + $0x110] sm:$0xff]  ;;  %739 = vmatpush.msra.mxu3 %v440_v55  ;;  %720 = vmatpush.msra.mxu2 %v406_v57  ;;  %v372_v0 = vld [vmem:[%s2615_s1 + $0x100] sm:$0xff] }
  0x32   : > { %v438_v59 = vld [vmem:[%s2615_s1 + $0x310] sm:$0xff]  ;;  %700 = vmatpush.msra.mxu1 %v374_v58  ;;  %v436_v1 = vld [vmem:[%s2615_s1 + $0x300] sm:$0xff]  ;;  %681 = vmatpush.msra.mxu0 %v340_v60  ;;  %v278_v58 = vrot.slane %v277_v48, 2 }
  0x33   : > { %v498_v62 = vld [vmem:[%s2615_s1 + $0x4f0] sm:$0xff]  ;;  %740 = vmatpush.msra.mxu3 %v438_v59  ;;  %721 = vmatpush.msra.mxu2 %v404_v61  ;;  %v496_v2 = vld [vmem:[%s2615_s1 + $0x4e0] sm:$0xff]  ;;  %v290_v59 = vrot.slane %v289_v49, 2 }
  0x34   : > { %v562_v63 = vld [vmem:[%s2615_s1 + $0x6f0] sm:$0xff]  ;;  %746 = vmatpush.msrb.mxu0 %v498_v62  ;;  %v560_v4 = vld [vmem:[%s2615_s1 + $0x6e0] sm:$0xff]  ;;  %701 = vmatpush.msra.mxu1 %v372_v0 }
  0x35   : > { %v530_v3 = vld [vmem:[%s2615_s1 + $0x5f0] sm:$0xff]  ;;  %786 = vmatpush.msrb.mxu2 %v562_v63  ;;  %741 = vmatpush.msra.mxu3 %v436_v1  ;;  %v528_v7 = vld [vmem:[%s2615_s1 + $0x5e0] sm:$0xff]  ;;  %v267_v63 = vld [vmem:[%s1708_s19 + $0x38] sm:$0xff] }
  0x36   : > { %v594_v5 = vld [vmem:[%s2615_s1 + $0x7f0] sm:$0xff]  ;;  %747 = vmatpush.msrb.mxu0 %v496_v2  ;;  %766 = vmatpush.msrb.mxu1 %v530_v3  ;;  %v592_v9 = vld [vmem:[%s2615_s1 + $0x7e0] sm:$0xff]  ;;  %v279_v3 = vadd.f32 %v278_v58, %v277_v48  ;;  %v371_v48 = vld [vmem:[%s2615_s1 + $0xf8] sm:$0xff] }
  0x37   : > { %v494_v6 = vld [vmem:[%s2615_s1 + $0x4d0] sm:$0xff]  ;;  %787 = vmatpush.msrb.mxu2 %v560_v4  ;;  %806 = vmatpush.msrb.mxu3 %v594_v5  ;;  %v492_v10 = vld [vmem:[%s2615_s1 + $0x4c0] sm:$0xff]  ;;  %v291_v4 = vadd.f32 %v290_v59, %v289_v49  ;;  %v369_v59 = vld [vmem:[%s2615_s1 + $0xe8] sm:$0xff] }
  0x38   : > { %v558_v8 = vld [vmem:[%s2615_s1 + $0x6d0] sm:$0xff]  ;;  %748 = vmatpush.msrb.mxu0 %v494_v6  ;;  %767 = vmatpush.msrb.mxu1 %v528_v7  ;;  %v556_v12 = vld [vmem:[%s2615_s1 + $0x6c0] sm:$0xff] }
  0x39   : > { %v526_v11 = vld [vmem:[%s2615_s1 + $0x5d0] sm:$0xff]  ;;  %788 = vmatpush.msrb.mxu2 %v558_v8  ;;  %807 = vmatpush.msrb.mxu3 %v592_v9  ;;  %v524_v15 = vld [vmem:[%s2615_s1 + $0x5c0] sm:$0xff] }
  0x3a   : > { %v590_v13 = vld [vmem:[%s2615_s1 + $0x7d0] sm:$0xff]  ;;  %749 = vmatpush.msrb.mxu0 %v492_v10  ;;  %768 = vmatpush.msrb.mxu1 %v526_v11  ;;  %v588_v17 = vld [vmem:[%s2615_s1 + $0x7c0] sm:$0xff]  ;;  %v312_v10 = vrot.slane %v267_v63, 4  ;;  %v265_v11 = vld [vmem:[%s1708_s19 + $0x28] sm:$0xff] }
  0x3b   : > { %v490_v14 = vld [vmem:[%s2615_s1 + $0x4b0] sm:$0xff]  ;;  %789 = vmatpush.msrb.mxu2 %v556_v12  ;;  %808 = vmatpush.msrb.mxu3 %v590_v13  ;;  %v488_v18 = vld [vmem:[%s2615_s1 + $0x4a0] sm:$0xff] }
  0x3c   : > { %v554_v16 = vld [vmem:[%s2615_s1 + $0x6b0] sm:$0xff]  ;;  %750 = vmatpush.msrb.mxu0 %v490_v14  ;;  %769 = vmatpush.msrb.mxu1 %v524_v15  ;;  %v552_v20 = vld [vmem:[%s2615_s1 + $0x6a0] sm:$0xff] }
  0x3d   : > { %v522_v19 = vld [vmem:[%s2615_s1 + $0x5b0] sm:$0xff]  ;;  %790 = vmatpush.msrb.mxu2 %v554_v16  ;;  %809 = vmatpush.msrb.mxu3 %v588_v17  ;;  %v520_v23 = vld [vmem:[%s2615_s1 + $0x5a0] sm:$0xff] }
  0x3e   : > { %v586_v21 = vld [vmem:[%s2615_s1 + $0x7b0] sm:$0xff]  ;;  %751 = vmatpush.msrb.mxu0 %v488_v18  ;;  %770 = vmatpush.msrb.mxu1 %v522_v19  ;;  %v584_v25 = vld [vmem:[%s2615_s1 + $0x7a0] sm:$0xff]  ;;  %v313_v18 = vadd.f32 %v312_v10, %v267_v63  ;;  %v300_v19 = vrot.slane %v265_v11, 4 }
  0x3f   : > { %v486_v22 = vld [vmem:[%s2615_s1 + $0x490] sm:$0xff]  ;;  %v260_v26 = vld [vmem:[%s1708_s19] sm:$0xff]  ;;  %791 = vmatpush.msrb.mxu2 %v552_v20  ;;  %810 = vmatpush.msrb.mxu3 %v586_v21 }
  0x40   : > { %v550_v24 = vld [vmem:[%s2615_s1 + $0x690] sm:$0xff]  ;;  %v484_v28 = vld [vmem:[%s2615_s1 + $0x480] sm:$0xff]  ;;  %v270_v31 = vrot.slane %v260_v26, 4  ;;  %752 = vmatpush.msrb.mxu0 %v486_v22  ;;  %771 = vmatpush.msrb.mxu1 %v520_v23  ;;  %v280_v22 = vrot.slane %v279_v3, 1  ;;  %v292_v23 = vrot.slane %v291_v4, 1 }
  0x41   : > { %v262_v27 = vld [vmem:[%s1708_s19 + $0x10] sm:$0xff]  ;;  %v548_v30 = vld [vmem:[%s2615_s1 + $0x680] sm:$0xff]  ;;  %792 = vmatpush.msrb.mxu2 %v550_v24  ;;  %811 = vmatpush.msrb.mxu3 %v584_v25 }
  0x42   : > { %v518_v29 = vld [vmem:[%s2615_s1 + $0x590] sm:$0xff]  ;;  %v282_v32 = vrot.slane %v262_v27, 4  ;;  %v516_v37 = vld [vmem:[%s2615_s1 + $0x580] sm:$0xff]  ;;  %v271_v38 = vadd.f32 %v270_v31, %v260_v26  ;;  %753 = vmatpush.msrb.mxu0 %v484_v28 }
  0x43   : > { %v582_v33 = vld [vmem:[%s2615_s1 + $0x790] sm:$0xff]  ;;  %772 = vmatpush.msrb.mxu1 %v518_v29  ;;  %v580_v43 = vld [vmem:[%s2615_s1 + $0x780] sm:$0xff]  ;;  %793 = vmatpush.msrb.mxu2 %v548_v30  ;;  %v301_v29 = vadd.f32 %v300_v19, %v265_v11 }
  0x44   : > { %v482_v36 = vld [vmem:[%s2615_s1 + $0x470] sm:$0xff]  ;;  %v283_v39 = vadd.f32 %v282_v32, %v262_v27  ;;  %812 = vmatpush.msrb.mxu3 %v582_v33  ;;  %v480_v44 = vld [vmem:[%s2615_s1 + $0x460] sm:$0xff]  ;;  %v272_v46 = vrot.slane %v271_v38, 2  ;;  %v314_v32 = vrot.slane %v313_v18, 2 }
  0x45   : > { %v546_v42 = vld [vmem:[%s2615_s1 + $0x670] sm:$0xff]  ;;  %754 = vmatpush.msrb.mxu0 %v482_v36  ;;  %773 = vmatpush.msrb.mxu1 %v516_v37  ;;  %v544_v50 = vld [vmem:[%s2615_s1 + $0x660] sm:$0xff]  ;;  %v302_v40 = vrot.slane %v301_v29, 2 }
  0x46   : > { %v514_v45 = vld [vmem:[%s2615_s1 + $0x570] sm:$0xff]  ;;  %v284_v47 = vrot.slane %v283_v39, 2  ;;  %794 = vmatpush.msrb.mxu2 %v546_v42  ;;  %813 = vmatpush.msrb.mxu3 %v580_v43  ;;  %v512_v54 = vld [vmem:[%s2615_s1 + $0x560] sm:$0xff]  ;;  %v273_v56 = vadd.f32 %v272_v46, %v271_v38  ;;  %v281_v38 = vadd.f32 %v280_v22, %v279_v3  ;;  %v315_v46 = vadd.f32 %v314_v32, %v313_v18  ;;  %v397_v18 = vld [vmem:[%s2615_s1 + $0x1c8] sm:$0xff] }
  0x47   : > { %v578_v51 = vld [vmem:[%s2615_s1 + $0x770] sm:$0xff]  ;;  %755 = vmatpush.msrb.mxu0 %v480_v44  ;;  %774 = vmatpush.msrb.mxu1 %v514_v45  ;;  %v576_v60 = vld [vmem:[%s2615_s1 + $0x760] sm:$0xff] }
  0x48   : > { %v266_v52 = vld [vmem:[%s1708_s19 + $0x30] sm:$0xff]  ;;  %v285_v57 = vadd.f32 %v284_v47, %v283_v39  ;;  %v264_v62 = vld [vmem:[%s1708_s19 + $0x20] sm:$0xff]  ;;  %795 = vmatpush.msrb.mxu2 %v544_v50  ;;  %814 = vmatpush.msrb.mxu3 %v578_v51  ;;  %v274_v2 = vrot.slane %v273_v56, 1  ;;  %v293_v39 = vadd.f32 %v292_v23, %v291_v4  ;;  %v316_v58 = vrot.slane %v315_v46, 1  ;;  %v361_v23 = vld [vmem:[%s2615_s1 + $0xa8] sm:$0xff] }
  0x49   : > { %v478_v53 = vld [vmem:[%s2615_s1 + $0x450] sm:$0xff]  ;;  %v306_v61 = vrot.slane %v266_v52, 4  ;;  %v476_v0 = vld [vmem:[%s2615_s1 + $0x440] sm:$0xff]  ;;  %775 = vmatpush.msrb.mxu1 %v512_v54  ;;  %v294_v9 = vrot.slane %v264_v62, 4  ;;  %v303_v54 = vadd.f32 %v302_v40, %v301_v29  ;;  %v359_v29 = vld [vmem:[%s2615_s1 + $0x98] sm:$0xff] }
  0x4a   : > { %v542_v55 = vld [vmem:[%s2615_s1 + $0x650] sm:$0xff]  ;;  %756 = vmatpush.msrb.mxu0 %v478_v53  ;;  %v540_v5 = vld [vmem:[%s2615_s1 + $0x640] sm:$0xff]  ;;  %v286_v7 = vrot.slane %v285_v57, 1  ;;  %815 = vmatpush.msrb.mxu3 %v576_v60  ;;  %v275_v26 = vadd.f32 %v274_v2, %v273_v56  ;;  %v1862_v53 = vmul.f32 0.00390625, %v293_v39  ;;  %v403_v60 = vld [vmem:[%s2615_s1 + $0x1f8] sm:$0xff] }
  0x4b   : > { %v510_v1 = vld [vmem:[%s2615_s1 + $0x550] sm:$0xff]  ;;  %v307_v8 = vadd.f32 %v306_v61, %v266_v52  ;;  %796 = vmatpush.msrb.mxu2 %v542_v55  ;;  %v508_v13 = vld [vmem:[%s2615_s1 + $0x540] sm:$0xff]  ;;  %v295_v17 = vadd.f32 %v294_v9, %v264_v62  ;;  %v1860_v52 = vmul.f32 0.00390625, %v281_v38  ;;  %v401_v2 = vld [vmem:[%s2615_s1 + $0x1e8] sm:$0xff] }
  0x4c   : > { %v574_v6 = vld [vmem:[%s2615_s1 + $0x750] sm:$0xff]  ;;  %757 = vmatpush.msrb.mxu0 %v476_v0  ;;  %776 = vmatpush.msrb.mxu1 %v510_v1  ;;  %v572_v15 = vld [vmem:[%s2615_s1 + $0x740] sm:$0xff]  ;;  %v287_v27 = vadd.f32 %v286_v7, %v285_v57  ;;  %v1844_v43 = vmul.f32 0.00390625, %v275_v26  ;;  %v304_v0 = vrot.slane %v303_v54, 1  ;;  %v367_v1 = vld [vmem:[%s2615_s1 + $0xd8] sm:$0xff] }
  0x4d   : > { %v474_v12 = vld [vmem:[%s2615_s1 + $0x430] sm:$0xff]  ;;  %v308_v16 = vrot.slane %v307_v8, 2  ;;  %797 = vmatpush.msrb.mxu2 %v540_v5  ;;  %816 = vmatpush.msrb.mxu3 %v574_v6  ;;  %v472_v20 = vld [vmem:[%s2615_s1 + $0x420] sm:$0xff]  ;;  %v296_v28 = vrot.slane %v295_v17, 2  ;;  %v317_v6 = vadd.f32 %v316_v58, %v315_v46  ;;  %v399_v9 = vld [vmem:[%s2615_s1 + $0x1d8] sm:$0xff] }
  0x4e   : > { %v538_v14 = vld [vmem:[%s2615_s1 + $0x630] sm:$0xff]  ;;  %758 = vmatpush.msrb.mxu0 %v474_v12  ;;  %777 = vmatpush.msrb.mxu1 %v508_v13  ;;  %v536_v24 = vld [vmem:[%s2615_s1 + $0x620] sm:$0xff]  ;;  %v1846_v44 = vmul.f32 0.00390625, %v287_v27  ;;  %v305_v12 = vadd.f32 %v304_v0, %v303_v54  ;;  %v269_v13 = vld [vmem:[%s1708_s19 + $0x48] sm:$0xff] }
  0x4f   : > { %v506_v21 = vld [vmem:[%s2615_s1 + $0x530] sm:$0xff]  ;;  %798 = vmatpush.msrb.mxu2 %v538_v14  ;;  %817 = vmatpush.msrb.mxu3 %v572_v15  ;;  %v504_v31 = vld [vmem:[%s2615_s1 + $0x520] sm:$0xff]  ;;  %v309_v35 = vadd.f32 %v308_v16, %v307_v8  ;;  %v297_v45 = vadd.f32 %v296_v28, %v295_v17  ;;  %v365_v8 = vld [vmem:[%s2615_s1 + $0xc8] sm:$0xff]  ;;  %v1922_v19 = vmul.f32 0.00390625, %v317_v6 }
  0x50   : > { %v570_v25 = vld [vmem:[%s2615_s1 + $0x730] sm:$0xff]  ;;  %759 = vmatpush.msrb.mxu0 %v472_v20  ;;  %778 = vmatpush.msrb.mxu1 %v506_v21  ;;  %v568_v34 = vld [vmem:[%s2615_s1 + $0x720] sm:$0xff]  ;;  %v363_v15 = vld [vmem:[%s2615_s1 + $0xb8] sm:$0xff]  ;;  %v324_v21 = vrot.slane %v269_v13, 4 }
  0x51   : > { %v470_v30 = vld [vmem:[%s2615_s1 + $0x410] sm:$0xff]  ;;  %799 = vmatpush.msrb.mxu2 %v536_v24  ;;  %818 = vmatpush.msrb.mxu3 %v570_v25  ;;  %v468_v36 = vld [vmem:[%s2615_s1 + $0x400] sm:$0xff]  ;;  %v310_v49 = vrot.slane %v309_v35, 1  ;;  %v298_v55 = vrot.slane %v297_v45, 1  ;;  %v1934_v24 = vmul.f32 0.00390625, %v305_v12  ;;  %v395_v25 = vld [vmem:[%s2615_s1 + $0x1b8] sm:$0xff] }
  0x52   : > { %v534_v33 = vld [vmem:[%s2615_s1 + $0x610] sm:$0xff]  ;;  %760 = vmatpush.msrb.mxu0 %v470_v30  ;;  %779 = vmatpush.msrb.mxu1 %v504_v31  ;;  %v532_v41 = vld [vmem:[%s2615_s1 + $0x600] sm:$0xff]  ;;  %v393_v30 = vld [vmem:[%s2615_s1 + $0x1a8] sm:$0xff]  ;;  %v325_v31 = vadd.f32 %v324_v21, %v269_v13 }
  0x53   : > { %v502_v37 = vld [vmem:[%s2615_s1 + $0x510] sm:$0xff]  ;;  %800 = vmatpush.msrb.mxu2 %v534_v33  ;;  %819 = vmatpush.msrb.mxu3 %v568_v34  ;;  %v500_v50 = vld [vmem:[%s2615_s1 + $0x500] sm:$0xff]  ;;  %v311_v61 = vadd.f32 %v310_v49, %v309_v35  ;;  %v299_v3 = vadd.f32 %v298_v55, %v297_v45  ;;  %v357_v34 = vld [vmem:[%s2615_s1 + $0x88] sm:$0xff] }
  0x54   : > { %v566_v42 = vld [vmem:[%s2615_s1 + $0x710] sm:$0xff]  ;;  %761 = vmatpush.msrb.mxu0 %v468_v36  ;;  %780 = vmatpush.msrb.mxu1 %v502_v37  ;;  %v564_v51 = vld [vmem:[%s2615_s1 + $0x700] sm:$0xff]  ;;  %v391_v35 = vld [vmem:[%s2615_s1 + $0x198] sm:$0xff] }
  0x55   : > { %v626_v47 = vld [vmem:[%s2615_s1 + $0x8f0] sm:$0xff]  ;;  %801 = vmatpush.msrb.mxu2 %v532_v41  ;;  %820 = vmatpush.msrb.mxu3 %v566_v42  ;;  %v624_v56 = vld [vmem:[%s2615_s1 + $0x8e0] sm:$0xff]  ;;  %v1905_v10 = vmul.f32 0.00390625, %v311_v61  ;;  %v1917_v16 = vmul.f32 0.00390625, %v299_v3  ;;  %v355_v39 = vld [vmem:[%s2615_s1 + $0x78] sm:$0xff]  ;;  %v326_v41 = vrot.slane %v325_v31, 2 }
  0x56   : > { %682 = vmatmul.f32.vlgmr.msra.gmra.mxu0 %v1844_v43  ;;  %722 = vmatmul.f32.vlgmr.msra.gmra.mxu2 %v1846_v44  ;;  %v658_v57 = vld [vmem:[%s2615_s1 + $0x9f0] sm:$0xff]  ;;  %v656_v63 = vld [vmem:[%s2615_s1 + $0x9e0] sm:$0xff]  ;;  %v389_v40 = vld [vmem:[%s2615_s1 + $0x188] sm:$0xff] }
  0x57   : > { %826 = vmatpush.msra.mxu0 %v626_v47  ;;  %866 = vmatpush.msra.mxu2 %v371_v48  ;;  %v622_v62 = vld [vmem:[%s2615_s1 + $0x8d0] sm:$0xff]  ;;  %v620_v4 = vld [vmem:[%s2615_s1 + $0x8c0] sm:$0xff]  ;;  %v353_v46 = vld [vmem:[%s2615_s1 + $0x68] sm:$0xff]  ;;  %v327_v55 = vadd.f32 %v326_v41, %v325_v31 }
  0x58   : > { %781 = vmatpush.msrb.mxu1 %v500_v50  ;;  %821 = vmatpush.msrb.mxu3 %v564_v51  ;;  %v654_v5 = vld [vmem:[%s2615_s1 + $0x9d0] sm:$0xff]  ;;  %v268_v7 = vld [vmem:[%s1708_s19 + $0x40] sm:$0xff]  ;;  %v387_v47 = vld [vmem:[%s2615_s1 + $0x178] sm:$0xff] }
  0x59   : > { %702 = vmatmul.f32.vlgmr.msra.gmra.mxu1 %v1860_v52  ;;  %742 = vmatmul.f32.vlgmr.msra.gmra.mxu3 %v1862_v53  ;;  %v618_v11 = vld [vmem:[%s2615_s1 + $0x8b0] sm:$0xff]  ;;  %v652_v14 = vld [vmem:[%s2615_s1 + $0x9c0] sm:$0xff]  ;;  %v318_v17 = vrot.slane %v268_v7, 4  ;;  %v351_v51 = vld [vmem:[%s2615_s1 + $0x58] sm:$0xff] }
  0x5a   : > { %827 = vmatpush.msra.mxu0 %v624_v56  ;;  %846 = vmatpush.msra.mxu1 %v658_v57  ;;  %v616_v20 = vld [vmem:[%s2615_s1 + $0x8a0] sm:$0xff]  ;;  %v650_v22 = vld [vmem:[%s2615_s1 + $0x9b0] sm:$0xff]  ;;  %v385_v54 = vld [vmem:[%s2615_s1 + $0x168] sm:$0xff] }
  0x5b   : > { %867 = vmatpush.msra.mxu2 %v369_v59  ;;  %886 = vmatpush.msra.mxu3 %v403_v60  ;;  %v319_v26 = vadd.f32 %v318_v17, %v268_v7  ;;  %v614_v27 = vld [vmem:[%s2615_s1 + $0x890] sm:$0xff]  ;;  %v648_v28 = vld [vmem:[%s2615_s1 + $0x9a0] sm:$0xff]  ;;  %v349_v58 = vld [vmem:[%s2615_s1 + $0x48] sm:$0xff] }
  0x5c   : > { %828 = vmatpush.msra.mxu0 %v622_v62  ;;  %847 = vmatpush.msra.mxu1 %v656_v63  ;;  %v612_v32 = vld [vmem:[%s2615_s1 + $0x880] sm:$0xff]  ;;  %v646_v33 = vld [vmem:[%s2615_s1 + $0x990] sm:$0xff]  ;;  %v383_v59 = vld [vmem:[%s2615_s1 + $0x158] sm:$0xff] }
  0x5d   : > { %868 = vmatpush.msra.mxu2 %v367_v1  ;;  %887 = vmatpush.msra.mxu3 %v401_v2  ;;  %v320_v36 = vrot.slane %v319_v26, 2  ;;  %v610_v37 = vld [vmem:[%s2615_s1 + $0x870] sm:$0xff]  ;;  %v644_v38 = vld [vmem:[%s2615_s1 + $0x980] sm:$0xff]  ;;  %v347_v63 = vld [vmem:[%s2615_s1 + $0x38] sm:$0xff]  ;;  %v328_v1 = vrot.slane %v327_v55, 1 }
  0x5e   : > { %829 = vmatpush.msra.mxu0 %v620_v4  ;;  %848 = vmatpush.msra.mxu1 %v654_v5  ;;  %v608_v42 = vld [vmem:[%s2615_s1 + $0x860] sm:$0xff]  ;;  %v642_v45 = vld [vmem:[%s2615_s1 + $0x970] sm:$0xff]  ;;  %v381_v0 = vld [vmem:[%s2615_s1 + $0x148] sm:$0xff] }
  0x5f   : > { %869 = vmatpush.msra.mxu2 %v365_v8  ;;  %888 = vmatpush.msra.mxu3 %v399_v9  ;;  %v321_v48 = vadd.f32 %v320_v36, %v319_v26  ;;  %v606_v49 = vld [vmem:[%s2615_s1 + $0x850] sm:$0xff]  ;;  %v640_v50 = vld [vmem:[%s2615_s1 + $0x960] sm:$0xff]  ;;  %v345_v4 = vld [vmem:[%s2615_s1 + $0x28] sm:$0xff]  ;;  %v329_v12 = vadd.f32 %v328_v1, %v327_v55 }
  0x60   : > { %802 = vmatmul.f32.vlgmr.msrb.gmra.mxu2 %v1905_v10  ;;  %830 = vmatpush.msra.mxu0 %v618_v11  ;;  %v604_v56 = vld [vmem:[%s2615_s1 + $0x840] sm:$0xff]  ;;  %v638_v57 = vld [vmem:[%s2615_s1 + $0x950] sm:$0xff]  ;;  %v379_v5 = vld [vmem:[%s2615_s1 + $0x138] sm:$0xff] }
  0x61   : > { %849 = vmatpush.msra.mxu1 %v652_v14  ;;  %870 = vmatpush.msra.mxu2 %v363_v15  ;;  %v322_v60 = vrot.slane %v321_v48, 1  ;;  %v602_v61 = vld [vmem:[%s2615_s1 + $0x830] sm:$0xff]  ;;  %v636_v62 = vld [vmem:[%s2615_s1 + $0x940] sm:$0xff]  ;;  %v343_v9 = vld [vmem:[%s2615_s1 + $0x18] sm:$0xff] }
  0x62   : > { %889 = vmatpush.msra.mxu3 %v397_v18  ;;  %762 = vmatmul.f32.vlgmr.msrb.gmra.mxu0 %v1917_v16  ;;  %v600_v2 = vld [vmem:[%s2615_s1 + $0x820] sm:$0xff]  ;;  %v634_v3 = vld [vmem:[%s2615_s1 + $0x930] sm:$0xff]  ;;  %v377_v11 = vld [vmem:[%s2615_s1 + $0x128] sm:$0xff] }
  0x63   : > { %822 = vmatmul.f32.vlgmr.msrb.gmra.mxu3 %v1922_v19  ;;  %831 = vmatpush.msra.mxu0 %v616_v20  ;;  %v323_v6 = vadd.f32 %v322_v60, %v321_v48  ;;  %v598_v7 = vld [vmem:[%s2615_s1 + $0x810] sm:$0xff]  ;;  %v632_v8 = vld [vmem:[%s2615_s1 + $0x920] sm:$0xff]  ;;  %v341_v15 = vld [vmem:[%s2615_s1 + $0x8] sm:$0xff] }
  0x64   : > { %850 = vmatpush.msra.mxu1 %v650_v22  ;;  %871 = vmatpush.msra.mxu2 %v361_v23  ;;  %v596_v13 = vld [vmem:[%s2615_s1 + $0x800] sm:$0xff]  ;;  %v630_v14 = vld [vmem:[%s2615_s1 + $0x910] sm:$0xff]  ;;  %v375_v17 = vld [vmem:[%s2615_s1 + $0x118] sm:$0xff]  ;;  %v2073_v23 = vmul.f32 0.00390625, %v329_v12 }
  0x65   : > { %890 = vmatpush.msra.mxu3 %v395_v25  ;;  %782 = vmatmul.f32.vlgmr.msrb.gmra.mxu1 %v1934_v24  ;;  %v2062_v18 = vmul.f32 0.00390625, %v323_v6  ;;  %v499_v20 = vld [vmem:[%s2615_s1 + $0x4f8] sm:$0xff]  ;;  %v628_v22 = vld [vmem:[%s2615_s1 + $0x900] sm:$0xff]  ;;  %v373_v25 = vld [vmem:[%s2615_s1 + $0x108] sm:$0xff] }
  0x66   : > { %832 = vmatpush.msra.mxu0 %v614_v27  ;;  %851 = vmatpush.msra.mxu1 %v648_v28  ;;  %v435_v21 = vld [vmem:[%s2615_s1 + $0x2f8] sm:$0xff]  ;;  %v433_v26 = vld [vmem:[%s2615_s1 + $0x2e8] sm:$0xff] }
  0x67   : > { %872 = vmatpush.msra.mxu2 %v359_v29  ;;  %891 = vmatpush.msra.mxu3 %v393_v30  ;;  %v467_v27 = vld [vmem:[%s2615_s1 + $0x3f8] sm:$0xff]  ;;  %v497_v28 = vld [vmem:[%s2615_s1 + $0x4e8] sm:$0xff] }
  0x68   : > { %833 = vmatpush.msra.mxu0 %v612_v32  ;;  %852 = vmatpush.msra.mxu1 %v646_v33  ;;  %v531_v29 = vld [vmem:[%s2615_s1 + $0x5f8] sm:$0xff]  ;;  %v465_v31 = vld [vmem:[%s2615_s1 + $0x3e8] sm:$0xff] }
  0x69   : > { %873 = vmatpush.msra.mxu2 %v357_v34  ;;  %892 = vmatpush.msra.mxu3 %v391_v35  ;;  %v431_v30 = vld [vmem:[%s2615_s1 + $0x2d8] sm:$0xff]  ;;  %v529_v33 = vld [vmem:[%s2615_s1 + $0x5e8] sm:$0xff] }
  0x6a   : > { %834 = vmatpush.msra.mxu0 %v610_v37  ;;  %853 = vmatpush.msra.mxu1 %v644_v38  ;;  %v495_v32 = vld [vmem:[%s2615_s1 + $0x4d8] sm:$0xff]  ;;  %v429_v34 = vld [vmem:[%s2615_s1 + $0x2c8] sm:$0xff] }
  0x6b   : > { %874 = vmatpush.msra.mxu2 %v355_v39  ;;  %893 = vmatpush.msra.mxu3 %v389_v40  ;;  %v463_v35 = vld [vmem:[%s2615_s1 + $0x3d8] sm:$0xff]  ;;  %v493_v36 = vld [vmem:[%s2615_s1 + $0x4c8] sm:$0xff] }
  0x6c   : > { %835 = vmatpush.msra.mxu0 %v608_v42  ;;  %854 = vmatpush.msra.mxu1 %v642_v45  ;;  %v527_v37 = vld [vmem:[%s2615_s1 + $0x5d8] sm:$0xff]  ;;  %v461_v39 = vld [vmem:[%s2615_s1 + $0x3c8] sm:$0xff] }
  0x6d   : > { %875 = vmatpush.msra.mxu2 %v353_v46  ;;  %894 = vmatpush.msra.mxu3 %v387_v47  ;;  %v427_v38 = vld [vmem:[%s2615_s1 + $0x2b8] sm:$0xff]  ;;  %v525_v41 = vld [vmem:[%s2615_s1 + $0x5c8] sm:$0xff] }
  0x6e   : > { %836 = vmatpush.msra.mxu0 %v606_v49  ;;  %855 = vmatpush.msra.mxu1 %v640_v50  ;;  %v491_v40 = vld [vmem:[%s2615_s1 + $0x4b8] sm:$0xff]  ;;  %v425_v42 = vld [vmem:[%s2615_s1 + $0x2a8] sm:$0xff] }
  0x6f   : > { %876 = vmatpush.msra.mxu2 %v351_v51  ;;  %895 = vmatpush.msra.mxu3 %v385_v54  ;;  %v459_v45 = vld [vmem:[%s2615_s1 + $0x3b8] sm:$0xff]  ;;  %v489_v46 = vld [vmem:[%s2615_s1 + $0x4a8] sm:$0xff] }
  0x70   : > { %837 = vmatpush.msra.mxu0 %v604_v56  ;;  %856 = vmatpush.msra.mxu1 %v638_v57  ;;  %v523_v47 = vld [vmem:[%s2615_s1 + $0x5b8] sm:$0xff]  ;;  %v457_v49 = vld [vmem:[%s2615_s1 + $0x3a8] sm:$0xff] }
  0x71   : > { %877 = vmatpush.msra.mxu2 %v349_v58  ;;  %896 = vmatpush.msra.mxu3 %v383_v59  ;;  %v423_v48 = vld [vmem:[%s2615_s1 + $0x298] sm:$0xff]  ;;  %v521_v51 = vld [vmem:[%s2615_s1 + $0x5a8] sm:$0xff] }
  0x72   : > { %838 = vmatpush.msra.mxu0 %v602_v61  ;;  %857 = vmatpush.msra.mxu1 %v636_v62  ;;  %v487_v50 = vld [vmem:[%s2615_s1 + $0x498] sm:$0xff]  ;;  %v421_v54 = vld [vmem:[%s2615_s1 + $0x288] sm:$0xff] }
  0x73   : > { %878 = vmatpush.msra.mxu2 %v347_v63  ;;  %897 = vmatpush.msra.mxu3 %v381_v0  ;;  %v455_v55 = vld [vmem:[%s2615_s1 + $0x398] sm:$0xff]  ;;  %v485_v56 = vld [vmem:[%s2615_s1 + $0x488] sm:$0xff] }
  0x74   : > { %839 = vmatpush.msra.mxu0 %v600_v2  ;;  %858 = vmatpush.msra.mxu1 %v634_v3  ;;  %v519_v57 = vld [vmem:[%s2615_s1 + $0x598] sm:$0xff]  ;;  %v453_v59 = vld [vmem:[%s2615_s1 + $0x388] sm:$0xff] }
  0x75   : > { %879 = vmatpush.msra.mxu2 %v345_v4  ;;  %898 = vmatpush.msra.mxu3 %v379_v5  ;;  %v419_v58 = vld [vmem:[%s2615_s1 + $0x278] sm:$0xff]  ;;  %v517_v61 = vld [vmem:[%s2615_s1 + $0x588] sm:$0xff] }
  0x76   : > { %840 = vmatpush.msra.mxu0 %v598_v7  ;;  %859 = vmatpush.msra.mxu1 %v632_v8  ;;  %v483_v60 = vld [vmem:[%s2615_s1 + $0x478] sm:$0xff]  ;;  %v417_v62 = vld [vmem:[%s2615_s1 + $0x268] sm:$0xff] }
  0x77   : > { %880 = vmatpush.msra.mxu2 %v343_v9  ;;  %899 = vmatpush.msra.mxu3 %v377_v11  ;;  %v451_v63 = vld [vmem:[%s2615_s1 + $0x378] sm:$0xff]  ;;  %v481_v0 = vld [vmem:[%s2615_s1 + $0x468] sm:$0xff] }
  0x78   : > { %841 = vmatpush.msra.mxu0 %v596_v13  ;;  %860 = vmatpush.msra.mxu1 %v630_v14  ;;  %v515_v1 = vld [vmem:[%s2615_s1 + $0x578] sm:$0xff]  ;;  %v449_v3 = vld [vmem:[%s2615_s1 + $0x368] sm:$0xff] }
  0x79   : > { %881 = vmatpush.msra.mxu2 %v341_v15  ;;  %900 = vmatpush.msra.mxu3 %v375_v17  ;;  %v415_v2 = vld [vmem:[%s2615_s1 + $0x258] sm:$0xff]  ;;  %v513_v5 = vld [vmem:[%s2615_s1 + $0x568] sm:$0xff] }
  0x7a   : > { %842 = vmatmul.f32.vlgmr.msra.gmra.mxu0 %v2062_v18  ;;  %861 = vmatpush.msra.mxu1 %v628_v22  ;;  %v479_v4 = vld [vmem:[%s2615_s1 + $0x458] sm:$0xff]  ;;  %v413_v6 = vld [vmem:[%s2615_s1 + $0x248] sm:$0xff] }
  0x7b   : > { %946 = vmatpush.msrb.mxu2 %v499_v20  ;;  %906 = vmatpush.msrb.mxu0 %v435_v21  ;;  %v447_v7 = vld [vmem:[%s2615_s1 + $0x358] sm:$0xff]  ;;  %v477_v8 = vld [vmem:[%s2615_s1 + $0x448] sm:$0xff] }
  0x7c   : > { %901 = vmatpush.msra.mxu3 %v373_v25  ;;  %862 = vmatmul.f32.vlgmr.msra.gmra.mxu1 %v2073_v23  ;;  %v511_v9 = vld [vmem:[%s2615_s1 + $0x558] sm:$0xff]  ;;  %v445_v12 = vld [vmem:[%s2615_s1 + $0x348] sm:$0xff] }
  0x7d   : > { %907 = vmatpush.msrb.mxu0 %v433_v26  ;;  %926 = vmatpush.msrb.mxu1 %v467_v27  ;;  %v411_v11 = vld [vmem:[%s2615_s1 + $0x238] sm:$0xff]  ;;  %v509_v14 = vld [vmem:[%s2615_s1 + $0x548] sm:$0xff] }
  0x7e   : > { %947 = vmatpush.msrb.mxu2 %v497_v28  ;;  %966 = vmatpush.msrb.mxu3 %v531_v29  ;;  %v475_v13 = vld [vmem:[%s2615_s1 + $0x438] sm:$0xff]  ;;  %v409_v15 = vld [vmem:[%s2615_s1 + $0x228] sm:$0xff] }
  0x7f   : > { %908 = vmatpush.msrb.mxu0 %v431_v30  ;;  %927 = vmatpush.msrb.mxu1 %v465_v31  ;;  %v443_v17 = vld [vmem:[%s2615_s1 + $0x338] sm:$0xff]  ;;  %v473_v20 = vld [vmem:[%s2615_s1 + $0x428] sm:$0xff] }
  0x80   : > { %948 = vmatpush.msrb.mxu2 %v495_v32  ;;  %967 = vmatpush.msrb.mxu3 %v529_v33  ;;  %v507_v21 = vld [vmem:[%s2615_s1 + $0x538] sm:$0xff]  ;;  %v441_v25 = vld [vmem:[%s2615_s1 + $0x328] sm:$0xff] }
  0x81   : > { %909 = vmatpush.msrb.mxu0 %v429_v34  ;;  %928 = vmatpush.msrb.mxu1 %v463_v35  ;;  %v407_v22 = vld [vmem:[%s2615_s1 + $0x218] sm:$0xff]  ;;  %v505_v27 = vld [vmem:[%s2615_s1 + $0x528] sm:$0xff] }
  0x82   : > { %949 = vmatpush.msrb.mxu2 %v493_v36  ;;  %968 = vmatpush.msrb.mxu3 %v527_v37  ;;  %v471_v26 = vld [vmem:[%s2615_s1 + $0x418] sm:$0xff]  ;;  %v405_v28 = vld [vmem:[%s2615_s1 + $0x208] sm:$0xff] }
  0x83   : > { %910 = vmatpush.msrb.mxu0 %v427_v38  ;;  %929 = vmatpush.msrb.mxu1 %v461_v39  ;;  %v439_v29 = vld [vmem:[%s2615_s1 + $0x318] sm:$0xff]  ;;  %v469_v30 = vld [vmem:[%s2615_s1 + $0x408] sm:$0xff] }
  0x84   : > { %950 = vmatpush.msrb.mxu2 %v491_v40  ;;  %969 = vmatpush.msrb.mxu3 %v525_v41  ;;  %v503_v31 = vld [vmem:[%s2615_s1 + $0x518] sm:$0xff]  ;;  %v437_v34 = vld [vmem:[%s2615_s1 + $0x308] sm:$0xff] }
  0x85   : > { %911 = vmatpush.msrb.mxu0 %v425_v42  ;;  %930 = vmatpush.msrb.mxu1 %v459_v45  ;;  %v563_v32 = vld [vmem:[%s2615_s1 + $0x6f8] sm:$0xff]  ;;  %v501_v35 = vld [vmem:[%s2615_s1 + $0x508] sm:$0xff] }
  0x86   : > { %951 = vmatpush.msrb.mxu2 %v489_v46  ;;  %970 = vmatpush.msrb.mxu3 %v523_v47  ;;  %v627_v33 = vld [vmem:[%s2615_s1 + $0x8f8] sm:$0xff]  ;;  %v561_v36 = vld [vmem:[%s2615_s1 + $0x6e8] sm:$0xff] }
  0x87   : > { %912 = vmatpush.msrb.mxu0 %v423_v48  ;;  %931 = vmatpush.msrb.mxu1 %v457_v49  ;;  %v595_v37 = vld [vmem:[%s2615_s1 + $0x7f8] sm:$0xff]  ;;  %v625_v38 = vld [vmem:[%s2615_s1 + $0x8e8] sm:$0xff] }
  0x88   : > { %952 = vmatpush.msrb.mxu2 %v487_v50  ;;  %971 = vmatpush.msrb.mxu3 %v521_v51  ;;  %v659_v39 = vld [vmem:[%s2615_s1 + $0x9f8] sm:$0xff]  ;;  %v593_v40 = vld [vmem:[%s2615_s1 + $0x7e8] sm:$0xff] }
  0x89   : > { %913 = vmatpush.msrb.mxu0 %v421_v54  ;;  %932 = vmatpush.msrb.mxu1 %v455_v55  ;;  %v623_v41 = vld [vmem:[%s2615_s1 + $0x8d8] sm:$0xff]  ;;  %v657_v42 = vld [vmem:[%s2615_s1 + $0x9e8] sm:$0xff] }
  0x8a   : > { %953 = vmatpush.msrb.mxu2 %v485_v56  ;;  %972 = vmatpush.msrb.mxu3 %v519_v57  ;;  %v557_v45 = vld [vmem:[%s2615_s1 + $0x6c8] sm:$0xff]  ;;  %v591_v46 = vld [vmem:[%s2615_s1 + $0x7d8] sm:$0xff] }
  0x8b   : > { %914 = vmatpush.msrb.mxu0 %v419_v58  ;;  %933 = vmatpush.msrb.mxu1 %v453_v59  ;;  %v655_v47 = vld [vmem:[%s2615_s1 + $0x9d8] sm:$0xff]  ;;  %v589_v49 = vld [vmem:[%s2615_s1 + $0x7c8] sm:$0xff] }
  0x8c   : > { %954 = vmatpush.msrb.mxu2 %v483_v60  ;;  %973 = vmatpush.msrb.mxu3 %v517_v61  ;;  %v555_v48 = vld [vmem:[%s2615_s1 + $0x6b8] sm:$0xff]  ;;  %v653_v51 = vld [vmem:[%s2615_s1 + $0x9c8] sm:$0xff] }
  0x8d   : > { %915 = vmatpush.msrb.mxu0 %v417_v62  ;;  %934 = vmatpush.msrb.mxu1 %v451_v63  ;;  %v619_v50 = vld [vmem:[%s2615_s1 + $0x8b8] sm:$0xff]  ;;  %v553_v54 = vld [vmem:[%s2615_s1 + $0x6a8] sm:$0xff] }
  0x8e   : > { %955 = vmatpush.msrb.mxu2 %v481_v0  ;;  %974 = vmatpush.msrb.mxu3 %v515_v1  ;;  %v587_v55 = vld [vmem:[%s2615_s1 + $0x7b8] sm:$0xff]  ;;  %v617_v56 = vld [vmem:[%s2615_s1 + $0x8a8] sm:$0xff] }
  0x8f   : > { %916 = vmatpush.msrb.mxu0 %v415_v2  ;;  %935 = vmatpush.msrb.mxu1 %v449_v3  ;;  %v551_v57 = vld [vmem:[%s2615_s1 + $0x698] sm:$0xff]  ;;  %v585_v58 = vld [vmem:[%s2615_s1 + $0x7a8] sm:$0xff] }
  0x90   : > { %956 = vmatpush.msrb.mxu2 %v479_v4  ;;  %975 = vmatpush.msrb.mxu3 %v513_v5  ;;  %v649_v59 = vld [vmem:[%s2615_s1 + $0x9a8] sm:$0xff]  ;;  %v583_v60 = vld [vmem:[%s2615_s1 + $0x798] sm:$0xff] }
  0x91   : > { %917 = vmatpush.msrb.mxu0 %v413_v6  ;;  %936 = vmatpush.msrb.mxu1 %v447_v7  ;;  %v613_v61 = vld [vmem:[%s2615_s1 + $0x888] sm:$0xff]  ;;  %v647_v62 = vld [vmem:[%s2615_s1 + $0x998] sm:$0xff] }
  0x92   : > { %957 = vmatpush.msrb.mxu2 %v477_v8  ;;  %976 = vmatpush.msrb.mxu3 %v511_v9  ;;  %v581_v63 = vld [vmem:[%s2615_s1 + $0x788] sm:$0xff]  ;;  %v611_v0 = vld [vmem:[%s2615_s1 + $0x878] sm:$0xff] }
  0x93   : > { %918 = vmatpush.msrb.mxu0 %v411_v11  ;;  %937 = vmatpush.msrb.mxu1 %v445_v12  ;;  %v645_v1 = vld [vmem:[%s2615_s1 + $0x988] sm:$0xff]  ;;  %v579_v3 = vld [vmem:[%s2615_s1 + $0x778] sm:$0xff] }
  0x94   : > { %958 = vmatpush.msrb.mxu2 %v475_v13  ;;  %977 = vmatpush.msrb.mxu3 %v509_v14  ;;  %v545_v2 = vld [vmem:[%s2615_s1 + $0x668] sm:$0xff]  ;;  %v643_v5 = vld [vmem:[%s2615_s1 + $0x978] sm:$0xff] }
  0x95   : > { %919 = vmatpush.msrb.mxu0 %v409_v15  ;;  %938 = vmatpush.msrb.mxu1 %v443_v17  ;;  %v609_v4 = vld [vmem:[%s2615_s1 + $0x868] sm:$0xff]  ;;  %v543_v6 = vld [vmem:[%s2615_s1 + $0x658] sm:$0xff] }
  0x96   : > { %959 = vmatpush.msrb.mxu2 %v473_v20  ;;  %978 = vmatpush.msrb.mxu3 %v507_v21  ;;  %v577_v7 = vld [vmem:[%s2615_s1 + $0x768] sm:$0xff]  ;;  %v607_v8 = vld [vmem:[%s2615_s1 + $0x858] sm:$0xff] }
  0x97   : > { %920 = vmatpush.msrb.mxu0 %v407_v22  ;;  %939 = vmatpush.msrb.mxu1 %v441_v25  ;;  %v641_v9 = vld [vmem:[%s2615_s1 + $0x968] sm:$0xff]  ;;  %v575_v12 = vld [vmem:[%s2615_s1 + $0x758] sm:$0xff] }
  0x98   : > { %960 = vmatpush.msrb.mxu2 %v471_v26  ;;  %979 = vmatpush.msrb.mxu3 %v505_v27  ;;  %v541_v11 = vld [vmem:[%s2615_s1 + $0x648] sm:$0xff]  ;;  %v639_v14 = vld [vmem:[%s2615_s1 + $0x958] sm:$0xff] }
  0x99   : > { %921 = vmatpush.msrb.mxu0 %v405_v28  ;;  %940 = vmatpush.msrb.mxu1 %v439_v29  ;;  %v605_v13 = vld [vmem:[%s2615_s1 + $0x848] sm:$0xff]  ;;  %v539_v15 = vld [vmem:[%s2615_s1 + $0x638] sm:$0xff] }
  0x9a   : > { %961 = vmatpush.msrb.mxu2 %v469_v30  ;;  %980 = vmatpush.msrb.mxu3 %v503_v31  ;;  %v573_v17 = vld [vmem:[%s2615_s1 + $0x748] sm:$0xff]  ;;  %v603_v20 = vld [vmem:[%s2615_s1 + $0x838] sm:$0xff] }
  0x9b   : > { %882 = vmatmul.f32.vlgmr.msra.gmra.mxu2 %v1844_v43  ;;  %986 = vmatpush.msra.mxu0 %v563_v32  ;;  %v559_v43 = vld [vmem:[%s2615_s1 + $0x6d8] sm:$0xff]  ;;  %v637_v21 = vld [vmem:[%s2615_s1 + $0x948] sm:$0xff] }
  0x9c   : > { %1026 = vmatpush.msra.mxu2 %v627_v33  ;;  %941 = vmatpush.msrb.mxu1 %v437_v34  ;;  %v537_v22 = vld [vmem:[%s2615_s1 + $0x628] sm:$0xff]  ;;  %v571_v25 = vld [vmem:[%s2615_s1 + $0x738] sm:$0xff] }
  0x9d   : > { %981 = vmatpush.msrb.mxu3 %v501_v35  ;;  %987 = vmatpush.msra.mxu0 %v561_v36  ;;  %v601_v26 = vld [vmem:[%s2615_s1 + $0x828] sm:$0xff]  ;;  %v635_v27 = vld [vmem:[%s2615_s1 + $0x938] sm:$0xff] }
  0x9e   : > { %902 = vmatmul.f32.vlgmr.msra.gmra.mxu3 %v1860_v52  ;;  %1006 = vmatpush.msra.mxu1 %v595_v37  ;;  %v621_v52 = vld [vmem:[%s2615_s1 + $0x8c8] sm:$0xff]  ;;  %v535_v28 = vld [vmem:[%s2615_s1 + $0x618] sm:$0xff] }
  0x9f   : > { %1027 = vmatpush.msra.mxu2 %v625_v38  ;;  %1046 = vmatpush.msra.mxu3 %v659_v39  ;;  %v569_v29 = vld [vmem:[%s2615_s1 + $0x728] sm:$0xff]  ;;  %v599_v30 = vld [vmem:[%s2615_s1 + $0x818] sm:$0xff]  ;;  %v1091_v39 = vld [vmem:[%s2617_s3 + $0x70] sm:$0xff] }
  0xa0   : > { %988 = vmatpush.msra.mxu0 %v559_v43  ;;  %1007 = vmatpush.msra.mxu1 %v593_v40  ;;  %v633_v31 = vld [vmem:[%s2615_s1 + $0x928] sm:$0xff]  ;;  %v567_v33 = vld [vmem:[%s2615_s1 + $0x718] sm:$0xff]  ;;  %v1085_v40 = vld [vmem:[%s2617_s3 + $0x40] sm:$0xff] }
  0xa1   : > { %1028 = vmatpush.msra.mxu2 %v623_v41  ;;  %1047 = vmatpush.msra.mxu3 %v657_v42  ;;  %v533_v32 = vld [vmem:[%s2615_s1 + $0x608] sm:$0xff]  ;;  %v631_v35 = vld [vmem:[%s2615_s1 + $0x918] sm:$0xff]  ;;  %v1083_v42 = vld [vmem:[%s2617_s3 + $0x30] sm:$0xff] }
  0xa2   : > { %989 = vmatpush.msra.mxu0 %v557_v45  ;;  %1008 = vmatpush.msra.mxu1 %v591_v46  ;;  %v597_v34 = vld [vmem:[%s2615_s1 + $0x808] sm:$0xff]  ;;  %v1092_v38 = vld [vmem:[%s2617_s3 + $0x78] sm:$0xff]  ;;  %v2504_v46 = vld [vmem:[%s2616_s2] sm:$0x3] }
  0xa3   : > { %1029 = vmatpush.msra.mxu2 %v621_v52  ;;  %1048 = vmatpush.msra.mxu3 %v655_v47  ;;  %v565_v36 = vld [vmem:[%s2615_s1 + $0x708] sm:$0xff]  ;;  %v1084_v41 = vld [vmem:[%s2617_s3 + $0x38] sm:$0xff]  ;;  %v1081_v52 = vld [vmem:[%s2617_s3 + $0x20] sm:$0xff]  ;;  %v662_v47 = vperm.slane %v2504_v46, 0 }
  0xa4   : > { %962 = vmatmul.f32.vlgmr.msrb.gmra.mxu2 %v1917_v16  ;;  %990 = vmatpush.msra.mxu0 %v555_v48  ;;  %v651_v16 = vld [vmem:[%s2615_s1 + $0x9b8] sm:$0xff]  ;;  %v629_v37 = vld [vmem:[%s2615_s1 + $0x908] sm:$0xff] }
  0xa5   : > { %1009 = vmatpush.msra.mxu1 %v589_v49  ;;  %1030 = vmatpush.msra.mxu2 %v619_v50  ;;  %v1086_v43 = vld [vmem:[%s2617_s3 + $0x48] sm:$0xff]  ;;  %v1080_v48 = vld [vmem:[%s2617_s3 + $0x18] sm:$0xff]  ;;  %v1079_v50 = vld [vmem:[%s2617_s3 + $0x10] sm:$0xff] }
  0xa6   : > { %1049 = vmatpush.msra.mxu3 %v653_v51  ;;  %922 = vmatmul.f32.vlgmr.msrb.gmra.mxu0 %v1846_v44  ;;  %v615_v44 = vld [vmem:[%s2615_s1 + $0x898] sm:$0xff]  ;;  %v1082_v45 = vld [vmem:[%s2617_s3 + $0x28] sm:$0xff] }
  0xa7   : > { %982 = vmatmul.f32.vlgmr.msrb.gmra.mxu3 %v1934_v24  ;;  %991 = vmatpush.msra.mxu0 %v553_v54  ;;  %v549_v24 = vld [vmem:[%s2615_s1 + $0x688] sm:$0xff] }
  0xa8   : > { %1010 = vmatpush.msra.mxu1 %v587_v55  ;;  %1031 = vmatpush.msra.mxu2 %v617_v56  ;;  %v1078_v54 = vld [vmem:[%s2617_s3 + $0x8] sm:$0xff]  ;;  %v1077_v56 = vld [vmem:[%s2617_s3] sm:$0xff] }
  0xa9   : > { %1050 = vmatpush.msra.mxu3 %v651_v16  ;;  %942 = vmatmul.f32.vlgmr.msrb.gmra.mxu1 %v1862_v53  ;;  %v547_v53 = vld [vmem:[%s2615_s1 + $0x678] sm:$0xff] }
  0xaa   : > { %992 = vmatpush.msra.mxu0 %v551_v57  ;;  %1011 = vmatpush.msra.mxu1 %v585_v58 }
  0xab   : > { %1032 = vmatpush.msra.mxu2 %v615_v44  ;;  %1051 = vmatpush.msra.mxu3 %v649_v59 }
  0xac   : > { %993 = vmatpush.msra.mxu0 %v549_v24  ;;  %1012 = vmatpush.msra.mxu1 %v583_v60 }
  0xad   : > { %1033 = vmatpush.msra.mxu2 %v613_v61  ;;  %1052 = vmatpush.msra.mxu3 %v647_v62 }
  0xae   : > { %994 = vmatpush.msra.mxu0 %v547_v53  ;;  %1013 = vmatpush.msra.mxu1 %v581_v63 }
  0xaf   : > { %1034 = vmatpush.msra.mxu2 %v611_v0  ;;  %1053 = vmatpush.msra.mxu3 %v645_v1 }
  0xb0   : > { %995 = vmatpush.msra.mxu0 %v545_v2  ;;  %1014 = vmatpush.msra.mxu1 %v579_v3 }
  0xb1   : > { %1035 = vmatpush.msra.mxu2 %v609_v4  ;;  %1054 = vmatpush.msra.mxu3 %v643_v5 }
  0xb2   : > { %996 = vmatpush.msra.mxu0 %v543_v6  ;;  %1015 = vmatpush.msra.mxu1 %v577_v7  ;;  %v1108_v6 = vld [vmem:[%s2617_s3 + $0xf8] sm:$0xff]  ;;  %v1107_v7 = vld [vmem:[%s2617_s3 + $0xf0] sm:$0xff] }
  0xb3   : > { %1036 = vmatpush.msra.mxu2 %v607_v8  ;;  %1055 = vmatpush.msra.mxu3 %v641_v9  ;;  %v1106_v8 = vld [vmem:[%s2617_s3 + $0xe8] sm:$0xff]  ;;  %v1105_v9 = vld [vmem:[%s2617_s3 + $0xe0] sm:$0xff] }
  0xb4   : > { %997 = vmatpush.msra.mxu0 %v541_v11  ;;  %1016 = vmatpush.msra.mxu1 %v575_v12  ;;  %v1104_v11 = vld [vmem:[%s2617_s3 + $0xd8] sm:$0xff]  ;;  %v1103_v12 = vld [vmem:[%s2617_s3 + $0xd0] sm:$0xff] }
  0xb5   : > { %1037 = vmatpush.msra.mxu2 %v605_v13  ;;  %1056 = vmatpush.msra.mxu3 %v639_v14  ;;  %v1102_v13 = vld [vmem:[%s2617_s3 + $0xc8] sm:$0xff]  ;;  %v1101_v14 = vld [vmem:[%s2617_s3 + $0xc0] sm:$0xff] }
  0xb6   : > { %998 = vmatpush.msra.mxu0 %v539_v15  ;;  %1017 = vmatpush.msra.mxu1 %v573_v17  ;;  %v1100_v15 = vld [vmem:[%s2617_s3 + $0xb8] sm:$0xff]  ;;  %v1099_v17 = vld [vmem:[%s2617_s3 + $0xb0] sm:$0xff] }
  0xb7   : > { %1038 = vmatpush.msra.mxu2 %v603_v20  ;;  %1057 = vmatpush.msra.mxu3 %v637_v21  ;;  %v1098_v20 = vld [vmem:[%s2617_s3 + $0xa8] sm:$0xff]  ;;  %v1097_v21 = vld [vmem:[%s2617_s3 + $0xa0] sm:$0xff] }
  0xb8   : > { %999 = vmatpush.msra.mxu0 %v537_v22  ;;  %1018 = vmatpush.msra.mxu1 %v571_v25  ;;  %v1096_v22 = vld [vmem:[%s2617_s3 + $0x98] sm:$0xff]  ;;  %v1095_v25 = vld [vmem:[%s2617_s3 + $0x90] sm:$0xff] }
  0xb9   : > { %1039 = vmatpush.msra.mxu2 %v601_v26  ;;  %1058 = vmatpush.msra.mxu3 %v635_v27  ;;  %v663_v26 = vperm.slane %v2504_v46, 1  ;;  %v1094_v27 = vld [vmem:[%s2617_s3 + $0x88] sm:$0xff] }
  0xba   : > { %1000 = vmatpush.msra.mxu0 %v535_v28  ;;  %1019 = vmatpush.msra.mxu1 %v569_v29  ;;  %v1093_v29 = vld [vmem:[%s2617_s3 + $0x80] sm:$0xff] }
  0xbb   : > { %1040 = vmatpush.msra.mxu2 %v599_v30  ;;  %1059 = vmatpush.msra.mxu3 %v633_v31 }
  0xbc   : > { %1001 = vmatpush.msra.mxu0 %v533_v32  ;;  %1020 = vmatpush.msra.mxu1 %v567_v33 }
  0xbd   : > { %1041 = vmatpush.msra.mxu2 %v597_v34  ;;  %1060 = vmatpush.msra.mxu3 %v631_v35 }
  0xbe   : > { %1002 = vmatmul.f32.vlgmr.msra.gmra.mxu0 %v1905_v10  ;;  %1042 = vmatmul.f32.vlgmr.msra.gmra.mxu2 %v2062_v18  ;;  %v1090_v10 = vld [vmem:[%s2617_s3 + $0x68] sm:$0xff]  ;;  %v1089_v18 = vld [vmem:[%s2617_s3 + $0x60] sm:$0xff] }
  0xbf   : > { %1021 = vmatpush.msra.mxu1 %v565_v36  ;;  %1061 = vmatpush.msra.mxu3 %v629_v37 }
  0xc0   : > { %1022 = vmatmul.f32.vlgmr.msra.gmra.mxu1 %v1922_v19  ;;  %1062 = vmatmul.f32.vlgmr.msra.gmra.mxu3 %v2073_v23  ;;  %v1088_v19 = vld [vmem:[%s2617_s3 + $0x58] sm:$0xff]  ;;  %v1087_v23 = vld [vmem:[%s2617_s3 + $0x50] sm:$0xff] }
  0xc1   : > { %1110 = vmatpush.msrb.mxu0 %v1092_v38  ;;  %1130 = vmatpush.msrb.mxu1 %v1108_v6 }
  0xc3   : > { %1111 = vmatpush.msrb.mxu0 %v1091_v39  ;;  %1131 = vmatpush.msrb.mxu1 %v1107_v7 }
  0xc5   : > { %1112 = vmatpush.msrb.mxu0 %v1090_v10  ;;  %1132 = vmatpush.msrb.mxu1 %v1106_v8 }
  0xc7   : > { %1113 = vmatpush.msrb.mxu0 %v1089_v18  ;;  %1133 = vmatpush.msrb.mxu1 %v1105_v9 }
  0xc9   : > { %1114 = vmatpush.msrb.mxu0 %v1088_v19  ;;  %1134 = vmatpush.msrb.mxu1 %v1104_v11 }
  0xcb   : > { %1115 = vmatpush.msrb.mxu0 %v1087_v23  ;;  %1135 = vmatpush.msrb.mxu1 %v1103_v12 }
  0xcd   : > { %1116 = vmatpush.msrb.mxu0 %v1086_v43  ;;  %1136 = vmatpush.msrb.mxu1 %v1102_v13 }
  0xcf   : > { %1117 = vmatpush.msrb.mxu0 %v1085_v40  ;;  %1137 = vmatpush.msrb.mxu1 %v1101_v14 }
  0xd1   : > { %1118 = vmatpush.msrb.mxu0 %v1084_v41  ;;  %1138 = vmatpush.msrb.mxu1 %v1100_v15 }
  0xd3   : > { %1119 = vmatpush.msrb.mxu0 %v1083_v42  ;;  %v683_v49 = vpop.f32.mrf.mxu0  ;;  %1139 = vmatpush.msrb.mxu1 %v1099_v17  ;;  %v1072_v42 = vlaneseq }
  0xd4   : > { %v684_v51 = vadd.f32 %v683_v49, %v662_v47 }
  0xd5   : > { %1120 = vmatpush.msrb.mxu0 %v1082_v45  ;;  %1140 = vmatpush.msrb.mxu1 %v1098_v20  ;;  %vm1074_vm1 = vcmp.lt.s32.totalorder %v1072_v42, 256 }
  0xd6   : > { %v703_v55 = vpop.f32.mrf.mxu1 }
  0xd7   : > { %1121 = vmatpush.msrb.mxu0 %v1081_v52  ;;  %v704_v16 = vadd.f32 %v703_v55, %v684_v51  ;;  %1141 = vmatpush.msrb.mxu1 %v1097_v21 }
  0xd9   : > { %1122 = vmatpush.msrb.mxu0 %v1080_v48  ;;  %v723_v57 = vpop.f32.mrf.mxu2  ;;  %1142 = vmatpush.msrb.mxu1 %v1096_v22  ;;  %v1109_v48 = vld [vmem:[%s2618_s4] sm:$0x1] }
  0xda   : > { %v724_v58 = vadd.f32 %v723_v57, %v704_v16 }
  0xdb   : > { %1123 = vmatpush.msrb.mxu0 %v1079_v50  ;;  %1143 = vmatpush.msrb.mxu1 %v1095_v25 }
  0xdc   : > { %v743_v44 = vpop.f32.mrf.mxu3 }
  0xdd   : > { %1124 = vmatpush.msrb.mxu0 %v1078_v54  ;;  %v744_v59 = vadd.f32 %v743_v44, %v724_v58  ;;  %1144 = vmatpush.msrb.mxu1 %v1094_v27 }
  0xdf   : > { %1125 = vmatpush.msrb.mxu0 %v1077_v56  ;;  %v763_v24 = vpop.f32.mrf.mxu0  ;;  %1145 = vmatpush.msrb.mxu1 %v1093_v29 }
  0xe0   : > { %v764_v60 = vadd.f32 %v763_v24, %v744_v59 }
  0xe2   : > { %v783_v61 = vpop.f32.mrf.mxu1 }
  0xe3   : > { %v784_v62 = vadd.f32 %v783_v61, %v764_v60  ;;  %v803_v53 = vpop.f32.mrf.mxu2 }
  0xe5   : > { %v804_v63 = vadd.f32 %v803_v53, %v784_v62 }
  0xe6   : > { %v823_v0 = vpop.f32.mrf.mxu3 }
  0xe7   : > { %v824_v1 = vadd.f32 %v823_v0, %v804_v63 }
  0xf7   : > { %v843_v2 = vpop.f32.mrf.mxu0 }
  0xf8   : > { %v844_v3 = vadd.f32 %v843_v2, %v824_v1 }
  0xf9   : > { %v863_v4 = vpop.f32.mrf.mxu1 }
  0xfa   : > { %v2522_v5 = vadd.f32 %v863_v4, %v844_v3 }
  0xfc   : > { %1126 = vmatmul.f32.vlgmr.msrb.gmra.mxu0 %v2522_v5 }
 0x11e   : > { %v883_v28 = vpop.f32.mrf.mxu2 }
 0x11f   : > { %v884_v30 = vadd.f32 %v883_v28, %v663_v26 }
 0x121   : > { %v903_v31 = vpop.f32.mrf.mxu3 }
 0x122   : > { %v904_v32 = vadd.f32 %v903_v31, %v884_v30 }
 0x123   : > { %v923_v33 = vpop.f32.mrf.mxu0 }
 0x124   : > { %v924_v34 = vadd.f32 %v923_v33, %v904_v32 }
 0x126   : > { %v943_v35 = vpop.f32.mrf.mxu1 }
 0x127   : > { %v944_v36 = vadd.f32 %v943_v35, %v924_v34  ;;  %v963_v37 = vpop.f32.mrf.mxu2 }
 0x129   : > { %v964_v38 = vadd.f32 %v963_v37, %v944_v36 }
 0x12a   : > { %v983_v39 = vpop.f32.mrf.mxu3 }
 0x12b   : > { %v984_v10 = vadd.f32 %v983_v39, %v964_v38 }
 0x13b   : > { %v1003_v18 = vpop.f32.mrf.mxu0 }
 0x13c   : > { %v1004_v19 = vadd.f32 %v1003_v18, %v984_v10 }
 0x13d   : > { %v1023_v23 = vpop.f32.mrf.mxu1 }
 0x13e   : > { %v1024_v43 = vadd.f32 %v1023_v23, %v1004_v19 }
 0x141   : > { %v1043_v40 = vpop.f32.mrf.mxu2 }
 0x142   : > { %v1044_v41 = vadd.f32 %v1043_v40, %v1024_v43 }
 0x143   : > { %v1063_v45 = vpop.f32.mrf.mxu3 }
 0x144   : > { %v1064_v46 = vadd.f32 %v1063_v45, %v1044_v41 }
 0x146   : > { %v1068_v52 = vrot.slane %v1064_v46, 7  ;;  %1146 = vmatmul.f32.vlgmr.msrb.gmra.mxu1 %v1064_v46 }
 0x148   : > { %v1070_v47 = vsel %vm1069_vm0, %v2522_v5, %v1068_v52 }
 0x149   : > { %1076 = vst.msk [vmem:[%s259_s9] sm:$0x3] %vm1074_vm1, %v1070_v47 }
 0x179   : > { %v1127_v49 = vpop.f32.mrf.mxu0 }
 0x17a   : > { %v1128_v50 = vadd.f32 %v1127_v49, %v1109_v48 }
 0x1c3   : > { %v1147_v51 = vpop.f32.mrf.mxu1 }
 0x1c4   : > { %v1148_v54 = vadd.f32 %v1147_v51, %v1128_v50 }
 0x1c6   : > { %1151 = vst.msk [vmem:[%s250_s15] sm:$0x1] %vm1150_vm2, %v1148_v54 }
 0x1c7   : > { %1326 = shalt.err (!%p1323_p3)
}
 0x1c8   : > { %1260 = dma.vmem_to_hbm [thread:$0]  (%p1436_p5), %s1171_s16, 16, %s1173_s17, %s1157_s18  }
 0x1c9 PF: > { %p1266_p4 = scmp.ge.s32.totalorder %s1361_s24, 2  ;;  %s1191_s11 = sand.u32 1, %s1349_s21  }
 0x1ca   : > { %s1192_s19 = scalar_lea.sflag [#allocation3], %s1191_s11 }
 0x1cb   : > { %p1263_p7 = pnand %p1266_p4, %p1440_p6 }
 0x1cd   : > { %p1264_p8 = pneg %p1263_p7 }
 0x1cf   : > { %1344 = dma.done.wait (%p1264_p8), %s1192_s19, 16  }
 0x1d0   : > { %1346 = vsyncadd (%p1264_p8), %s1192_s19, 4294967280  ;;  %p17_p9 = scmp.ge.s32.totalorder %s1423_s27, 4   ;;  %s2623_s21 = smov %s1353_s22 }
 0x1d1   : > { %s2624_s22 = smov %s1357_s23  ;;  %s2625_s23 = smov %s1434_s30 }
 0x1d2   : > { %s2626_s24 = smov %s1423_s27  ;;  %19 = sbr.rel (!%p17_p9) target bundleno = 3 (0x3), region = 87 }
 0x1d7   :  { %1197 = vsyncpa [#allocation3], 1 }
 0x1d8   :  { %1199 = vsyncpa [#allocation3 + $0x1], 1 }

// kernel: _run.2
= control target key start
LH: loop header
LB: loop body
LE: loop exit
PB: predicated region body
PF: predicated region fallthrough
CT: control target
= control target key end

     0   :  { %s9445_s18 = smov 0   ;;  %s9447_s19 = smov 0   ;;  %s14021_s0 = inlined_call_operand.vmem [shape: bf16[2,256,32], index: 0, kind: input, shape index: {}]   ;;  %s14022_s1 = inlined_call_operand.vmem [shape: bf16[32,32], index: 1, kind: input, shape index: {}]   ;;  %s14023_s2 = inlined_call_operand.vmem [shape: f32[1,32], index: 2, kind: input, shape index: {}]   ;;  %s14024_s3 = inlined_call_operand.vmem [shape: bf16[32,1280], index: 3, kind: input, shape index: {}]   ;;  %s14025_s4 = inlined_call_operand.vmem [shape: f32[1,1280], index: 4, kind: input, shape index: {}]   ;;  %s14026_s5 = inlined_call_operand.vmem [shape: f32[2,8,1280], index: 5, kind: output, shape index: {}]  }
   0x1   :  { %s9449_s20 = smov 0  }
   0x2 LB: > { %s34_s21 = sadd.s32 1, %s9408_s19  ;;  %p7539_p0 = scmp.ge.s32.totalorder %s9412_s20, 1  ;;  %s9412_s20 = sphi %s9449_s20, %s15_s20   ;;  %s9408_s19 = sphi %s9447_s19, %s14298_s19   ;;  %s9404_s18 = sphi %s9445_s18, %s14297_s18  }
   0x3   : > { %p36_p1 = scmp.ge.s32.totalorder %s34_s21, 2  ;;  %p219_p2 = scmp.lt.s32.totalorder %s9412_s20, 3 }
   0x5   : > { %s14300_s21 = smov (%p36_p1, %s34_s21), 0  ;;  %p220_p3 = pnand %p7539_p0, %p219_p2 }
   0x7   : > { %223 = sbr.rel (%p220_p3) target bundleno = 1729 (0x6c1), region = 40 }
   0xc   : > { %v7923_v0 = vld [vmem:[%s14022_s1 + $0x8] sm:$0xff]  ;;  %p258_p4 = scmp.lt.s32.totalorder %s9404_s18, 1  ;;  %v7922_v1 = vld [vmem:[%s14022_s1] sm:$0xff]  ;;  %vm425_vm0 = vcmask 261120   ;;  %v7705_v21 = vld [vmem:[%s14024_s3 + $0x50] sm:$0xf] }
   0xd   : > { %480 = vmatpush.bf16.msra.mxu0 %v7923_v0  ;;  %7944 = vmatpush.bf16.msra.mxu3 %v7923_v0  ;;  %v9504_v14 = vld [vmem:[%s14023_s2] ss:$0 sm:$0xff]  ;;  %v7939_v22 = vld [vmem:[%s14024_s3 + $0x74] sm:$0xf0]  ;;  %v7934_v25 = vld [vmem:[%s14024_s3 + $0x54] sm:$0xf] }
   0xe   : > { %s14302_s18 = smov (!%p258_p4, %s9404_s18), 1  ;;  %v7706_v24 = vor.u32 %v7939_v22, %v7705_v21  ;;  %v7707_v26 = vld [vmem:[%s14024_s3 + $0x78] sm:$0xf0]  ;;  %v7665_v41 = vld [vmem:[%s14024_s3] sm:$0xf] }
   0xf   : > { %s7905_s26 = sshll.u32 %s14302_s18, 7  ;;  %v7710_v29 = vor.u32 %v7934_v25, %v7707_v26  ;;  %v7929_v42 = vld [vmem:[%s14024_s3 + $0x24] sm:$0xf0]  ;;  %v7924_v46 = vld [vmem:[%s14024_s3 + $0x4] sm:$0xf]  ;;  %s7950_s11 = smul.u32 80, %s14302_s18 }
  0x10   : > { %s9475_s29 = scalar_lea.vmem %s14021_s0, %s7905_s26  ;;  %1417 = vmatpush.bf16.msra.mxu1 %v7706_v24  ;;  %v7666_v45 = vor.u32 %v7929_v42, %v7665_v41  ;;  %v7667_v47 = vld [vmem:[%s14024_s3 + $0x28] sm:$0xf0] }
  0x11   : > { %481 = vmatpush.bf16.msra.mxu0 %v7922_v1  ;;  %7945 = vmatpush.bf16.msra.mxu3 %v7922_v1  ;;  %v7906_v2 = vld [vmem:[%s9475_s29] sm:$0xff]  ;;  %v7907_v4 = vld [vmem:[%s9475_s29 + $0x8] sm:$0xff]  ;;  %v7908_v6 = vld [vmem:[%s9475_s29 + $0x10] sm:$0xff]  ;;  %v7670_v52 = vor.u32 %v7924_v46, %v7667_v47  ;;  %s11653_s13 = scalar_lea.vmem %s14026_s5, %s7950_s11 }
  0x12   : > { %v7918_v3 = vld [vmem:[%s9475_s29 + $0x60] sm:$0xff]  ;;  %v7919_v5 = vld [vmem:[%s9475_s29 + $0x68] sm:$0xff]  ;;  %v7920_v7 = vld [vmem:[%s9475_s29 + $0x70] sm:$0xff]  ;;  %1506 = vmatpush.bf16.msra.mxu2 %v7710_v29 }
  0x13   : > { %v7909_v8 = vld [vmem:[%s9475_s29 + $0x18] sm:$0xff]  ;;  %v7910_v10 = vld [vmem:[%s9475_s29 + $0x20] sm:$0xff]  ;;  %v7911_v11 = vld [vmem:[%s9475_s29 + $0x28] sm:$0xff] }
  0x14   : > { %7615 = vmatmul.msk.bf16.vlgmr.msra.gmra.mxu0 %vm425_vm0, %v7906_v2  ;;  %7627 = vmatmul.msk.bf16.vlgmr.msra.gmra.mxu3 %vm425_vm0, %v7918_v3  ;;  %v7921_v9 = vld [vmem:[%s9475_s29 + $0x78] sm:$0xff]  ;;  %v7912_v12 = vld [vmem:[%s9475_s29 + $0x30] sm:$0xff]  ;;  %v7914_v15 = vld [vmem:[%s9475_s29 + $0x40] sm:$0xff] }
  0x15   : > { %v7913_v13 = vld [vmem:[%s9475_s29 + $0x38] sm:$0xff]  ;;  %7946 = vmatpush.bf16.msrb.mxu3 %v7706_v24  ;;  %v7915_v35 = vld [vmem:[%s9475_s29 + $0x48] sm:$0xff]  ;;  %1418 = vmatpush.bf16.msra.mxu1 %v7666_v45  ;;  %v7916_v22 = vld [vmem:[%s9475_s29 + $0x50] sm:$0xff] }
  0x16   : > { %1507 = vmatpush.bf16.msra.mxu2 %v7670_v52 }
  0x19   : > { %7947 = vmatpush.bf16.msrb.mxu3 %v7666_v45 }
  0x1d   : > { %7948 = vmatpush.bf16.msra.mxu3 %v7710_v29  ;;  %v7917_v29 = vld [vmem:[%s9475_s29 + $0x58] sm:$0xff] }
  0x21   : > { %7949 = vmatpush.bf16.msra.mxu3 %v7670_v52 }
  0x24   : > { %7616 = vmatmul.msk.bf16.gmra.mxu0 %vm425_vm0, %v7907_v4  ;;  %7628 = vmatmul.msk.bf16.gmra.mxu3 %vm425_vm0, %v7919_v5 }
  0x34   : > { %7617 = vmatmul.msk.bf16.gmra.mxu0 %vm425_vm0, %v7908_v6  ;;  %7629 = vmatmul.msk.bf16.gmra.mxu3 %vm425_vm0, %v7920_v7 }
  0x44   : > { %7618 = vmatmul.msk.bf16.gmra.mxu0 %vm425_vm0, %v7909_v8  ;;  %7630 = vmatmul.msk.bf16.gmra.mxu3 %vm425_vm0, %v7921_v9 }
  0x54   : > { %7619 = vmatmul.msk.bf16.gmra.mxu0 %vm425_vm0, %v7910_v10 }
  0x64   : > { %7620 = vmatmul.msk.bf16.gmra.mxu0 %vm425_vm0, %v7911_v11 }
  0x74   : > { %7621 = vmatmul.msk.bf16.gmra.mxu0 %vm425_vm0, %v7912_v12 }
  0x84   : > { %7622 = vmatmul.msk.bf16.gmra.mxu0 %vm425_vm0, %v7913_v13 }
  0x91   : > { %v483_v16 = vpop.f32.mrf.mxu0 }
  0x92   : > { %v9508_v17 = vadd.f32 %v9504_v14, %v483_v16 }
  0x94   : > { %v7631_v18 = vmul.f32 -1.442695, %v9508_v17  ;;  %7623 = vmatmul.msk.bf16.gmra.mxu0 %vm425_vm0, %v7914_v15 }
  0x96   : > { %7978 = vpow2.f32 %v7631_v18 }
  0x97   : > { %v543_v19 = vpop.f32.mrf.mxu3 }
  0x98   : > { %v9513_v20 = vadd.f32 %v9504_v14, %v543_v19 }
  0x99   : > { %v485_v23 = vpop.f32.mrf.mxu0 }
  0x9a   : > { %v7655_v27 = vmul.f32 -1.442695, %v9513_v20  ;;  %v9529_v28 = vadd.f32 %v9504_v14, %v485_v23 }
  0x9c   : > { %v7979_v30 = vpop.eup %7978  ;;  %7980 = vpow2.f32 %v7655_v27  ;;  %v7632_v31 = vmul.f32 -1.442695, %v9529_v28 }
  0x9d   : > { %v9532_v32 = vadd.f32 1.0, %v7979_v30 }
  0x9e   : > { %7982 = vpow2.f32 %v7632_v31 }
  0x9f   : > { %7984 = vrcp.f32 %v9532_v32  ;;  %v545_v33 = vpop.f32.mrf.mxu3  ;;  %v700_v54 = vand.u32 2147483647, %v9532_v32  ;;  %v702_v55 = vand.u32 2147483648, %v9532_v32  ;;  %vm696_vm1 = vweird.f32 %v9532_v32 }
  0xa0   : > { %v9536_v34 = vadd.f32 %v9504_v14, %v545_v33 }
  0xa1   : > { %v488_v36 = vpop.f32.mrf.mxu0  ;;  %vm9582_vm2 = vcmp.eq.f32.partialorder %v700_v54, 8.507059e+37  ;;  %v703_v2 = vor.u32 1.1754944e-38, %v702_v55 }
  0xa2   : > { %v7981_v37 = vpop.eup %7980  ;;  %v7656_v38 = vmul.f32 -1.442695, %v9536_v34  ;;  %v9541_v39 = vadd.f32 %v9504_v14, %v488_v36 }
  0xa3   : > { %v9543_v40 = vadd.f32 1.0, %v7981_v37 }
  0xa4   : > { %v7983_v43 = vpop.eup %7982  ;;  %7986 = vpow2.f32 %v7656_v38  ;;  %v7633_v44 = vmul.f32 -1.442695, %v9541_v39  ;;  %7624 = vmatmul.msk.bf16.gmra.mxu0 %vm425_vm0, %v7915_v35 }
  0xa5   : > { %v9559_v48 = vpop.eup %7984  ;;  %7988 = vrcp.f32 %v9543_v40  ;;  %v9564_v50 = vadd.f32 1.0, %v7983_v43  ;;  %v1060_v4 = vand.u32 2147483647, %v9543_v40  ;;  %v1062_v5 = vand.u32 2147483648, %v9543_v40 }
  0xa6   : > { %v692_v49 = vmul.f32 %v9559_v48, %v9532_v32  ;;  %7990 = vpow2.f32 %v7633_v44  ;;  %vm697_vm3 = vweird.f32 %v9559_v48  ;;  %vm1056_vm4 = vweird.f32 %v9543_v40 }
  0xa7   : > { %v548_v51 = vpop.f32.mrf.mxu3  ;;  %7992 = vrcp.f32 %v9564_v50  ;;  %v715_v7 = vand.u32 2147483647, %v9564_v50  ;;  %v717_v13 = vand.u32 2147483648, %v9564_v50  ;;  %vm9603_vm6 = vmor %vm696_vm1, %vm697_vm3  ;;  %vm9608_vm7 = vcmp.eq.f32.partialorder %v1060_v4, 8.507059e+37 }
  0xa8   : > { %v693_v53 = vsub.f32 1.0, %v692_v49  ;;  %v9570_v56 = vadd.f32 %v9504_v14, %v548_v51  ;;  %v1063_v21 = vor.u32 1.1754944e-38, %v1062_v5  ;;  %vm711_vm8 = vweird.f32 %v9564_v50 }
  0xa9   : > { %v490_v57 = vpop.f32.mrf.mxu0  ;;  %vm9618_vm9 = vcmp.eq.f32.partialorder %v715_v7, 8.507059e+37  ;;  %v718_v35 = vor.u32 1.1754944e-38, %v717_v13 }
  0xaa   : > { %v7987_v58 = vpop.eup %7986  ;;  %v694_v59 = vmul.f32 %v9559_v48, %v693_v53  ;;  %v9574_v60 = vadd.f32 %v9504_v14, %v490_v57  ;;  %v7657_v63 = vmul.f32 -1.442695, %v9570_v56 }
  0xab   : > { %v9576_v61 = vpop.eup %7988  ;;  %v9579_v62 = vadd.f32 1.0, %v7987_v58 }
  0xac   : > { %v7991_v0 = vpop.eup %7990  ;;  %v1052_v3 = vmul.f32 %v9576_v61, %v9543_v40  ;;  %v695_v6 = vadd.f32 %v9559_v48, %v694_v59  ;;  %v7634_v11 = vmul.f32 -1.442695, %v9574_v60  ;;  %vm1057_vm5 = vweird.f32 %v9576_v61 }
  0xad   : > { %7994 = vrcp.f32 %v9579_v62  ;;  %v7993_v8 = vpop.eup %7992  ;;  %v9594_v10 = vadd.f32 1.0, %v7991_v0  ;;  %vm9627_vm10 = vmor %vm1056_vm4, %vm1057_vm5  ;;  %v1075_v36 = vand.u32 2147483647, %v9579_v62  ;;  %vm1071_vm12 = vweird.f32 %v9579_v62 }
  0xae   : > { %v1053_v9 = vsub.f32 1.0, %v1052_v3  ;;  %7996 = vpow2.f32 %v7657_v63  ;;  %v707_v12 = vmul.f32 %v7993_v8, %v9564_v50  ;;  %v699_v23 = vsel %vm9603_vm6, %v9559_v48, %v695_v6 }
  0xaf   : > { %v550_v15 = vpop.f32.mrf.mxu3  ;;  %7998 = vrcp.f32 %v9594_v10  ;;  %vm712_vm11 = vweird.f32 %v7993_v8  ;;  %v1077_v40 = vand.u32 2147483648, %v9579_v62  ;;  %v704_v42 = vsel %vm9582_vm2, %v703_v2, %v699_v23 }
  0xb0   : > { %v1054_v18 = vmul.f32 %v9576_v61, %v1053_v9  ;;  %v708_v24 = vsub.f32 1.0, %v707_v12  ;;  %8000 = vpow2.f32 %v7634_v11  ;;  %v9632_v30 = vadd.f32 %v9504_v14, %v550_v15  ;;  %vm713_vm13 = vmor %vm711_vm8, %vm712_vm11 }
  0xb1   : > { %v493_v26 = vpop.f32.mrf.mxu0  ;;  %vm9655_vm15 = vcmp.eq.f32.partialorder %v1075_v36, 8.507059e+37  ;;  %v1171_v50 = vmul.f32 %v704_v42, %v9508_v17  ;;  %v1078_v58 = vor.u32 1.1754944e-38, %v1077_v40  ;;  %vm726_vm2 = vweird.f32 %v9594_v10  ;;  %v7935_v42 = vld [vmem:[%s14024_s3 + $0x5c] sm:$0xf] }
  0xb2   : > { %v1055_v27 = vadd.f32 %v9576_v61, %v1054_v18  ;;  %v9635_v31 = vadd.f32 %v9504_v14, %v493_v26  ;;  %v709_v33 = vmul.f32 %v7993_v8, %v708_v24  ;;  %v7658_v41 = vmul.f32 -1.442695, %v9632_v30 }
  0xb3   : > { %v7995_v32 = vpop.eup %7994 }
  0xb4   : > { %v7997_v37 = vpop.eup %7996  ;;  %v1067_v38 = vmul.f32 %v7995_v32, %v9579_v62  ;;  %7625 = vmatmul.msk.bf16.gmra.mxu0 %vm425_vm0, %v7916_v22  ;;  %v1059_v43 = vsel %vm9627_vm10, %v9576_v61, %v1055_v27  ;;  %v710_v44 = vadd.f32 %v7993_v8, %v709_v33  ;;  %vm1072_vm14 = vweird.f32 %v7995_v32 }
  0xb5   : > { %v9648_v45 = vadd.f32 1.0, %v7997_v37  ;;  %v9650_v46 = vpop.eup %7998  ;;  %8002 = vpow2.f32 %v7658_v41  ;;  %v7635_v48 = vmul.f32 -1.442695, %v9635_v31  ;;  %v1064_v59 = vsel %vm9608_vm7, %v1063_v21, %v1059_v43  ;;  %vm9671_vm1 = vmor %vm1071_vm12, %vm1072_vm14  ;;  %v7715_v43 = vld [vmem:[%s14024_s3 + $0x80] sm:$0xf0] }
  0xb6   : > { %v1068_v47 = vsub.f32 1.0, %v1067_v38  ;;  %v714_v49 = vsel %vm713_vm13, %v7993_v8, %v710_v44  ;;  %v722_v52 = vmul.f32 %v9650_v46, %v9594_v10  ;;  %v8001_v54 = vpop.eup %8000  ;;  %v730_v62 = vand.u32 2147483647, %v9594_v10 }
  0xb7   : > { %8004 = vrcp.f32 %v9648_v45  ;;  %v553_v53 = vpop.f32.mrf.mxu3  ;;  %v719_v55 = vsel %vm9618_vm9, %v718_v35, %v714_v49  ;;  %v9675_v1 = vadd.f32 1.0, %v8001_v54  ;;  %v1195_v6 = vmul.f32 %v1064_v59, %v9513_v20  ;;  %v7936_v59 = vld [vmem:[%s14024_s3 + $0x64] sm:$0xf] }
  0xb8   : > { %v1069_v57 = vmul.f32 %v7995_v32, %v1068_v47  ;;  %v1172_v61 = vmul.f32 %v719_v55, %v9529_v28  ;;  %v723_v0 = vsub.f32 1.0, %v722_v52  ;;  %8006 = vpow2.f32 %v7635_v48 }
  0xb9   : > { %v495_v17 = vpop.f32.mrf.mxu0  ;;  %v9679_v3 = vadd.f32 %v9504_v14, %v553_v53  ;;  %8008 = vrcp.f32 %v9675_v1  ;;  %vm727_vm3 = vweird.f32 %v9650_v46  ;;  %v732_v8 = vand.u32 2147483648, %v9594_v10 }
  0xba   : > { %v1070_v2 = vadd.f32 %v7995_v32, %v1069_v57  ;;  %v9681_v4 = vpack.c.bf16 %v1172_v61, %v1171_v50  ;;  %v724_v28 = vmul.f32 %v9650_v46, %v723_v0  ;;  %v1090_v12 = vand.u32 2147483647, %v9648_v45  ;;  %vm9725_vm6 = vmor %vm726_vm2, %vm727_vm3  ;;  %v7723_v61 = vld [vmem:[%s14024_s3 + $0x88] sm:$0xf0] }
  0xbb   : > { %v8003_v5 = vpop.eup %8002  ;;  %v7659_v15 = vmul.f32 -1.442695, %v9679_v3  ;;  %v1092_v19 = vand.u32 2147483648, %v9648_v45  ;;  %vm9708_vm4 = vcmp.eq.f32.partialorder %v730_v62, 8.507059e+37  ;;  %v745_v22 = vand.u32 2147483647, %v9675_v1 }
  0xbc   : > { %14087 = vst [vmem:[#allocation2_spill] sm:$0xff] %v9681_v4  ;;  %v1074_v7 = vsel %vm9671_vm1, %v7995_v32, %v1070_v2  ;;  %v9696_v13 = vadd.f32 1.0, %v8003_v5  ;;  %7743 = vmatmul.msk.bf16.vlgmr.msra.gmra.mxu1 %vm425_vm0, %v9681_v4  ;;  %7759 = vmatmul.msk.bf16.vlgmr.msra.gmra.mxu2 %vm425_vm0, %v9681_v4  ;;  %v725_v16 = vadd.f32 %v9650_v46, %v724_v28  ;;  %v747_v23 = vand.u32 2147483648, %v9675_v1 }
  0xbd   : > { %v9691_v9 = vpop.eup %8004  ;;  %v1079_v11 = vsel %vm9655_vm15, %v1078_v58, %v1074_v7  ;;  %v733_v26 = vor.u32 1.1754944e-38, %v732_v8  ;;  %vm1086_vm5 = vweird.f32 %v9648_v45  ;;  %vm9730_vm8 = vcmp.eq.f32.partialorder %v1090_v12, 8.507059e+37 }
  0xbe   : > { %v1196_v20 = vmul.f32 %v1079_v11, %v9536_v34  ;;  %v1082_v18 = vmul.f32 %v9691_v9, %v9648_v45  ;;  %8010 = vrcp.f32 %v9696_v13  ;;  %v8007_v25 = vpop.eup %8006  ;;  %vm1087_vm7 = vweird.f32 %v9691_v9 }
  0xbf   : > { %v555_v24 = vpop.f32.mrf.mxu3  ;;  %v9719_v32 = vpop.eup %8008  ;;  %v9734_v36 = vadd.f32 1.0, %v8007_v25  ;;  %8012 = vpow2.f32 %v7659_v15  ;;  %v729_v38 = vsel %vm9725_vm6, %v9650_v46, %v725_v16  ;;  %v1093_v40 = vor.u32 1.1754944e-38, %v1092_v19  ;;  %vm9761_vm11 = vmor %vm1086_vm5, %vm1087_vm7  ;;  %v7941_v19 = vld [vmem:[%s14024_s3 + $0x84] sm:$0xf0] }
  0xc0   : > { %v9715_v34 = vpack.c.bf16 %v1196_v20, %v1195_v6  ;;  %v1083_v27 = vsub.f32 1.0, %v1082_v18  ;;  %v737_v41 = vmul.f32 %v9719_v32, %v9675_v1  ;;  %vm741_vm9 = vweird.f32 %v9675_v1  ;;  %v7721_v1 = vld [vmem:[%s14024_s3 + $0x60] sm:$0xf] }
  0xc1   : > { %v498_v37 = vpop.f32.mrf.mxu0  ;;  %vm9751_vm10 = vcmp.eq.f32.partialorder %v745_v22, 8.507059e+37  ;;  %v748_v46 = vor.u32 1.1754944e-38, %v747_v23  ;;  %8014 = vrcp.f32 %v9734_v36  ;;  %vm1101_vm12 = vweird.f32 %v9696_v13 }
  0xc2   : > { %14090 = vst [vmem:[#allocation3_spill] sm:$0xff] %v9715_v34  ;;  %v1084_v10 = vmul.f32 %v9691_v9, %v1083_v27  ;;  %7755 = vmatmul.msk.bf16.vlgmr.msrb.gmra.mxu3 %vm425_vm0, %v9715_v34  ;;  %v738_v49 = vsub.f32 1.0, %v737_v41  ;;  %v9767_v51 = vadd.f32 %v9504_v14, %v495_v17  ;;  %v734_v53 = vsel %vm9708_vm4, %v733_v26, %v729_v38 }
  0xc3   : > { %v1105_v54 = vand.u32 2147483647, %v9696_v13  ;;  %v9774_v45 = vadd.f32 %v9504_v14, %v555_v24  ;;  %v7718_v50 = vor.u32 %v7935_v42, %v7715_v43  ;;  %vm742_vm13 = vweird.f32 %v9719_v32 }
  0xc4   : > { %v1085_v47 = vadd.f32 %v9691_v9, %v1084_v10  ;;  %7626 = vmatmul.msk.bf16.gmra.mxu0 %vm425_vm0, %v7917_v29  ;;  %v8011_v52 = vpop.eup %8010  ;;  %v739_v55 = vmul.f32 %v9719_v32, %v738_v49  ;;  %v1107_v58 = vand.u32 2147483648, %v9696_v13  ;;  %v7636_v17 = vmul.f32 -1.442695, %v9767_v51  ;;  %vm743_vm15 = vmor %vm741_vm9, %vm742_vm13  ;;  %v7925_v29 = vld [vmem:[%s14024_s3 + $0xc] sm:$0xf] }
  0xc5   : > { %v1097_v57 = vmul.f32 %v8011_v52, %v9696_v13  ;;  %v8013_v63 = vpop.eup %8012  ;;  %v7726_v2 = vor.u32 %v7936_v59, %v7723_v61  ;;  %v9791_v28 = vadd.f32 %v9504_v14, %v498_v37  ;;  %1684 = vmatpush.bf16.msrb.mxu0 %v7718_v50  ;;  %vm1102_vm14 = vweird.f32 %v8011_v52  ;;  %v7675_v13 = vld [vmem:[%s14024_s3 + $0x30] sm:$0xf0] }
  0xc6   : > { %v1089_v0 = vsel %vm9761_vm11, %v9691_v9, %v1085_v47  ;;  %v740_v5 = vadd.f32 %v9719_v32, %v739_v55  ;;  %v9794_v7 = vadd.f32 1.0, %v8013_v63  ;;  %v1173_v11 = vmul.f32 %v734_v53, %v9541_v39  ;;  %vm9823_vm1 = vmor %vm1101_vm12, %vm1102_vm14 }
  0xc7   : > { %v558_v62 = vpop.f32.mrf.mxu3  ;;  %v1098_v6 = vsub.f32 1.0, %v1097_v57  ;;  %v9796_v8 = vpop.eup %8014  ;;  %8016 = vpow2.f32 %v7636_v17  ;;  %1862 = vmatpush.bf16.msrb.mxu2 %v7726_v2  ;;  %v7660_v9 = vmul.f32 -1.442695, %v9774_v45  ;;  %v1108_v18 = vor.u32 1.1754944e-38, %v1107_v58 }
  0xc8   : > { %v9805_v12 = vadd.f32 %v9504_v14, %v558_v62  ;;  %v744_v20 = vsel %vm743_vm15, %v9719_v32, %v740_v5  ;;  %v752_v39 = vmul.f32 %v9796_v8, %v9734_v36  ;;  %v1094_v21 = vsel %vm9730_vm8, %v1093_v40, %v1089_v0 }
  0xc9   : > { %v500_v15 = vpop.f32.mrf.mxu0  ;;  %v1099_v16 = vmul.f32 %v8011_v52, %v1098_v6  ;;  %v749_v22 = vsel %vm9751_vm10, %v748_v46, %v744_v20  ;;  %8018 = vrcp.f32 %v9794_v7  ;;  %v7637_v24 = vmul.f32 -1.442695, %v9791_v28 }
  0xca   : > { %v1174_v25 = vmul.f32 %v749_v22, %v9574_v60  ;;  %vm1106_vm2 = vcmp.eq.f32.partialorder %v1105_v54, 8.507059e+37  ;;  %v753_v27 = vsub.f32 1.0, %v752_v39  ;;  %8020 = vpow2.f32 %v7660_v9 }
  0xcb   : > { %v1100_v26 = vadd.f32 %v8011_v52, %v1099_v16  ;;  %v7722_v32 = vor.u32 %v7941_v19, %v7721_v1  ;;  %v7661_v33 = vmul.f32 -1.442695, %v9805_v12  ;;  %v1197_v35 = vmul.f32 %v1094_v21, %v9570_v56 }
  0xcc   : > { %v9838_v37 = vpack.c.bf16 %v1174_v25, %v1173_v11  ;;  %v754_v38 = vmul.f32 %v9796_v8, %v753_v27  ;;  %8022 = vpow2.f32 %v7637_v24  ;;  %v9844_v41 = vadd.f32 %v9504_v14, %v500_v15 }
  0xcd   : > { %v1104_v60 = vsel %vm9823_vm1, %v8011_v52, %v1100_v26  ;;  %v8017_v10 = vpop.eup %8016  ;;  %1773 = vmatpush.bf16.msrb.mxu1 %v7722_v32  ;;  %v7678_v43 = vor.u32 %v7925_v29, %v7675_v13  ;;  %v762_v56 = vand.u32 2147483648, %v9734_v36  ;;  %8024 = vpow2.f32 %v7661_v33 }
  0xce   : > { %14101 = vst [vmem:[#allocation4_spill] sm:$0xff] %v9838_v37  ;;  %v1109_v40 = vsel %vm1106_vm2, %v1108_v18, %v1104_v60  ;;  %v9848_v46 = vadd.f32 1.0, %v8017_v10  ;;  %7744 = vmatmul.msk.bf16.gmra.mxu1 %vm425_vm0, %v9838_v37  ;;  %7760 = vmatmul.msk.bf16.gmra.mxu2 %vm425_vm0, %v9838_v37  ;;  %v7638_v48 = vmul.f32 -1.442695, %v9844_v41  ;;  %v755_v53 = vadd.f32 %v9796_v8, %v754_v38 }
  0xcf   : > { %v560_v42 = vpop.f32.mrf.mxu3  ;;  %v1198_v44 = vmul.f32 %v1109_v40, %v9632_v30  ;;  %v9854_v47 = vpop.eup %8018  ;;  %1685 = vmatpush.bf16.msrb.mxu0 %v7678_v43  ;;  %vm757_vm3 = vweird.f32 %v9796_v8  ;;  %vm756_vm4 = vweird.f32 %v9734_v36  ;;  %v760_v55 = vand.u32 2147483647, %v9734_v36 }
  0xd0   : > { %v9858_v49 = vadd.f32 %v9504_v14, %v560_v42  ;;  %v1112_v54 = vmul.f32 %v9854_v47, %v9794_v7  ;;  %v8021_v50 = vpop.eup %8020  ;;  %8026 = vrcp.f32 %v9848_v46  ;;  %v763_v57 = vor.u32 1.1754944e-38, %v762_v56  ;;  %vm9875_vm5 = vmor %vm756_vm4, %vm757_vm3 }
  0xd1   : > { %v503_v52 = vpop.f32.mrf.mxu0  ;;  %v9860_v30 = vpack.c.bf16 %v1198_v44, %v1197_v35  ;;  %v9869_v59 = vadd.f32 1.0, %v8021_v50  ;;  %vm1116_vm6 = vweird.f32 %v9794_v7  ;;  %v1120_v0 = vand.u32 2147483647, %v9794_v7 }
  0xd2   : > { %v1113_v58 = vsub.f32 1.0, %v1112_v54  ;;  %v8023_v61 = vpop.eup %8022  ;;  %8028 = vpow2.f32 %v7638_v48  ;;  %v7662_v36 = vmul.f32 -1.442695, %v9858_v49  ;;  %v759_v2 = vsel %vm9875_vm5, %v9796_v8, %v755_v53 }
  0xd3   : > { %14102 = vst [vmem:[#allocation5_spill] sm:$0xff] %v9860_v30  ;;  %7756 = vmatmul.msk.bf16.gmra.mxu3 %vm425_vm0, %v9860_v30  ;;  %v8025_v17 = vpop.eup %8024  ;;  %vm1117_vm7 = vweird.f32 %v9854_v47  ;;  %8030 = vrcp.f32 %v9869_v59  ;;  %v1122_v5 = vand.u32 2147483648, %v9794_v7  ;;  %v9889_v6 = vadd.f32 1.0, %v8023_v61 }
  0xd4   : > { %7791 = vmatmul.msk.bf16.vlgmr.msrb.gmra.mxu0 %vm425_vm0, %v9681_v4  ;;  %v1114_v62 = vmul.f32 %v9854_v47, %v1113_v58  ;;  %v9891_v11 = vadd.f32 1.0, %v8025_v17  ;;  %v9894_v9 = vadd.f32 %v9504_v14, %v503_v52  ;;  %vm761_vm8 = vcmp.eq.f32.partialorder %v760_v55, 8.507059e+37  ;;  %vm9900_vm9 = vmor %vm1116_vm6, %vm1117_vm7 }
  0xd5   : > { %v775_v8 = vand.u32 2147483647, %v9848_v46  ;;  %8032 = vpow2.f32 %v7662_v36  ;;  %v764_v16 = vsel %vm761_vm8, %v763_v57, %v759_v2  ;;  %v777_v39 = vand.u32 2147483648, %v9848_v46 }
  0xd6   : > { %v1115_v15 = vadd.f32 %v9854_v47, %v1114_v62  ;;  %v8027_v20 = vpop.eup %8026  ;;  %v1135_v1 = vand.u32 2147483647, %v9869_v59  ;;  %8034 = vrcp.f32 %v9889_v6  ;;  %vm9907_vm10 = vcmp.eq.f32.partialorder %v1120_v0, 8.507059e+37 }
  0xd7   : > { %v767_v22 = vmul.f32 %v8027_v20, %v9848_v46  ;;  %v1137_v23 = vand.u32 2147483648, %v9869_v59  ;;  %v1123_v24 = vor.u32 1.1754944e-38, %v1122_v5  ;;  %vm771_vm11 = vweird.f32 %v9848_v46 }
  0xd8   : > { %v8029_v7 = vpop.eup %8028  ;;  %8036 = vrcp.f32 %v9891_v11  ;;  %v7639_v25 = vmul.f32 -1.442695, %v9894_v9  ;;  %v1175_v27 = vmul.f32 %v764_v16, %v9635_v31  ;;  %v1119_v29 = vsel %vm9900_vm9, %v9854_v47, %v1115_v15 }
  0xd9   : > { %v505_v19 = vpop.f32.mrf.mxu0  ;;  %v8031_v26 = vpop.eup %8030  ;;  %v768_v13 = vsub.f32 1.0, %v767_v22  ;;  %vm9920_vm12 = vcmp.eq.f32.partialorder %v775_v8, 8.507059e+37  ;;  %v778_v33 = vor.u32 1.1754944e-38, %v777_v39  ;;  %vm1131_vm13 = vweird.f32 %v9869_v59 }
  0xda   : > { %v1127_v35 = vmul.f32 %v8031_v26, %v9869_v59  ;;  %vm9926_vm14 = vcmp.eq.f32.partialorder %v1135_v1, 8.507059e+37  ;;  %vm772_vm15 = vweird.f32 %v8027_v20  ;;  %v1138_v10 = vor.u32 1.1754944e-38, %v1137_v23 }
  0xdb   : > { %v8033_v38 = vpop.eup %8032  ;;  %v769_v31 = vmul.f32 %v8027_v20, %v768_v13  ;;  %v9930_v40 = vadd.f32 1.0, %v8029_v7  ;;  %v1124_v43 = vsel %vm9907_vm10, %v1123_v24, %v1119_v29  ;;  %vm1132_vm1 = vweird.f32 %v8031_v26  ;;  %vm773_vm2 = vmor %vm771_vm11, %vm772_vm15 }
  0xdc   : > { %v9932_v42 = vpop.eup %8034  ;;  %v1128_v44 = vsub.f32 1.0, %v1127_v35  ;;  %8038 = vpow2.f32 %v7639_v25  ;;  %v9939_v48 = vadd.f32 1.0, %v8033_v38  ;;  %vm786_vm3 = vweird.f32 %v9889_v6  ;;  %vm9952_vm4 = vmor %vm1131_vm13, %vm1132_vm1 }
  0xdd   : > { %v770_v56 = vadd.f32 %v8027_v20, %v769_v31  ;;  %v782_v47 = vmul.f32 %v9932_v42, %v9889_v6  ;;  %8040 = vrcp.f32 %v9930_v40  ;;  %v790_v54 = vand.u32 2147483647, %v9889_v6 }
  0xde   : > { %v9941_v52 = vpop.eup %8036  ;;  %v1129_v53 = vmul.f32 %v8031_v26, %v1128_v44  ;;  %v792_v50 = vand.u32 2147483648, %v9889_v6  ;;  %v1150_v55 = vand.u32 2147483647, %v9891_v11  ;;  %vm1146_vm5 = vweird.f32 %v9891_v11 }
  0xdf   : > { %v774_v58 = vsel %vm773_vm2, %v8027_v20, %v770_v56  ;;  %v783_v46 = vsub.f32 1.0, %v782_v47  ;;  %v1142_v63 = vmul.f32 %v9941_v52, %v9891_v11  ;;  %v1199_v0 = vmul.f32 %v1124_v43, %v9679_v3 }
  0xe0   : > { %v779_v36 = vsel %vm9920_vm12, %v778_v33, %v774_v58  ;;  %v1130_v17 = vadd.f32 %v8031_v26, %v1129_v53  ;;  %v1152_v2 = vand.u32 2147483648, %v9891_v11  ;;  %8042 = vrcp.f32 %v9939_v48 }
  0xe1   : > { %v508_v57 = vpop.f32.mrf.mxu0  ;;  %v1176_v59 = vmul.f32 %v779_v36, %v9767_v51  ;;  %v784_v62 = vmul.f32 %v9932_v42, %v783_v46  ;;  %v1143_v5 = vsub.f32 1.0, %v1142_v63  ;;  %vm9970_vm6 = vcmp.eq.f32.partialorder %v790_v54, 8.507059e+37 }
  0xe2   : > { %v8039_v15 = vpop.eup %8038  ;;  %v1134_v3 = vsel %vm9952_vm4, %v8031_v26, %v1130_v17  ;;  %v793_v20 = vor.u32 1.1754944e-38, %v792_v50  ;;  %vm9974_vm7 = vcmp.eq.f32.partialorder %v1150_v55, 8.507059e+37  ;;  %v9979_v51 = vadd.f32 %v9504_v14, %v505_v19 }
  0xe3   : > { %v8041_v18 = vpop.eup %8040  ;;  %v9981_v39 = vpack.c.bf16 %v1176_v59, %v1175_v27  ;;  %v1139_v1 = vsel %vm9926_vm14, %v1138_v10, %v1134_v3  ;;  %v1144_v21 = vmul.f32 %v9941_v52, %v1143_v5  ;;  %vm1147_vm8 = vweird.f32 %v9941_v52 }
  0xe4   : > { %7792 = vmatmul.msk.bf16.gmra.mxu0 %vm425_vm0, %v9838_v37  ;;  %v1200_v22 = vmul.f32 %v1139_v1, %v9774_v45  ;;  %v785_v23 = vadd.f32 %v9932_v42, %v784_v62  ;;  %vm787_vm9 = vweird.f32 %v9932_v42  ;;  %v797_v7 = vmul.f32 %v8041_v18, %v9930_v40  ;;  %vm10003_vm11 = vmor %vm1146_vm5, %vm1147_vm8 }
  0xe5   : > { %v1145_v19 = vadd.f32 %v9941_v52, %v1144_v21  ;;  %v1153_v24 = vor.u32 1.1754944e-38, %v1152_v2  ;;  %vm801_vm10 = vweird.f32 %v9930_v40  ;;  %v9993_v25 = vadd.f32 1.0, %v8039_v15  ;;  %7745 = vmatmul.msk.bf16.gmra.mxu1 %vm425_vm0, %v9981_v39  ;;  %7761 = vmatmul.msk.bf16.gmra.mxu2 %vm425_vm0, %v9981_v39  ;;  %vm10013_vm12 = vmor %vm786_vm3, %vm787_vm9 }
  0xe6   : > { %v9999_v45 = vpack.c.bf16 %v1200_v22, %v1199_v0  ;;  %v798_v27 = vsub.f32 1.0, %v797_v7  ;;  %v805_v29 = vand.u32 2147483647, %v9930_v40  ;;  %v7640_v13 = vmul.f32 -1.442695, %v9979_v51  ;;  %v8043_v33 = vpop.eup %8042 }
  0xe7   : > { %v807_v11 = vand.u32 2147483648, %v9930_v40  ;;  %vm1161_vm13 = vweird.f32 %v9939_v48  ;;  %v1165_v60 = vand.u32 2147483647, %v9939_v48  ;;  %8044 = vrcp.f32 %v9993_v25 }
  0xe8   : > { %14119 = vst [vmem:[#allocation6_spill] sm:$0xff] %v9999_v45  ;;  %v789_v38 = vsel %vm10013_vm12, %v9932_v42, %v785_v23  ;;  %v799_v31 = vmul.f32 %v8041_v18, %v798_v27  ;;  %vm802_vm14 = vweird.f32 %v8041_v18  ;;  %v1157_v6 = vmul.f32 %v8043_v33, %v9939_v48  ;;  %7757 = vmatmul.msk.bf16.gmra.mxu3 %vm425_vm0, %v9999_v45 }
  0xe9   : > { %v510_v32 = vpop.f32.mrf.mxu0  ;;  %v1149_v10 = vsel %vm10003_vm11, %v9941_v52, %v1145_v19  ;;  %vm1162_vm15 = vweird.f32 %v8043_v33  ;;  %v1167_v43 = vand.u32 2147483648, %v9939_v48  ;;  %8046 = vpow2.f32 %v7640_v13  ;;  %vm803_vm1 = vmor %vm801_vm10, %vm802_vm14 }
  0xea   : > { %v800_v44 = vadd.f32 %v8041_v18, %v799_v31  ;;  %v1158_v56 = vsub.f32 1.0, %v1157_v6  ;;  %v10032_v47 = vadd.f32 %v9504_v14, %v508_v57  ;;  %v10035_v42 = vadd.f32 %v9504_v14, %v510_v32  ;;  %vm10053_vm4 = vmor %vm1161_vm13, %vm1162_vm15 }
  0xeb   : > { %v794_v53 = vsel %vm9970_vm6, %v793_v20, %v789_v38  ;;  %vm806_vm2 = vcmp.eq.f32.partialorder %v805_v29, 8.507059e+37  ;;  %v808_v52 = vor.u32 1.1754944e-38, %v807_v11  ;;  %vm10041_vm3 = vcmp.eq.f32.partialorder %v1165_v60, 8.507059e+37 }
  0xec   : > { %v804_v54 = vsel %vm803_vm1, %v8041_v18, %v800_v44  ;;  %v1159_v50 = vmul.f32 %v8043_v33, %v1158_v56  ;;  %v7641_v57 = vmul.f32 -1.442695, %v10032_v47  ;;  %v1154_v61 = vsel %vm9974_vm7, %v1153_v24, %v1149_v10 }
  0xed   : > { %v10046_v58 = vpop.eup %8044  ;;  %v809_v46 = vsel %vm806_vm2, %v808_v52, %v804_v54  ;;  %v1168_v63 = vor.u32 1.1754944e-38, %v1167_v43  ;;  %v7642_v0 = vmul.f32 -1.442695, %v10035_v42  ;;  %v1177_v36 = vmul.f32 %v794_v53, %v9791_v28 }
  0xee   : > { %v1178_v17 = vmul.f32 %v809_v46, %v9844_v41  ;;  %v1160_v2 = vadd.f32 %v8043_v33, %v1159_v50  ;;  %v812_v59 = vmul.f32 %v10046_v58, %v9993_v25  ;;  %8048 = vpow2.f32 %v7641_v57 }
  0xef   : > { %v8047_v5 = vpop.eup %8046  ;;  %v1201_v15 = vmul.f32 %v1154_v61, %v9805_v12  ;;  %8050 = vpow2.f32 %v7642_v0  ;;  %vm817_vm5 = vweird.f32 %v10046_v58  ;;  %v822_v29 = vand.u32 2147483648, %v9993_v25 }
  0xf0   : > { %v10066_v3 = vpack.c.bf16 %v1178_v17, %v1177_v36  ;;  %v1164_v8 = vsel %vm10053_vm4, %v8043_v33, %v1160_v2  ;;  %v668_v28 = vadd.f32 1.0, %v8047_v5  ;;  %v813_v20 = vsub.f32 1.0, %v812_v59 }
  0xf1   : > { %v513_v62 = vpop.f32.mrf.mxu0  ;;  %v1169_v41 = vsel %vm10041_vm3, %v1168_v63, %v1164_v8  ;;  %vm816_vm6 = vweird.f32 %v9993_v25  ;;  %v820_v33 = vand.u32 2147483647, %v9993_v25  ;;  %v823_v43 = vor.u32 1.1754944e-38, %v822_v29 }
  0xf2   : > { %v10063_v48 = vadd.f32 %v9504_v14, %v513_v62  ;;  %v1202_v18 = vmul.f32 %v1169_v41, %v9858_v49  ;;  %8052 = vrcp.f32 %v668_v28  ;;  %v814_v21 = vmul.f32 %v10046_v58, %v813_v20  ;;  %vm10100_vm7 = vmor %vm816_vm6, %vm817_vm5 }
  0xf3   : > { %v835_v60 = vand.u32 2147483647, %v668_v28  ;;  %v837_v38 = vand.u32 2147483648, %v668_v28  ;;  %vm821_vm9 = vcmp.eq.f32.partialorder %v820_v33, 8.507059e+37  ;;  %vm831_vm10 = vweird.f32 %v668_v28 }
  0xf4   : > { %v7643_v16 = vmul.f32 -1.442695, %v10063_v48  ;;  %7793 = vmatmul.msk.bf16.gmra.mxu0 %vm425_vm0, %v9981_v39  ;;  %v10076_v12 = vpack.c.bf16 %v1202_v18, %v1201_v15  ;;  %v8049_v1 = vpop.eup %8048  ;;  %v815_v24 = vadd.f32 %v10046_v58, %v814_v21 }
  0xf5   : > { %7746 = vmatmul.msk.bf16.gmra.mxu1 %vm425_vm0, %v10066_v3  ;;  %7762 = vmatmul.msk.bf16.gmra.mxu2 %vm425_vm0, %v10066_v3  ;;  %v10083_v22 = vadd.f32 1.0, %v8049_v1  ;;  %v8051_v7 = vpop.eup %8050  ;;  %v838_v54 = vor.u32 1.1754944e-38, %v837_v38  ;;  %vm836_vm12 = vcmp.eq.f32.partialorder %v835_v60, 8.507059e+37 }
  0xf6   : > { %14128 = vst [vmem:[#allocation7_spill] sm:$0xff] %v10076_v12  ;;  %8054 = vpow2.f32 %v7643_v16  ;;  %v10093_v27 = vadd.f32 1.0, %v8051_v7  ;;  %v819_v31 = vsel %vm10100_vm7, %v10046_v58, %v815_v24 }
  0xf7   : > { %8056 = vrcp.f32 %v10083_v22  ;;  %v824_v52 = vsel %vm821_vm9, %v823_v43, %v819_v31  ;;  %v852_v20 = vand.u32 2147483648, %v10083_v22  ;;  %vm846_vm1 = vweird.f32 %v10083_v22 }
  0xf8   : > { %v8053_v49 = vpop.eup %8052  ;;  %7758 = vmatmul.msk.bf16.gmra.mxu3 %vm425_vm0, %v10076_v12  ;;  %8058 = vrcp.f32 %v10093_v27  ;;  %v1179_v0 = vmul.f32 %v824_v52, %v9894_v9  ;;  %v867_v5 = vand.u32 2147483648, %v10093_v27  ;;  %v865_v9 = vand.u32 2147483647, %v10093_v27 }
  0xf9   : > { %v515_v23 = vpop.f32.mrf.mxu0  ;;  %v827_v26 = vmul.f32 %v8053_v49, %v668_v28  ;;  %vm832_vm8 = vweird.f32 %v8053_v49  ;;  %vm861_vm15 = vweird.f32 %v10093_v27  ;;  %v850_v18 = vand.u32 2147483647, %v10083_v22 }
  0xfa   : > { %v10086_v19 = vadd.f32 %v9504_v14, %v515_v23  ;;  %vm833_vm11 = vmor %vm831_vm10, %vm832_vm8  ;;  %v868_v23 = vor.u32 1.1754944e-38, %v867_v5  ;;  %vm866_vm4 = vcmp.eq.f32.partialorder %v865_v9, 8.507059e+37 }
  0xfb   : > { %v828_v35 = vsub.f32 1.0, %v827_v26  ;;  %vm851_vm5 = vcmp.eq.f32.partialorder %v850_v18, 8.507059e+37 }
  0xfc   : > { %v7644_v13 = vmul.f32 -1.442695, %v10086_v19  ;;  %v8055_v32 = vpop.eup %8054 }
  0xfd   : > { %v829_v6 = vmul.f32 %v8053_v49, %v828_v35  ;;  %v10107_v10 = vpop.eup %8056  ;;  %v10109_v25 = vadd.f32 1.0, %v8055_v32 }
  0xfe   : > { %8060 = vpow2.f32 %v7644_v13  ;;  %v842_v53 = vmul.f32 %v10107_v10, %v10083_v22  ;;  %v8059_v55 = vpop.eup %8058  ;;  %vm847_vm14 = vweird.f32 %v10107_v10 }
  0xff   : > { %v830_v56 = vadd.f32 %v8053_v49, %v829_v6  ;;  %v857_v46 = vmul.f32 %v8059_v55, %v10093_v27  ;;  %8062 = vrcp.f32 %v10109_v25  ;;  %vm862_vm13 = vweird.f32 %v8059_v55  ;;  %vm848_vm3 = vmor %vm846_vm1, %vm847_vm14 }
 0x100   : > { %v843_v58 = vsub.f32 1.0, %v842_v53  ;;  %vm863_vm2 = vmor %vm861_vm15, %vm862_vm13  ;;  %v853_v27 = vor.u32 1.1754944e-38, %v852_v20  ;;  %vm876_vm10 = vweird.f32 %v10109_v25 }
 0x101   : > { %v518_v44 = vpop.f32.mrf.mxu0  ;;  %v834_v57 = vsel %vm833_vm11, %v8053_v49, %v830_v56  ;;  %v858_v17 = vsub.f32 1.0, %v857_v46 }
 0x102   : > { %v10114_v50 = vadd.f32 %v9504_v14, %v518_v44  ;;  %v839_v61 = vsel %vm836_vm12, %v838_v54, %v834_v57  ;;  %v844_v36 = vmul.f32 %v10107_v10, %v843_v58  ;;  %v7926_v58 = vld [vmem:[%s14024_s3 + $0x14] sm:$0xf] }
 0x103   : > { %v1180_v14 = vmul.f32 %v839_v61, %v9979_v51  ;;  %v859_v62 = vmul.f32 %v8059_v55, %v858_v17  ;;  %v10140_v51 = vld [vmem:[%s14023_s2] ss:$0 sm:$0xff]  ;;  %v7683_v61 = vld [vmem:[%s14024_s3 + $0x38] sm:$0xf0] }
 0x104   : > { %7794 = vmatmul.msk.bf16.gmra.mxu0 %vm425_vm0, %v10066_v3  ;;  %v7645_v40 = vmul.f32 -1.442695, %v10114_v50  ;;  %v8061_v63 = vpop.eup %8060  ;;  %v845_v8 = vadd.f32 %v10107_v10, %v844_v36 }
 0x105   : > { %v10124_v2 = vadd.f32 1.0, %v8061_v63  ;;  %v10126_v59 = vpack.c.bf16 %v1180_v14, %v1179_v0  ;;  %v10145_v41 = vpop.eup %8062  ;;  %v860_v16 = vadd.f32 %v8059_v55, %v859_v62  ;;  %v882_v63 = vand.u32 2147483648, %v10109_v25 }
 0x106   : > { %8064 = vpow2.f32 %v7645_v40  ;;  %v849_v49 = vsel %vm848_vm3, %v10107_v10, %v845_v8  ;;  %v872_v24 = vmul.f32 %v10145_v41, %v10109_v25  ;;  %vm877_vm7 = vweird.f32 %v10145_v41 }
 0x107   : > { %8066 = vrcp.f32 %v10124_v2  ;;  %7747 = vmatmul.msk.bf16.gmra.mxu1 %vm425_vm0, %v10126_v59  ;;  %7763 = vmatmul.msk.bf16.gmra.mxu2 %vm425_vm0, %v10126_v59  ;;  %v864_v21 = vsel %vm863_vm2, %v8059_v55, %v860_v16  ;;  %v854_v13 = vsel %vm851_vm5, %v853_v27, %v849_v49  ;;  %v897_v52 = vand.u32 2147483648, %v10124_v2  ;;  %vm10215_vm11 = vmor %vm876_vm10, %vm877_vm7 }
 0x108   : > { %7771 = vmatmul.msk.bf16.vlgmr.msra.gmra.mxu3 %vm425_vm0, %v9715_v34  ;;  %v869_v22 = vsel %vm866_vm4, %v868_v23, %v864_v21  ;;  %v873_v11 = vsub.f32 1.0, %v872_v24  ;;  %v1181_v6 = vmul.f32 %v854_v13, %v10032_v47  ;;  %v895_v47 = vand.u32 2147483647, %v10124_v2  ;;  %v7681_v21 = vld [vmem:[%s14024_s3 + $0x10] sm:$0xf] }
 0x109   : > { %v520_v15 = vpop.f32.mrf.mxu0  ;;  %v1182_v35 = vmul.f32 %v869_v22, %v10035_v42  ;;  %vm891_vm8 = vweird.f32 %v10124_v2  ;;  %v880_v40 = vand.u32 2147483647, %v10109_v25  ;;  %v7686_v14 = vor.u32 %v7926_v58, %v7683_v61  ;;  %v7930_v58 = vld [vmem:[%s14024_s3 + $0x2c] sm:$0xf0] }
 0x10a   : > { %v10143_v28 = vadd.f32 %v10140_v51, %v520_v15  ;;  %v874_v42 = vmul.f32 %v10145_v41, %v873_v11  ;;  %vm896_vm12 = vcmp.eq.f32.partialorder %v895_v47, 8.507059e+37  ;;  %v898_v15 = vor.u32 1.1754944e-38, %v897_v52 }
 0x10b   : > { %v10174_v56 = vpack.c.bf16 %v1182_v35, %v1181_v6  ;;  %1863 = vmatpush.bf16.msrb.mxu2 %v7686_v14  ;;  %vm881_vm13 = vcmp.eq.f32.partialorder %v880_v40, 8.507059e+37  ;;  %v883_v20 = vor.u32 1.1754944e-38, %v882_v63 }
 0x10c   : > { %v7646_v1 = vmul.f32 -1.442695, %v10143_v28  ;;  %v8065_v7 = vpop.eup %8064  ;;  %v875_v55 = vadd.f32 %v10145_v41, %v874_v42 }
 0x10d   : > { %v8067_v26 = vpop.eup %8066  ;;  %v10161_v32 = vadd.f32 1.0, %v8065_v7  ;;  %14131 = vst [vmem:[#allocation8_spill] sm:$0xff] %v10174_v56 }
 0x10e   : > { %8068 = vpow2.f32 %v7646_v1  ;;  %v887_v29 = vmul.f32 %v8067_v26, %v10124_v2  ;;  %vm892_vm6 = vweird.f32 %v8067_v26  ;;  %v879_v25 = vsel %vm10215_vm11, %v10145_v41, %v875_v55  ;;  %v7931_v41 = vld [vmem:[%s14024_s3 + $0x34] sm:$0xf0] }
 0x10f   : > { %8070 = vrcp.f32 %v10161_v32  ;;  %vm10201_vm9 = vmor %vm891_vm8, %vm892_vm6  ;;  %v884_v23 = vsel %vm881_vm13, %v883_v20, %v879_v25  ;;  %v7682_v49 = vor.u32 %v7931_v41, %v7681_v21  ;;  %vm906_vm2 = vweird.f32 %v10161_v32 }
 0x110   : > { %v888_v60 = vsub.f32 1.0, %v887_v29  ;;  %v1183_v29 = vmul.f32 %v884_v23, %v10063_v48  ;;  %v7713_v48 = vld [vmem:[%s14024_s3 + $0x58] sm:$0xf]  ;;  %v910_v61 = vand.u32 2147483647, %v10161_v32 }
 0x111   : > { %v523_v33 = vpop.f32.mrf.mxu0  ;;  %1774 = vmatpush.bf16.msrb.mxu1 %v7682_v49 }
 0x112   : > { %v10165_v38 = vadd.f32 %v10140_v51, %v523_v33  ;;  %v889_v10 = vmul.f32 %v8067_v26, %v888_v60  ;;  %v7940_v60 = vld [vmem:[%s14024_s3 + $0x7c] sm:$0xf0]  ;;  %vm911_vm6 = vcmp.eq.f32.partialorder %v910_v61, 8.507059e+37 }
 0x114   : > { %v8069_v31 = vpop.eup %8068  ;;  %v7647_v43 = vmul.f32 -1.442695, %v10165_v38  ;;  %7795 = vmatmul.msk.bf16.gmra.mxu0 %vm425_vm0, %v10126_v59  ;;  %v890_v53 = vadd.f32 %v8067_v26, %v889_v10 }
 0x115   : > { %v10172_v44 = vadd.f32 1.0, %v8069_v31  ;;  %v10196_v46 = vpop.eup %8070 }
 0x116   : > { %8072 = vpow2.f32 %v7647_v43  ;;  %v894_v17 = vsel %vm10201_vm9, %v8067_v26, %v890_v53  ;;  %v902_v8 = vmul.f32 %v10196_v46, %v10161_v32  ;;  %vm907_vm15 = vweird.f32 %v10196_v46 }
 0x117   : > { %8074 = vrcp.f32 %v10172_v44  ;;  %7748 = vmatmul.msk.bf16.gmra.mxu1 %vm425_vm0, %v10174_v56  ;;  %7764 = vmatmul.msk.bf16.gmra.mxu2 %vm425_vm0, %v10174_v56  ;;  %v899_v16 = vsel %vm896_vm12, %v898_v15, %v894_v17  ;;  %v927_v6 = vand.u32 2147483648, %v10172_v44  ;;  %v7714_v43 = vor.u32 %v7940_v60, %v7713_v48  ;;  %vm908_vm4 = vmor %vm906_vm2, %vm907_vm15 }
 0x118   : > { %7772 = vmatmul.msk.bf16.gmra.mxu3 %vm425_vm0, %v9860_v30  ;;  %v1184_v24 = vmul.f32 %v899_v16, %v10086_v19  ;;  %v903_v26 = vsub.f32 1.0, %v902_v8  ;;  %vm921_vm1 = vweird.f32 %v10172_v44  ;;  %v925_v47 = vand.u32 2147483647, %v10172_v44 }
 0x119   : > { %v525_v54 = vpop.f32.mrf.mxu0  ;;  %1595 = vmatpush.bf16.msrb.mxu3 %v7714_v43 }
 0x11a   : > { %v10188_v57 = vadd.f32 %v10140_v51, %v525_v54  ;;  %v10246_v19 = vpack.c.bf16 %v1184_v24, %v1183_v29  ;;  %v904_v11 = vmul.f32 %v10196_v46, %v903_v26  ;;  %v912_v54 = vand.u32 2147483648, %v10161_v32 }
 0x11b   : > { %vm926_vm5 = vcmp.eq.f32.partialorder %v925_v47, 8.507059e+37 }
 0x11c   : > { %v8073_v36 = vpop.eup %8072  ;;  %v7648_v2 = vmul.f32 -1.442695, %v10188_v57  ;;  %14136 = vst [vmem:[#allocation9_spill] sm:$0xff] %v10246_v19  ;;  %v905_v53 = vadd.f32 %v10196_v46, %v904_v11  ;;  %v913_v5 = vor.u32 1.1754944e-38, %v912_v54 }
 0x11d   : > { %v10211_v62 = vpop.eup %8074  ;;  %v10226_v1 = vadd.f32 1.0, %v8073_v36  ;;  %v928_v36 = vor.u32 1.1754944e-38, %v927_v6 }
 0x11e   : > { %v917_v9 = vmul.f32 %v10211_v62, %v10172_v44  ;;  %8076 = vpow2.f32 %v7648_v2  ;;  %vm922_vm14 = vweird.f32 %v10211_v62  ;;  %v7673_v44 = vld [vmem:[%s14024_s3 + $0x8] sm:$0xf]  ;;  %v909_v32 = vsel %vm908_vm4, %v10196_v46, %v905_v53 }
 0x11f   : > { %8078 = vrcp.f32 %v10226_v1  ;;  %vm10276_vm3 = vmor %vm921_vm1, %vm922_vm14  ;;  %v7674_v0 = vor.u32 %v7930_v58, %v7673_v44  ;;  %v914_v8 = vsel %vm911_vm6, %v913_v5, %v909_v32  ;;  %vm936_vm10 = vweird.f32 %v10226_v1 }
 0x120   : > { %v918_v18 = vsub.f32 1.0, %v917_v9  ;;  %v1185_v41 = vmul.f32 %v914_v8, %v10114_v50  ;;  %v942_v60 = vand.u32 2147483648, %v10226_v1 }
 0x121   : > { %v528_v7 = vpop.f32.mrf.mxu0  ;;  %1596 = vmatpush.bf16.msrb.mxu3 %v7674_v0 }
 0x122   : > { %v10236_v27 = vadd.f32 %v10140_v51, %v528_v7  ;;  %v919_v13 = vmul.f32 %v10211_v62, %v918_v18  ;;  %v943_v0 = vor.u32 1.1754944e-38, %v942_v60 }
 0x124   : > { %v8077_v22 = vpop.eup %8076  ;;  %v7649_v33 = vmul.f32 -1.442695, %v10236_v27  ;;  %7796 = vmatmul.msk.bf16.gmra.mxu0 %vm425_vm0, %v10174_v56  ;;  %v920_v31 = vadd.f32 %v10211_v62, %v919_v13 }
 0x125   : > { %v10244_v35 = vadd.f32 1.0, %v8077_v22  ;;  %v10260_v42 = vpop.eup %8078 }
 0x126   : > { %v924_v40 = vsel %vm10276_vm3, %v10211_v62, %v920_v31  ;;  %v932_v17 = vmul.f32 %v10260_v42, %v10226_v1  ;;  %vm937_vm8 = vweird.f32 %v10260_v42 }
 0x127   : > { %8080 = vrcp.f32 %v10244_v35  ;;  %7749 = vmatmul.msk.bf16.gmra.mxu1 %vm425_vm0, %v10246_v19  ;;  %7765 = vmatmul.msk.bf16.gmra.mxu2 %vm425_vm0, %v10246_v19  ;;  %v929_v15 = vsel %vm926_vm5, %v928_v36, %v924_v40  ;;  %v955_v22 = vand.u32 2147483647, %v10244_v35  ;;  %v957_v29 = vand.u32 2147483648, %v10244_v35  ;;  %vm10351_vm12 = vmor %vm936_vm10, %vm937_vm8 }
 0x128   : > { %8082 = vpow2.f32 %v7649_v33  ;;  %7773 = vmatmul.msk.bf16.gmra.mxu3 %vm425_vm0, %v9999_v45  ;;  %v933_v9 = vsub.f32 1.0, %v932_v17  ;;  %v1186_v18 = vmul.f32 %v929_v15, %v10143_v28  ;;  %v10329_v33 = vld [vmem:[%s14025_s4] sm:$0xff]  ;;  %vm951_vm9 = vweird.f32 %v10244_v35 }
 0x129   : > { %v530_v10 = vpop.f32.mrf.mxu0  ;;  %v10361_v47 = vperm.slane %v10329_v33, 0  ;;  %vm956_vm13 = vcmp.eq.f32.partialorder %v955_v22, 8.507059e+37  ;;  %v958_v58 = vor.u32 1.1754944e-38, %v957_v29 }
 0x12a   : > { %v10270_v52 = vadd.f32 %v10140_v51, %v530_v10  ;;  %v934_v49 = vmul.f32 %v10260_v42, %v933_v9  ;;  %v10317_v28 = vpack.c.bf16 %v1186_v18, %v1185_v41  ;;  %v940_v10 = vand.u32 2147483647, %v10226_v1 }
 0x12b   : > { %v10369_v1 = vperm.slane %v10329_v33, 1 }
 0x12c   : > { %v7650_v63 = vmul.f32 -1.442695, %v10270_v52  ;;  %14139 = vst [vmem:[#allocation10_spill] sm:$0xff] %v10317_v28  ;;  %v935_v26 = vadd.f32 %v10260_v42, %v934_v49  ;;  %vm941_vm14 = vcmp.eq.f32.partialorder %v940_v10, 8.507059e+37 }
 0x12d   : > { %v10293_v14 = vpop.eup %8080 }
 0x12e   : > { %v8083_v2 = vpop.eup %8082  ;;  %v947_v62 = vmul.f32 %v10293_v14, %v10244_v35  ;;  %8084 = vpow2.f32 %v7650_v63  ;;  %vm952_vm7 = vweird.f32 %v10293_v14  ;;  %v939_v44 = vsel %vm10351_vm12, %v10260_v42, %v935_v26 }
 0x12f   : > { %v10302_v20 = vadd.f32 1.0, %v8083_v2  ;;  %vm10343_vm11 = vmor %vm951_vm9, %vm952_vm7  ;;  %v944_v42 = vsel %vm941_vm14, %v943_v0, %v939_v44 }
 0x130   : > { %v948_v25 = vsub.f32 1.0, %v947_v62 }
 0x131   : > { %v533_v16 = vpop.f32.mrf.mxu0  ;;  %8086 = vrcp.f32 %v10302_v20  ;;  %vm966_vm15 = vweird.f32 %v10302_v20  ;;  %v970_v0 = vand.u32 2147483647, %v10302_v20 }
 0x132   : > { %v10306_v21 = vadd.f32 %v10140_v51, %v533_v16  ;;  %v949_v23 = vmul.f32 %v10293_v14, %v948_v25  ;;  %v1187_v16 = vmul.f32 %v944_v42, %v10165_v38 }
 0x133   : > { %vm971_vm7 = vcmp.eq.f32.partialorder %v970_v0, 8.507059e+37 }
 0x134   : > { %v8085_v46 = vpop.eup %8084  ;;  %v7651_v7 = vmul.f32 -1.442695, %v10306_v21  ;;  %7797 = vmatmul.msk.bf16.gmra.mxu0 %vm425_vm0, %v10246_v19  ;;  %v950_v50 = vadd.f32 %v10293_v14, %v949_v23 }
 0x135   : > { %v10315_v24 = vadd.f32 1.0, %v8085_v46 }
 0x136   : > { %8088 = vpow2.f32 %v7651_v7  ;;  %v954_v43 = vsel %vm10343_vm11, %v10293_v14, %v950_v50 }
 0x137   : > { %8090 = vrcp.f32 %v10315_v24  ;;  %7750 = vmatmul.msk.bf16.gmra.mxu1 %vm425_vm0, %v10317_v28  ;;  %7766 = vmatmul.msk.bf16.gmra.mxu2 %vm425_vm0, %v10317_v28  ;;  %v10339_v48 = vpop.eup %8086  ;;  %v959_v14 = vsel %vm956_vm13, %v958_v58, %v954_v43  ;;  %v987_v22 = vand.u32 2147483648, %v10315_v24  ;;  %vm981_vm3 = vweird.f32 %v10315_v24 }
 0x138   : > { %7774 = vmatmul.msk.bf16.gmra.mxu3 %vm425_vm0, %v10076_v12  ;;  %v962_v61 = vmul.f32 %v10339_v48, %v10302_v20  ;;  %v1188_v5 = vmul.f32 %v959_v14, %v10188_v57  ;;  %vm967_vm2 = vweird.f32 %v10339_v48  ;;  %v985_v10 = vand.u32 2147483647, %v10315_v24 }
 0x139   : > { %v535_v13 = vpop.f32.mrf.mxu0  ;;  %v1420_v54 = vpop.f32.mrf.mxu1  ;;  %vm10439_vm5 = vmor %vm966_vm15, %vm967_vm2 }
 0x13a   : > { %v10337_v11 = vadd.f32 %v10140_v51, %v535_v13  ;;  %v1421_v2 = vadd.f32 %v1420_v54, %v10361_v47  ;;  %v963_v15 = vsub.f32 1.0, %v962_v61  ;;  %v10394_v23 = vpack.c.bf16 %v1188_v5, %v1187_v16 }
 0x13b   : > { %v972_v54 = vand.u32 2147483648, %v10302_v20  ;;  %vm986_vm6 = vcmp.eq.f32.partialorder %v985_v10, 8.507059e+37 }
 0x13c   : > { %v8089_v35 = vpop.eup %8088  ;;  %v7652_v53 = vmul.f32 -1.442695, %v10337_v11  ;;  %14144 = vst [vmem:[#allocation11_spill] sm:$0xff] %v10394_v23  ;;  %v964_v7 = vmul.f32 %v10339_v48, %v963_v15 }
 0x13d   : > { %v10363_v55 = vpop.eup %8090  ;;  %v10375_v63 = vadd.f32 1.0, %v8089_v35  ;;  %v973_v5 = vor.u32 1.1754944e-38, %v972_v54 }
 0x13e   : > { %v977_v40 = vmul.f32 %v10363_v55, %v10315_v24  ;;  %8092 = vpow2.f32 %v7652_v53  ;;  %vm982_vm1 = vweird.f32 %v10363_v55  ;;  %v965_v6 = vadd.f32 %v10339_v48, %v964_v7 }
 0x13f   : > { %v1509_v17 = vpop.f32.mrf.mxu2  ;;  %8094 = vrcp.f32 %v10375_v63  ;;  %vm10419_vm4 = vmor %vm981_vm3, %vm982_vm1  ;;  %vm996_vm10 = vweird.f32 %v10375_v63 }
 0x140   : > { %v978_v36 = vsub.f32 1.0, %v977_v40  ;;  %v1510_v32 = vadd.f32 %v1509_v17, %v10369_v1 }
 0x141   : > { %v538_v62 = vpop.f32.mrf.mxu0  ;;  %v1422_v49 = vpop.f32.mrf.mxu1 }
 0x142   : > { %v10382_v25 = vadd.f32 %v10140_v51, %v538_v62  ;;  %v10384_v8 = vpack.c.bf16 %v1510_v32, %v1421_v2  ;;  %v979_v18 = vmul.f32 %v10363_v55, %v978_v36  ;;  %v1423_v31 = vadd.f32 %v1422_v49, %v10361_v47 }
 0x143   : > { %v988_v36 = vor.u32 1.1754944e-38, %v987_v22  ;;  %v1000_v22 = vand.u32 2147483647, %v10375_v63 }
 0x144   : > { %v8093_v9 = vpop.eup %8092  ;;  %v7653_v46 = vmul.f32 -1.442695, %v10382_v25  ;;  %7798 = vmatmul.msk.bf16.gmra.mxu0 %vm425_vm0, %v10317_v28  ;;  %v2461_v57 = vxor.u32 2147516416, %v10384_v8  ;;  %v980_v26 = vadd.f32 %v10363_v55, %v979_v18 }
 0x145   : > { %v10391_v41 = vadd.f32 1.0, %v8093_v9  ;;  %v10397_v50 = vpop.f32.mrf.mxu3  ;;  %v10401_v38 = vpop.eup %8094  ;;  %vm10491_vm13 = vcmp.eq.f32.partialorder %v1000_v22, 8.507059e+37 }
 0x146   : > { %8096 = vpow2.f32 %v7653_v46  ;;  %v2621_v29 = vunpack.c.l.bf16 %v2461_v57  ;;  %v2622_v60 = vunpack.c.h.bf16 %v2461_v57  ;;  %v992_v58 = vmul.f32 %v10401_v38, %v10375_v63 }
 0x147   : > { %8098 = vrcp.f32 %v10391_v41  ;;  %v1511_v13 = vpop.f32.mrf.mxu2  ;;  %7751 = vmatmul.msk.bf16.gmra.mxu1 %vm425_vm0, %v10394_v23  ;;  %7767 = vmatmul.msk.bf16.gmra.mxu2 %vm425_vm0, %v10394_v23  ;;  %v984_v14 = vsel %vm10419_vm4, %v10363_v55, %v980_v26  ;;  %v969_v55 = vsel %vm10439_vm5, %v10339_v48, %v965_v6  ;;  %vm997_vm8 = vweird.f32 %v10401_v38 }
 0x148   : > { %v1512_v35 = vadd.f32 %v1511_v13, %v10369_v1  ;;  %v2941_v43 = vmul.f32 1.442695, %v2621_v29  ;;  %v2943_v24 = vmul.f32 1.442695, %v2622_v60  ;;  %7775 = vmatmul.msk.bf16.vlgmr.msrb.gmra.mxu3 %vm425_vm0, %v9681_v4  ;;  %v989_v15 = vsel %vm986_vm6, %v988_v36, %v984_v14  ;;  %vm10482_vm11 = vmor %vm996_vm10, %vm997_vm8 }
 0x149   : > { %v540_v53 = vpop.f32.mrf.mxu0  ;;  %v993_v9 = vsub.f32 1.0, %v992_v58  ;;  %v1190_v26 = vmul.f32 %v989_v15, %v10270_v52  ;;  %v1002_v52 = vand.u32 2147483648, %v10375_v63  ;;  %vm1011_vm12 = vweird.f32 %v10391_v41 }
 0x14a   : > { %v10427_v61 = vpack.c.bf16 %v1512_v35, %v1423_v31  ;;  %8100 = vpow2.f32 %v2941_v43  ;;  %v10447_v62 = vadd.f32 %v10140_v51, %v540_v53  ;;  %v974_v51 = vsel %vm971_vm7, %v973_v5, %v969_v55 }
 0x14b   : > { %8102 = vpow2.f32 %v2943_v24  ;;  %v1425_v49 = vpop.f32.mrf.mxu1  ;;  %v994_v60 = vmul.f32 %v10401_v38, %v993_v9  ;;  %v1189_v10 = vmul.f32 %v974_v51, %v10236_v27  ;;  %v1017_v27 = vand.u32 2147483648, %v10391_v41 }
 0x14c   : > { %v8097_v40 = vpop.eup %8096  ;;  %v2466_v32 = vxor.u32 2147516416, %v10427_v61  ;;  %v7654_v7 = vmul.f32 -1.442695, %v10447_v62  ;;  %v1426_v54 = vadd.f32 %v1425_v49, %v10361_v47  ;;  %v1015_v5 = vand.u32 2147483647, %v10391_v41 }
 0x14d   : > { %v10433_v17 = vpop.eup %8098  ;;  %v10443_v2 = vadd.f32 1.0, %v8097_v40  ;;  %v10455_v46 = vpop.f32.mrf.mxu3  ;;  %v10471_v58 = vpack.c.bf16 %v1190_v26, %v1189_v10  ;;  %v995_v0 = vadd.f32 %v10401_v38, %v994_v60  ;;  %v1018_v22 = vor.u32 1.1754944e-38, %v1017_v27 }
 0x14e   : > { %v1007_v20 = vmul.f32 %v10433_v17, %v10391_v41  ;;  %v2631_v18 = vunpack.c.l.bf16 %v2466_v32  ;;  %v2632_v57 = vunpack.c.h.bf16 %v2466_v32  ;;  %vm1012_vm9 = vweird.f32 %v10433_v17 }
 0x14f   : > { %8104 = vrcp.f32 %v10443_v2  ;;  %14149 = vst [vmem:[#allocation12_spill] sm:$0xff] %v10471_v58  ;;  %vm10495_vm14 = vmor %vm1011_vm12, %vm1012_vm9  ;;  %v999_v49 = vsel %vm10482_vm11, %v10401_v38, %v995_v0  ;;  %vm1016_vm15 = vcmp.eq.f32.partialorder %v1015_v5, 8.507059e+37  ;;  %vm1026_vm3 = vweird.f32 %v10443_v2 }
 0x150   : > { %v1008_v16 = vsub.f32 1.0, %v1007_v20  ;;  %v8101_v48 = vpop.eup %8100  ;;  %v2961_v29 = vmul.f32 1.442695, %v2631_v18  ;;  %v2963_v35 = vmul.f32 1.442695, %v2632_v57  ;;  %8106 = vpow2.f32 %v7654_v7 }
 0x151   : > { %v8103_v13 = vpop.eup %8102  ;;  %v1514_v6 = vpop.f32.mrf.mxu2 }
 0x152   : > { %v1009_v31 = vmul.f32 %v10433_v17, %v1008_v16  ;;  %v3581_v43 = vpack.c.bf16 %v8103_v13, %v8101_v48  ;;  %8108 = vpow2.f32 %v2961_v29  ;;  %v1515_v53 = vadd.f32 %v1514_v6, %v10369_v1 }
 0x153   : > { %8110 = vpow2.f32 %v2963_v35  ;;  %v1003_v48 = vor.u32 1.1754944e-38, %v1002_v52  ;;  %v1427_v29 = vpop.f32.mrf.mxu1 }
 0x154   : > { %7799 = vmatmul.msk.bf16.gmra.mxu0 %vm425_vm0, %v10394_v23  ;;  %v3741_v24 = vunpack.c.l.bf16 %v3581_v43  ;;  %v3742_v40 = vunpack.c.h.bf16 %v3581_v43  ;;  %v1010_v14 = vadd.f32 %v10433_v17, %v1009_v31  ;;  %v10477_v36 = vpack.c.bf16 %v1515_v53, %v1426_v54 }
 0x155   : > { %v10469_v44 = vpop.eup %8104 }
 0x156   : > { %v4061_v42 = vadd.f32 1.0, %v3741_v24  ;;  %v4062_v32 = vadd.f32 1.0, %v3742_v40  ;;  %v8107_v55 = vpop.eup %8106  ;;  %v1022_v15 = vmul.f32 %v10469_v44, %v10443_v2  ;;  %v2471_v9 = vxor.u32 2147516416, %v10477_v36  ;;  %v10505_v41 = vpop.f32.mrf.mxu3 }
 0x157   : > { %v10499_v57 = vadd.f32 1.0, %v8107_v55  ;;  %7752 = vmatmul.msk.bf16.gmra.mxu1 %vm425_vm0, %v10471_v58  ;;  %7768 = vmatmul.msk.bf16.gmra.mxu2 %vm425_vm0, %v10471_v58  ;;  %v1014_v26 = vsel %vm10495_vm14, %v10433_v17, %v1010_v14  ;;  %v1004_v17 = vsel %vm10491_vm13, %v1003_v48, %v999_v49  ;;  %v1428_v40 = vadd.f32 %v1427_v29, %v10361_v47 }
 0x158   : > { %v8109_v16 = vpop.eup %8108  ;;  %v4381_v51 = vpack.c.bf16 %v4062_v32, %v4061_v42  ;;  %7776 = vmatmul.msk.bf16.gmra.mxu3 %vm425_vm0, %v9838_v37  ;;  %v2641_v35 = vunpack.c.l.bf16 %v2471_v9  ;;  %v1023_v6 = vsub.f32 1.0, %v1022_v15  ;;  %v2642_v10 = vunpack.c.h.bf16 %v2471_v9 }
 0x159   : > { %v8111_v7 = vpop.eup %8110  ;;  %8112 = vrcp.f32 %v10499_v57  ;;  %v1019_v38 = vsel %vm1016_vm15, %v1018_v22, %v1014_v26  ;;  %v1516_v52 = vpop.f32.mrf.mxu2  ;;  %v9414_v55 = vmov 1065369472   ;;  %v1191_v9 = vmul.f32 %v1004_v17, %v10306_v21 }
 0x15a   : > { %v4543_v13 = vunpack.c.h.bf16 %v4381_v51  ;;  %v4544_v60 = vunpack.c.l.bf16 %v4381_v51  ;;  %v3586_v31 = vpack.c.bf16 %v8111_v7, %v8109_v16  ;;  %v2981_v24 = vmul.f32 1.442695, %v2641_v35 }
 0x15b   : > { %v1192_v0 = vmul.f32 %v1019_v38, %v10337_v11  ;;  %v1024_v14 = vmul.f32 %v10469_v44, %v1023_v6  ;;  %v2983_v42 = vmul.f32 1.442695, %v2642_v10  ;;  %v1517_v32 = vadd.f32 %v1516_v52, %v10369_v1 }
 0x15c   : > { %8114 = vrcp.f32 %v4543_v13  ;;  %v3751_v43 = vunpack.c.l.bf16 %v3586_v31  ;;  %v3752_v53 = vunpack.c.h.bf16 %v3586_v31  ;;  %v10522_v20 = vunpack.c.h.bf16 %v9414_v55 }
 0x15d   : > { %8116 = vrcp.f32 %v4544_v60  ;;  %v10525_v16 = vunpack.c.l.bf16 %v9414_v55  ;;  %v10527_v63 = vpack.c.bf16 %v1517_v32, %v1428_v40  ;;  %v1030_v11 = vand.u32 2147483647, %v10443_v2 }
 0x15e   : > { %v4071_v54 = vadd.f32 1.0, %v3751_v43  ;;  %v4072_v27 = vadd.f32 1.0, %v3752_v53  ;;  %8118 = vpow2.f32 %v2981_v24  ;;  %v10531_v48 = vpop.f32.mrf.mxu3  ;;  %v10535_v22 = vpack.c.bf16 %v1192_v0, %v1191_v9 }
 0x15f   : > { %v8113_v15 = vpop.eup %8112  ;;  %8120 = vpow2.f32 %v2983_v42  ;;  %v1025_v21 = vadd.f32 %v10469_v44, %v1024_v14  ;;  %vm1027_vm1 = vweird.f32 %v10469_v44  ;;  %v2476_v29 = vxor.u32 2147516416, %v10527_v63 }
 0x160   : > { %v4386_v5 = vpack.c.bf16 %v4072_v27, %v4071_v54  ;;  %v1037_v49 = vmul.f32 %v8113_v15, %v10499_v57  ;;  %14156 = vst [vmem:[#allocation13_spill] sm:$0xff] %v10535_v22  ;;  %v1047_v35 = vand.u32 2147483648, %v10499_v57  ;;  %v1032_v53 = vand.u32 2147483648, %v10443_v2  ;;  %vm10548_vm4 = vmor %vm1026_vm3, %vm1027_vm1 }
 0x161   : > { %v2651_v10 = vunpack.c.l.bf16 %v2476_v29  ;;  %v2652_v38 = vunpack.c.h.bf16 %v2476_v29  ;;  %vm1042_vm2 = vweird.f32 %v8113_v15  ;;  %v1045_v17 = vand.u32 2147483647, %v10499_v57 }
 0x162   : > { %v8115_v18 = vpop.eup %8114  ;;  %v4578_v51 = vunpack.c.h.bf16 %v4386_v5  ;;  %v4579_v7 = vunpack.c.l.bf16 %v4386_v5  ;;  %v1430_v13 = vpop.f32.mrf.mxu1  ;;  %v1038_v31 = vsub.f32 1.0, %v1037_v49  ;;  %vm10552_vm5 = vcmp.eq.f32.partialorder %v1030_v11, 8.507059e+37 }
 0x163   : > { %v8117_v26 = vpop.eup %8116  ;;  %v4546_v60 = vmul.f32 %v8115_v18, %v10522_v20  ;;  %v3001_v27 = vmul.f32 1.442695, %v2651_v10  ;;  %v3003_v24 = vmul.f32 1.442695, %v2652_v38  ;;  %vm1041_vm6 = vweird.f32 %v10499_v57 }
 0x164   : > { %7800 = vmatmul.msk.bf16.gmra.mxu0 %vm425_vm0, %v10471_v58  ;;  %8122 = vrcp.f32 %v4578_v51  ;;  %v4548_v6 = vmul.f32 %v8117_v26, %v10525_v16  ;;  %v8119_v43 = vpop.eup %8118  ;;  %v1039_v52 = vmul.f32 %v8113_v15, %v1038_v31  ;;  %v1029_v32 = vsel %vm10548_vm4, %v10469_v44, %v1025_v21  ;;  %vm1043_vm7 = vmor %vm1041_vm6, %vm1042_vm2 }
 0x165   : > { %8124 = vrcp.f32 %v4579_v7  ;;  %v8121_v54 = vpop.eup %8120  ;;  %v1048_v55 = vor.u32 1.1754944e-38, %v1047_v35  ;;  %v1033_v9 = vor.u32 1.1754944e-38, %v1032_v53  ;;  %vm1046_vm8 = vcmp.eq.f32.partialorder %v1045_v17, 8.507059e+37 }
 0x166   : > { %v1040_v14 = vadd.f32 %v8113_v15, %v1039_v52  ;;  %v3591_v42 = vpack.c.bf16 %v8121_v54, %v8119_v43  ;;  %v4549_v2 = vpack.c.bf16 %v4546_v60, %v4548_v6  ;;  %8126 = vpow2.f32 %v3001_v27 }
 0x167   : > { %7753 = vmatmul.msk.bf16.gmra.mxu1 %vm425_vm0, %v10535_v22  ;;  %7769 = vmatmul.msk.bf16.gmra.mxu2 %vm425_vm0, %v10535_v22  ;;  %8128 = vpow2.f32 %v3003_v24  ;;  %v1034_v21 = vsel %vm10552_vm5, %v1033_v9, %v1029_v32  ;;  %v5663_v38 = vunpack.c.l.bf16 %v10384_v8  ;;  %v5664_v43 = vunpack.c.h.bf16 %v10384_v8 }
 0x168   : > { %v1519_v5 = vpop.f32.mrf.mxu2  ;;  %7777 = vmatmul.msk.bf16.gmra.mxu3 %vm425_vm0, %v9981_v39  ;;  %v1044_v18 = vsel %vm1043_vm7, %v8113_v15, %v1040_v14  ;;  %v3761_v11 = vunpack.c.l.bf16 %v3591_v42  ;;  %v3762_v26 = vunpack.c.h.bf16 %v3591_v42  ;;  %v5983_v35 = vunpack.c.l.bf16 %v4549_v2 }
 0x169   : > { %v1049_v49 = vsel %vm1046_vm8, %v1048_v55, %v1044_v18  ;;  %v1431_v15 = vadd.f32 %v1430_v13, %v10361_v47  ;;  %v1520_v10 = vadd.f32 %v1519_v5, %v10369_v1  ;;  %v5673_v54 = vunpack.c.l.bf16 %v10427_v61 }
 0x16a   : > { %v8123_v57 = vpop.eup %8122  ;;  %v1432_v44 = vpop.f32.mrf.mxu1  ;;  %v4081_v60 = vadd.f32 1.0, %v3761_v11  ;;  %v4082_v6 = vadd.f32 1.0, %v3762_v26  ;;  %v1194_v52 = vmul.f32 %v1049_v49, %v10447_v62  ;;  %v5674_v27 = vunpack.c.h.bf16 %v10427_v61 }
 0x16b   : > { %v8125_v51 = vpop.eup %8124  ;;  %v4581_v7 = vmul.f32 %v8123_v57, %v10522_v20  ;;  %v10571_v31 = vpop.f32.mrf.mxu3  ;;  %v10580_v40 = vpack.c.bf16 %v1520_v10, %v1431_v15  ;;  %v5984_v0 = vunpack.c.h.bf16 %v4549_v2  ;;  %v1193_v13 = vmul.f32 %v1034_v21, %v10382_v25 }
 0x16c   : > { %v4583_v29 = vmul.f32 %v8125_v51, %v10525_v16  ;;  %v8127_v17 = vpop.eup %8126  ;;  %v4391_v24 = vpack.c.bf16 %v4082_v6, %v4081_v60  ;;  %v6303_v55 = vmul.f32 %v5983_v35, %v5663_v38  ;;  %v1433_v61 = vadd.f32 %v1432_v44, %v10361_v47  ;;  %v10594_v38 = vpop.f32.mrf.mxu0 }
 0x16d   : > { %v8129_v32 = vpop.eup %8128  ;;  %v2481_v57 = vxor.u32 2147516416, %v10580_v40  ;;  %v10584_v18 = vpack.c.bf16 %v1194_v52, %v1193_v13 }
 0x16e   : > { %v4584_v53 = vpack.c.bf16 %v4581_v7, %v4583_v29  ;;  %v4613_v5 = vunpack.c.h.bf16 %v4391_v24  ;;  %v4614_v8 = vunpack.c.l.bf16 %v4391_v24  ;;  %v3596_v11 = vpack.c.bf16 %v8129_v32, %v8127_v17 }
 0x16f   : > { %14161 = vst [vmem:[#allocation14_spill] sm:$0xff] %v10584_v18  ;;  %v2661_v25 = vunpack.c.l.bf16 %v2481_v57  ;;  %v2662_v2 = vunpack.c.h.bf16 %v2481_v57  ;;  %v6304_v29 = vmul.f32 %v5984_v0, %v5664_v43  ;;  %v10600_v17 = vperm.slane %v10329_v33, 3 }
 0x170   : > { %v5993_v14 = vunpack.c.l.bf16 %v4584_v53  ;;  %v5994_v42 = vunpack.c.h.bf16 %v4584_v53  ;;  %v1521_v62 = vpop.f32.mrf.mxu2  ;;  %8130 = vrcp.f32 %v4613_v5  ;;  %v3771_v49 = vunpack.c.l.bf16 %v3596_v11 }
 0x171   : > { %v1522_v51 = vadd.f32 %v1521_v62, %v10369_v1  ;;  %8132 = vrcp.f32 %v4614_v8  ;;  %v3772_v26 = vunpack.c.h.bf16 %v3596_v11  ;;  %v3021_v60 = vmul.f32 1.442695, %v2661_v25  ;;  %14162 = vst [vmem:[#allocation15_spill] sm:$0xff] %v10600_v17 }
 0x172   : > { %v6313_v9 = vmul.f32 %v5993_v14, %v5673_v54  ;;  %v6314_v7 = vmul.f32 %v5994_v42, %v5674_v27  ;;  %v3023_v35 = vmul.f32 1.442695, %v2662_v2  ;;  %v1435_v44 = vpop.f32.mrf.mxu1  ;;  %v4091_v15 = vadd.f32 1.0, %v3771_v49 }
 0x173   : > { %v10590_v21 = vpop.f32.mrf.mxu3  ;;  %v10592_v6 = vpack.c.bf16 %v1522_v51, %v1433_v61  ;;  %v4092_v10 = vadd.f32 1.0, %v3772_v26  ;;  %8134 = vpow2.f32 %v3021_v60  ;;  %v6623_v27 = vpack.c.bf16 %v6304_v29, %v6303_v55 }
 0x174   : > { %7801 = vmatmul.msk.bf16.gmra.mxu0 %vm425_vm0, %v10535_v22  ;;  %v10597_v52 = vpack.c.bf16 %v6314_v7, %v6313_v9  ;;  %8136 = vpow2.f32 %v3023_v35  ;;  %v1436_v13 = vadd.f32 %v1435_v44, %v10361_v47  ;;  %v10613_v57 = vadd.f32 %v10397_v50, %v10361_v47 }
 0x175   : > { %v2486_v53 = vxor.u32 2147516416, %v10592_v6  ;;  %v4396_v54 = vpack.c.bf16 %v4092_v10, %v4091_v15  ;;  %v5683_v61 = vunpack.c.l.bf16 %v10477_v36  ;;  %v5684_v49 = vunpack.c.h.bf16 %v10477_v36 }
 0x176   : > { %v8131_v43 = vpop.eup %8130  ;;  %v6793_v11 = vunpack.c.l.bf16 %v10597_v52  ;;  %v5693_v50 = vunpack.c.l.bf16 %v10527_v63  ;;  %v6783_v29 = vunpack.c.l.bf16 %v6623_v27  ;;  %v6784_v60 = vunpack.c.h.bf16 %v6623_v27 }
 0x177   : > { %7754 = vmatmul.msk.bf16.gmra.mxu1 %vm425_vm0, %v10584_v18  ;;  %7770 = vmatmul.msk.bf16.gmra.mxu2 %vm425_vm0, %v10584_v18  ;;  %v2671_v24 = vunpack.c.l.bf16 %v2486_v53  ;;  %v2672_v0 = vunpack.c.h.bf16 %v2486_v53  ;;  %v8133_v33 = vpop.eup %8132  ;;  %v4616_v42 = vmul.f32 %v8131_v43, %v10522_v20  ;;  %v4648_v32 = vunpack.c.h.bf16 %v4396_v54 }
 0x178   : > { %v1524_v14 = vpop.f32.mrf.mxu2  ;;  %7778 = vmatmul.msk.bf16.gmra.mxu3 %vm425_vm0, %v10066_v3  ;;  %v4649_v5 = vunpack.c.l.bf16 %v4396_v54  ;;  %v4618_v55 = vmul.f32 %v8133_v33, %v10525_v16  ;;  %v6794_v54 = vunpack.c.h.bf16 %v10597_v52  ;;  %v7113_v43 = vadd.f32 %v6793_v11, %v6783_v29 }
 0x179   : > { %v1525_v8 = vadd.f32 %v1524_v14, %v10369_v1  ;;  %v3041_v62 = vmul.f32 1.442695, %v2671_v24  ;;  %v3043_v9 = vmul.f32 1.442695, %v2672_v0  ;;  %8138 = vrcp.f32 %v4648_v32  ;;  %v8135_v51 = vpop.eup %8134  ;;  %v10626_v14 = vpop.f32.mrf.mxu0 }
 0x17a   : > { %v4619_v7 = vpack.c.bf16 %v4616_v42, %v4618_v55  ;;  %8140 = vrcp.f32 %v4649_v5  ;;  %v8137_v26 = vpop.eup %8136  ;;  %v1437_v53 = vpop.f32.mrf.mxu1 }
 0x17b   : > { %v10618_v25 = vpack.c.bf16 %v1525_v8, %v1436_v13  ;;  %v10620_v2 = vpop.f32.mrf.mxu3  ;;  %8142 = vpow2.f32 %v3041_v62  ;;  %v3601_v10 = vpack.c.bf16 %v8137_v26, %v8135_v51  ;;  %v1438_v55 = vadd.f32 %v1437_v53, %v10361_v47 }
 0x17c   : > { %v6003_v44 = vunpack.c.l.bf16 %v4619_v7  ;;  %v6004_v15 = vunpack.c.h.bf16 %v4619_v7  ;;  %8144 = vpow2.f32 %v3043_v9 }
 0x17d   : > { %v2491_v35 = vxor.u32 2147516416, %v10618_v25  ;;  %v3781_v33 = vunpack.c.l.bf16 %v3601_v10  ;;  %v3782_v42 = vunpack.c.h.bf16 %v3601_v10 }
 0x17e   : > { %v6323_v36 = vmul.f32 %v6003_v44, %v5683_v61  ;;  %v6324_v13 = vmul.f32 %v6004_v15, %v5684_v49  ;;  %v7144_v49 = vadd.f32 %v6794_v54, %v6784_v60 }
 0x17f   : > { %v2681_v24 = vunpack.c.l.bf16 %v2491_v35  ;;  %v2682_v0 = vunpack.c.h.bf16 %v2491_v35  ;;  %v8139_v32 = vpop.eup %8138  ;;  %v4101_v61 = vadd.f32 1.0, %v3781_v33  ;;  %v4102_v51 = vadd.f32 1.0, %v3782_v42 }
 0x180   : > { %v1526_v27 = vpop.f32.mrf.mxu2  ;;  %v8141_v52 = vpop.eup %8140  ;;  %v6633_v9 = vpack.c.bf16 %v6324_v13, %v6323_v36  ;;  %v4651_v11 = vmul.f32 %v8139_v32, %v10522_v20 }
 0x181   : > { %v3061_v5 = vmul.f32 1.442695, %v2681_v24  ;;  %v3063_v8 = vmul.f32 1.442695, %v2682_v0  ;;  %v1527_v62 = vadd.f32 %v1526_v27, %v10369_v1  ;;  %v8143_v7 = vpop.eup %8142  ;;  %v4653_v26 = vmul.f32 %v8141_v52, %v10525_v16 }
 0x182   : > { %v8145_v44 = vpop.eup %8144  ;;  %v6803_v15 = vunpack.c.l.bf16 %v6633_v9  ;;  %v6804_v10 = vunpack.c.h.bf16 %v6633_v9  ;;  %v4401_v53 = vpack.c.bf16 %v4102_v51, %v4101_v61  ;;  %v5694_v0 = vunpack.c.h.bf16 %v10527_v63 }
 0x183   : > { %8146 = vpow2.f32 %v3061_v5  ;;  %v10634_v29 = vpack.c.bf16 %v1527_v62, %v1438_v55  ;;  %v10636_v35 = vpop.f32.mrf.mxu3  ;;  %v4654_v24 = vpack.c.bf16 %v4651_v11, %v4653_v26  ;;  %v3606_v36 = vpack.c.bf16 %v8145_v44, %v8143_v7 }
 0x184   : > { %7802 = vmatmul.msk.bf16.gmra.mxu0 %vm425_vm0, %v10584_v18  ;;  %8148 = vpow2.f32 %v3063_v8  ;;  %v7114_v33 = vadd.f32 %v7113_v43, %v6803_v15  ;;  %v7145_v60 = vadd.f32 %v7144_v49, %v6804_v10  ;;  %v4683_v54 = vunpack.c.h.bf16 %v4401_v53  ;;  %v1440_v52 = vpop.f32.mrf.mxu1 }
 0x185   : > { %v2496_v13 = vxor.u32 2147516416, %v10634_v29  ;;  %v4684_v42 = vunpack.c.l.bf16 %v4401_v53  ;;  %v6013_v27 = vunpack.c.l.bf16 %v4654_v24  ;;  %v6014_v32 = vunpack.c.h.bf16 %v4654_v24 }
 0x186   : > { %v3791_v5 = vunpack.c.l.bf16 %v3606_v36  ;;  %v3792_v55 = vunpack.c.h.bf16 %v3606_v36  ;;  %v10646_v8 = vadd.f32 %v10455_v46, %v10361_v47  ;;  %8150 = vrcp.f32 %v4683_v54  ;;  %v10656_v46 = vpop.f32.mrf.mxu0 }
 0x187   : > { %7807 = vmatmul.msk.bf16.vlgmr.msrb.gmra.mxu1 %vm425_vm0, %v9681_v4  ;;  %7823 = vmatmul.msk.bf16.vlgmr.msrb.gmra.mxu2 %vm425_vm0, %v9681_v4  ;;  %v2691_v62 = vunpack.c.l.bf16 %v2496_v13  ;;  %v2692_v43 = vunpack.c.h.bf16 %v2496_v13  ;;  %v6333_v11 = vmul.f32 %v6013_v27, %v5693_v50  ;;  %v6334_v61 = vmul.f32 %v6014_v32, %v5694_v0 }
 0x188   : > { %7779 = vmatmul.msk.bf16.gmra.mxu3 %vm425_vm0, %v10126_v59  ;;  %8152 = vrcp.f32 %v4684_v42  ;;  %v4111_v51 = vadd.f32 1.0, %v3791_v5  ;;  %v10654_v49 = vadd.f32 %v10594_v38, %v10600_v17  ;;  %v4112_v26 = vadd.f32 1.0, %v3792_v55 }
 0x189   : > { %v8147_v9 = vpop.eup %8146  ;;  %v3081_v44 = vmul.f32 1.442695, %v2691_v62  ;;  %v3083_v15 = vmul.f32 1.442695, %v2692_v43  ;;  %v10660_v53 = vadd.f32 %v10505_v41, %v10361_v47  ;;  %v6638_v63 = vpack.c.bf16 %v6334_v61, %v6333_v11 }
 0x18a   : > { %v8149_v7 = vpop.eup %8148  ;;  %14163 = vst [vmem:[#allocation16_spill] sm:$0xff] %v10654_v49  ;;  %v1529_v10 = vpop.f32.mrf.mxu2  ;;  %v4406_v36 = vpack.c.bf16 %v4112_v26, %v4111_v51  ;;  %v1441_v38 = vadd.f32 %v1440_v52, %v10361_v47 }
 0x18b   : > { %v3611_v50 = vpack.c.bf16 %v8149_v7, %v8147_v9  ;;  %v1530_v24 = vadd.f32 %v1529_v10, %v10369_v1  ;;  %v1569_v0 = vpop.f32.mrf.mxu3  ;;  %8154 = vpow2.f32 %v3081_v44  ;;  %v6813_v54 = vunpack.c.l.bf16 %v6638_v63 }
 0x18c   : > { %v1570_v13 = vadd.f32 %v1569_v0, %v10369_v1  ;;  %v6814_v42 = vunpack.c.h.bf16 %v6638_v63  ;;  %v8151_v5 = vpop.eup %8150  ;;  %v4718_v55 = vunpack.c.h.bf16 %v4406_v36  ;;  %v4719_v62 = vunpack.c.l.bf16 %v4406_v36  ;;  %v1442_v0 = vpop.f32.mrf.mxu1 }
 0x18d   : > { %v3801_v27 = vunpack.c.l.bf16 %v3611_v50  ;;  %v3802_v32 = vunpack.c.h.bf16 %v3611_v50  ;;  %8156 = vpow2.f32 %v3083_v15  ;;  %v10665_v41 = vpack.c.bf16 %v1530_v24, %v1441_v38 }
 0x18e   : > { %v8153_v43 = vpop.eup %8152  ;;  %v10667_v9 = vadd.f32 %v7114_v33, %v6813_v54  ;;  %v10669_v11 = vadd.f32 %v7145_v60, %v6814_v42  ;;  %v4686_v61 = vmul.f32 %v8151_v5, %v10522_v20  ;;  %8158 = vrcp.f32 %v4718_v55  ;;  %v7729_v54 = vld [vmem:[%s14024_s3 + $0x68] sm:$0xf]  ;;  %v7938_v42 = vld [vmem:[%s14024_s3 + $0x74] sm:$0xf] }
 0x18f   : > { %v4121_v52 = vadd.f32 1.0, %v3801_v27  ;;  %v4688_v51 = vmul.f32 %v8153_v43, %v10525_v16  ;;  %v4122_v7 = vadd.f32 1.0, %v3802_v32  ;;  %v2501_v26 = vxor.u32 2147516416, %v10665_v41 }
 0x190   : > { %v10676_v44 = vadd.f32 %v10626_v14, %v10600_v17  ;;  %v5703_v15 = vunpack.c.l.bf16 %v10580_v40  ;;  %v5704_v33 = vunpack.c.h.bf16 %v10580_v40  ;;  %8160 = vrcp.f32 %v4719_v62  ;;  %v7942_v40 = vld [vmem:[%s14024_s3 + $0x8c] sm:$0xf0]  ;;  %v10697_v62 = vpop.f32.mrf.mxu0 }
 0x191   : > { %v8155_v60 = vpop.eup %8154  ;;  %v4689_v10 = vpack.c.bf16 %v4686_v61, %v4688_v51  ;;  %v4411_v63 = vpack.c.bf16 %v4122_v7, %v4121_v52  ;;  %v2701_v50 = vunpack.c.l.bf16 %v2501_v26  ;;  %v2702_v24 = vunpack.c.h.bf16 %v2501_v26  ;;  %v7739_v52 = vld [vmem:[%s14024_s3 + $0x98] sm:$0xf0] }
 0x192   : > { %14164 = vst [vmem:[#allocation17_spill] sm:$0xff] %v10676_v44  ;;  %v1531_v36 = vpop.f32.mrf.mxu2  ;;  %v5713_v38 = vunpack.c.l.bf16 %v10592_v6  ;;  %v5714_v14 = vunpack.c.h.bf16 %v10592_v6  ;;  %v10694_v27 = vpack.c.bf16 %v1570_v13, %v10613_v57  ;;  %v7730_v7 = vor.u32 %v7942_v40, %v7729_v54 }
 0x193   : > { %v1532_v32 = vadd.f32 %v1531_v36, %v10369_v1  ;;  %v8157_v5 = vpop.eup %8156  ;;  %v6023_v55 = vunpack.c.l.bf16 %v4689_v10  ;;  %v6024_v6 = vunpack.c.h.bf16 %v4689_v10  ;;  %v4753_v43 = vunpack.c.h.bf16 %v4411_v63 }
 0x194   : > { %7803 = vmatmul.msk.bf16.gmra.mxu0 %vm425_vm0, %v9715_v34  ;;  %v4754_v61 = vunpack.c.l.bf16 %v4411_v63  ;;  %v3616_v51 = vpack.c.bf16 %v8157_v5, %v8155_v60  ;;  %v7742_v26 = vor.u32 %v7938_v42, %v7739_v52  ;;  %v3101_v4 = vmul.f32 1.442695, %v2701_v50  ;;  %v8159_v44 = vpop.eup %8158  ;;  %1951 = vmatpush.bf16.msra.mxu3 %v7730_v7 }
 0x195   : > { %v6343_v57 = vmul.f32 %v6023_v55, %v5703_v15  ;;  %v6344_v13 = vmul.f32 %v6024_v6, %v5704_v33  ;;  %8162 = vrcp.f32 %v4753_v43  ;;  %v3103_v36 = vmul.f32 1.442695, %v2702_v24  ;;  %v1445_v43 = vpop.f32.mrf.mxu1 }
 0x196   : > { %v8161_v49 = vpop.eup %8160  ;;  %v4721_v10 = vmul.f32 %v8159_v44, %v10522_v20  ;;  %8164 = vrcp.f32 %v4754_v61  ;;  %v3811_v34 = vunpack.c.l.bf16 %v3616_v51  ;;  %v3812_v18 = vunpack.c.h.bf16 %v3616_v51  ;;  %2218 = vmatpush.bf16.msra.mxu2 %v7742_v26 }
 0x197   : > { %v6643_v63 = vpack.c.bf16 %v6344_v13, %v6343_v57  ;;  %v4723_v22 = vmul.f32 %v8161_v49, %v10525_v16  ;;  %8166 = vpow2.f32 %v3101_v4  ;;  %v2581_v60 = vxor.u32 2147516416, %v10694_v27  ;;  %7808 = vmatmul.msk.bf16.gmra.mxu1 %vm425_vm0, %v9838_v37  ;;  %7824 = vmatmul.msk.bf16.gmra.mxu2 %vm425_vm0, %v9838_v37 }
 0x198   : > { %v4131_v15 = vadd.f32 1.0, %v3811_v34  ;;  %v4132_v33 = vadd.f32 1.0, %v3812_v18  ;;  %8168 = vpow2.f32 %v3103_v36  ;;  %v1443_v44 = vadd.f32 %v1442_v0, %v10361_v47  ;;  %7780 = vmatmul.msk.bf16.gmra.mxu3 %vm425_vm0, %v10174_v56  ;;  %v10719_v36 = vpop.f32.mrf.mxu0 }
 0x199   : > { %v6823_v50 = vunpack.c.l.bf16 %v6643_v63  ;;  %v6824_v24 = vunpack.c.h.bf16 %v6643_v63  ;;  %v4724_v49 = vpack.c.bf16 %v4721_v10, %v4723_v22  ;;  %v2861_v4 = vunpack.c.l.bf16 %v2581_v60 }
 0x19a   : > { %v5723_v54 = vunpack.c.l.bf16 %v10618_v25  ;;  %v4416_v40 = vpack.c.bf16 %v4132_v33, %v4131_v15  ;;  %v2862_v42 = vunpack.c.h.bf16 %v2581_v60  ;;  %v10713_v5 = vpack.c.bf16 %v1532_v32, %v1443_v44  ;;  %v7937_v60 = vld [vmem:[%s14024_s3 + $0x6c] sm:$0xf] }
 0x19b   : > { %v8163_v55 = vpop.eup %8162  ;;  %v7116_v34 = vadd.f32 %v10667_v9, %v6823_v50  ;;  %v7147_v18 = vadd.f32 %v10669_v11, %v6824_v24  ;;  %v6033_v6 = vunpack.c.l.bf16 %v4724_v49  ;;  %v6034_v0 = vunpack.c.h.bf16 %v4724_v49  ;;  %v7943_v50 = vld [vmem:[%s14024_s3 + $0x94] sm:$0xf0] }
 0x19c   : > { %v8165_v61 = vpop.eup %8164  ;;  %v4756_v52 = vmul.f32 %v8163_v55, %v10522_v20  ;;  %v4788_v51 = vunpack.c.h.bf16 %v4416_v40  ;;  %v4789_v22 = vunpack.c.l.bf16 %v4416_v40  ;;  %v3421_v7 = vmul.f32 1.442695, %v2861_v4 }
 0x19d   : > { %v8167_v26 = vpop.eup %8166  ;;  %v6353_v57 = vmul.f32 %v6033_v6, %v5713_v38  ;;  %v6354_v13 = vmul.f32 %v6034_v0, %v5714_v14  ;;  %v4758_v32 = vmul.f32 %v8165_v61, %v10525_v16  ;;  %v3423_v10 = vmul.f32 1.442695, %v2862_v42  ;;  %v7731_v38 = vld [vmem:[%s14024_s3 + $0x90] sm:$0xf0]  ;;  %v7737_v14 = vld [vmem:[%s14024_s3 + $0x70] sm:$0xf] }
 0x19e   : > { %v8169_v9 = vpop.eup %8168  ;;  %v5724_v11 = vunpack.c.h.bf16 %v10618_v25  ;;  %8170 = vrcp.f32 %v4788_v51  ;;  %v5733_v63 = vunpack.c.l.bf16 %v10634_v29  ;;  %v1446_v15 = vadd.f32 %v1445_v43, %v10361_v47  ;;  %v1534_v51 = vpop.f32.mrf.mxu2 }
 0x19f   : > { %v6648_v33 = vpack.c.bf16 %v6354_v13, %v6353_v57  ;;  %v4759_v44 = vpack.c.bf16 %v4756_v52, %v4758_v32  ;;  %8172 = vrcp.f32 %v4789_v22  ;;  %v3621_v25 = vpack.c.bf16 %v8169_v9, %v8167_v26  ;;  %v1571_v52 = vpop.f32.mrf.mxu3 }
 0x1a0   : > { %v7734_v24 = vor.u32 %v7937_v60, %v7731_v38  ;;  %v7738_v49 = vor.u32 %v7943_v50, %v7737_v14  ;;  %8174 = vpow2.f32 %v3421_v7  ;;  %v2506_v4 = vxor.u32 2147516416, %v10713_v5 }
 0x1a1   : > { %v6833_v40 = vunpack.c.l.bf16 %v6648_v33  ;;  %v6834_v42 = vunpack.c.h.bf16 %v6648_v33  ;;  %v6043_v55 = vunpack.c.l.bf16 %v4759_v44  ;;  %v6044_v6 = vunpack.c.h.bf16 %v4759_v44 }
 0x1a2   : > { %v3821_v0 = vunpack.c.l.bf16 %v3621_v25  ;;  %v3822_v43 = vunpack.c.h.bf16 %v3621_v25  ;;  %2040 = vmatpush.bf16.msra.mxu0 %v7734_v24  ;;  %2129 = vmatpush.bf16.msra.mxu1 %v7738_v49  ;;  %8176 = vpow2.f32 %v3423_v10  ;;  %v2711_v61 = vunpack.c.l.bf16 %v2506_v4  ;;  %v10743_v49 = vpop.f32.mrf.mxu0 }
 0x1a3   : > { %v7117_v22 = vadd.f32 %v7116_v34, %v6833_v40  ;;  %v7148_v26 = vadd.f32 %v7147_v18, %v6834_v42  ;;  %v6363_v7 = vmul.f32 %v6043_v55, %v5723_v54  ;;  %v6364_v57 = vmul.f32 %v6044_v6, %v5724_v11 }
 0x1a4   : > { %7804 = vmatmul.msk.bf16.gmra.mxu0 %vm425_vm0, %v9860_v30  ;;  %v8171_v13 = vpop.eup %8170  ;;  %v4141_v32 = vadd.f32 1.0, %v3821_v0  ;;  %v4142_v9 = vadd.f32 1.0, %v3822_v43  ;;  %v2712_v60 = vunpack.c.h.bf16 %v2506_v4  ;;  %v3121_v38 = vmul.f32 1.442695, %v2711_v61 }
 0x1a5   : > { %v8173_v14 = vpop.eup %8172  ;;  %v6653_v33 = vpack.c.bf16 %v6364_v57, %v6363_v7  ;;  %v4791_v44 = vmul.f32 %v8171_v13, %v10522_v20  ;;  %v1572_v25 = vadd.f32 %v1571_v52, %v10369_v1  ;;  %v1535_v10 = vadd.f32 %v1534_v51, %v10369_v1 }
 0x1a6   : > { %v8175_v50 = vpop.eup %8174  ;;  %v4793_v24 = vmul.f32 %v8173_v14, %v10525_v16  ;;  %v4421_v34 = vpack.c.bf16 %v4142_v9, %v4141_v32  ;;  %8178 = vpow2.f32 %v3121_v38  ;;  %v3123_v54 = vmul.f32 1.442695, %v2712_v60 }
 0x1a7   : > { %v6843_v18 = vunpack.c.l.bf16 %v6653_v33  ;;  %v6844_v11 = vunpack.c.h.bf16 %v6653_v33  ;;  %v10746_v4 = vpack.c.bf16 %v1572_v25, %v10646_v8  ;;  %v10748_v40 = vpack.c.bf16 %v1535_v10, %v1446_v15  ;;  %7809 = vmatmul.msk.bf16.gmra.mxu1 %vm425_vm0, %v9981_v39  ;;  %7825 = vmatmul.msk.bf16.gmra.mxu2 %vm425_vm0, %v9981_v39 }
 0x1a8   : > { %v8177_v42 = vpop.eup %8176  ;;  %v4794_v55 = vpack.c.bf16 %v4791_v44, %v4793_v24  ;;  %v4823_v6 = vunpack.c.h.bf16 %v4421_v34  ;;  %v4824_v0 = vunpack.c.l.bf16 %v4421_v34  ;;  %8180 = vpow2.f32 %v3123_v54  ;;  %7781 = vmatmul.msk.bf16.gmra.mxu3 %vm425_vm0, %v10246_v19 }
 0x1a9   : > { %v7118_v43 = vadd.f32 %v7117_v22, %v6843_v18  ;;  %v7149_v61 = vadd.f32 %v7148_v26, %v6844_v11  ;;  %v3701_v8 = vpack.c.bf16 %v8177_v42, %v8175_v50  ;;  %v2586_v15 = vxor.u32 2147516416, %v10746_v4 }
 0x1aa   : > { %v5734_v52 = vunpack.c.h.bf16 %v10634_v29  ;;  %v6053_v51 = vunpack.c.l.bf16 %v4794_v55  ;;  %v6054_v7 = vunpack.c.h.bf16 %v4794_v55  ;;  %8182 = vrcp.f32 %v4823_v6 }
 0x1ab   : > { %8184 = vrcp.f32 %v4824_v0  ;;  %v3981_v57 = vunpack.c.l.bf16 %v3701_v8  ;;  %v3982_v13 = vunpack.c.h.bf16 %v3701_v8  ;;  %v2871_v32 = vunpack.c.l.bf16 %v2586_v15  ;;  %v10781_v8 = vpop.f32.mrf.mxu0 }
 0x1ac   : > { %v8179_v9 = vpop.eup %8178  ;;  %v10760_v60 = vadd.f32 %v10531_v48, %v10361_v47  ;;  %v6373_v22 = vmul.f32 %v6053_v51, %v5733_v63  ;;  %v6374_v26 = vmul.f32 %v6054_v7, %v5734_v52  ;;  %v2872_v38 = vunpack.c.h.bf16 %v2586_v15  ;;  %v1574_v52 = vpop.f32.mrf.mxu3 }
 0x1ad   : > { %v4301_v14 = vadd.f32 1.0, %v3981_v57  ;;  %v4302_v33 = vadd.f32 1.0, %v3982_v13  ;;  %v3441_v44 = vmul.f32 1.442695, %v2871_v32  ;;  %v2511_v25 = vxor.u32 2147516416, %v10748_v40  ;;  %v1447_v32 = vpop.f32.mrf.mxu1 }
 0x1ae   : > { %v8181_v10 = vpop.eup %8180  ;;  %v10767_v50 = vadd.f32 %v10656_v46, %v10600_v17  ;;  %v10771_v24 = vadd.f32 %v10697_v62, %v10600_v17  ;;  %v6658_v48 = vpack.c.bf16 %v6374_v26, %v6373_v22  ;;  %v3443_v34 = vmul.f32 1.442695, %v2872_v38 }
 0x1af   : > { %v4501_v29 = vpack.c.bf16 %v4302_v33, %v4301_v14  ;;  %v3626_v63 = vpack.c.bf16 %v8181_v10, %v8179_v9  ;;  %8186 = vpow2.f32 %v3441_v44  ;;  %v2721_v54 = vunpack.c.l.bf16 %v2511_v25  ;;  %v1536_v9 = vpop.f32.mrf.mxu2 }
 0x1b0   : > { %v8183_v18 = vpop.eup %8182  ;;  %v6853_v11 = vunpack.c.l.bf16 %v6658_v48  ;;  %v6854_v42 = vunpack.c.h.bf16 %v6658_v48  ;;  %8188 = vpow2.f32 %v3443_v34  ;;  %v2722_v55 = vunpack.c.h.bf16 %v2511_v25 }
 0x1b1   : > { %v8185_v46 = vpop.eup %8184  ;;  %v10777_v6 = vadd.f32 %v10571_v31, %v10361_v47  ;;  %v4826_v62 = vmul.f32 %v8183_v18, %v10522_v20  ;;  %v5743_v0 = vunpack.c.l.bf16 %v10665_v41  ;;  %v3831_v15 = vunpack.c.l.bf16 %v3626_v63 }
 0x1b2   : > { %v7119_v51 = vadd.f32 %v7118_v43, %v6853_v11  ;;  %v7150_v7 = vadd.f32 %v7149_v61, %v6854_v42  ;;  %v4828_v57 = vmul.f32 %v8185_v46, %v10525_v16  ;;  %v3832_v13 = vunpack.c.h.bf16 %v3626_v63 }
 0x1b3   : > { %v5383_v22 = vunpack.c.h.bf16 %v4501_v29  ;;  %v4151_v26 = vadd.f32 1.0, %v3831_v15  ;;  %v3141_v38 = vmul.f32 1.442695, %v2721_v54  ;;  %v3143_v31 = vmul.f32 1.442695, %v2722_v55 }
 0x1b4   : > { %7805 = vmatmul.msk.bf16.gmra.mxu0 %vm425_vm0, %v9999_v45  ;;  %v4829_v14 = vpack.c.bf16 %v4826_v62, %v4828_v57  ;;  %v5744_v33 = vunpack.c.h.bf16 %v10665_v41  ;;  %v5384_v44 = vunpack.c.l.bf16 %v4501_v29  ;;  %v4152_v25 = vadd.f32 1.0, %v3832_v13 }
 0x1b5   : > { %v8187_v10 = vpop.eup %8186  ;;  %8190 = vpow2.f32 %v3141_v38  ;;  %v1448_v48 = vadd.f32 %v1447_v32, %v10361_v47  ;;  %v1575_v43 = vadd.f32 %v1574_v52, %v10369_v1  ;;  %v1537_v61 = vadd.f32 %v1536_v9, %v10369_v1 }
 0x1b6   : > { %v8189_v34 = vpop.eup %8188  ;;  %v6063_v63 = vunpack.c.l.bf16 %v4829_v14  ;;  %v6064_v18 = vunpack.c.h.bf16 %v4829_v14  ;;  %v4426_v11 = vpack.c.bf16 %v4152_v25, %v4151_v26  ;;  %8192 = vpow2.f32 %v3143_v31 }
 0x1b7   : > { %8194 = vrcp.f32 %v5383_v22  ;;  %v3706_v54 = vpack.c.bf16 %v8189_v34, %v8187_v10  ;;  %v10789_v42 = vpack.c.bf16 %v1575_v43, %v10660_v53  ;;  %v10791_v41 = vpack.c.bf16 %v1537_v61, %v1448_v48  ;;  %7810 = vmatmul.msk.bf16.gmra.mxu1 %vm425_vm0, %v10066_v3  ;;  %7826 = vmatmul.msk.bf16.gmra.mxu2 %vm425_vm0, %v10066_v3 }
 0x1b8   : > { %v6383_v29 = vmul.f32 %v6063_v63, %v5743_v0  ;;  %v6384_v55 = vmul.f32 %v6064_v18, %v5744_v33  ;;  %v4858_v46 = vunpack.c.h.bf16 %v4426_v11  ;;  %v4859_v62 = vunpack.c.l.bf16 %v4426_v11  ;;  %7782 = vmatmul.msk.bf16.gmra.mxu3 %vm425_vm0, %v10317_v28  ;;  %v1704_v33 = vpop.f32.mrf.mxu0 }
 0x1b9   : > { %8196 = vrcp.f32 %v5384_v44  ;;  %v3991_v15 = vunpack.c.l.bf16 %v3706_v54  ;;  %v3992_v52 = vunpack.c.h.bf16 %v3706_v54  ;;  %v2591_v53 = vxor.u32 2147516416, %v10789_v42 }
 0x1ba   : > { %v10802_v57 = vadd.f32 %v10590_v21, %v10361_v47  ;;  %v10806_v0 = vadd.f32 %v10719_v36, %v10600_v17  ;;  %v6663_v13 = vpack.c.bf16 %v6384_v55, %v6383_v29  ;;  %8198 = vrcp.f32 %v4858_v46 }
 0x1bb   : > { %v8191_v32 = vpop.eup %8190  ;;  %v10810_v9 = vadd.f32 %v10743_v49, %v10600_v17  ;;  %8200 = vrcp.f32 %v4859_v62  ;;  %v4311_v22 = vadd.f32 1.0, %v3991_v15  ;;  %v4312_v26 = vadd.f32 1.0, %v3992_v52 }
 0x1bc   : > { %v8193_v38 = vpop.eup %8192  ;;  %v6863_v31 = vunpack.c.l.bf16 %v6663_v13  ;;  %v6864_v14 = vunpack.c.h.bf16 %v6663_v13  ;;  %v2881_v21 = vunpack.c.l.bf16 %v2591_v53  ;;  %v2882_v44 = vunpack.c.h.bf16 %v2591_v53 }
 0x1bd   : > { %v8195_v25 = vpop.eup %8194  ;;  %v10814_v36 = vadd.f32 %v10620_v2, %v10361_v47  ;;  %v4506_v10 = vpack.c.bf16 %v4312_v26, %v4311_v22  ;;  %v3631_v48 = vpack.c.bf16 %v8193_v38, %v8191_v32  ;;  %v2516_v43 = vxor.u32 2147516416, %v10791_v41  ;;  %v1450_v22 = vpop.f32.mrf.mxu1 }
 0x1be   : > { %v10817_v49 = vadd.f32 %v7119_v51, %v6863_v31  ;;  %v10819_v61 = vadd.f32 %v7150_v7, %v6864_v14  ;;  %v10823_v34 = vadd.f32 %v10781_v8, %v10600_v17  ;;  %v3461_v63 = vmul.f32 1.442695, %v2881_v21  ;;  %v1576_v26 = vpop.f32.mrf.mxu3 }
 0x1bf   : > { %v8197_v18 = vpop.eup %8196  ;;  %v10827_v11 = vadd.f32 %v10636_v35, %v10361_v47  ;;  %v10830_v2 = vadd.f32 %v1704_v33, %v10600_v17  ;;  %v5418_v54 = vunpack.c.h.bf16 %v4506_v10  ;;  %v3463_v29 = vmul.f32 1.442695, %v2882_v44 }
 0x1c0   : > { %14165 = vst [vmem:[#allocation18_spill] sm:$0xff] %v10823_v34  ;;  %v8199_v55 = vpop.eup %8198  ;;  %v5419_v51 = vunpack.c.l.bf16 %v4506_v10  ;;  %v3841_v46 = vunpack.c.l.bf16 %v3631_v48  ;;  %v3842_v7 = vunpack.c.h.bf16 %v3631_v48  ;;  %v2731_v62 = vunpack.c.l.bf16 %v2516_v43 }
 0x1c1   : > { %14166 = vst [vmem:[#allocation19_spill] sm:$0xff] %v10830_v2  ;;  %v8201_v8 = vpop.eup %8200  ;;  %v5386_v15 = vmul.f32 %v8195_v25, %v10522_v20  ;;  %v5903_v52 = vunpack.c.l.bf16 %v10694_v27  ;;  %v4861_v35 = vmul.f32 %v8199_v55, %v10522_v20  ;;  %8202 = vpow2.f32 %v3461_v63  ;;  %v1539_v25 = vpop.f32.mrf.mxu2 }
 0x1c2   : > { %v4863_v53 = vmul.f32 %v8201_v8, %v10525_v16  ;;  %8204 = vrcp.f32 %v5418_v54  ;;  %v4161_v13 = vadd.f32 1.0, %v3841_v46  ;;  %v4162_v32 = vadd.f32 1.0, %v3842_v7 }
 0x1c3   : > { %v5388_v38 = vmul.f32 %v8197_v18, %v10525_v16  ;;  %8206 = vpow2.f32 %v3463_v29  ;;  %v2732_v31 = vunpack.c.h.bf16 %v2516_v43  ;;  %v3161_v14 = vmul.f32 1.442695, %v2731_v62 }
 0x1c4   : > { %7806 = vmatmul.msk.bf16.gmra.mxu0 %vm425_vm0, %v10076_v12  ;;  %v4864_v33 = vpack.c.bf16 %v4861_v35, %v4863_v53  ;;  %v5753_v21 = vunpack.c.l.bf16 %v10713_v5  ;;  %8208 = vrcp.f32 %v5419_v51  ;;  %v4431_v44 = vpack.c.bf16 %v4162_v32, %v4161_v13 }
 0x1c5   : > { %v5754_v10 = vunpack.c.h.bf16 %v10713_v5  ;;  %8210 = vpow2.f32 %v3161_v14  ;;  %v3163_v48 = vmul.f32 1.442695, %v2732_v31  ;;  %v1451_v63 = vadd.f32 %v1450_v22, %v10361_v47  ;;  %v1707_v14 = vpop.f32.mrf.mxu0 }
 0x1c6   : > { %v6073_v54 = vunpack.c.l.bf16 %v4864_v33  ;;  %v6074_v55 = vunpack.c.h.bf16 %v4864_v33  ;;  %v4893_v46 = vunpack.c.h.bf16 %v4431_v44  ;;  %v4894_v7 = vunpack.c.l.bf16 %v4431_v44 }
 0x1c7   : > { %v8203_v18 = vpop.eup %8202  ;;  %v5389_v29 = vpack.c.bf16 %v5386_v15, %v5388_v38  ;;  %8212 = vpow2.f32 %v3163_v48  ;;  %v1577_v43 = vadd.f32 %v1576_v26, %v10369_v1  ;;  %v1540_v62 = vadd.f32 %v1539_v25, %v10369_v1  ;;  %7811 = vmatmul.msk.bf16.gmra.mxu1 %vm425_vm0, %v10126_v59  ;;  %7827 = vmatmul.msk.bf16.gmra.mxu2 %vm425_vm0, %v10126_v59 }
 0x1c8   : > { %v8205_v51 = vpop.eup %8204  ;;  %v5904_v5 = vunpack.c.h.bf16 %v10694_v27  ;;  %v6393_v8 = vmul.f32 %v6073_v54, %v5753_v21  ;;  %v6394_v35 = vmul.f32 %v6074_v55, %v5754_v10  ;;  %8214 = vrcp.f32 %v4893_v46  ;;  %7783 = vmatmul.msk.bf16.gmra.mxu3 %vm425_vm0, %v10394_v23  ;;  %v1579_v46 = vpop.f32.mrf.mxu3 }
 0x1c9   : > { %v8207_v15 = vpop.eup %8206  ;;  %8216 = vrcp.f32 %v4894_v7  ;;  %v10853_v13 = vpack.c.bf16 %v1577_v43, %v10760_v60  ;;  %v10855_v32 = vpack.c.bf16 %v1540_v62, %v1451_v63  ;;  %v5763_v31 = vunpack.c.l.bf16 %v10748_v40 }
 0x1ca   : > { %v8209_v22 = vpop.eup %8208  ;;  %v6668_v26 = vpack.c.bf16 %v6394_v35, %v6393_v8  ;;  %v3711_v33 = vpack.c.bf16 %v8207_v15, %v8203_v18  ;;  %v6223_v44 = vunpack.c.l.bf16 %v5389_v29  ;;  %v6224_v25 = vunpack.c.h.bf16 %v5389_v29 }
 0x1cb   : > { %v8211_v21 = vpop.eup %8210  ;;  %v5764_v10 = vunpack.c.h.bf16 %v10748_v40  ;;  %v2596_v48 = vxor.u32 2147516416, %v10853_v13  ;;  %v10862_v43 = vadd.f32 %v1707_v14, %v10600_v17  ;;  %v5421_v62 = vmul.f32 %v8205_v51, %v10522_v20 }
 0x1cc   : > { %v6873_v54 = vunpack.c.l.bf16 %v6668_v26  ;;  %v6874_v60 = vunpack.c.h.bf16 %v6668_v26  ;;  %v4001_v55 = vunpack.c.l.bf16 %v3711_v33  ;;  %v4002_v63 = vunpack.c.h.bf16 %v3711_v33 }
 0x1cd   : > { %v8213_v7 = vpop.eup %8212  ;;  %14167 = vst [vmem:[#allocation20_spill] sm:$0xff] %v10862_v43  ;;  %v2891_v8 = vunpack.c.l.bf16 %v2596_v48  ;;  %v2892_v18 = vunpack.c.h.bf16 %v2596_v48  ;;  %v6543_v33 = vmul.f32 %v6223_v44, %v5903_v52  ;;  %v6544_v53 = vmul.f32 %v6224_v25, %v5904_v5 }
 0x1ce   : > { %v8215_v35 = vpop.eup %8214  ;;  %v10866_v29 = vadd.f32 %v10817_v49, %v6873_v54  ;;  %v10869_v40 = vadd.f32 %v10819_v61, %v6874_v60  ;;  %v4321_v15 = vadd.f32 1.0, %v4001_v55  ;;  %v4322_v26 = vadd.f32 1.0, %v4002_v63 }
 0x1cf   : > { %v8217_v38 = vpop.eup %8216  ;;  %v4896_v14 = vmul.f32 %v8215_v35, %v10522_v20  ;;  %v3636_v43 = vpack.c.bf16 %v8213_v7, %v8211_v21  ;;  %v3481_v49 = vmul.f32 1.442695, %v2891_v8  ;;  %v5423_v54 = vmul.f32 %v8209_v22, %v10525_v16 }
 0x1d0   : > { %v4898_v48 = vmul.f32 %v8217_v38, %v10525_v16  ;;  %v4511_v2 = vpack.c.bf16 %v4322_v26, %v4321_v15  ;;  %v2521_v55 = vxor.u32 2147516416, %v10855_v32  ;;  %v3483_v52 = vmul.f32 1.442695, %v2892_v18  ;;  %v1541_v15 = vpop.f32.mrf.mxu2 }
 0x1d1   : > { %v3851_v61 = vunpack.c.l.bf16 %v3636_v43  ;;  %v3852_v60 = vunpack.c.h.bf16 %v3636_v43  ;;  %v10879_v5 = vpack.c.bf16 %v6544_v53, %v6543_v33  ;;  %8218 = vpow2.f32 %v3481_v49  ;;  %v1709_v43 = vpop.f32.mrf.mxu0  ;;  %v1452_v53 = vpop.f32.mrf.mxu1 }
 0x1d2   : > { %v4899_v63 = vpack.c.bf16 %v4896_v14, %v4898_v48  ;;  %v5453_v34 = vunpack.c.h.bf16 %v4511_v2  ;;  %v5454_v21 = vunpack.c.l.bf16 %v4511_v2  ;;  %v2741_v7 = vunpack.c.l.bf16 %v2521_v55  ;;  %v1581_v33 = vpop.f32.mrf.mxu3 }
 0x1d3   : > { %14168 = vst [vmem:[#allocation21_spill] sm:$0xff] %v10879_v5  ;;  %v4171_v44 = vadd.f32 1.0, %v3851_v61  ;;  %v4172_v51 = vadd.f32 1.0, %v3852_v60  ;;  %v10881_v8 = vpack.c.bf16 %v5421_v62, %v5423_v54  ;;  %v2742_v35 = vunpack.c.h.bf16 %v2521_v55 }
 0x1d4   : > { %v6083_v25 = vunpack.c.l.bf16 %v4899_v63  ;;  %v6084_v38 = vunpack.c.h.bf16 %v4899_v63  ;;  %8220 = vrcp.f32 %v5453_v34  ;;  %v3181_v18 = vmul.f32 1.442695, %v2741_v7 }
 0x1d5   : > { %v4436_v22 = vpack.c.bf16 %v4172_v51, %v4171_v44  ;;  %8222 = vpow2.f32 %v3483_v52  ;;  %v3183_v61 = vmul.f32 1.442695, %v2742_v35  ;;  %v1580_v34 = vadd.f32 %v1579_v46, %v10369_v1 }
 0x1d6   : > { %v6403_v26 = vmul.f32 %v6083_v25, %v5763_v31  ;;  %v6404_v14 = vmul.f32 %v6084_v38, %v5764_v10  ;;  %8224 = vrcp.f32 %v5454_v21  ;;  %v1542_v49 = vadd.f32 %v1541_v15, %v10369_v1 }
 0x1d7   : > { %v4928_v2 = vunpack.c.h.bf16 %v4436_v22  ;;  %v4929_v48 = vunpack.c.l.bf16 %v4436_v22  ;;  %7812 = vmatmul.msk.bf16.gmra.mxu1 %vm425_vm0, %v10174_v56  ;;  %8226 = vpow2.f32 %v3181_v18  ;;  %7828 = vmatmul.msk.bf16.gmra.mxu2 %vm425_vm0, %v10174_v56  ;;  %v1453_v10 = vadd.f32 %v1452_v53, %v10361_v47  ;;  %v8219_v60 = vpop.eup %8218 }
 0x1d8   : > { %v6673_v62 = vpack.c.bf16 %v6404_v14, %v6403_v26  ;;  %7784 = vmatmul.msk.bf16.gmra.mxu3 %vm425_vm0, %v10471_v58  ;;  %v1582_v54 = vadd.f32 %v1581_v33, %v10369_v1  ;;  %v10895_v46 = vpack.c.bf16 %v1580_v34, %v10777_v6  ;;  %v6233_v21 = vunpack.c.l.bf16 %v10881_v8 }
 0x1d9   : > { %8228 = vrcp.f32 %v4928_v2  ;;  %v10898_v44 = vpack.c.bf16 %v1542_v49, %v1453_v10  ;;  %v5774_v22 = vunpack.c.h.bf16 %v10791_v41  ;;  %v6234_v53 = vunpack.c.h.bf16 %v10881_v8 }
 0x1da   : > { %v6883_v55 = vunpack.c.l.bf16 %v6673_v62  ;;  %v6884_v63 = vunpack.c.h.bf16 %v6673_v62  ;;  %8230 = vrcp.f32 %v4929_v48  ;;  %v8221_v52 = vpop.eup %8220  ;;  %v10901_v51 = vpack.c.bf16 %v1582_v54, %v10802_v57 }
 0x1db   : > { %8232 = vpow2.f32 %v3183_v61  ;;  %v8223_v25 = vpop.eup %8222  ;;  %v2601_v6 = vxor.u32 2147516416, %v10895_v46  ;;  %v2526_v57 = vxor.u32 2147516416, %v10898_v44  ;;  %v14170_v48 = vunpack.c.l.bf16 %v10746_v4 }
 0x1dc   : > { %v10904_v38 = vadd.f32 %v10866_v29, %v6883_v55  ;;  %v10907_v7 = vadd.f32 %v10869_v40, %v6884_v63  ;;  %v8225_v35 = vpop.eup %8224  ;;  %v3716_v14 = vpack.c.bf16 %v8223_v25, %v8219_v60  ;;  %v10916_v29 = vadd.f32 %v1709_v43, %v10600_v17  ;;  %v1712_v55 = vpop.f32.mrf.mxu0 }
 0x1dd   : > { %v8227_v18 = vpop.eup %8226  ;;  %v2901_v40 = vunpack.c.l.bf16 %v2601_v6  ;;  %v2902_v33 = vunpack.c.h.bf16 %v2601_v6  ;;  %v6553_v61 = vmul.f32 %v6233_v21, %v14170_v48  ;;  %v5456_v62 = vmul.f32 %v8221_v52, %v10522_v20 }
 0x1de   : > { %14169 = vst [vmem:[#allocation22_spill] sm:$0xff] %v10916_v29  ;;  %v4011_v34 = vunpack.c.l.bf16 %v3716_v14  ;;  %v4012_v49 = vunpack.c.h.bf16 %v3716_v14  ;;  %v5458_v54 = vmul.f32 %v8225_v35, %v10525_v16  ;;  %v2751_v63 = vunpack.c.l.bf16 %v2526_v57 }
 0x1df   : > { %v8229_v2 = vpop.eup %8228  ;;  %v3501_v8 = vmul.f32 1.442695, %v2901_v40  ;;  %v3503_v15 = vmul.f32 1.442695, %v2902_v33  ;;  %v14171_v21 = vunpack.c.h.bf16 %v10746_v4  ;;  %v2752_v14 = vunpack.c.h.bf16 %v2526_v57 }
 0x1e0   : > { %v8231_v10 = vpop.eup %8230  ;;  %v4931_v60 = vmul.f32 %v8229_v2, %v10522_v20  ;;  %v4331_v6 = vadd.f32 1.0, %v4011_v34  ;;  %v4332_v26 = vadd.f32 1.0, %v4012_v49  ;;  %v10927_v35 = vadd.f32 %v1712_v55, %v10600_v17  ;;  %v1455_v34 = vpop.f32.mrf.mxu1 }
 0x1e1   : > { %v8233_v43 = vpop.eup %8232  ;;  %v4933_v25 = vmul.f32 %v8231_v10, %v10525_v16  ;;  %v6554_v48 = vmul.f32 %v6234_v53, %v14171_v21  ;;  %8234 = vpow2.f32 %v3501_v8  ;;  %v10929_v40 = vpack.c.bf16 %v5456_v62, %v5458_v54 }
 0x1e2   : > { %v3641_v52 = vpack.c.bf16 %v8233_v43, %v8227_v18  ;;  %v4516_v31 = vpack.c.bf16 %v4332_v26, %v4331_v6  ;;  %14172 = vst [vmem:[#allocation23_spill] sm:$0xff] %v10927_v35  ;;  %8236 = vpow2.f32 %v3503_v15  ;;  %v3201_v10 = vmul.f32 1.442695, %v2751_v63  ;;  %v1544_v26 = vpop.f32.mrf.mxu2 }
 0x1e3   : > { %v4934_v27 = vpack.c.bf16 %v4931_v60, %v4933_v25  ;;  %v10931_v53 = vpack.c.bf16 %v6554_v48, %v6553_v61  ;;  %v3203_v60 = vmul.f32 1.442695, %v2752_v14  ;;  %v14174_v55 = vunpack.c.l.bf16 %v10791_v41 }
 0x1e4   : > { %v3861_v2 = vunpack.c.l.bf16 %v3641_v52  ;;  %v3862_v5 = vunpack.c.h.bf16 %v3641_v52  ;;  %v5488_v29 = vunpack.c.h.bf16 %v4516_v31  ;;  %v5489_v4 = vunpack.c.l.bf16 %v4516_v31 }
 0x1e5   : > { %v6093_v49 = vunpack.c.l.bf16 %v4934_v27  ;;  %v6094_v33 = vunpack.c.h.bf16 %v4934_v27  ;;  %14173 = vst [vmem:[#allocation24_spill] sm:$0xff] %v10931_v53  ;;  %v1456_v62 = vadd.f32 %v1455_v34, %v10361_v47  ;;  %v6243_v27 = vunpack.c.l.bf16 %v10929_v40 }
 0x1e6   : > { %v4181_v18 = vadd.f32 1.0, %v3861_v2  ;;  %v4182_v57 = vadd.f32 1.0, %v3862_v5  ;;  %8238 = vrcp.f32 %v5488_v29  ;;  %v2606_v61 = vxor.u32 2147516416, %v10901_v51  ;;  %v14175_v5 = vld [vmem:[#allocation13_spill] sm:$0xff]  ;;  %v1584_v2 = vpop.f32.mrf.mxu3 }
 0x1e7   : > { %v6413_v8 = vmul.f32 %v6093_v49, %v14174_v55  ;;  %v6414_v15 = vmul.f32 %v6094_v33, %v5774_v22  ;;  %7813 = vmatmul.msk.bf16.gmra.mxu1 %vm425_vm0, %v10246_v19  ;;  %v8235_v54 = vpop.eup %8234  ;;  %8240 = vrcp.f32 %v5489_v4  ;;  %7829 = vmatmul.msk.bf16.gmra.mxu2 %vm425_vm0, %v10246_v19  ;;  %v6244_v22 = vunpack.c.h.bf16 %v10929_v40 }
 0x1e8   : > { %v4441_v31 = vpack.c.bf16 %v4182_v57, %v4181_v18  ;;  %7785 = vmatmul.msk.bf16.gmra.mxu3 %vm425_vm0, %v14175_v5  ;;  %v8237_v41 = vpop.eup %8236  ;;  %8242 = vpow2.f32 %v3201_v10  ;;  %v1545_v63 = vadd.f32 %v1544_v26, %v10369_v1  ;;  %v2911_v52 = vunpack.c.l.bf16 %v2606_v61 }
 0x1e9   : > { %v6678_v29 = vpack.c.bf16 %v6414_v15, %v6413_v8  ;;  %v3721_v6 = vpack.c.bf16 %v8237_v41, %v8235_v54  ;;  %8244 = vpow2.f32 %v3203_v60  ;;  %v2912_v14 = vunpack.c.h.bf16 %v2606_v61  ;;  %v10958_v61 = vpop.f32.mrf.mxu1 }
 0x1ea   : > { %v4963_v43 = vunpack.c.h.bf16 %v4441_v31  ;;  %v4964_v25 = vunpack.c.l.bf16 %v4441_v31  ;;  %v10946_v33 = vpack.c.bf16 %v1545_v63, %v1456_v62  ;;  %v3521_v18 = vmul.f32 1.442695, %v2911_v52  ;;  %v1714_v31 = vpop.f32.mrf.mxu0 }
 0x1eb   : > { %v6893_v21 = vunpack.c.l.bf16 %v6678_v29  ;;  %v6894_v48 = vunpack.c.h.bf16 %v6678_v29  ;;  %v4021_v34 = vunpack.c.l.bf16 %v3721_v6  ;;  %v4022_v49 = vunpack.c.h.bf16 %v3721_v6 }
 0x1ec   : > { %8246 = vrcp.f32 %v4963_v43  ;;  %v8239_v4 = vpop.eup %8238  ;;  %v3523_v8 = vmul.f32 1.442695, %v2912_v14  ;;  %v14176_v29 = vunpack.c.l.bf16 %v10789_v42  ;;  %v5783_v43 = vunpack.c.l.bf16 %v10855_v32 }
 0x1ed   : > { %v10949_v40 = vadd.f32 %v10904_v38, %v6893_v21  ;;  %v10952_v10 = vadd.f32 %v10907_v7, %v6894_v48  ;;  %8248 = vrcp.f32 %v4964_v25  ;;  %v8241_v57 = vpop.eup %8240  ;;  %v4341_v26 = vadd.f32 1.0, %v4021_v34 }
 0x1ee   : > { %v4342_v55 = vadd.f32 1.0, %v4022_v49  ;;  %v8243_v15 = vpop.eup %8242  ;;  %8250 = vpow2.f32 %v3521_v18  ;;  %v2531_v38 = vxor.u32 2147516416, %v10946_v33  ;;  %v6563_v63 = vmul.f32 %v6243_v27, %v14176_v29 }
 0x1ef   : > { %v8245_v7 = vpop.eup %8244  ;;  %8252 = vpow2.f32 %v3523_v8  ;;  %v14177_v25 = vunpack.c.h.bf16 %v10789_v42  ;;  %v5491_v34 = vmul.f32 %v8239_v4, %v10522_v20  ;;  %v5784_v49 = vunpack.c.h.bf16 %v10855_v32 }
 0x1f0   : > { %v4521_v21 = vpack.c.bf16 %v4342_v55, %v4341_v26  ;;  %v3646_v48 = vpack.c.bf16 %v8245_v7, %v8243_v15  ;;  %v2761_v52 = vunpack.c.l.bf16 %v2531_v38  ;;  %v10969_v18 = vadd.f32 %v1714_v31, %v10600_v17  ;;  %v1546_v15 = vpop.f32.mrf.mxu2 }
 0x1f1   : > { %v6564_v6 = vmul.f32 %v6244_v22, %v14177_v25  ;;  %v2762_v41 = vunpack.c.h.bf16 %v2531_v38  ;;  %v5493_v27 = vmul.f32 %v8241_v57, %v10525_v16  ;;  %v1585_v42 = vadd.f32 %v1584_v2, %v10369_v1  ;;  %v10979_v57 = vpop.f32.mrf.mxu3 }
 0x1f2   : > { %v8247_v14 = vpop.eup %8246  ;;  %14178 = vst [vmem:[#allocation25_spill] sm:$0xff] %v10969_v18  ;;  %v3871_v29 = vunpack.c.l.bf16 %v3646_v48  ;;  %v3872_v55 = vunpack.c.h.bf16 %v3646_v48  ;;  %v3221_v4 = vmul.f32 1.442695, %v2761_v52  ;;  %v5523_v31 = vunpack.c.h.bf16 %v4521_v21 }
 0x1f3   : > { %v8249_v54 = vpop.eup %8248  ;;  %v4966_v8 = vmul.f32 %v8247_v14, %v10522_v20  ;;  %v10976_v7 = vpack.c.bf16 %v6564_v6, %v6563_v63  ;;  %v3223_v2 = vmul.f32 1.442695, %v2762_v41  ;;  %v5524_v18 = vunpack.c.l.bf16 %v4521_v21 }
 0x1f4   : > { %v4968_v22 = vmul.f32 %v8249_v54, %v10525_v16  ;;  %v8251_v32 = vpop.eup %8250  ;;  %v4191_v25 = vadd.f32 1.0, %v3871_v29  ;;  %v4192_v60 = vadd.f32 1.0, %v3872_v55  ;;  %8254 = vpow2.f32 %v3221_v4 }
 0x1f5   : > { %14179 = vst [vmem:[#allocation26_spill] sm:$0xff] %v10976_v7  ;;  %v8253_v14 = vpop.eup %8252  ;;  %v5494_v54 = vpack.c.bf16 %v5491_v34, %v5493_v27  ;;  %v10982_v48 = vpack.c.bf16 %v1585_v42, %v10814_v36  ;;  %8256 = vpow2.f32 %v3223_v2  ;;  %v10991_v36 = vpop.f32.mrf.mxu1 }
 0x1f6   : > { %v4969_v62 = vpack.c.bf16 %v4966_v8, %v4968_v22  ;;  %v3726_v26 = vpack.c.bf16 %v8253_v14, %v8251_v32  ;;  %v4446_v52 = vpack.c.bf16 %v4192_v60, %v4191_v25  ;;  %v14180_v8 = vld [vmem:[#allocation14_spill] sm:$0xff]  ;;  %8258 = vrcp.f32 %v5523_v31 }
 0x1f7   : > { %7814 = vmatmul.msk.bf16.gmra.mxu1 %vm425_vm0, %v10317_v28  ;;  %7830 = vmatmul.msk.bf16.gmra.mxu2 %vm425_vm0, %v10317_v28  ;;  %8260 = vrcp.f32 %v5524_v18  ;;  %v2611_v55 = vxor.u32 2147516416, %v10982_v48  ;;  %v6253_v25 = vunpack.c.l.bf16 %v5494_v54  ;;  %v1547_v18 = vadd.f32 %v1546_v15, %v10369_v1 }
 0x1f8   : > { %v6103_v63 = vunpack.c.l.bf16 %v4969_v62  ;;  %v6104_v6 = vunpack.c.h.bf16 %v4969_v62  ;;  %7786 = vmatmul.msk.bf16.gmra.mxu3 %vm425_vm0, %v14180_v8  ;;  %v4031_v21 = vunpack.c.l.bf16 %v3726_v26  ;;  %v4032_v34 = vunpack.c.h.bf16 %v3726_v26 }
 0x1f9   : > { %v4998_v42 = vunpack.c.h.bf16 %v4446_v52  ;;  %v4999_v22 = vunpack.c.l.bf16 %v4446_v52  ;;  %v2921_v26 = vunpack.c.l.bf16 %v2611_v55  ;;  %v2922_v2 = vunpack.c.h.bf16 %v2611_v55 }
 0x1fa   : > { %v6423_v27 = vmul.f32 %v6103_v63, %v5783_v43  ;;  %v6424_v29 = vmul.f32 %v6104_v6, %v5784_v49  ;;  %v4351_v60 = vadd.f32 1.0, %v4031_v21  ;;  %v4352_v62 = vadd.f32 1.0, %v4032_v34  ;;  %v8255_v4 = vpop.eup %8254  ;;  %v1549_v6 = vpop.f32.mrf.mxu2 }
 0x1fb   : > { %8262 = vrcp.f32 %v4998_v42  ;;  %v8257_v38 = vpop.eup %8256  ;;  %v6254_v43 = vunpack.c.h.bf16 %v5494_v54  ;;  %v5794_v34 = vunpack.c.h.bf16 %v10898_v44  ;;  %v3541_v41 = vmul.f32 1.442695, %v2921_v26 }
 0x1fc   : > { %v6683_v31 = vpack.c.bf16 %v6424_v29, %v6423_v27  ;;  %8264 = vrcp.f32 %v4999_v22  ;;  %v4526_v14 = vpack.c.bf16 %v4352_v62, %v4351_v60  ;;  %v8259_v52 = vpop.eup %8258  ;;  %v3651_v32 = vpack.c.bf16 %v8257_v38, %v8255_v4  ;;  %v10998_v27 = vpop.f32.mrf.mxu3 }
 0x1fd   : > { %v14181_v29 = vunpack.c.l.bf16 %v10853_v13  ;;  %v1458_v15 = vadd.f32 %v10958_v61, %v10361_v47  ;;  %v8261_v60 = vpop.eup %8260  ;;  %v3543_v38 = vmul.f32 1.442695, %v2922_v2  ;;  %v14182_v26 = vunpack.c.h.bf16 %v10853_v13  ;;  %v11016_v61 = vpop.f32.mrf.mxu1 }
 0x1fe   : > { %v6903_v49 = vunpack.c.l.bf16 %v6683_v31  ;;  %v6904_v63 = vunpack.c.h.bf16 %v6683_v31  ;;  %v5558_v62 = vunpack.c.h.bf16 %v4526_v14  ;;  %v3881_v55 = vunpack.c.l.bf16 %v3651_v32 }
 0x1ff   : > { %v6573_v42 = vmul.f32 %v6253_v25, %v14181_v29  ;;  %v3882_v31 = vunpack.c.h.bf16 %v3651_v32  ;;  %v6574_v21 = vmul.f32 %v6254_v43, %v14182_v26  ;;  %v5526_v25 = vmul.f32 %v8259_v52, %v10522_v20 }
 0x200   : > { %v11003_v22 = vadd.f32 %v10949_v40, %v6903_v49  ;;  %v11006_v54 = vadd.f32 %v10952_v10, %v6904_v63  ;;  %v5559_v29 = vunpack.c.l.bf16 %v4526_v14  ;;  %v11013_v40 = vpack.c.bf16 %v1547_v18, %v1458_v15 }
 0x201   : > { %v8263_v4 = vpop.eup %8262  ;;  %v4201_v63 = vadd.f32 1.0, %v3881_v55  ;;  %v4202_v35 = vadd.f32 1.0, %v3882_v31  ;;  %8266 = vpow2.f32 %v3541_v41  ;;  %v5528_v32 = vmul.f32 %v8261_v60, %v10525_v16 }
 0x202   : > { %v8265_v49 = vpop.eup %8264  ;;  %v5001_v10 = vmul.f32 %v8263_v4, %v10522_v20  ;;  %8268 = vpow2.f32 %v3543_v38  ;;  %v2536_v13 = vxor.u32 2147516416, %v11013_v40  ;;  %v11024_v55 = vpack.c.bf16 %v6574_v21, %v6573_v42  ;;  %v11028_v14 = vpop.f32.mrf.mxu2 }
 0x203   : > { %v5003_v2 = vmul.f32 %v8265_v49, %v10525_v16  ;;  %8270 = vrcp.f32 %v5558_v62  ;;  %v4451_v18 = vpack.c.bf16 %v4202_v35, %v4201_v63  ;;  %v5529_v38 = vpack.c.bf16 %v5526_v25, %v5528_v32  ;;  %v14184_v25 = vld [vmem:[#allocation3_spill] sm:$0xff] }
 0x204   : > { %8272 = vrcp.f32 %v5559_v29  ;;  %v2771_v41 = vunpack.c.l.bf16 %v2536_v13  ;;  %14183 = vst [vmem:[#allocation27_spill] sm:$0xff] %v11024_v55  ;;  %v2772_v4 = vunpack.c.h.bf16 %v2536_v13  ;;  %v1717_v29 = vpop.f32.mrf.mxu0  ;;  %v1461_v42 = vadd.f32 %v10991_v36, %v10361_v47  ;;  %v11036_v63 = vpop.f32.mrf.mxu3 }
 0x205   : > { %v5004_v52 = vpack.c.bf16 %v5001_v10, %v5003_v2  ;;  %v5033_v31 = vunpack.c.h.bf16 %v4451_v18  ;;  %v5034_v60 = vunpack.c.l.bf16 %v4451_v18  ;;  %v1587_v10 = vadd.f32 %v10979_v57, %v10369_v1 }
 0x206   : > { %v3241_v49 = vmul.f32 1.442695, %v2771_v41  ;;  %v3243_v21 = vmul.f32 1.442695, %v2772_v4  ;;  %v14185_v2 = vunpack.c.l.bf16 %v10898_v44  ;;  %v11048_v15 = vadd.f32 %v1717_v29, %v10600_v17 }
 0x207   : > { %7815 = vmatmul.msk.bf16.gmra.mxu1 %vm425_vm0, %v10394_v23  ;;  %v6113_v62 = vunpack.c.l.bf16 %v5004_v52  ;;  %v6114_v26 = vunpack.c.h.bf16 %v5004_v52  ;;  %7831 = vmatmul.msk.bf16.gmra.mxu2 %vm425_vm0, %v10394_v23  ;;  %v8267_v35 = vpop.eup %8266  ;;  %8274 = vrcp.f32 %v5033_v31  ;;  %v1550_v52 = vadd.f32 %v1549_v6, %v10369_v1 }
 0x208   : > { %7787 = vmatmul.msk.bf16.gmra.mxu3 %vm425_vm0, %v14184_v25  ;;  %v8269_v32 = vpop.eup %8268  ;;  %8276 = vrcp.f32 %v5034_v60  ;;  %v5804_v31 = vunpack.c.h.bf16 %v10946_v33  ;;  %v11045_v57 = vpack.c.bf16 %v1587_v10, %v10827_v11  ;;  %14186 = vst [vmem:[#allocation28_spill] sm:$0xff] %v11048_v15  ;;  %v6263_v60 = vunpack.c.l.bf16 %v5529_v38 }
 0x209   : > { %v6433_v13 = vmul.f32 %v6113_v62, %v14185_v2  ;;  %v6434_v18 = vmul.f32 %v6114_v26, %v5794_v34  ;;  %v8271_v41 = vpop.eup %8270  ;;  %v3731_v36 = vpack.c.bf16 %v8269_v32, %v8267_v35  ;;  %8278 = vpow2.f32 %v3241_v49  ;;  %v11053_v26 = vpop.f32.mrf.mxu1 }
 0x20a   : > { %v8273_v4 = vpop.eup %8272  ;;  %8280 = vpow2.f32 %v3243_v21  ;;  %v11050_v44 = vpack.c.bf16 %v1550_v52, %v1461_v42  ;;  %v6264_v35 = vunpack.c.h.bf16 %v5529_v38  ;;  %v2616_v11 = vxor.u32 2147516416, %v11045_v57 }
 0x20b   : > { %v6688_v43 = vpack.c.bf16 %v6434_v18, %v6433_v13  ;;  %v4041_v6 = vunpack.c.l.bf16 %v3731_v36  ;;  %v4042_v62 = vunpack.c.h.bf16 %v3731_v36  ;;  %v5561_v2 = vmul.f32 %v8271_v41, %v10522_v20 }
 0x20c   : > { %v5563_v29 = vmul.f32 %v8273_v4, %v10525_v16  ;;  %v2931_v34 = vunpack.c.l.bf16 %v2616_v11  ;;  %v2932_v23 = vunpack.c.h.bf16 %v2616_v11  ;;  %v14187_v4 = vunpack.c.l.bf16 %v10895_v46 }
 0x20d   : > { %v6913_v49 = vunpack.c.l.bf16 %v6688_v43  ;;  %v6914_v32 = vunpack.c.h.bf16 %v6688_v43  ;;  %v8275_v10 = vpop.eup %8274  ;;  %v4361_v21 = vadd.f32 1.0, %v4041_v6  ;;  %v4362_v42 = vadd.f32 1.0, %v4042_v62 }
 0x20e   : > { %v8277_v13 = vpop.eup %8276  ;;  %v5036_v36 = vmul.f32 %v8275_v10, %v10522_v20  ;;  %v6583_v6 = vmul.f32 %v6263_v60, %v14187_v4  ;;  %v3561_v7 = vmul.f32 1.442695, %v2931_v34  ;;  %v14189_v62 = vunpack.c.l.bf16 %v10946_v33  ;;  %v9387_v33 = vld [vmem:[%s14025_s4] sm:$0xff] }
 0x20f   : > { %v7125_v18 = vadd.f32 %v11003_v22, %v6913_v49  ;;  %v7156_v52 = vadd.f32 %v11006_v54, %v6914_v32  ;;  %v8279_v38 = vpop.eup %8278  ;;  %v5038_v15 = vmul.f32 %v8277_v13, %v10525_v16  ;;  %v4531_v17 = vpack.c.bf16 %v4362_v42, %v4361_v21 }
 0x210   : > { %v8281_v41 = vpop.eup %8280  ;;  %v2541_v22 = vxor.u32 2147516416, %v11050_v44  ;;  %v14188_v54 = vunpack.c.h.bf16 %v10895_v46  ;;  %v5564_v32 = vpack.c.bf16 %v5561_v2, %v5563_v29  ;;  %8282 = vpow2.f32 %v3561_v7  ;;  %v11084_v29 = vpop.f32.mrf.mxu2 }
 0x211   : > { %v5039_v10 = vpack.c.bf16 %v5036_v36, %v5038_v15  ;;  %v5593_v53 = vunpack.c.h.bf16 %v4531_v17  ;;  %v5594_v43 = vunpack.c.l.bf16 %v4531_v17  ;;  %v3656_v55 = vpack.c.bf16 %v8281_v41, %v8279_v38  ;;  %v11071_v15 = vpop.f32.mrf.mxu1 }
 0x212   : > { %v6584_v49 = vmul.f32 %v6264_v35, %v14188_v54  ;;  %v3563_v21 = vmul.f32 1.442695, %v2932_v23  ;;  %v2781_v13 = vunpack.c.l.bf16 %v2541_v22  ;;  %v2782_v34 = vunpack.c.h.bf16 %v2541_v22 }
 0x213   : > { %v6123_v11 = vunpack.c.l.bf16 %v5039_v10  ;;  %v6124_v42 = vunpack.c.h.bf16 %v5039_v10  ;;  %8284 = vrcp.f32 %v5593_v53  ;;  %v3891_v60 = vunpack.c.l.bf16 %v3656_v55 }
 0x214   : > { %8286 = vrcp.f32 %v5594_v43  ;;  %v3892_v4 = vunpack.c.h.bf16 %v3656_v55  ;;  %v3261_v35 = vmul.f32 1.442695, %v2781_v13  ;;  %v11075_v23 = vpack.c.bf16 %v6584_v49, %v6583_v6 }
 0x215   : > { %v6443_v28 = vmul.f32 %v6123_v11, %v14189_v62  ;;  %v6444_v46 = vmul.f32 %v6124_v42, %v5804_v31  ;;  %8288 = vpow2.f32 %v3563_v21  ;;  %v4211_v17 = vadd.f32 1.0, %v3891_v60 }
 0x216   : > { %14190 = vst [vmem:[#allocation29_spill] sm:$0xff] %v11075_v23  ;;  %v4212_v53 = vadd.f32 1.0, %v3892_v4  ;;  %v3263_v7 = vmul.f32 1.442695, %v2782_v34  ;;  %8290 = vpow2.f32 %v3261_v35  ;;  %v1463_v55 = vadd.f32 %v11016_v61, %v10361_v47  ;;  %v8283_v36 = vpop.eup %8282 }
 0x217   : > { %7816 = vmatmul.msk.bf16.gmra.mxu1 %vm425_vm0, %v10471_v58  ;;  %v6693_v2 = vpack.c.bf16 %v6444_v46, %v6443_v28  ;;  %v11082_v31 = vperm.slane %v9387_v33, 2  ;;  %v6273_v38 = vunpack.c.l.bf16 %v5564_v32  ;;  %v1552_v41 = vadd.f32 %v11028_v14, %v10369_v1 }
 0x218   : > { %v4456_v43 = vpack.c.bf16 %v4212_v53, %v4211_v17  ;;  %8292 = vpow2.f32 %v3263_v7  ;;  %v6274_v6 = vunpack.c.h.bf16 %v5564_v32  ;;  %v14191_v32 = vld [vmem:[#allocation16_spill] sm:$0xff]  ;;  %v5964_v34 = vunpack.c.h.bf16 %v10982_v48 }
 0x219   : > { %v8285_v28 = vpop.eup %8284  ;;  %v6923_v62 = vunpack.c.l.bf16 %v6693_v2  ;;  %v6924_v22 = vunpack.c.h.bf16 %v6693_v2  ;;  %v1599_v61 = vadd.f32 %v10998_v27, %v11082_v31  ;;  %v11091_v11 = vpack.c.bf16 %v1552_v41, %v1463_v55 }
 0x21a   : > { %v8287_v54 = vpop.eup %8286  ;;  %v5596_v49 = vmul.f32 %v8285_v28, %v10522_v20  ;;  %v5068_v10 = vunpack.c.h.bf16 %v4456_v43  ;;  %v5069_v21 = vunpack.c.l.bf16 %v4456_v43  ;;  %v14192_v17 = vunpack.c.l.bf16 %v10901_v51 }
 0x21b   : > { %v8289_v42 = vpop.eup %8288  ;;  %v11093_v13 = vadd.f32 %v7125_v18, %v6923_v62  ;;  %v11095_v60 = vadd.f32 %v7156_v52, %v6924_v22  ;;  %v5598_v14 = vmul.f32 %v8287_v54, %v10525_v16  ;;  %v11099_v4 = vpack.c.bf16 %v14191_v32, %v1599_v61 }
 0x21c   : > { %8294 = vrcp.f32 %v5068_v10  ;;  %v3736_v27 = vpack.c.bf16 %v8289_v42, %v8283_v36  ;;  %v2546_v46 = vxor.u32 2147516416, %v11091_v11  ;;  %v8291_v35 = vpop.eup %8290  ;;  %v6593_v53 = vmul.f32 %v6273_v38, %v14192_v17 }
 0x21d   : > { %8296 = vrcp.f32 %v5069_v21  ;;  %v5813_v18 = vunpack.c.l.bf16 %v11013_v40  ;;  %v2462_v52 = vxor.u32 2147516416, %v11099_v4  ;;  %v14193_v2 = vunpack.c.h.bf16 %v10901_v51  ;;  %v11113_v21 = vpop.f32.mrf.mxu3 }
 0x21e   : > { %v8293_v7 = vpop.eup %8292  ;;  %v5599_v33 = vpack.c.bf16 %v5596_v49, %v5598_v14  ;;  %v4051_v43 = vunpack.c.l.bf16 %v3736_v27  ;;  %v4052_v41 = vunpack.c.h.bf16 %v3736_v27  ;;  %v5814_v28 = vunpack.c.h.bf16 %v11013_v40  ;;  %v11115_v14 = vpop.f32.mrf.mxu2  ;;  %7832 = vmatmul.msk.bf16.gmra.mxu2 %vm425_vm0, %v10471_v58 }
 0x21f   : > { %v6594_v55 = vmul.f32 %v6274_v6, %v14193_v2  ;;  %v3661_v62 = vpack.c.bf16 %v8293_v7, %v8291_v35  ;;  %v2623_v22 = vunpack.c.l.bf16 %v2462_v52  ;;  %v2624_v54 = vunpack.c.h.bf16 %v2462_v52 }
 0x220   : > { %v2791_v10 = vunpack.c.l.bf16 %v2546_v46  ;;  %v4371_v42 = vadd.f32 1.0, %v4051_v43  ;;  %v4372_v51 = vadd.f32 1.0, %v4052_v41  ;;  %v6283_v27 = vunpack.c.l.bf16 %v5599_v33 }
 0x221   : > { %v3901_v6 = vunpack.c.l.bf16 %v3661_v62  ;;  %v3902_v49 = vunpack.c.h.bf16 %v3661_v62  ;;  %v11119_v32 = vpack.c.bf16 %v6594_v55, %v6593_v53  ;;  %v2945_v35 = vmul.f32 1.442695, %v2623_v22 }
 0x222   : > { %v8295_v40 = vpop.eup %8294  ;;  %v2947_v17 = vmul.f32 1.442695, %v2624_v54  ;;  %v2792_v43 = vunpack.c.h.bf16 %v2546_v46  ;;  %v3281_v36 = vmul.f32 1.442695, %v2791_v10  ;;  %v6284_v61 = vunpack.c.h.bf16 %v5599_v33 }
 0x223   : > { %14194 = vst [vmem:[#allocation16_spill] sm:$0xff] %v11119_v32  ;;  %v8297_v7 = vpop.eup %8296  ;;  %v5071_v52 = vmul.f32 %v8295_v40, %v10522_v20  ;;  %v4221_v2 = vadd.f32 1.0, %v3901_v6  ;;  %v4222_v38 = vadd.f32 1.0, %v3902_v49  ;;  %8298 = vpow2.f32 %v2945_v35 }
 0x224   : > { %v5073_v41 = vmul.f32 %v8297_v7, %v10525_v16  ;;  %v4536_v58 = vpack.c.bf16 %v4372_v51, %v4371_v42  ;;  %8300 = vpow2.f32 %v2947_v17  ;;  %v14195_v53 = vunpack.c.l.bf16 %v10982_v48  ;;  %v14196_v51 = vld [vmem:[#allocation17_spill] sm:$0xff] }
 0x225   : > { %v4461_v23 = vpack.c.bf16 %v4222_v38, %v4221_v2  ;;  %v5823_v54 = vunpack.c.l.bf16 %v11050_v44  ;;  %v1466_v6 = vadd.f32 %v11053_v26, %v10361_v47  ;;  %v3283_v40 = vmul.f32 1.442695, %v2792_v43 }
 0x226   : > { %v6603_v55 = vmul.f32 %v6283_v27, %v14195_v53  ;;  %v5074_v22 = vpack.c.bf16 %v5071_v52, %v5073_v41  ;;  %v1601_v35 = vadd.f32 %v11036_v63, %v11082_v31  ;;  %8302 = vpow2.f32 %v3281_v36  ;;  %v11138_v52 = vpop.f32.mrf.mxu3  ;;  %7788 = vmatmul.msk.bf16.gmra.mxu3 %vm425_vm0, %v9860_v30  ;;  %v11163_v62 = vpop.f32.mrf.mxu2 }
 0x227   : > { %v5103_v46 = vunpack.c.h.bf16 %v4461_v23  ;;  %v5104_v49 = vunpack.c.l.bf16 %v4461_v23  ;;  %v1555_v38 = vadd.f32 %v11084_v29, %v10369_v1  ;;  %v6604_v48 = vmul.f32 %v6284_v61, %v5964_v34 }
 0x228   : > { %v6133_v10 = vunpack.c.l.bf16 %v5074_v22  ;;  %v6134_v33 = vunpack.c.h.bf16 %v5074_v22  ;;  %v5628_v42 = vunpack.c.h.bf16 %v4536_v58  ;;  %v11134_v27 = vpack.c.bf16 %v14196_v51, %v1601_v35 }
 0x229   : > { %8304 = vrcp.f32 %v5103_v46  ;;  %v8299_v17 = vpop.eup %8298  ;;  %v11136_v23 = vpack.c.bf16 %v1555_v38, %v1466_v6  ;;  %v5629_v2 = vunpack.c.l.bf16 %v4536_v58  ;;  %v11146_v43 = vpack.c.bf16 %v6604_v48, %v6603_v55  ;;  %v11149_v6 = vpop.f32.mrf.mxu1 }
 0x22a   : > { %v6453_v26 = vmul.f32 %v6133_v10, %v5813_v18  ;;  %v6454_v7 = vmul.f32 %v6134_v33, %v5814_v28  ;;  %8306 = vrcp.f32 %v5104_v49  ;;  %v8301_v63 = vpop.eup %8300  ;;  %v2467_v36 = vxor.u32 2147516416, %v11134_v27 }
 0x22b   : > { %8308 = vpow2.f32 %v3283_v40  ;;  %v3582_v18 = vpack.c.bf16 %v8301_v63, %v8299_v17  ;;  %v2551_v28 = vxor.u32 2147516416, %v11136_v23  ;;  %14197 = vst [vmem:[#allocation17_spill] sm:$0xff] %v11146_v43  ;;  %v5824_v41 = vunpack.c.h.bf16 %v11050_v44 }
 0x22c   : > { %v6698_v61 = vpack.c.bf16 %v6454_v7, %v6453_v26  ;;  %v2633_v53 = vunpack.c.l.bf16 %v2467_v36  ;;  %v2634_v22 = vunpack.c.h.bf16 %v2467_v36  ;;  %v8303_v46 = vpop.eup %8302  ;;  %8310 = vrcp.f32 %v5628_v42 }
 0x22d   : > { %v3743_v40 = vunpack.c.l.bf16 %v3582_v18  ;;  %v3744_v33 = vunpack.c.h.bf16 %v3582_v18  ;;  %v2801_v51 = vunpack.c.l.bf16 %v2551_v28  ;;  %8312 = vrcp.f32 %v5629_v2 }
 0x22e   : > { %v6933_v49 = vunpack.c.l.bf16 %v6698_v61  ;;  %v6934_v35 = vunpack.c.h.bf16 %v6698_v61  ;;  %v2965_v38 = vmul.f32 1.442695, %v2633_v53  ;;  %v2967_v58 = vmul.f32 1.442695, %v2634_v22 }
 0x22f   : > { %v8305_v10 = vpop.eup %8304  ;;  %v4063_v42 = vadd.f32 1.0, %v3743_v40  ;;  %v4064_v36 = vadd.f32 1.0, %v3744_v33 }
 0x230   : > { %v8307_v17 = vpop.eup %8306  ;;  %v11152_v55 = vadd.f32 %v11093_v13, %v6933_v49  ;;  %v11155_v48 = vadd.f32 %v11095_v60, %v6934_v35  ;;  %v5106_v26 = vmul.f32 %v8305_v10, %v10522_v20  ;;  %8314 = vpow2.f32 %v2965_v38 }
 0x231   : > { %v8309_v7 = vpop.eup %8308  ;;  %v5108_v63 = vmul.f32 %v8307_v17, %v10525_v16  ;;  %8316 = vpow2.f32 %v2967_v58  ;;  %v4382_v22 = vpack.c.bf16 %v4064_v36, %v4063_v42  ;;  %v2802_v49 = vunpack.c.h.bf16 %v2551_v28  ;;  %v7927_v28 = vld [vmem:[%s14024_s3 + $0x1c] sm:$0xf] }
 0x232   : > { %v3666_v18 = vpack.c.bf16 %v8309_v7, %v8303_v46  ;;  %v3301_v60 = vmul.f32 1.442695, %v2801_v51  ;;  %v8311_v35 = vpop.eup %8310  ;;  %v7691_v51 = vld [vmem:[%s14024_s3 + $0x40] sm:$0xf0] }
 0x233   : > { %v5109_v13 = vpack.c.bf16 %v5106_v26, %v5108_v63  ;;  %v4550_v38 = vunpack.c.h.bf16 %v4382_v22  ;;  %v4551_v29 = vunpack.c.l.bf16 %v4382_v22  ;;  %v8313_v46 = vpop.eup %8312  ;;  %v5631_v22 = vmul.f32 %v8311_v35, %v10522_v20 }
 0x234   : > { %v3911_v34 = vunpack.c.l.bf16 %v3666_v18  ;;  %v3912_v17 = vunpack.c.h.bf16 %v3666_v18  ;;  %8318 = vpow2.f32 %v3301_v60  ;;  %v3303_v18 = vmul.f32 1.442695, %v2802_v49 }
 0x235   : > { %v6143_v40 = vunpack.c.l.bf16 %v5109_v13  ;;  %v6144_v33 = vunpack.c.h.bf16 %v5109_v13  ;;  %8320 = vrcp.f32 %v4550_v38  ;;  %v11174_v13 = vpop.f32.mrf.mxu1  ;;  %7817 = vmatmul.msk.bf16.gmra.mxu1 %vm425_vm0, %v14175_v5  ;;  %v7694_v44 = vor.u32 %v7927_v28, %v7691_v51 }
 0x236   : > { %v4231_v26 = vadd.f32 1.0, %v3911_v34  ;;  %v4232_v7 = vadd.f32 1.0, %v3912_v17  ;;  %v8315_v63 = vpop.eup %8314  ;;  %8322 = vrcp.f32 %v4551_v29  ;;  %v1468_v17 = vadd.f32 %v11071_v15, %v10361_v47 }
 0x237   : > { %v6463_v42 = vmul.f32 %v6143_v40, %v5823_v54  ;;  %v6464_v36 = vmul.f32 %v6144_v33, %v5824_v41  ;;  %v8317_v34 = vpop.eup %8316  ;;  %8324 = vpow2.f32 %v3303_v18  ;;  %v1604_v49 = vadd.f32 %v11113_v21, %v11082_v31  ;;  %2041 = vmatpush.bf16.msra.mxu0 %v7694_v44 }
 0x238   : > { %v4466_v60 = vpack.c.bf16 %v4232_v7, %v4231_v26  ;;  %v3587_v2 = vpack.c.bf16 %v8317_v34, %v8315_v63  ;;  %v1557_v40 = vadd.f32 %v11115_v14, %v10369_v1  ;;  %v5633_v15 = vmul.f32 %v8313_v46, %v10525_v16 }
 0x239   : > { %v6703_v58 = vpack.c.bf16 %v6464_v36, %v6463_v42  ;;  %v11187_v7 = vpack.c.bf16 %v10767_v50, %v1604_v49  ;;  %v5834_v46 = vunpack.c.h.bf16 %v11091_v11  ;;  %v14198_v36 = vld [vmem:[#allocation2_spill] sm:$0xff] }
 0x23a   : > { %v5138_v54 = vunpack.c.h.bf16 %v4466_v60  ;;  %v5139_v41 = vunpack.c.l.bf16 %v4466_v60  ;;  %v3753_v35 = vunpack.c.l.bf16 %v3587_v2  ;;  %v3754_v29 = vunpack.c.h.bf16 %v3587_v2  ;;  %v8319_v26 = vpop.eup %8318  ;;  %7855 = vmatmul.msk.bf16.vlgmr.msra.gmra.mxu0 %vm425_vm0, %v14198_v36 }
 0x23b   : > { %v6943_v33 = vunpack.c.l.bf16 %v6703_v58  ;;  %v6944_v38 = vunpack.c.h.bf16 %v6703_v58  ;;  %v11189_v28 = vpack.c.bf16 %v1557_v40, %v1468_v17  ;;  %v8321_v51 = vpop.eup %8320  ;;  %v2472_v50 = vxor.u32 2147516416, %v11187_v7  ;;  %v11206_v17 = vpop.f32.mrf.mxu2  ;;  %7833 = vmatmul.msk.bf16.gmra.mxu2 %vm425_vm0, %v14175_v5 }
 0x23c   : > { %8326 = vrcp.f32 %v5138_v54  ;;  %v4073_v58 = vadd.f32 1.0, %v3753_v35  ;;  %v8323_v2 = vpop.eup %8322  ;;  %v4553_v63 = vmul.f32 %v8321_v51, %v10522_v20  ;;  %v4074_v42 = vadd.f32 1.0, %v3754_v29  ;;  %v11212_v40 = vpop.f32.mrf.mxu3 }
 0x23d   : > { %v11192_v21 = vadd.f32 %v11152_v55, %v6943_v33  ;;  %v11195_v14 = vadd.f32 %v11155_v48, %v6944_v38  ;;  %8328 = vrcp.f32 %v5139_v41  ;;  %v8325_v18 = vpop.eup %8324  ;;  %v4555_v55 = vmul.f32 %v8323_v2, %v10525_v16 }
 0x23e   : > { %v2556_v60 = vxor.u32 2147516416, %v11189_v28  ;;  %v11210_v44 = vpack.c.bf16 %v5631_v22, %v5633_v15  ;;  %v4387_v54 = vpack.c.bf16 %v4074_v42, %v4073_v58  ;;  %v3671_v41 = vpack.c.bf16 %v8325_v18, %v8319_v26 }
 0x23f   : > { %v2643_v49 = vunpack.c.l.bf16 %v2472_v50  ;;  %v4556_v33 = vpack.c.bf16 %v4553_v63, %v4555_v55  ;;  %v2644_v38 = vunpack.c.h.bf16 %v2472_v50  ;;  %v14199_v63 = vunpack.c.l.bf16 %v11099_v4 }
 0x240   : > { %v2811_v35 = vunpack.c.l.bf16 %v2556_v60  ;;  %v2812_v29 = vunpack.c.h.bf16 %v2556_v60  ;;  %v4585_v2 = vunpack.c.h.bf16 %v4387_v54  ;;  %v4586_v48 = vunpack.c.l.bf16 %v4387_v54  ;;  %v11220_v54 = vpop.f32.mrf.mxu0 }
 0x241   : > { %v3921_v34 = vunpack.c.l.bf16 %v3671_v41  ;;  %v3922_v53 = vunpack.c.h.bf16 %v3671_v41  ;;  %v5985_v61 = vunpack.c.l.bf16 %v4556_v33  ;;  %v5986_v43 = vunpack.c.h.bf16 %v4556_v33  ;;  %14201 = vst [vmem:[#allocation2_spill] sm:$0xff] %v11220_v54 }
 0x242   : > { %v8327_v51 = vpop.eup %8326  ;;  %v2985_v15 = vmul.f32 1.442695, %v2643_v49  ;;  %8330 = vrcp.f32 %v4585_v2  ;;  %v14200_v18 = vunpack.c.h.bf16 %v11099_v4  ;;  %v2987_v60 = vmul.f32 1.442695, %v2644_v38 }
 0x243   : > { %v8329_v10 = vpop.eup %8328  ;;  %v5141_v22 = vmul.f32 %v8327_v51, %v10522_v20  ;;  %v4241_v58 = vadd.f32 1.0, %v3921_v34  ;;  %v4242_v42 = vadd.f32 1.0, %v3922_v53  ;;  %v6305_v50 = vmul.f32 %v5985_v61, %v14199_v63 }
 0x244   : > { %v5143_v26 = vmul.f32 %v8329_v10, %v10525_v16  ;;  %v6306_v55 = vmul.f32 %v5986_v43, %v14200_v18  ;;  %8332 = vrcp.f32 %v4586_v48  ;;  %v3321_v51 = vmul.f32 1.442695, %v2811_v35 }
 0x245   : > { %v4471_v33 = vpack.c.bf16 %v4242_v42, %v4241_v58  ;;  %8334 = vpow2.f32 %v2985_v15  ;;  %v6293_v49 = vunpack.c.l.bf16 %v11210_v44  ;;  %v3323_v53 = vmul.f32 1.442695, %v2812_v29 }
 0x246   : > { %v5144_v41 = vpack.c.bf16 %v5141_v22, %v5143_v26  ;;  %8336 = vpow2.f32 %v2987_v60  ;;  %v11224_v4 = vpack.c.bf16 %v6306_v55, %v6305_v50  ;;  %v1471_v43 = vadd.f32 %v11149_v6, %v10361_v47  ;;  %v11234_v26 = vpop.f32.mrf.mxu3  ;;  %7789 = vmatmul.msk.bf16.gmra.mxu3 %vm425_vm0, %v9999_v45 }
 0x247   : > { %v5173_v61 = vunpack.c.h.bf16 %v4471_v33  ;;  %v5174_v63 = vunpack.c.l.bf16 %v4471_v33  ;;  %8338 = vpow2.f32 %v3321_v51  ;;  %v1606_v48 = vadd.f32 %v11138_v52, %v11082_v31 }
 0x248   : > { %v6153_v34 = vunpack.c.l.bf16 %v5144_v41  ;;  %v6154_v2 = vunpack.c.h.bf16 %v5144_v41  ;;  %v8331_v38 = vpop.eup %8330  ;;  %v14202_v35 = vunpack.c.l.bf16 %v11091_v11  ;;  %v1560_v29 = vadd.f32 %v11163_v62, %v10369_v1 }
 0x249   : > { %8340 = vrcp.f32 %v5173_v61  ;;  %v4588_v6 = vmul.f32 %v8331_v38, %v10522_v20  ;;  %v5844_v52 = vunpack.c.h.bf16 %v11136_v23  ;;  %v11241_v42 = vpack.c.bf16 %v10771_v24, %v1606_v48 }
 0x24a   : > { %v6473_v22 = vmul.f32 %v6153_v34, %v14202_v35  ;;  %v6474_v15 = vmul.f32 %v6154_v2, %v5834_v46  ;;  %v8333_v58 = vpop.eup %8332  ;;  %8342 = vrcp.f32 %v5174_v63  ;;  %v11244_v62 = vpack.c.bf16 %v1560_v29, %v1471_v43  ;;  %7856 = vmatmul.msk.bf16.gmra.mxu0 %vm425_vm0, %v9838_v37 }
 0x24b   : > { %v8335_v11 = vpop.eup %8334  ;;  %v4590_v50 = vmul.f32 %v8333_v58, %v10525_v16  ;;  %8344 = vpow2.f32 %v3323_v53  ;;  %v14203_v60 = vunpack.c.l.bf16 %v11045_v57  ;;  %v6785_v33 = vunpack.c.l.bf16 %v11224_v4 }
 0x24c   : > { %v6708_v46 = vpack.c.bf16 %v6474_v15, %v6473_v22  ;;  %v8337_v18 = vpop.eup %8336  ;;  %v2477_v51 = vxor.u32 2147516416, %v11241_v42  ;;  %v6786_v63 = vunpack.c.h.bf16 %v11224_v4  ;;  %v2561_v38 = vxor.u32 2147516416, %v11244_v62  ;;  %v11259_v22 = vpop.f32.mrf.mxu0 }
 0x24d   : > { %v11249_v41 = vmul.f32 %v6293_v49, %v14203_v60  ;;  %v4591_v2 = vpack.c.bf16 %v4588_v6, %v4590_v50  ;;  %v3592_v61 = vpack.c.bf16 %v8337_v18, %v8335_v11  ;;  %v8339_v53 = vpop.eup %8338  ;;  %v11257_v49 = vpop.f32.mrf.mxu1  ;;  %14204 = vst [vmem:[#allocation30_spill] sm:$0xff] %v11259_v22  ;;  %v14206_v10 = vunpack.c.h.bf16 %v11134_v27 }
 0x24e   : > { %v6953_v24 = vunpack.c.l.bf16 %v6708_v46  ;;  %v6954_v34 = vunpack.c.h.bf16 %v6708_v46  ;;  %v2653_v43 = vunpack.c.l.bf16 %v2477_v51  ;;  %v2654_v48 = vunpack.c.h.bf16 %v2477_v51 }
 0x24f   : > { %v8341_v35 = vpop.eup %8340  ;;  %v5995_v58 = vunpack.c.l.bf16 %v4591_v2  ;;  %v5996_v6 = vunpack.c.h.bf16 %v4591_v2  ;;  %v3763_v46 = vunpack.c.l.bf16 %v3592_v61  ;;  %v3764_v50 = vunpack.c.h.bf16 %v3592_v61 }
 0x250   : > { %v11262_v15 = vadd.f32 %v11192_v21, %v6953_v24  ;;  %v11265_v29 = vadd.f32 %v11195_v14, %v6954_v34  ;;  %v8343_v11 = vpop.eup %8342  ;;  %v5176_v4 = vmul.f32 %v8341_v35, %v10522_v20  ;;  %v3005_v18 = vmul.f32 1.442695, %v2653_v43 }
 0x251   : > { %v8345_v60 = vpop.eup %8344  ;;  %v14205_v51 = vunpack.c.l.bf16 %v11134_v27  ;;  %v6316_v5 = vmul.f32 %v5996_v6, %v14206_v10  ;;  %v5178_v21 = vmul.f32 %v8343_v11, %v10525_v16  ;;  %v3007_v24 = vmul.f32 1.442695, %v2654_v48 }
 0x252   : > { %v4083_v14 = vadd.f32 1.0, %v3763_v46  ;;  %v4084_v34 = vadd.f32 1.0, %v3764_v50  ;;  %v3676_v22 = vpack.c.bf16 %v8345_v60, %v8339_v53  ;;  %8346 = vpow2.f32 %v3005_v18  ;;  %v11279_v60 = vpop.f32.mrf.mxu2 }
 0x253   : > { %v6315_v55 = vmul.f32 %v5995_v58, %v14205_v51  ;;  %v5179_v54 = vpack.c.bf16 %v5176_v4, %v5178_v21  ;;  %8348 = vpow2.f32 %v3007_v24  ;;  %v2821_v35 = vunpack.c.l.bf16 %v2561_v38 }
 0x254   : > { %v4392_v61 = vpack.c.bf16 %v4084_v34, %v4083_v14  ;;  %v3931_v43 = vunpack.c.l.bf16 %v3676_v22  ;;  %v3932_v45 = vunpack.c.h.bf16 %v3676_v22  ;;  %v2822_v32 = vunpack.c.h.bf16 %v2561_v38 }
 0x255   : > { %v6629_v2 = vpack.c.bf16 %v6316_v5, %v6315_v55  ;;  %v6163_v51 = vunpack.c.l.bf16 %v5179_v54  ;;  %v6164_v27 = vunpack.c.h.bf16 %v5179_v54  ;;  %v14207_v5 = vunpack.c.l.bf16 %v11136_v23  ;;  %v11281_v54 = vpop.f32.mrf.mxu1  ;;  %7818 = vmatmul.msk.bf16.gmra.mxu1 %vm425_vm0, %v14180_v8 }
 0x256   : > { %v4620_v10 = vunpack.c.h.bf16 %v4392_v61  ;;  %v4621_v6 = vunpack.c.l.bf16 %v4392_v61  ;;  %v4251_v11 = vadd.f32 1.0, %v3931_v43  ;;  %v4252_v48 = vadd.f32 1.0, %v3932_v45  ;;  %v11285_v45 = vpop.f32.mrf.mxu0 }
 0x257   : > { %v6795_v37 = vunpack.c.l.bf16 %v6629_v2  ;;  %v6796_v58 = vunpack.c.h.bf16 %v6629_v2  ;;  %v6483_v55 = vmul.f32 %v6163_v51, %v14207_v5  ;;  %v6484_v4 = vmul.f32 %v6164_v27, %v5844_v52 }
 0x258   : > { %v8347_v50 = vpop.eup %8346  ;;  %8350 = vrcp.f32 %v4620_v10  ;;  %v4476_v22 = vpack.c.bf16 %v4252_v48, %v4251_v11  ;;  %v3341_v38 = vmul.f32 1.442695, %v2821_v35  ;;  %v3343_v18 = vmul.f32 1.442695, %v2822_v32 }
 0x259   : > { %v11273_v46 = vadd.f32 %v6795_v37, %v6785_v33  ;;  %v11275_v53 = vadd.f32 %v6796_v58, %v6786_v63  ;;  %v8349_v37 = vpop.eup %8348  ;;  %v6713_v33 = vpack.c.bf16 %v6484_v4, %v6483_v55  ;;  %8352 = vrcp.f32 %v4621_v6 }
 0x25a   : > { %v1473_v23 = vadd.f32 %v11174_v13, %v10361_v47  ;;  %v1609_v52 = vadd.f32 %v11212_v40, %v11082_v31  ;;  %v5208_v63 = vunpack.c.h.bf16 %v4476_v22  ;;  %v5209_v32 = vunpack.c.l.bf16 %v4476_v22  ;;  %7857 = vmatmul.msk.bf16.gmra.mxu0 %vm425_vm0, %v9981_v39 }
 0x25b   : > { %v3597_v21 = vpack.c.bf16 %v8349_v37, %v8347_v50  ;;  %8354 = vpow2.f32 %v3341_v38  ;;  %v6963_v24 = vunpack.c.l.bf16 %v6713_v33  ;;  %v6964_v14 = vunpack.c.h.bf16 %v6713_v33 }
 0x25c   : > { %8356 = vpow2.f32 %v3343_v18  ;;  %v11292_v34 = vpack.c.bf16 %v10806_v0, %v1609_v52  ;;  %v1562_v61 = vadd.f32 %v11206_v17, %v10369_v1  ;;  %v14208_v58 = vunpack.c.h.bf16 %v11045_v57 }
 0x25d   : > { %8358 = vrcp.f32 %v5208_v63  ;;  %v3773_v2 = vunpack.c.l.bf16 %v3597_v21  ;;  %v3774_v35 = vunpack.c.h.bf16 %v3597_v21  ;;  %v11297_v13 = vadd.f32 %v11262_v15, %v6963_v24  ;;  %v11320_v24 = vpop.f32.mrf.mxu2  ;;  %7834 = vmatmul.msk.bf16.gmra.mxu2 %vm425_vm0, %v14180_v8 }
 0x25e   : > { %v11300_v40 = vadd.f32 %v11265_v29, %v6964_v14  ;;  %8360 = vrcp.f32 %v5209_v32  ;;  %v2482_v43 = vxor.u32 2147516416, %v11292_v34  ;;  %v8351_v0 = vpop.eup %8350  ;;  %v14209_v51 = vunpack.c.h.bf16 %v11210_v44  ;;  %v11324_v14 = vpop.f32.mrf.mxu0 }
 0x25f   : > { %v5685_v17 = vunpack.c.l.bf16 %v11187_v7  ;;  %v4093_v15 = vadd.f32 1.0, %v3773_v2  ;;  %v4094_v10 = vadd.f32 1.0, %v3774_v35  ;;  %v8353_v6 = vpop.eup %8352  ;;  %v4623_v29 = vmul.f32 %v8351_v0, %v10522_v20 }
 0x260   : > { %v11309_v27 = vmul.f32 %v14209_v51, %v14208_v58  ;;  %v2663_v11 = vunpack.c.l.bf16 %v2482_v43  ;;  %v2664_v48 = vunpack.c.h.bf16 %v2482_v43  ;;  %v11313_v5 = vpack.c.bf16 %v1562_v61, %v1473_v23 }
 0x261   : > { %v8355_v55 = vpop.eup %8354  ;;  %v4625_v4 = vmul.f32 %v8353_v6, %v10525_v16  ;;  %v5686_v57 = vunpack.c.h.bf16 %v11187_v7  ;;  %v5853_v44 = vunpack.c.l.bf16 %v11189_v28  ;;  %v4397_v50 = vpack.c.bf16 %v4094_v10, %v4093_v15 }
 0x262   : > { %v8357_v22 = vpop.eup %8356  ;;  %v5854_v38 = vunpack.c.h.bf16 %v11189_v28  ;;  %v3025_v18 = vmul.f32 1.442695, %v2663_v11  ;;  %v3027_v37 = vmul.f32 1.442695, %v2664_v48  ;;  %v2566_v33 = vxor.u32 2147516416, %v11313_v5 }
 0x263   : > { %v8359_v52 = vpop.eup %8358  ;;  %v4626_v63 = vpack.c.bf16 %v4623_v29, %v4625_v4  ;;  %v4655_v32 = vunpack.c.h.bf16 %v4397_v50  ;;  %v4656_v23 = vunpack.c.l.bf16 %v4397_v50  ;;  %v3681_v21 = vpack.c.bf16 %v8357_v22, %v8355_v55  ;;  %v11329_v50 = vpop.f32.mrf.mxu3 }
 0x264   : > { %v8361_v7 = vpop.eup %8360  ;;  %v5211_v2 = vmul.f32 %v8359_v52, %v10522_v20  ;;  %8362 = vpow2.f32 %v3025_v18  ;;  %v2831_v28 = vunpack.c.l.bf16 %v2566_v33  ;;  %v2832_v35 = vunpack.c.h.bf16 %v2566_v33 }
 0x265   : > { %v6005_v61 = vunpack.c.l.bf16 %v4626_v63  ;;  %v6006_v43 = vunpack.c.h.bf16 %v4626_v63  ;;  %v5213_v0 = vmul.f32 %v8361_v7, %v10525_v16  ;;  %8364 = vrcp.f32 %v4655_v32 }
 0x266   : > { %8366 = vrcp.f32 %v4656_v23  ;;  %v3941_v58 = vunpack.c.l.bf16 %v3681_v21  ;;  %v3942_v51 = vunpack.c.h.bf16 %v3681_v21  ;;  %v3361_v15 = vmul.f32 1.442695, %v2831_v28 }
 0x267   : > { %v6325_v10 = vmul.f32 %v6005_v61, %v5685_v17  ;;  %v6326_v6 = vmul.f32 %v6006_v43, %v5686_v57  ;;  %v5214_v29 = vpack.c.bf16 %v5211_v2, %v5213_v0  ;;  %8368 = vpow2.f32 %v3027_v37 }
 0x268   : > { %v5695_v11 = vunpack.c.l.bf16 %v11241_v42  ;;  %v4261_v48 = vadd.f32 1.0, %v3941_v58  ;;  %v4262_v55 = vadd.f32 1.0, %v3942_v51  ;;  %v3363_v4 = vmul.f32 1.442695, %v2832_v35 }
 0x269   : > { %v6634_v22 = vpack.c.bf16 %v6326_v6, %v6325_v10  ;;  %v6173_v18 = vunpack.c.l.bf16 %v5214_v29  ;;  %v6174_v33 = vunpack.c.h.bf16 %v5214_v29  ;;  %8370 = vpow2.f32 %v3361_v15  ;;  %v11341_v15 = vpop.f32.mrf.mxu0 }
 0x26a   : > { %v8363_v52 = vpop.eup %8362  ;;  %v5696_v63 = vunpack.c.h.bf16 %v11241_v42  ;;  %v4481_v32 = vpack.c.bf16 %v4262_v55, %v4261_v48  ;;  %8372 = vpow2.f32 %v3363_v4  ;;  %v1611_v17 = vadd.f32 %v11234_v26, %v11082_v31  ;;  %7858 = vmatmul.msk.bf16.gmra.mxu0 %vm425_vm0, %v10066_v3 }
 0x26b   : > { %v8365_v57 = vpop.eup %8364  ;;  %v6805_v37 = vunpack.c.l.bf16 %v6634_v22  ;;  %v6806_v23 = vunpack.c.h.bf16 %v6634_v22  ;;  %v6493_v21 = vmul.f32 %v6173_v18, %v5853_v44  ;;  %v6494_v7 = vmul.f32 %v6174_v33, %v5854_v38 }
 0x26c   : > { %v8367_v2 = vpop.eup %8366  ;;  %v4658_v28 = vmul.f32 %v8365_v57, %v10522_v20  ;;  %v5243_v35 = vunpack.c.h.bf16 %v4481_v32  ;;  %v5244_v61 = vunpack.c.l.bf16 %v4481_v32  ;;  %v11336_v43 = vpack.c.bf16 %v10810_v9, %v1611_v17 }
 0x26d   : > { %v8369_v0 = vpop.eup %8368  ;;  %v7176_v42 = vadd.f32 %v11273_v46, %v6805_v37  ;;  %v7207_v58 = vadd.f32 %v11275_v53, %v6806_v23  ;;  %v6718_v51 = vpack.c.bf16 %v6494_v7, %v6493_v21  ;;  %v4660_v26 = vmul.f32 %v8367_v2, %v10525_v16  ;;  %v11354_v23 = vpop.f32.mrf.mxu1 }
 0x26e   : > { %8374 = vrcp.f32 %v5243_v35  ;;  %v3602_v44 = vpack.c.bf16 %v8369_v0, %v8363_v52  ;;  %v2487_v38 = vxor.u32 2147516416, %v11336_v43  ;;  %v1565_v10 = vadd.f32 %v11279_v60, %v10369_v1  ;;  %v11356_v21 = vpop.f32.mrf.mxu3  ;;  %7790 = vmatmul.msk.bf16.gmra.mxu3 %vm425_vm0, %v10076_v12 }
 0x26f   : > { %v8371_v9 = vpop.eup %8370  ;;  %v6973_v6 = vunpack.c.l.bf16 %v6718_v51  ;;  %v6974_v46 = vunpack.c.h.bf16 %v6718_v51  ;;  %v4661_v29 = vpack.c.bf16 %v4658_v28, %v4660_v26  ;;  %8376 = vrcp.f32 %v5244_v61 }
 0x270   : > { %v8373_v53 = vpop.eup %8372  ;;  %v3783_v48 = vunpack.c.l.bf16 %v3602_v44  ;;  %v3784_v55 = vunpack.c.h.bf16 %v3602_v44  ;;  %v2673_v4 = vunpack.c.l.bf16 %v2487_v38  ;;  %v2674_v22 = vunpack.c.h.bf16 %v2487_v38 }
 0x271   : > { %v11349_v18 = vadd.f32 %v11297_v13, %v6973_v6  ;;  %v11352_v33 = vadd.f32 %v11300_v40, %v6974_v46  ;;  %v6015_v60 = vunpack.c.l.bf16 %v4661_v29  ;;  %v6016_v52 = vunpack.c.h.bf16 %v4661_v29 }
 0x272   : > { %v4103_v32 = vadd.f32 1.0, %v3783_v48  ;;  %v4104_v17 = vadd.f32 1.0, %v3784_v55  ;;  %v3686_v57 = vpack.c.bf16 %v8373_v53, %v8371_v9  ;;  %v3045_v37 = vmul.f32 1.442695, %v2673_v4 }
 0x273   : > { %v6335_v7 = vmul.f32 %v6015_v60, %v5695_v11  ;;  %v6336_v2 = vmul.f32 %v6016_v52, %v5696_v63  ;;  %v1476_v13 = vadd.f32 %v11257_v49, %v10361_v47  ;;  %v3047_v40 = vmul.f32 1.442695, %v2674_v22  ;;  %v11369_v22 = vpop.f32.mrf.mxu0 }
 0x274   : > { %v8375_v28 = vpop.eup %8374  ;;  %v4402_v35 = vpack.c.bf16 %v4104_v17, %v4103_v32  ;;  %v3951_v61 = vunpack.c.l.bf16 %v3686_v57  ;;  %v3952_v0 = vunpack.c.h.bf16 %v3686_v57  ;;  %8378 = vpow2.f32 %v3045_v37 }
 0x275   : > { %v8377_v51 = vpop.eup %8376  ;;  %v6639_v26 = vpack.c.bf16 %v6336_v2, %v6335_v7  ;;  %v5246_v44 = vmul.f32 %v8375_v28, %v10522_v20  ;;  %8380 = vpow2.f32 %v3047_v40  ;;  %v11363_v38 = vpack.c.bf16 %v1565_v10, %v1476_v13 }
 0x276   : > { %v5248_v9 = vmul.f32 %v8377_v51, %v10525_v16  ;;  %v4690_v11 = vunpack.c.h.bf16 %v4402_v35  ;;  %v4691_v63 = vunpack.c.l.bf16 %v4402_v35  ;;  %v4271_v6 = vadd.f32 1.0, %v3951_v61 }
 0x277   : > { %v6815_v46 = vunpack.c.l.bf16 %v6639_v26  ;;  %v6816_v49 = vunpack.c.h.bf16 %v6639_v26  ;;  %v4272_v29 = vadd.f32 1.0, %v3952_v0  ;;  %v2571_v53 = vxor.u32 2147516416, %v11363_v38  ;;  %v11381_v0 = vpop.f32.mrf.mxu1  ;;  %7819 = vmatmul.msk.bf16.gmra.mxu1 %vm425_vm0, %v14184_v25 }
 0x278   : > { %v5249_v48 = vpack.c.bf16 %v5246_v44, %v5248_v9  ;;  %v5863_v55 = vunpack.c.l.bf16 %v11244_v62  ;;  %v5864_v4 = vunpack.c.h.bf16 %v11244_v62  ;;  %8382 = vrcp.f32 %v4690_v11 }
 0x279   : > { %v11371_v10 = vadd.f32 %v7176_v42, %v6815_v46  ;;  %v11373_v60 = vadd.f32 %v7207_v58, %v6816_v49  ;;  %8384 = vrcp.f32 %v4691_v63  ;;  %v4486_v52 = vpack.c.bf16 %v4272_v29, %v4271_v6  ;;  %v14210_v63 = vld [vmem:[#allocation18_spill] sm:$0xff] }
 0x27a   : > { %v8379_v32 = vpop.eup %8378  ;;  %v6183_v17 = vunpack.c.l.bf16 %v5249_v48  ;;  %v6184_v57 = vunpack.c.h.bf16 %v5249_v48  ;;  %v2841_v37 = vunpack.c.l.bf16 %v2571_v53  ;;  %v2842_v7 = vunpack.c.h.bf16 %v2571_v53  ;;  %7859 = vmatmul.msk.bf16.gmra.mxu0 %vm425_vm0, %v10126_v59 }
 0x27b   : > { %v8381_v2 = vpop.eup %8380  ;;  %v11377_v13 = vpack.c.bf16 %v11309_v27, %v11249_v41  ;;  %v5278_v62 = vunpack.c.h.bf16 %v4486_v52  ;;  %v5279_v40 = vunpack.c.l.bf16 %v4486_v52  ;;  %v1478_v42 = vadd.f32 %v11281_v54, %v10361_v47 }
 0x27c   : > { %v6503_v28 = vmul.f32 %v6183_v17, %v5863_v55  ;;  %v6504_v58 = vmul.f32 %v6184_v57, %v5864_v4  ;;  %v3607_v35 = vpack.c.bf16 %v8381_v2, %v8379_v32  ;;  %v3381_v61 = vmul.f32 1.442695, %v2841_v37  ;;  %v11409_v57 = vpop.f32.mrf.mxu0 }
 0x27d   : > { %8386 = vrcp.f32 %v5278_v62  ;;  %v3383_v51 = vmul.f32 1.442695, %v2842_v7  ;;  %v1614_v41 = vadd.f32 %v11329_v50, %v11082_v31  ;;  %v1567_v27 = vadd.f32 %v11320_v24, %v10369_v1  ;;  %v11397_v50 = vpop.f32.mrf.mxu2 }
 0x27e   : > { %v8383_v26 = vpop.eup %8382  ;;  %v6723_v44 = vpack.c.bf16 %v6504_v58, %v6503_v28  ;;  %8388 = vrcp.f32 %v5279_v40  ;;  %v3793_v47 = vunpack.c.l.bf16 %v3607_v35  ;;  %v3794_v54 = vunpack.c.h.bf16 %v3607_v35 }
 0x27f   : > { %v8385_v9 = vpop.eup %8384  ;;  %v4693_v11 = vmul.f32 %v8383_v26, %v10522_v20  ;;  %8390 = vpow2.f32 %v3381_v61  ;;  %v11393_v6 = vpack.c.bf16 %v14210_v63, %v1614_v41  ;;  %v11395_v46 = vpack.c.bf16 %v1567_v27, %v1478_v42 }
 0x280   : > { %v6983_v1 = vunpack.c.l.bf16 %v6723_v44  ;;  %v6984_v24 = vunpack.c.h.bf16 %v6723_v44  ;;  %v4695_v49 = vmul.f32 %v8385_v9, %v10525_v16  ;;  %v4113_v29 = vadd.f32 1.0, %v3793_v47 }
 0x281   : > { %v5705_v53 = vunpack.c.l.bf16 %v11292_v34  ;;  %v4114_v48 = vadd.f32 1.0, %v3794_v54  ;;  %8392 = vpow2.f32 %v3383_v51  ;;  %v2492_v55 = vxor.u32 2147516416, %v11393_v6 }
 0x282   : > { %v11403_v4 = vadd.f32 %v11349_v18, %v6983_v1  ;;  %v11406_v52 = vadd.f32 %v11352_v33, %v6984_v24  ;;  %v4696_v32 = vpack.c.bf16 %v4693_v11, %v4695_v49  ;;  %v5706_v17 = vunpack.c.h.bf16 %v11292_v34 }
 0x283   : > { %v8387_v37 = vpop.eup %8386  ;;  %v4407_v7 = vpack.c.bf16 %v4114_v48, %v4113_v29  ;;  %v2683_v2 = vunpack.c.l.bf16 %v2492_v55  ;;  %v2684_v62 = vunpack.c.h.bf16 %v2492_v55  ;;  %v2576_v40 = vxor.u32 2147516416, %v11395_v46 }
 0x284   : > { %v8389_v42 = vpop.eup %8388  ;;  %v6025_v28 = vunpack.c.l.bf16 %v4696_v32  ;;  %v6026_v58 = vunpack.c.h.bf16 %v4696_v32  ;;  %v5281_v18 = vmul.f32 %v8387_v37, %v10522_v20  ;;  %v5873_v35 = vunpack.c.l.bf16 %v11313_v5 }
 0x285   : > { %v8391_v33 = vpop.eup %8390  ;;  %v5283_v61 = vmul.f32 %v8389_v42, %v10525_v16  ;;  %v4725_v51 = vunpack.c.h.bf16 %v4407_v7  ;;  %v4726_v34 = vunpack.c.l.bf16 %v4407_v7  ;;  %v3065_v41 = vmul.f32 1.442695, %v2683_v2  ;;  %v11416_v32 = vpop.f32.mrf.mxu2  ;;  %7835 = vmatmul.msk.bf16.gmra.mxu2 %vm425_vm0, %v14184_v25 }
 0x286   : > { %v6345_v27 = vmul.f32 %v6025_v28, %v5705_v53  ;;  %v6346_v26 = vmul.f32 %v6026_v58, %v5706_v17  ;;  %v5874_v44 = vunpack.c.h.bf16 %v11313_v5  ;;  %v2851_v47 = vunpack.c.l.bf16 %v2576_v40 }
 0x287   : > { %v8393_v54 = vpop.eup %8392  ;;  %v5284_v9 = vpack.c.bf16 %v5281_v18, %v5283_v61  ;;  %8394 = vrcp.f32 %v4725_v51  ;;  %v3067_v11 = vmul.f32 1.442695, %v2684_v62  ;;  %v2852_v63 = vunpack.c.h.bf16 %v2576_v40  ;;  %v11427_v18 = vpop.f32.mrf.mxu0 }
 0x288   : > { %v6644_v1 = vpack.c.bf16 %v6346_v26, %v6345_v27  ;;  %8396 = vrcp.f32 %v4726_v34  ;;  %v3691_v24 = vpack.c.bf16 %v8393_v54, %v8391_v33  ;;  %v3401_v49 = vmul.f32 1.442695, %v2851_v47 }
 0x289   : > { %v6193_v29 = vunpack.c.l.bf16 %v5284_v9  ;;  %v6194_v48 = vunpack.c.h.bf16 %v5284_v9  ;;  %8398 = vpow2.f32 %v3065_v41  ;;  %v3403_v55 = vmul.f32 1.442695, %v2852_v63 }
 0x28a   : > { %v6825_v5 = vunpack.c.l.bf16 %v6644_v1  ;;  %v6826_v53 = vunpack.c.h.bf16 %v6644_v1  ;;  %v3961_v17 = vunpack.c.l.bf16 %v3691_v24  ;;  %v3962_v37 = vunpack.c.h.bf16 %v3691_v24  ;;  %7860 = vmatmul.msk.bf16.gmra.mxu0 %vm425_vm0, %v10174_v56  ;;  %v14211_v1 = vld [vmem:[#allocation19_spill] sm:$0xff]  ;;  %v7697_v56 = vld [vmem:[%s14024_s3 + $0x20] sm:$0xf] }
 0x28b   : > { %v6513_v2 = vmul.f32 %v6193_v29, %v5873_v35  ;;  %v6514_v62 = vmul.f32 %v6194_v48, %v5874_v44  ;;  %8400 = vpow2.f32 %v3067_v11  ;;  %v1616_v35 = vadd.f32 %v11356_v21, %v11082_v31 }
 0x28c   : > { %v11422_v40 = vadd.f32 %v11371_v10, %v6825_v5  ;;  %v11425_v42 = vadd.f32 %v11373_v60, %v6826_v53  ;;  %v4281_v28 = vadd.f32 1.0, %v3961_v17  ;;  %v4282_v58 = vadd.f32 1.0, %v3962_v37  ;;  %v9388_v60 = vld [vmem:[%s14025_s4] sm:$0xff] }
 0x28d   : > { %v8395_v33 = vpop.eup %8394  ;;  %v6728_v51 = vpack.c.bf16 %v6514_v62, %v6513_v2  ;;  %8402 = vpow2.f32 %v3401_v49  ;;  %v11436_v27 = vperm.slane %v9388_v60, 5  ;;  %v11441_v21 = vperm.slane %v9388_v60, 4 }
 0x28e   : > { %v8397_v34 = vpop.eup %8396  ;;  %v4728_v41 = vmul.f32 %v8395_v33, %v10522_v20  ;;  %v4491_v10 = vpack.c.bf16 %v4282_v58, %v4281_v28  ;;  %8404 = vpow2.f32 %v3403_v55  ;;  %v5715_v9 = vunpack.c.l.bf16 %v11336_v43 }
 0x28f   : > { %v8399_v26 = vpop.eup %8398  ;;  %v6993_v44 = vunpack.c.l.bf16 %v6728_v51  ;;  %v6994_v47 = vunpack.c.h.bf16 %v6728_v51  ;;  %v4730_v54 = vmul.f32 %v8397_v34, %v10525_v16  ;;  %v11445_v24 = vpack.c.bf16 %v14211_v1, %v1616_v35  ;;  %v1618_v1 = vpop.f32.mrf.mxu3 }
 0x290   : > { %v5313_v11 = vunpack.c.h.bf16 %v4491_v10  ;;  %v5314_v63 = vunpack.c.l.bf16 %v4491_v10  ;;  %v1866_v5 = vadd.f32 %v11397_v50, %v11436_v27  ;;  %v5716_v53 = vunpack.c.h.bf16 %v11336_v43 }
 0x291   : > { %v8401_v49 = vpop.eup %8400  ;;  %v11448_v29 = vadd.f32 %v11403_v4, %v6993_v44  ;;  %v11451_v48 = vadd.f32 %v11406_v52, %v6994_v47  ;;  %v4731_v55 = vpack.c.bf16 %v4728_v41, %v4730_v54  ;;  %v2497_v37 = vxor.u32 2147516416, %v11445_v24 }
 0x292   : > { %8406 = vrcp.f32 %v5313_v11  ;;  %v3612_v17 = vpack.c.bf16 %v8401_v49, %v8399_v26  ;;  %v1777_v4 = vadd.f32 %v11354_v23, %v11441_v21  ;;  %v11461_v26 = vpop.f32.mrf.mxu0 }
 0x293   : > { %v8403_v2 = vpop.eup %8402  ;;  %v6035_v62 = vunpack.c.l.bf16 %v4731_v55  ;;  %v6036_v28 = vunpack.c.h.bf16 %v4731_v55  ;;  %8408 = vrcp.f32 %v5314_v63  ;;  %v2693_v51 = vunpack.c.l.bf16 %v2497_v37  ;;  %14212 = vst [vmem:[#allocation18_spill] sm:$0xff] %v11461_v26 }
 0x294   : > { %v8405_v58 = vpop.eup %8404  ;;  %v3803_v52 = vunpack.c.l.bf16 %v3612_v17  ;;  %v3804_v33 = vunpack.c.h.bf16 %v3612_v17  ;;  %v2694_v35 = vunpack.c.h.bf16 %v2497_v37  ;;  %v11459_v43 = vpack.c.bf16 %v1866_v5, %v1777_v4 }
 0x295   : > { %v6355_v34 = vmul.f32 %v6035_v62, %v5715_v9  ;;  %v6356_v50 = vmul.f32 %v6036_v28, %v5716_v53  ;;  %v3696_v41 = vpack.c.bf16 %v8405_v58, %v8403_v2  ;;  %v3085_v44 = vmul.f32 1.442695, %v2693_v51 }
 0x296   : > { %v4123_v10 = vadd.f32 1.0, %v3803_v52  ;;  %v4124_v60 = vadd.f32 1.0, %v3804_v33  ;;  %v3087_v47 = vmul.f32 1.442695, %v2694_v35  ;;  %v2463_v23 = vxor.u32 2147516416, %v11459_v43 }
 0x297   : > { %v6649_v54 = vpack.c.bf16 %v6356_v50, %v6355_v34  ;;  %v3971_v11 = vunpack.c.l.bf16 %v3696_v41  ;;  %v3972_v63 = vunpack.c.h.bf16 %v3696_v41  ;;  %v5883_v55 = vunpack.c.l.bf16 %v11363_v38 }
 0x298   : > { %v8407_v49 = vpop.eup %8406  ;;  %v5884_v9 = vunpack.c.h.bf16 %v11363_v38  ;;  %v4412_v53 = vpack.c.bf16 %v4124_v60, %v4123_v10  ;;  %8410 = vpow2.f32 %v3085_v44  ;;  %v2625_v38 = vunpack.c.l.bf16 %v2463_v23  ;;  %v11477_v44 = vpop.f32.mrf.mxu1 }
 0x299   : > { %v8409_v5 = vpop.eup %8408  ;;  %v6835_v17 = vunpack.c.l.bf16 %v6649_v54  ;;  %v6836_v37 = vunpack.c.h.bf16 %v6649_v54  ;;  %v5316_v2 = vmul.f32 %v8407_v49, %v10522_v20  ;;  %v4291_v62 = vadd.f32 1.0, %v3971_v11 }
 0x29a   : > { %v5318_v28 = vmul.f32 %v8409_v5, %v10525_v16  ;;  %v4760_v4 = vunpack.c.h.bf16 %v4412_v53  ;;  %v4761_v58 = vunpack.c.l.bf16 %v4412_v53  ;;  %v4292_v52 = vadd.f32 1.0, %v3972_v63  ;;  %7861 = vmatmul.msk.bf16.gmra.mxu0 %vm425_vm0, %v10246_v19  ;;  %v7699_v19 = vld [vmem:[%s14024_s3 + $0x48] sm:$0xf0] }
 0x29b   : > { %v11469_v33 = vadd.f32 %v11422_v40, %v6835_v17  ;;  %v11472_v51 = vadd.f32 %v11425_v42, %v6836_v37  ;;  %8412 = vpow2.f32 %v3087_v47  ;;  %v2626_v50 = vunpack.c.h.bf16 %v2463_v23  ;;  %v11485_v17 = vpop.f32.mrf.mxu0 }
 0x29c   : > { %v5319_v35 = vpack.c.bf16 %v5316_v2, %v5318_v28  ;;  %8414 = vrcp.f32 %v4760_v4  ;;  %v4496_v34 = vpack.c.bf16 %v4292_v52, %v4291_v62  ;;  %v5725_v41 = vunpack.c.l.bf16 %v11393_v6  ;;  %14213 = vst [vmem:[#allocation19_spill] sm:$0xff] %v11485_v17  ;;  %v14214_v62 = vld [vmem:[#allocation20_spill] sm:$0xff] }
 0x29d   : > { %8416 = vrcp.f32 %v4761_v58  ;;  %v2949_v10 = vmul.f32 1.442695, %v2625_v38  ;;  %v1779_v60 = vadd.f32 %v11381_v0, %v11441_v21  ;;  %v2951_v47 = vmul.f32 1.442695, %v2626_v50 }
 0x29e   : > { %v8411_v40 = vpop.eup %8410  ;;  %v6203_v54 = vunpack.c.l.bf16 %v5319_v35  ;;  %v6204_v11 = vunpack.c.h.bf16 %v5319_v35  ;;  %v5348_v42 = vunpack.c.h.bf16 %v4496_v34  ;;  %v5349_v63 = vunpack.c.l.bf16 %v4496_v34 }
 0x29f   : > { %8418 = vpow2.f32 %v2949_v10  ;;  %v1619_v23 = vadd.f32 %v1618_v1, %v11082_v31  ;;  %v1868_v49 = vadd.f32 %v11416_v32, %v11436_v27  ;;  %v5726_v0 = vunpack.c.h.bf16 %v11393_v6  ;;  %v1620_v1 = vpop.f32.mrf.mxu3 }
 0x2a0   : > { %v6523_v53 = vmul.f32 %v6203_v54, %v5883_v55  ;;  %v6524_v5 = vmul.f32 %v6204_v11, %v5884_v9  ;;  %8420 = vrcp.f32 %v5348_v42  ;;  %v11502_v54 = vadd.f32 %v1620_v1, %v11082_v31  ;;  %v11504_v11 = vpop.f32.mrf.mxu2 }
 0x2a1   : > { %v8413_v37 = vpop.eup %8412  ;;  %8422 = vrcp.f32 %v5349_v63  ;;  %v11489_v28 = vpack.c.bf16 %v14214_v62, %v1619_v23  ;;  %v11491_v4 = vpack.c.bf16 %v1868_v49, %v1779_v60  ;;  %v11510_v60 = vpop.f32.mrf.mxu1  ;;  %7820 = vmatmul.msk.bf16.gmra.mxu1 %vm425_vm0, %v9860_v30  ;;  %v14216_v17 = vunpack.c.l.bf16 %v11395_v46 }
 0x2a2   : > { %v8415_v58 = vpop.eup %8414  ;;  %v11493_v52 = vpack.c.bf16 %v6524_v5, %v6523_v53  ;;  %v3617_v55 = vpack.c.bf16 %v8413_v37, %v8411_v40  ;;  %8424 = vpow2.f32 %v2951_v47 }
 0x2a3   : > { %v8417_v9 = vpop.eup %8416  ;;  %v4763_v38 = vmul.f32 %v8415_v58, %v10522_v20  ;;  %v2502_v34 = vxor.u32 2147516416, %v11489_v28  ;;  %v2468_v23 = vxor.u32 2147516416, %v11491_v4 }
 0x2a4   : > { %v4765_v50 = vmul.f32 %v8417_v9, %v10525_v16  ;;  %v3813_v10 = vunpack.c.l.bf16 %v3617_v55  ;;  %v3814_v40 = vunpack.c.h.bf16 %v3617_v55  ;;  %v7003_v53 = vunpack.c.l.bf16 %v11493_v52 }
 0x2a5   : > { %v8419_v42 = vpop.eup %8418  ;;  %v2703_v63 = vunpack.c.l.bf16 %v2502_v34  ;;  %v2704_v47 = vunpack.c.h.bf16 %v2502_v34  ;;  %v7004_v5 = vunpack.c.h.bf16 %v11493_v52  ;;  %v2635_v2 = vunpack.c.l.bf16 %v2468_v23  ;;  %v7689_v52 = vld [vmem:[%s14024_s3 + $0x18] sm:$0xf] }
 0x2a6   : > { %v8421_v49 = vpop.eup %8420  ;;  %v4766_v37 = vpack.c.bf16 %v4763_v38, %v4765_v50  ;;  %v4133_v62 = vadd.f32 1.0, %v3813_v10  ;;  %v4134_v1 = vadd.f32 1.0, %v3814_v40  ;;  %v7932_v38 = vld [vmem:[%s14024_s3 + $0x3c] sm:$0xf0]  ;;  %v7928_v50 = vld [vmem:[%s14024_s3 + $0x24] sm:$0xf] }
 0x2a7   : > { %v8423_v58 = vpop.eup %8422  ;;  %v5351_v9 = vmul.f32 %v8421_v49, %v10522_v20  ;;  %v3105_v61 = vmul.f32 1.442695, %v2703_v63  ;;  %v3107_v7 = vmul.f32 1.442695, %v2704_v47  ;;  %v2636_v63 = vunpack.c.h.bf16 %v2468_v23 }
 0x2a8   : > { %v8425_v55 = vpop.eup %8424  ;;  %v6045_v34 = vunpack.c.l.bf16 %v4766_v37  ;;  %v6046_v35 = vunpack.c.h.bf16 %v4766_v37  ;;  %v5353_v32 = vmul.f32 %v8423_v58, %v10525_v16  ;;  %v4417_v10 = vpack.c.bf16 %v4134_v1, %v4133_v62 }
 0x2a9   : > { %v3583_v40 = vpack.c.bf16 %v8425_v55, %v8419_v42  ;;  %8426 = vpow2.f32 %v3105_v61  ;;  %v7690_v58 = vor.u32 %v7932_v38, %v7689_v52  ;;  %v7933_v42 = vld [vmem:[%s14024_s3 + $0x44] sm:$0xf0]  ;;  %v11535_v61 = vpop.f32.mrf.mxu0  ;;  %v7702_v23 = vor.u32 %v7928_v50, %v7699_v19 }
 0x2aa   : > { %v6365_v47 = vmul.f32 %v6045_v34, %v5725_v41  ;;  %v6366_v49 = vmul.f32 %v6046_v35, %v5726_v0  ;;  %v5354_v37 = vpack.c.bf16 %v5351_v9, %v5353_v32  ;;  %14215 = vst [vmem:[#allocation20_spill] sm:$0xff] %v11535_v61  ;;  %v4795_v6 = vunpack.c.h.bf16 %v4417_v10 }
 0x2ab   : > { %v4796_v41 = vunpack.c.l.bf16 %v4417_v10  ;;  %v3745_v0 = vunpack.c.l.bf16 %v3583_v40  ;;  %1952 = vmatpush.bf16.msra.mxu3 %v7690_v58  ;;  %v3746_v9 = vunpack.c.h.bf16 %v3583_v40  ;;  %2219 = vmatpush.bf16.msra.mxu2 %v7702_v23  ;;  %v7698_v55 = vor.u32 %v7933_v42, %v7697_v56  ;;  %v11541_v10 = vpop.f32.mrf.mxu2 }
 0x2ac   : > { %v6654_v32 = vpack.c.bf16 %v6366_v49, %v6365_v47  ;;  %v6213_v35 = vunpack.c.l.bf16 %v5354_v37  ;;  %v6214_v62 = vunpack.c.h.bf16 %v5354_v37  ;;  %8428 = vrcp.f32 %v4795_v6  ;;  %v14218_v47 = vld [vmem:[#allocation10_spill] sm:$0xff]  ;;  %7836 = vmatmul.msk.bf16.gmra.mxu2 %vm425_vm0, %v9860_v30 }
 0x2ad   : > { %v4065_v1 = vadd.f32 1.0, %v3745_v0  ;;  %v2969_v34 = vmul.f32 1.442695, %v2635_v2  ;;  %v14217_v19 = vunpack.c.h.bf16 %v11395_v46  ;;  %7862 = vmatmul.msk.bf16.gmra.mxu0 %vm425_vm0, %v14218_v47  ;;  %v7134_v56 = vadd.f32 %v11448_v29, %v7003_v53  ;;  %2130 = vmatpush.bf16.msra.mxu1 %v7698_v55  ;;  %v14219_v29 = vld [vmem:[#allocation22_spill] sm:$0xff] }
 0x2ae   : > { %v6845_v52 = vunpack.c.l.bf16 %v6654_v32  ;;  %v6846_v38 = vunpack.c.h.bf16 %v6654_v32  ;;  %v6533_v26 = vmul.f32 %v6213_v35, %v14216_v17  ;;  %8430 = vrcp.f32 %v4796_v41  ;;  %7839 = vmatmul.msk.bf16.vlgmr.msra.gmra.mxu3 %vm425_vm0, %v14198_v36 }
 0x2af   : > { %v6534_v50 = vmul.f32 %v6214_v62, %v14217_v19  ;;  %v8427_v40 = vpop.eup %8426  ;;  %v4066_v2 = vadd.f32 1.0, %v3746_v9  ;;  %v2971_v49 = vmul.f32 1.442695, %v2636_v63  ;;  %8432 = vpow2.f32 %v3107_v7 }
 0x2b0   : > { %v11551_v46 = vadd.f32 %v11469_v33, %v6845_v52  ;;  %v11554_v17 = vadd.f32 %v11472_v51, %v6846_v38  ;;  %v7165_v58 = vadd.f32 %v11451_v48, %v7004_v5  ;;  %8434 = vpow2.f32 %v2969_v34 }
 0x2b1   : > { %v6738_v37 = vpack.c.bf16 %v6534_v50, %v6533_v26  ;;  %v4383_v42 = vpack.c.bf16 %v4066_v2, %v4065_v1  ;;  %v11559_v53 = vpack.c.bf16 %v14219_v29, %v11502_v54  ;;  %8436 = vpow2.f32 %v2971_v49  ;;  %v11568_v32 = vpop.f32.mrf.mxu0  ;;  %v11572_v1 = vpop.f32.mrf.mxu3  ;;  %v14224_v29 = vld [vmem:[#allocation24_spill] sm:$0xff] }
 0x2b2   : > { %v1871_v33 = vadd.f32 %v11504_v11, %v11436_v27  ;;  %v8429_v6 = vpop.eup %8428  ;;  %v1782_v7 = vadd.f32 %v11477_v44, %v11441_v21  ;;  %14220 = vst [vmem:[#allocation22_spill] sm:$0xff] %v11568_v32  ;;  %v14221_v44 = vld [vmem:[#allocation21_spill] sm:$0xff]  ;;  %v5668_v2 = vunpack.c.h.bf16 %v11459_v43 }
 0x2b3   : > { %v7013_v63 = vunpack.c.l.bf16 %v6738_v37  ;;  %v7014_v23 = vunpack.c.h.bf16 %v6738_v37  ;;  %v4557_v41 = vunpack.c.h.bf16 %v4383_v42  ;;  %v4558_v51 = vunpack.c.l.bf16 %v4383_v42 }
 0x2b4   : > { %v2507_v48 = vxor.u32 2147516416, %v11559_v53  ;;  %v4798_v0 = vmul.f32 %v8429_v6, %v10522_v20  ;;  %v8431_v35 = vpop.eup %8430  ;;  %v11570_v9 = vpack.c.bf16 %v1871_v33, %v1782_v7  ;;  %v14222_v34 = vunpack.c.l.bf16 %v14221_v44 }
 0x2b5   : > { %v7135_v26 = vadd.f32 %v7134_v56, %v7013_v63  ;;  %v7166_v5 = vadd.f32 %v7165_v58, %v7014_v23  ;;  %8438 = vrcp.f32 %v4557_v41  ;;  %v8433_v55 = vpop.eup %8432  ;;  %v14223_v38 = vunpack.c.h.bf16 %v14221_v44 }
 0x2b6   : > { %v2713_v62 = vunpack.c.l.bf16 %v2507_v48  ;;  %v2714_v11 = vunpack.c.h.bf16 %v2507_v48  ;;  %v4800_v50 = vmul.f32 %v8431_v35, %v10525_v16  ;;  %8440 = vrcp.f32 %v4558_v51  ;;  %v8435_v56 = vpop.eup %8434  ;;  %v11585_v48 = vpop.f32.mrf.mxu1  ;;  %v14227_v35 = vld [vmem:[#allocation26_spill] sm:$0xff] }
 0x2b7   : > { %v7136_v52 = vadd.f32 %v7135_v26, %v14222_v34  ;;  %v7167_v19 = vadd.f32 %v7166_v5, %v14223_v38  ;;  %v3622_v49 = vpack.c.bf16 %v8433_v55, %v8427_v40  ;;  %v8437_v42 = vpop.eup %8436  ;;  %v14225_v63 = vunpack.c.l.bf16 %v14224_v29 }
 0x2b8   : > { %v3125_v37 = vmul.f32 1.442695, %v2713_v62  ;;  %v3127_v58 = vmul.f32 1.442695, %v2714_v11  ;;  %v14226_v33 = vunpack.c.h.bf16 %v14224_v29  ;;  %v4801_v41 = vpack.c.bf16 %v4798_v0, %v4800_v50 }
 0x2b9   : > { %v7137_v23 = vadd.f32 %v7136_v52, %v14225_v63  ;;  %v3823_v26 = vunpack.c.l.bf16 %v3622_v49  ;;  %v3824_v51 = vunpack.c.h.bf16 %v3622_v49  ;;  %v3588_v5 = vpack.c.bf16 %v8437_v42, %v8435_v56  ;;  %v14230_v63 = vld [vmem:[#allocation27_spill] sm:$0xff] }
 0x2ba   : > { %v7168_v6 = vadd.f32 %v7167_v19, %v14226_v33  ;;  %8442 = vpow2.f32 %v3125_v37  ;;  %v14228_v40 = vunpack.c.l.bf16 %v14227_v35  ;;  %v14229_v11 = vunpack.c.h.bf16 %v14227_v35 }
 0x2bb   : > { %v6055_v44 = vunpack.c.l.bf16 %v4801_v41  ;;  %v6056_v34 = vunpack.c.h.bf16 %v4801_v41  ;;  %v8439_v52 = vpop.eup %8438  ;;  %v4143_v38 = vadd.f32 1.0, %v3823_v26  ;;  %v4144_v19 = vadd.f32 1.0, %v3824_v51 }
 0x2bc   : > { %v7138_v62 = vadd.f32 %v7137_v23, %v14228_v40  ;;  %v7169_v55 = vadd.f32 %v7168_v6, %v14229_v11  ;;  %v3755_v0 = vunpack.c.l.bf16 %v3588_v5  ;;  %v3756_v50 = vunpack.c.h.bf16 %v3588_v5  ;;  %v8441_v29 = vpop.eup %8440  ;;  %v14235_v5 = vld [vmem:[#allocation29_spill] sm:$0xff] }
 0x2bd   : > { %v14231_v33 = vunpack.c.l.bf16 %v14230_v63  ;;  %v14232_v56 = vunpack.c.h.bf16 %v14230_v63  ;;  %v14233_v37 = vunpack.c.l.bf16 %v11445_v24  ;;  %v14234_v23 = vunpack.c.h.bf16 %v11445_v24 }
 0x2be   : > { %v4560_v41 = vmul.f32 %v8439_v52, %v10522_v20  ;;  %v4562_v26 = vmul.f32 %v8441_v29, %v10525_v16  ;;  %v4422_v51 = vpack.c.bf16 %v4144_v19, %v4143_v38  ;;  %v4075_v35 = vadd.f32 1.0, %v3755_v0  ;;  %v11609_v38 = vpop.f32.mrf.mxu3  ;;  %v11611_v19 = vpop.f32.mrf.mxu2  ;;  %v14241_v0 = vld [vmem:[#allocation16_spill] sm:$0xff] }
 0x2bf   : > { %v7139_v7 = vadd.f32 %v7138_v62, %v14231_v33  ;;  %v7170_v49 = vadd.f32 %v7169_v55, %v14232_v56  ;;  %v6375_v42 = vmul.f32 %v6055_v44, %v14233_v37  ;;  %v6376_v6 = vmul.f32 %v6056_v34, %v14234_v23  ;;  %v11605_v56 = vpop.f32.mrf.mxu0  ;;  %v14239_v44 = vld [vmem:[#allocation11_spill] sm:$0xff] }
 0x2c0   : > { %v14236_v40 = vunpack.c.l.bf16 %v14235_v5  ;;  %v14237_v62 = vunpack.c.h.bf16 %v14235_v5  ;;  %v4076_v55 = vadd.f32 1.0, %v3756_v50  ;;  %14238 = vst [vmem:[#allocation21_spill] sm:$0xff] %v11605_v56  ;;  %7863 = vmatmul.msk.bf16.gmra.mxu0 %vm425_vm0, %v14239_v44  ;;  %v8443_v24 = vpop.eup %8442  ;;  %v4563_v34 = vpack.c.bf16 %v4560_v41, %v4562_v26 }
 0x2c1   : > { %v6659_v63 = vpack.c.bf16 %v6376_v6, %v6375_v42  ;;  %v4830_v52 = vunpack.c.h.bf16 %v4422_v51  ;;  %v4831_v29 = vunpack.c.l.bf16 %v4422_v51  ;;  %8444 = vpow2.f32 %v3127_v58  ;;  %v14244_v51 = vld [vmem:[#allocation17_spill] sm:$0xff] }
 0x2c2   : > { %v7140_v11 = vadd.f32 %v7139_v7, %v14236_v40  ;;  %v7171_v33 = vadd.f32 %v7170_v49, %v14237_v62  ;;  %v14240_v7 = vld [vmem:[#allocation4_spill] sm:$0xff]  ;;  %v14242_v49 = vunpack.c.l.bf16 %v14241_v0  ;;  %v14243_v37 = vunpack.c.h.bf16 %v14241_v0 }
 0x2c3   : > { %7840 = vmatmul.msk.bf16.gmra.mxu3 %vm425_vm0, %v14240_v7  ;;  %v6855_v23 = vunpack.c.l.bf16 %v6659_v63  ;;  %v6856_v6 = vunpack.c.h.bf16 %v6659_v63  ;;  %v5987_v41 = vunpack.c.l.bf16 %v4563_v34  ;;  %v5988_v26 = vunpack.c.h.bf16 %v4563_v34  ;;  %v14247_v63 = vld [vmem:[#allocation6_spill] sm:$0xff] }
 0x2c4   : > { %v7141_v50 = vadd.f32 %v7140_v11, %v14242_v49  ;;  %v7172_v42 = vadd.f32 %v7171_v33, %v14243_v37  ;;  %8446 = vrcp.f32 %v4830_v52  ;;  %v4388_v58 = vpack.c.bf16 %v4076_v55, %v4075_v35  ;;  %v11630_v33 = vpop.f32.mrf.mxu1  ;;  %7821 = vmatmul.msk.bf16.gmra.mxu1 %vm425_vm0, %v14247_v63 }
 0x2c5   : > { %v14245_v5 = vunpack.c.l.bf16 %v14244_v51  ;;  %v14246_v62 = vunpack.c.h.bf16 %v14244_v51  ;;  %v11625_v44 = vadd.f32 %v11551_v46, %v6855_v23  ;;  %v11628_v11 = vadd.f32 %v11554_v17, %v6856_v6  ;;  %v14252_v6 = vld [vmem:[#allocation15_spill] sm:$0xff]  ;;  %v14253_v51 = vld [vmem:[#allocation2_spill] sm:$0xff] }
 0x2c6   : > { %v14248_v34 = vunpack.c.l.bf16 %v11459_v43  ;;  %v6308_v55 = vmul.f32 %v5988_v26, %v5668_v2  ;;  %8448 = vrcp.f32 %v4831_v29  ;;  %v4592_v52 = vunpack.c.h.bf16 %v4388_v58  ;;  %v14254_v43 = vld [vmem:[#allocation30_spill] sm:$0xff] }
 0x2c7   : > { %v7142_v40 = vadd.f32 %v7141_v50, %v14245_v5  ;;  %v7173_v54 = vadd.f32 %v7172_v42, %v14246_v62  ;;  %v14249_v0 = vunpack.c.l.bf16 %v11377_v13  ;;  %v14250_v46 = vunpack.c.h.bf16 %v11377_v13  ;;  %v8445_v23 = vpop.eup %8444 }
 0x2c8   : > { %v6307_v35 = vmul.f32 %v5987_v41, %v14248_v34  ;;  %v4593_v37 = vunpack.c.l.bf16 %v4388_v58  ;;  %v14251_v17 = vxor.u32 2147516416, %v11570_v9  ;;  %v11644_v5 = vadd.f32 %v14253_v51, %v14252_v6  ;;  %v14257_v51 = vld [vmem:[#allocation23_spill] sm:$0xff] }
 0x2c9   : > { %v7143_v49 = vadd.f32 %v7142_v40, %v14249_v0  ;;  %v7174_v50 = vadd.f32 %v7173_v54, %v14250_v46  ;;  %v11648_v2 = vadd.f32 %v14254_v43, %v14252_v6  ;;  %8450 = vrcp.f32 %v4592_v52 }
 0x2ca   : > { %v2645_v42 = vunpack.c.l.bf16 %v14251_v17  ;;  %v14255_v13 = vmov %v14251_v17  ;;  %8452 = vrcp.f32 %v4593_v37  ;;  %v3627_v29 = vpack.c.bf16 %v8445_v23, %v8443_v24  ;;  %v8447_v41 = vpop.eup %8446 }
 0x2cb   : > { %v2646_v54 = vunpack.c.h.bf16 %v14255_v13  ;;  %v11659_v26 = vadd.f32 %v11285_v45, %v14252_v6  ;;  %v5745_v58 = vunpack.c.l.bf16 %v11489_v28  ;;  %7433 = vst [vmem:[%s11653_s13] sm:$0xff] %v7143_v49  ;;  %v11663_v34 = vpack.c.bf16 %v6308_v55, %v6307_v35  ;;  %v11675_v35 = vpop.f32.mrf.mxu2  ;;  %7837 = vmatmul.msk.bf16.gmra.mxu2 %vm425_vm0, %v14247_v63 }
 0x2cc   : > { %v2989_v40 = vmul.f32 1.442695, %v2645_v42  ;;  %v4833_v0 = vmul.f32 %v8447_v41, %v10522_v20  ;;  %v3833_v52 = vunpack.c.l.bf16 %v3627_v29  ;;  %v3834_v46 = vunpack.c.h.bf16 %v3627_v29  ;;  %v8449_v17 = vpop.eup %8448  ;;  %7434 = vst [vmem:[%s11653_s13 + $0x8] sm:$0xff] %v7174_v50  ;;  %v11673_v42 = vpop.f32.mrf.mxu0 }
 0x2cd   : > { %v2991_v62 = vmul.f32 1.442695, %v2646_v54  ;;  %v1784_v24 = vadd.f32 %v11510_v60, %v11441_v21  ;;  %v1624_v45 = vadd.f32 %v11572_v1, %v11082_v31  ;;  %v1873_v37 = vadd.f32 %v11541_v10, %v11436_v27  ;;  %14256 = vst [vmem:[#allocation24_spill] sm:$0xff] %v11673_v42 }
 0x2ce   : > { %8454 = vpow2.f32 %v2989_v40  ;;  %v4835_v55 = vmul.f32 %v8449_v17, %v10525_v16  ;;  %v4153_v49 = vadd.f32 1.0, %v3833_v52  ;;  %v4154_v50 = vadd.f32 1.0, %v3834_v46 }
 0x2cf   : > { %8456 = vpow2.f32 %v2991_v62  ;;  %v8451_v23 = vpop.eup %8450  ;;  %v5746_v60 = vunpack.c.h.bf16 %v11489_v28  ;;  %v5677_v1 = vunpack.c.l.bf16 %v11491_v4  ;;  %v11683_v43 = vpack.c.bf16 %v14257_v51, %v1624_v45 }
 0x2d0   : > { %v11685_v10 = vpack.c.bf16 %v1873_v37, %v1784_v24  ;;  %v8453_v13 = vpop.eup %8452  ;;  %v4836_v54 = vpack.c.bf16 %v4833_v0, %v4835_v55  ;;  %v4595_v29 = vmul.f32 %v8451_v23, %v10522_v20  ;;  %v5678_v41 = vunpack.c.h.bf16 %v11491_v4  ;;  %v11694_v4 = vpop.f32.mrf.mxu3 }
 0x2d1   : > { %v4427_v40 = vpack.c.bf16 %v4154_v50, %v4153_v49  ;;  %v6787_v52 = vunpack.c.l.bf16 %v11663_v34  ;;  %v6788_v62 = vunpack.c.h.bf16 %v11663_v34  ;;  %v4597_v28 = vmul.f32 %v8453_v13, %v10525_v16 }
 0x2d2   : > { %v2512_v46 = vxor.u32 2147516416, %v11683_v43  ;;  %v6065_v17 = vunpack.c.l.bf16 %v4836_v54  ;;  %v6066_v45 = vunpack.c.h.bf16 %v4836_v54  ;;  %v2478_v23 = vxor.u32 2147516416, %v11685_v10 }
 0x2d3   : > { %v4865_v51 = vunpack.c.h.bf16 %v4427_v40  ;;  %v4866_v24 = vunpack.c.l.bf16 %v4427_v40  ;;  %v4598_v47 = vpack.c.bf16 %v4595_v29, %v4597_v28  ;;  %v1626_v34 = vadd.f32 %v11609_v38, %v11082_v31 }
 0x2d4   : > { %v8455_v37 = vpop.eup %8454  ;;  %v2723_v0 = vunpack.c.l.bf16 %v2512_v46  ;;  %v2724_v55 = vunpack.c.h.bf16 %v2512_v46  ;;  %v6385_v50 = vmul.f32 %v6065_v17, %v5745_v58  ;;  %v6386_v63 = vmul.f32 %v6066_v45, %v5746_v60  ;;  %v11698_v25 = vpop.f32.mrf.mxu0  ;;  %v14258_v58 = vld [vmem:[#allocation12_spill] sm:$0xff] }
 0x2d5   : > { %v8457_v49 = vpop.eup %8456  ;;  %8458 = vrcp.f32 %v4865_v51  ;;  %v5997_v13 = vunpack.c.l.bf16 %v4598_v47  ;;  %v5998_v42 = vunpack.c.h.bf16 %v4598_v47  ;;  %v2655_v28 = vunpack.c.l.bf16 %v2478_v23  ;;  %7864 = vmatmul.msk.bf16.gmra.mxu0 %vm425_vm0, %v14258_v58 }
 0x2d6   : > { %8460 = vrcp.f32 %v4866_v24  ;;  %v3593_v54 = vpack.c.bf16 %v8457_v49, %v8455_v37  ;;  %v6664_v40 = vpack.c.bf16 %v6386_v63, %v6385_v50  ;;  %v3145_v56 = vmul.f32 1.442695, %v2723_v0 }
 0x2d7   : > { %v3147_v29 = vmul.f32 1.442695, %v2724_v55  ;;  %v6317_v46 = vmul.f32 %v5997_v13, %v5677_v1  ;;  %v6318_v30 = vmul.f32 %v5998_v42, %v5678_v41  ;;  %v2656_v38 = vunpack.c.h.bf16 %v2478_v23 }
 0x2d8   : > { %v3765_v32 = vunpack.c.l.bf16 %v3593_v54  ;;  %v3766_v61 = vunpack.c.h.bf16 %v3593_v54  ;;  %v6865_v60 = vunpack.c.l.bf16 %v6664_v40  ;;  %v6866_v17 = vunpack.c.h.bf16 %v6664_v40  ;;  %v11721_v54 = vpop.f32.mrf.mxu3  ;;  %7841 = vmatmul.msk.bf16.gmra.mxu3 %vm425_vm0, %v9981_v39 }
 0x2d9   : > { %8462 = vpow2.f32 %v3145_v56  ;;  %v6630_v47 = vpack.c.bf16 %v6318_v30, %v6317_v46  ;;  %v3009_v1 = vmul.f32 1.442695, %v2655_v28  ;;  %v3011_v41 = vmul.f32 1.442695, %v2656_v38 }
 0x2da   : > { %v4085_v45 = vadd.f32 1.0, %v3765_v32  ;;  %v4086_v51 = vadd.f32 1.0, %v3766_v61  ;;  %8464 = vpow2.f32 %v3147_v29  ;;  %v11703_v24 = vadd.f32 %v11625_v44, %v6865_v60  ;;  %v14259_v32 = vld [vmem:[#allocation25_spill] sm:$0xff] }
 0x2db   : > { %v8459_v63 = vpop.eup %8458  ;;  %v11706_v42 = vadd.f32 %v11628_v11, %v6866_v17  ;;  %v6797_v0 = vunpack.c.l.bf16 %v6630_v47  ;;  %v6798_v55 = vunpack.c.h.bf16 %v6630_v47  ;;  %v11711_v30 = vadd.f32 %v11324_v14, %v14252_v6 }
 0x2dc   : > { %v8461_v37 = vpop.eup %8460  ;;  %v4868_v49 = vmul.f32 %v8459_v63, %v10522_v20  ;;  %v4393_v56 = vpack.c.bf16 %v4086_v51, %v4085_v45  ;;  %8466 = vpow2.f32 %v3009_v1  ;;  %v11715_v44 = vpack.c.bf16 %v14259_v32, %v1626_v34 }
 0x2dd   : > { %v4870_v61 = vmul.f32 %v8461_v37, %v10525_v16  ;;  %v11717_v11 = vadd.f32 %v6797_v0, %v6787_v52  ;;  %v11719_v23 = vadd.f32 %v6798_v55, %v6788_v62  ;;  %v5755_v29 = vunpack.c.l.bf16 %v11559_v53 }
 0x2de   : > { %v4627_v50 = vunpack.c.h.bf16 %v4393_v56  ;;  %v4628_v13 = vunpack.c.l.bf16 %v4393_v56  ;;  %8468 = vpow2.f32 %v3011_v41  ;;  %v2517_v28 = vxor.u32 2147516416, %v11715_v44  ;;  %v11737_v56 = vpop.f32.mrf.mxu1 }
 0x2df   : > { %v8463_v40 = vpop.eup %8462  ;;  %v4871_v14 = vpack.c.bf16 %v4868_v49, %v4870_v61  ;;  %v5756_v52 = vunpack.c.h.bf16 %v11559_v53  ;;  %v1787_v62 = vadd.f32 %v11585_v48, %v11441_v21  ;;  %v1876_v46 = vadd.f32 %v11611_v19, %v11436_v27 }
 0x2e0   : > { %v8465_v34 = vpop.eup %8464  ;;  %8470 = vrcp.f32 %v4627_v50  ;;  %v5687_v47 = vunpack.c.l.bf16 %v11570_v9  ;;  %v2733_v45 = vunpack.c.l.bf16 %v2517_v28  ;;  %v2734_v51 = vunpack.c.h.bf16 %v2517_v28 }
 0x2e1   : > { %v6075_v60 = vunpack.c.l.bf16 %v4871_v14  ;;  %v6076_v17 = vunpack.c.h.bf16 %v4871_v14  ;;  %8472 = vrcp.f32 %v4628_v13  ;;  %v3632_v38 = vpack.c.bf16 %v8465_v34, %v8463_v40 }
 0x2e2   : > { %v11733_v63 = vpack.c.bf16 %v1876_v46, %v1787_v62  ;;  %v8467_v1 = vpop.eup %8466  ;;  %v5688_v48 = vunpack.c.h.bf16 %v11570_v9  ;;  %v3165_v55 = vmul.f32 1.442695, %v2733_v45  ;;  %v3167_v49 = vmul.f32 1.442695, %v2734_v51 }
 0x2e3   : > { %v6395_v41 = vmul.f32 %v6075_v60, %v5755_v29  ;;  %v6396_v53 = vmul.f32 %v6076_v17, %v5756_v52  ;;  %v3843_v37 = vunpack.c.l.bf16 %v3632_v38  ;;  %v3844_v0 = vunpack.c.h.bf16 %v3632_v38 }
 0x2e4   : > { %v2483_v19 = vxor.u32 2147516416, %v11733_v63  ;;  %v8469_v61 = vpop.eup %8468  ;;  %v1789_v40 = vadd.f32 %v11630_v33, %v11441_v21  ;;  %8474 = vpow2.f32 %v3165_v55  ;;  %v5775_v58 = vunpack.c.l.bf16 %v11715_v44 }
 0x2e5   : > { %v6669_v32 = vpack.c.bf16 %v6396_v53, %v6395_v41  ;;  %v4163_v50 = vadd.f32 1.0, %v3843_v37  ;;  %v4164_v13 = vadd.f32 1.0, %v3844_v0  ;;  %v3598_v29 = vpack.c.bf16 %v8469_v61, %v8467_v1 }
 0x2e6   : > { %v8471_v14 = vpop.eup %8470  ;;  %v2665_v28 = vunpack.c.l.bf16 %v2483_v19  ;;  %v2666_v34 = vunpack.c.h.bf16 %v2483_v19  ;;  %8476 = vpow2.f32 %v3167_v49  ;;  %v11749_v19 = vpop.f32.mrf.mxu2 }
 0x2e7   : > { %v8473_v52 = vpop.eup %8472  ;;  %v6875_v9 = vunpack.c.l.bf16 %v6669_v32  ;;  %v6876_v62 = vunpack.c.h.bf16 %v6669_v32  ;;  %v4630_v46 = vmul.f32 %v8471_v14, %v10522_v20  ;;  %v4432_v60 = vpack.c.bf16 %v4164_v13, %v4163_v50 }
 0x2e8   : > { %v4632_v17 = vmul.f32 %v8473_v52, %v10525_v16  ;;  %v3775_v38 = vunpack.c.l.bf16 %v3598_v29  ;;  %v3776_v45 = vunpack.c.h.bf16 %v3598_v29  ;;  %v3029_v55 = vmul.f32 1.442695, %v2665_v28  ;;  %v14260_v29 = vld [vmem:[#allocation28_spill] sm:$0xff] }
 0x2e9   : > { %v11744_v51 = vadd.f32 %v11703_v24, %v6875_v9  ;;  %v11747_v33 = vadd.f32 %v11706_v42, %v6876_v62  ;;  %v4900_v1 = vunpack.c.h.bf16 %v4432_v60  ;;  %v4901_v41 = vunpack.c.l.bf16 %v4432_v60 }
 0x2ea   : > { %v4633_v53 = vpack.c.bf16 %v4630_v46, %v4632_v17  ;;  %v4095_v37 = vadd.f32 1.0, %v3775_v38  ;;  %v4096_v0 = vadd.f32 1.0, %v3776_v45  ;;  %v3031_v61 = vmul.f32 1.442695, %v2666_v34  ;;  %v8475_v49 = vpop.eup %8474  ;;  %v11764_v46 = vpop.f32.mrf.mxu1  ;;  %7822 = vmatmul.msk.bf16.gmra.mxu1 %vm425_vm0, %v10076_v12 }
 0x2eb   : > { %8478 = vrcp.f32 %v4900_v1  ;;  %v1629_v32 = vadd.f32 %v11694_v4, %v11082_v31  ;;  %v1878_v24 = vadd.f32 %v11675_v35, %v11436_v27  ;;  %v11757_v14 = vadd.f32 %v11341_v15, %v14252_v6 }
 0x2ec   : > { %v6007_v50 = vunpack.c.l.bf16 %v4633_v53  ;;  %v6008_v42 = vunpack.c.h.bf16 %v4633_v53  ;;  %8480 = vrcp.f32 %v4901_v41  ;;  %v4398_v13 = vpack.c.bf16 %v4096_v0, %v4095_v37  ;;  %v8477_v52 = vpop.eup %8476  ;;  %v11772_v53 = vpop.f32.mrf.mxu0 }
 0x2ed   : > { %8482 = vpow2.f32 %v3029_v55  ;;  %v11760_v28 = vpack.c.bf16 %v14260_v29, %v1629_v32  ;;  %v11762_v34 = vpack.c.bf16 %v1878_v24, %v1789_v40  ;;  %v5765_v60 = vunpack.c.l.bf16 %v11683_v43 }
 0x2ee   : > { %v6327_v4 = vmul.f32 %v6007_v50, %v5687_v47  ;;  %v6328_v9 = vmul.f32 %v6008_v42, %v5688_v48  ;;  %v4662_v62 = vunpack.c.h.bf16 %v4398_v13  ;;  %v4663_v35 = vunpack.c.l.bf16 %v4398_v13 }
 0x2ef   : > { %v3637_v15 = vpack.c.bf16 %v8477_v52, %v8475_v49  ;;  %8484 = vpow2.f32 %v3031_v61  ;;  %v2522_v17 = vxor.u32 2147516416, %v11760_v28  ;;  %v5766_v40 = vunpack.c.h.bf16 %v11683_v43 }
 0x2f0   : > { %v6635_v38 = vpack.c.bf16 %v6328_v9, %v6327_v4  ;;  %8486 = vrcp.f32 %v4662_v62  ;;  %v2488_v47 = vxor.u32 2147516416, %v11762_v34  ;;  %v11782_v9 = vpop.f32.mrf.mxu2  ;;  %7838 = vmatmul.msk.bf16.gmra.mxu2 %vm425_vm0, %v10076_v12 }
 0x2f1   : > { %v8479_v48 = vpop.eup %8478  ;;  %8488 = vrcp.f32 %v4663_v35  ;;  %v3853_v45 = vunpack.c.l.bf16 %v3637_v15  ;;  %v3854_v1 = vunpack.c.h.bf16 %v3637_v15  ;;  %v2743_v41 = vunpack.c.l.bf16 %v2522_v17 }
 0x2f2   : > { %v8481_v37 = vpop.eup %8480  ;;  %v6807_v0 = vunpack.c.l.bf16 %v6635_v38  ;;  %v6808_v55 = vunpack.c.h.bf16 %v6635_v38  ;;  %v4903_v61 = vmul.f32 %v8479_v48, %v10522_v20  ;;  %v2744_v32 = vunpack.c.h.bf16 %v2522_v17 }
 0x2f3   : > { %v8483_v24 = vpop.eup %8482  ;;  %v4905_v49 = vmul.f32 %v8481_v37, %v10525_v16  ;;  %v4173_v43 = vadd.f32 1.0, %v3853_v45  ;;  %v4174_v50 = vadd.f32 1.0, %v3854_v1  ;;  %v3185_v42 = vmul.f32 1.442695, %v2743_v41 }
 0x2f4   : > { %v11777_v13 = vadd.f32 %v11717_v11, %v6807_v0  ;;  %v11780_v29 = vadd.f32 %v11719_v23, %v6808_v55  ;;  %v3187_v52 = vmul.f32 1.442695, %v2744_v32  ;;  %v2675_v4 = vunpack.c.l.bf16 %v2488_v47  ;;  %v11788_v55 = vpop.f32.mrf.mxu3  ;;  %v11793_v12 = vpop.f32.mrf.mxu0 }
 0x2f5   : > { %v8485_v62 = vpop.eup %8484  ;;  %v4906_v35 = vpack.c.bf16 %v4903_v61, %v4905_v49  ;;  %v4437_v15 = vpack.c.bf16 %v4174_v50, %v4173_v43  ;;  %8490 = vpow2.f32 %v3185_v42  ;;  %v2676_v17 = vunpack.c.h.bf16 %v2488_v47 }
 0x2f6   : > { %v8487_v38 = vpop.eup %8486  ;;  %v5697_v48 = vunpack.c.l.bf16 %v11685_v10  ;;  %v3603_v11 = vpack.c.bf16 %v8485_v62, %v8483_v24  ;;  %8492 = vpow2.f32 %v3187_v52  ;;  %v3049_v45 = vmul.f32 1.442695, %v2675_v4 }
 0x2f7   : > { %v8489_v23 = vpop.eup %8488  ;;  %v6085_v1 = vunpack.c.l.bf16 %v4906_v35  ;;  %v6086_v41 = vunpack.c.h.bf16 %v4906_v35  ;;  %v4665_v37 = vmul.f32 %v8487_v38, %v10522_v20  ;;  %v4935_v0 = vunpack.c.h.bf16 %v4437_v15 }
 0x2f8   : > { %v4667_v32 = vmul.f32 %v8489_v23, %v10525_v16  ;;  %v4936_v61 = vunpack.c.l.bf16 %v4437_v15  ;;  %v3785_v49 = vunpack.c.l.bf16 %v3603_v11  ;;  %v3786_v43 = vunpack.c.h.bf16 %v3603_v11  ;;  %v14261_v15 = vld [vmem:[#allocation13_spill] sm:$0xff] }
 0x2f9   : > { %v6405_v47 = vmul.f32 %v6085_v1, %v5765_v60  ;;  %v6406_v50 = vmul.f32 %v6086_v41, %v5766_v40  ;;  %8494 = vrcp.f32 %v4935_v0  ;;  %v3051_v42 = vmul.f32 1.442695, %v2676_v17  ;;  %7865 = vmatmul.msk.bf16.gmra.mxu0 %vm425_vm0, %v14261_v15 }
 0x2fa   : > { %v4668_v24 = vpack.c.bf16 %v4665_v37, %v4667_v32  ;;  %8496 = vrcp.f32 %v4936_v61  ;;  %v4105_v52 = vadd.f32 1.0, %v3785_v49  ;;  %v4106_v4 = vadd.f32 1.0, %v3786_v43 }
 0x2fb   : > { %v8491_v62 = vpop.eup %8490  ;;  %v6674_v35 = vpack.c.bf16 %v6406_v50, %v6405_v47  ;;  %v5698_v38 = vunpack.c.h.bf16 %v11685_v10  ;;  %8498 = vpow2.f32 %v3049_v45  ;;  %v1631_v37 = vadd.f32 %v11721_v54, %v11082_v31 }
 0x2fc   : > { %v8493_v60 = vpop.eup %8492  ;;  %v6017_v40 = vunpack.c.l.bf16 %v4668_v24  ;;  %v6018_v11 = vunpack.c.h.bf16 %v4668_v24  ;;  %v4403_v17 = vpack.c.bf16 %v4106_v4, %v4105_v52  ;;  %8500 = vpow2.f32 %v3051_v42 }
 0x2fd   : > { %v6885_v23 = vunpack.c.l.bf16 %v6674_v35  ;;  %v6886_v1 = vunpack.c.h.bf16 %v6674_v35  ;;  %v3642_v41 = vpack.c.bf16 %v8493_v60, %v8491_v62  ;;  %v11807_v54 = vpack.c.bf16 %v11644_v5, %v1631_v37 }
 0x2fe   : > { %v6337_v10 = vmul.f32 %v6017_v40, %v5697_v48  ;;  %v6338_v0 = vmul.f32 %v6018_v11, %v5698_v38  ;;  %v4697_v32 = vunpack.c.h.bf16 %v4403_v17  ;;  %v4698_v45 = vunpack.c.l.bf16 %v4403_v17  ;;  %v11809_v48 = vpop.f32.mrf.mxu1 }
 0x2ff   : > { %v8495_v61 = vpop.eup %8494  ;;  %v11800_v49 = vadd.f32 %v11744_v51, %v6885_v23  ;;  %v11803_v43 = vadd.f32 %v11747_v33, %v6886_v1  ;;  %v3863_v47 = vunpack.c.l.bf16 %v3642_v41  ;;  %v3864_v50 = vunpack.c.h.bf16 %v3642_v41  ;;  %v11812_v33 = vpop.f32.mrf.mxu3  ;;  %7842 = vmatmul.msk.bf16.gmra.mxu3 %vm425_vm0, %v10066_v3 }
 0x300   : > { %v8497_v42 = vpop.eup %8496  ;;  %v6640_v24 = vpack.c.bf16 %v6338_v0, %v6337_v10  ;;  %v4938_v52 = vmul.f32 %v8495_v61, %v10522_v20  ;;  %8502 = vrcp.f32 %v4697_v32  ;;  %v5776_v11 = vunpack.c.h.bf16 %v11715_v44 }
 0x301   : > { %v8499_v4 = vpop.eup %8498  ;;  %v4940_v62 = vmul.f32 %v8497_v42, %v10525_v16  ;;  %8504 = vrcp.f32 %v4698_v45  ;;  %v4183_v51 = vadd.f32 1.0, %v3863_v47  ;;  %v4184_v35 = vadd.f32 1.0, %v3864_v50 }
 0x302   : > { %v8501_v38 = vpop.eup %8500  ;;  %v6817_v60 = vunpack.c.l.bf16 %v6640_v24  ;;  %v6818_v40 = vunpack.c.h.bf16 %v6640_v24  ;;  %v2527_v5 = vxor.u32 2147516416, %v11807_v54  ;;  %v5707_v23 = vunpack.c.l.bf16 %v11733_v63 }
 0x303   : > { %v4941_v17 = vpack.c.bf16 %v4938_v52, %v4940_v62  ;;  %v4442_v1 = vpack.c.bf16 %v4184_v35, %v4183_v51  ;;  %v3608_v41 = vpack.c.bf16 %v8501_v38, %v8499_v4 }
 0x304   : > { %v11820_v37 = vadd.f32 %v11777_v13, %v6817_v60  ;;  %v11823_v10 = vadd.f32 %v11780_v29, %v6818_v40  ;;  %v2753_v0 = vunpack.c.l.bf16 %v2527_v5  ;;  %v2754_v32 = vunpack.c.h.bf16 %v2527_v5 }
 0x305   : > { %v6095_v45 = vunpack.c.l.bf16 %v4941_v17  ;;  %v6096_v61 = vunpack.c.h.bf16 %v4941_v17  ;;  %v4970_v47 = vunpack.c.h.bf16 %v4442_v1  ;;  %v4971_v50 = vunpack.c.l.bf16 %v4442_v1 }
 0x306   : > { %v8503_v44 = vpop.eup %8502  ;;  %v3795_v42 = vunpack.c.l.bf16 %v3608_v41  ;;  %v3796_v24 = vunpack.c.h.bf16 %v3608_v41  ;;  %v3205_v52 = vmul.f32 1.442695, %v2753_v0  ;;  %v3207_v62 = vmul.f32 1.442695, %v2754_v32  ;;  %v11832_v1 = vpop.f32.mrf.mxu1  ;;  %7871 = vmatmul.msk.bf16.vlgmr.msra.gmra.mxu1 %vm425_vm0, %v14198_v36 }
 0x307   : > { %v8505_v15 = vpop.eup %8504  ;;  %v6415_v51 = vmul.f32 %v6095_v45, %v5775_v58  ;;  %v6416_v4 = vmul.f32 %v6096_v61, %v5776_v11  ;;  %v4700_v13 = vmul.f32 %v8503_v44, %v10522_v20  ;;  %8506 = vrcp.f32 %v4970_v47 }
 0x308   : > { %v4702_v29 = vmul.f32 %v8505_v15, %v10525_v16  ;;  %8508 = vrcp.f32 %v4971_v50  ;;  %v4115_v35 = vadd.f32 1.0, %v3795_v42  ;;  %v4116_v38 = vadd.f32 1.0, %v3796_v24 }
 0x309   : > { %v6679_v60 = vpack.c.bf16 %v6416_v4, %v6415_v51  ;;  %v1792_v40 = vadd.f32 %v11737_v56, %v11441_v21  ;;  %8510 = vpow2.f32 %v3205_v52  ;;  %v1881_v5 = vadd.f32 %v11749_v19, %v11436_v27  ;;  %v11849_v51 = vpop.f32.mrf.mxu2 }
 0x30a   : > { %v4703_v17 = vpack.c.bf16 %v4700_v13, %v4702_v29  ;;  %v5708_v58 = vunpack.c.h.bf16 %v11733_v63  ;;  %v4408_v11 = vpack.c.bf16 %v4116_v38, %v4115_v35  ;;  %8512 = vpow2.f32 %v3207_v62 }
 0x30b   : > { %v6895_v15 = vunpack.c.l.bf16 %v6679_v60  ;;  %v6896_v41 = vunpack.c.h.bf16 %v6679_v60  ;;  %v11836_v0 = vpack.c.bf16 %v1881_v5, %v1792_v40  ;;  %v1634_v56 = vadd.f32 %v11788_v55, %v11082_v31 }
 0x30c   : > { %v6027_v32 = vunpack.c.l.bf16 %v4703_v17  ;;  %v6028_v45 = vunpack.c.h.bf16 %v4703_v17  ;;  %v4732_v19 = vunpack.c.h.bf16 %v4408_v11  ;;  %v4733_v61 = vunpack.c.l.bf16 %v4408_v11 }
 0x30d   : > { %v8507_v47 = vpop.eup %8506  ;;  %v11841_v63 = vadd.f32 %v11800_v49, %v6895_v15  ;;  %v11844_v50 = vadd.f32 %v11803_v43, %v6896_v41  ;;  %v5785_v44 = vunpack.c.l.bf16 %v11760_v28  ;;  %v2493_v42 = vxor.u32 2147516416, %v11836_v0 }
 0x30e   : > { %v8509_v24 = vpop.eup %8508  ;;  %v6347_v52 = vmul.f32 %v6027_v32, %v5707_v23  ;;  %v6348_v62 = vmul.f32 %v6028_v45, %v5708_v58  ;;  %v4973_v55 = vmul.f32 %v8507_v47, %v10522_v20  ;;  %8514 = vrcp.f32 %v4732_v19 }
 0x30f   : > { %v8511_v4 = vpop.eup %8510  ;;  %v4975_v13 = vmul.f32 %v8509_v24, %v10525_v16  ;;  %8516 = vrcp.f32 %v4733_v61  ;;  %v2685_v49 = vunpack.c.l.bf16 %v2493_v42  ;;  %v2686_v29 = vunpack.c.h.bf16 %v2493_v42 }
 0x310   : > { %v8513_v43 = vpop.eup %8512  ;;  %v6645_v35 = vpack.c.bf16 %v6348_v62, %v6347_v52  ;;  %v5786_v38 = vunpack.c.h.bf16 %v11760_v28  ;;  %v1794_v60 = vadd.f32 %v11764_v46, %v11441_v21  ;;  %v11856_v23 = vpack.c.bf16 %v11648_v2, %v1634_v56 }
 0x311   : > { %v4976_v40 = vpack.c.bf16 %v4973_v55, %v4975_v13  ;;  %v3647_v5 = vpack.c.bf16 %v8513_v43, %v8511_v4  ;;  %v3069_v17 = vmul.f32 1.442695, %v2685_v49  ;;  %v1883_v58 = vadd.f32 %v11782_v9, %v11436_v27  ;;  %v11868_v55 = vpop.f32.mrf.mxu0 }
 0x312   : > { %v6827_v11 = vunpack.c.l.bf16 %v6645_v35  ;;  %v6828_v15 = vunpack.c.h.bf16 %v6645_v35  ;;  %v3071_v41 = vmul.f32 1.442695, %v2686_v29  ;;  %v2532_v32 = vxor.u32 2147516416, %v11856_v23 }
 0x313   : > { %v6105_v45 = vunpack.c.l.bf16 %v4976_v40  ;;  %v6106_v19 = vunpack.c.h.bf16 %v4976_v40  ;;  %v3873_v28 = vunpack.c.l.bf16 %v3647_v5  ;;  %v3874_v61 = vunpack.c.h.bf16 %v3647_v5  ;;  %v11875_v5 = vpop.f32.mrf.mxu2  ;;  %7887 = vmatmul.msk.bf16.vlgmr.msra.gmra.mxu2 %vm425_vm0, %v14198_v36 }
 0x314   : > { %v8515_v47 = vpop.eup %8514  ;;  %v11862_v46 = vadd.f32 %v11820_v37, %v6827_v11  ;;  %v11865_v2 = vadd.f32 %v11823_v10, %v6828_v15  ;;  %8518 = vpow2.f32 %v3069_v17  ;;  %v2763_v56 = vunpack.c.l.bf16 %v2532_v32 }
 0x315   : > { %v8517_v42 = vpop.eup %8516  ;;  %v6425_v9 = vmul.f32 %v6105_v45, %v5785_v44  ;;  %v6426_v24 = vmul.f32 %v6106_v19, %v5786_v38  ;;  %v4735_v52 = vmul.f32 %v8515_v47, %v10522_v20  ;;  %v4193_v62 = vadd.f32 1.0, %v3873_v28 }
 0x316   : > { %v4737_v4 = vmul.f32 %v8517_v42, %v10525_v16  ;;  %v4194_v13 = vadd.f32 1.0, %v3874_v61  ;;  %8520 = vpow2.f32 %v3071_v41  ;;  %v2764_v49 = vunpack.c.h.bf16 %v2532_v32  ;;  %v11880_v41 = vpop.f32.mrf.mxu3 }
 0x317   : > { %v6684_v37 = vpack.c.bf16 %v6426_v24, %v6425_v9  ;;  %v5717_v29 = vunpack.c.l.bf16 %v11762_v34  ;;  %v3225_v10 = vmul.f32 1.442695, %v2763_v56  ;;  %v11872_v43 = vpack.c.bf16 %v1883_v58, %v1794_v60 }
 0x318   : > { %v4738_v35 = vpack.c.bf16 %v4735_v52, %v4737_v4  ;;  %v5718_v44 = vunpack.c.h.bf16 %v11762_v34  ;;  %v4447_v38 = vpack.c.bf16 %v4194_v13, %v4193_v62  ;;  %v3227_v40 = vmul.f32 1.442695, %v2764_v49 }
 0x319   : > { %v6905_v17 = vunpack.c.l.bf16 %v6684_v37  ;;  %v6906_v11 = vunpack.c.h.bf16 %v6684_v37  ;;  %8522 = vpow2.f32 %v3225_v10  ;;  %v2498_v15 = vxor.u32 2147516416, %v11872_v43 }
 0x31a   : > { %v8519_v32 = vpop.eup %8518  ;;  %v6037_v60 = vunpack.c.l.bf16 %v4738_v35  ;;  %v6038_v58 = vunpack.c.h.bf16 %v4738_v35  ;;  %v5005_v45 = vunpack.c.h.bf16 %v4447_v38  ;;  %v5006_v19 = vunpack.c.l.bf16 %v4447_v38 }
 0x31b   : > { %v11883_v34 = vadd.f32 %v11841_v63, %v6905_v17  ;;  %v11886_v28 = vadd.f32 %v11844_v50, %v6906_v11  ;;  %8524 = vpow2.f32 %v3227_v40  ;;  %v2695_v36 = vunpack.c.l.bf16 %v2498_v15 }
 0x31c   : > { %v8521_v61 = vpop.eup %8520  ;;  %v6357_v47 = vmul.f32 %v6037_v60, %v5717_v29  ;;  %v6358_v56 = vmul.f32 %v6038_v58, %v5718_v44  ;;  %8526 = vrcp.f32 %v5005_v45  ;;  %v2696_v42 = vunpack.c.h.bf16 %v2498_v15  ;;  %v11900_v29 = vpop.f32.mrf.mxu0  ;;  %7866 = vmatmul.msk.bf16.gmra.mxu0 %vm425_vm0, %v14180_v8 }
 0x31d   : > { %v11890_v9 = vadd.f32 %v11369_v22, %v14252_v6  ;;  %8528 = vrcp.f32 %v5006_v19  ;;  %v3613_v24 = vpack.c.bf16 %v8521_v61, %v8519_v32  ;;  %v3089_v52 = vmul.f32 1.442695, %v2695_v36 }
 0x31e   : > { %v11894_v63 = vadd.f32 %v11409_v57, %v14252_v6  ;;  %v6650_v50 = vpack.c.bf16 %v6358_v56, %v6357_v47  ;;  %v3091_v62 = vmul.f32 1.442695, %v2696_v42  ;;  %v1797_v4 = vadd.f32 %v11809_v48, %v11441_v21  ;;  %v11930_v47 = vpop.f32.mrf.mxu1 }
 0x31f   : > { %v8523_v13 = vpop.eup %8522  ;;  %v3805_v49 = vunpack.c.l.bf16 %v3613_v24  ;;  %v3806_v37 = vunpack.c.h.bf16 %v3613_v24  ;;  %8530 = vpow2.f32 %v3089_v52  ;;  %v1636_v22 = vadd.f32 %v11812_v33, %v11082_v31 }
 0x320   : > { %v6837_v10 = vunpack.c.l.bf16 %v6650_v50  ;;  %v6838_v57 = vunpack.c.h.bf16 %v6650_v50  ;;  %8532 = vpow2.f32 %v3091_v62  ;;  %v1886_v35 = vadd.f32 %v11849_v51, %v11436_v27 }
 0x321   : > { %v8525_v44 = vpop.eup %8524  ;;  %v11908_v48 = vadd.f32 %v11427_v18, %v14252_v6  ;;  %v4125_v38 = vadd.f32 1.0, %v3805_v49  ;;  %v4126_v40 = vadd.f32 1.0, %v3806_v37  ;;  %v11911_v33 = vpack.c.bf16 %v11659_v26, %v1636_v22  ;;  %v11924_v26 = vpop.f32.mrf.mxu3  ;;  %7843 = vmatmul.msk.bf16.gmra.mxu3 %vm425_vm0, %v10126_v59 }
 0x322   : > { %v8527_v17 = vpop.eup %8526  ;;  %v11914_v11 = vadd.f32 %v11862_v46, %v6837_v10  ;;  %v11917_v15 = vadd.f32 %v11865_v2, %v6838_v57  ;;  %v3652_v32 = vpack.c.bf16 %v8525_v44, %v8523_v13  ;;  %v11919_v60 = vpack.c.bf16 %v1886_v35, %v1797_v4 }
 0x323   : > { %v8529_v51 = vpop.eup %8528  ;;  %v5008_v58 = vmul.f32 %v8527_v17, %v10522_v20  ;;  %v5795_v18 = vunpack.c.l.bf16 %v11807_v54  ;;  %v4413_v45 = vpack.c.bf16 %v4126_v40, %v4125_v38  ;;  %v2537_v19 = vxor.u32 2147516416, %v11911_v33 }
 0x324   : > { %v5010_v46 = vmul.f32 %v8529_v51, %v10525_v16  ;;  %v5796_v2 = vunpack.c.h.bf16 %v11807_v54  ;;  %v3883_v36 = vunpack.c.l.bf16 %v3652_v32  ;;  %v3884_v61 = vunpack.c.h.bf16 %v3652_v32 }
 0x325   : > { %v8531_v56 = vpop.eup %8530  ;;  %v4767_v42 = vunpack.c.h.bf16 %v4413_v45  ;;  %v4768_v24 = vunpack.c.l.bf16 %v4413_v45  ;;  %v2773_v52 = vunpack.c.l.bf16 %v2537_v19  ;;  %v2774_v50 = vunpack.c.h.bf16 %v2537_v19 }
 0x326   : > { %v8533_v62 = vpop.eup %8532  ;;  %v5011_v4 = vpack.c.bf16 %v5008_v58, %v5010_v46  ;;  %v4203_v13 = vadd.f32 1.0, %v3883_v36  ;;  %v4204_v49 = vadd.f32 1.0, %v3884_v61  ;;  %v2503_v37 = vxor.u32 2147516416, %v11919_v60 }
 0x327   : > { %8534 = vrcp.f32 %v4767_v42  ;;  %v3618_v22 = vpack.c.bf16 %v8533_v62, %v8531_v56  ;;  %v3245_v10 = vmul.f32 1.442695, %v2773_v52  ;;  %v3247_v57 = vmul.f32 1.442695, %v2774_v50 }
 0x328   : > { %v6115_v54 = vunpack.c.l.bf16 %v5011_v4  ;;  %v6116_v35 = vunpack.c.h.bf16 %v5011_v4  ;;  %8536 = vrcp.f32 %v4768_v24  ;;  %v4452_v44 = vpack.c.bf16 %v4204_v49, %v4203_v13  ;;  %v11936_v49 = vpop.f32.mrf.mxu1  ;;  %7872 = vmatmul.msk.bf16.gmra.mxu1 %vm425_vm0, %v14240_v7 }
 0x329   : > { %v3815_v38 = vunpack.c.l.bf16 %v3618_v22  ;;  %v3816_v40 = vunpack.c.h.bf16 %v3618_v22  ;;  %8538 = vpow2.f32 %v3245_v10  ;;  %v2705_v17 = vunpack.c.l.bf16 %v2503_v37 }
 0x32a   : > { %v6435_v32 = vmul.f32 %v6115_v54, %v5795_v18  ;;  %v6436_v51 = vmul.f32 %v6116_v35, %v5796_v2  ;;  %v5040_v45 = vunpack.c.h.bf16 %v4452_v44  ;;  %v5041_v58 = vunpack.c.l.bf16 %v4452_v44 }
 0x32b   : > { %v4135_v19 = vadd.f32 1.0, %v3815_v38  ;;  %v4136_v46 = vadd.f32 1.0, %v3816_v40  ;;  %8540 = vpow2.f32 %v3247_v57  ;;  %v2706_v36 = vunpack.c.h.bf16 %v2503_v37  ;;  %v11950_v38 = vpop.f32.mrf.mxu2 }
 0x32c   : > { %v6689_v61 = vpack.c.bf16 %v6436_v51, %v6435_v32  ;;  %v5727_v56 = vunpack.c.l.bf16 %v11836_v0  ;;  %8542 = vrcp.f32 %v5040_v45  ;;  %v3109_v42 = vmul.f32 1.442695, %v2705_v17 }
 0x32d   : > { %v8535_v52 = vpop.eup %8534  ;;  %v5728_v24 = vunpack.c.h.bf16 %v11836_v0  ;;  %8544 = vrcp.f32 %v5041_v58  ;;  %v4418_v50 = vpack.c.bf16 %v4136_v46, %v4135_v19  ;;  %v3111_v62 = vmul.f32 1.442695, %v2706_v36 }
 0x32e   : > { %v8537_v4 = vpop.eup %8536  ;;  %v6915_v18 = vunpack.c.l.bf16 %v6689_v61  ;;  %v6916_v2 = vunpack.c.h.bf16 %v6689_v61  ;;  %v4770_v13 = vmul.f32 %v8535_v52, %v10522_v20  ;;  %8546 = vpow2.f32 %v3109_v42 }
 0x32f   : > { %v8539_v37 = vpop.eup %8538  ;;  %v4772_v22 = vmul.f32 %v8537_v4, %v10525_v16  ;;  %v4802_v10 = vunpack.c.h.bf16 %v4418_v50  ;;  %v4803_v57 = vunpack.c.l.bf16 %v4418_v50  ;;  %8548 = vpow2.f32 %v3111_v62 }
 0x330   : > { %v11942_v0 = vadd.f32 %v11883_v34, %v6915_v18  ;;  %v11945_v54 = vadd.f32 %v11886_v28, %v6916_v2  ;;  %v5805_v35 = vunpack.c.l.bf16 %v11856_v23  ;;  %v1639_v44 = vadd.f32 %v11880_v41, %v11082_v31 }
 0x331   : > { %v8541_v40 = vpop.eup %8540  ;;  %v4773_v17 = vpack.c.bf16 %v4770_v13, %v4772_v22  ;;  %8550 = vrcp.f32 %v4802_v10  ;;  %v1799_v32 = vadd.f32 %v11832_v1, %v11441_v21  ;;  %v1888_v34 = vadd.f32 %v11875_v5, %v11436_v27 }
 0x332   : > { %v8543_v51 = vpop.eup %8542  ;;  %v5806_v28 = vunpack.c.h.bf16 %v11856_v23  ;;  %8552 = vrcp.f32 %v4803_v57  ;;  %v3657_v45 = vpack.c.bf16 %v8541_v40, %v8539_v37  ;;  %v11958_v58 = vpack.c.bf16 %v11711_v30, %v1639_v44  ;;  %v11965_v23 = vpop.f32.mrf.mxu0 }
 0x333   : > { %v8545_v41 = vpop.eup %8544  ;;  %v6047_v19 = vunpack.c.l.bf16 %v4773_v17  ;;  %v6048_v46 = vunpack.c.h.bf16 %v4773_v17  ;;  %v5043_v36 = vmul.f32 %v8543_v51, %v10522_v20  ;;  %v11961_v61 = vpack.c.bf16 %v1888_v34, %v1799_v32 }
 0x334   : > { %v8547_v42 = vpop.eup %8546  ;;  %v5045_v1 = vmul.f32 %v8545_v41, %v10525_v16  ;;  %v3893_v52 = vunpack.c.l.bf16 %v3657_v45  ;;  %v3894_v5 = vunpack.c.h.bf16 %v3657_v45  ;;  %v2542_v50 = vxor.u32 2147516416, %v11958_v58 }
 0x335   : > { %v8549_v62 = vpop.eup %8548  ;;  %v6367_v4 = vmul.f32 %v6047_v19, %v5727_v56  ;;  %v6368_v30 = vmul.f32 %v6048_v46, %v5728_v24  ;;  %v5737_v18 = vunpack.c.l.bf16 %v11872_v43  ;;  %v5738_v2 = vunpack.c.h.bf16 %v11872_v43 }
 0x336   : > { %v5046_v13 = vpack.c.bf16 %v5043_v36, %v5045_v1  ;;  %v4213_v37 = vadd.f32 1.0, %v3893_v52  ;;  %v4214_v22 = vadd.f32 1.0, %v3894_v5  ;;  %v3623_v10 = vpack.c.bf16 %v8549_v62, %v8547_v42  ;;  %v11972_v5 = vpop.f32.mrf.mxu3 }
 0x337   : > { %v8551_v57 = vpop.eup %8550  ;;  %v6655_v44 = vpack.c.bf16 %v6368_v30, %v6367_v4  ;;  %v2783_v40 = vunpack.c.l.bf16 %v2542_v50  ;;  %v2784_v17 = vunpack.c.h.bf16 %v2542_v50  ;;  %v2508_v32 = vxor.u32 2147516416, %v11961_v61  ;;  %v11974_v50 = vpop.f32.mrf.mxu2  ;;  %7888 = vmatmul.msk.bf16.gmra.mxu2 %vm425_vm0, %v14240_v7  ;;  %v14263_v7 = vld [vmem:[#allocation3_spill] sm:$0xff] }
 0x338   : > { %v8553_v34 = vpop.eup %8552  ;;  %v6125_v51 = vunpack.c.l.bf16 %v5046_v13  ;;  %v6126_v45 = vunpack.c.h.bf16 %v5046_v13  ;;  %v4805_v56 = vmul.f32 %v8551_v57, %v10522_v20  ;;  %v4457_v24 = vpack.c.bf16 %v4214_v22, %v4213_v37 }
 0x339   : > { %v6847_v41 = vunpack.c.l.bf16 %v6655_v44  ;;  %v6848_v19 = vunpack.c.h.bf16 %v6655_v44  ;;  %v4807_v43 = vmul.f32 %v8553_v34, %v10525_v16  ;;  %v3825_v46 = vunpack.c.l.bf16 %v3623_v10 }
 0x33a   : > { %v6445_v36 = vmul.f32 %v6125_v51, %v5805_v35  ;;  %v6446_v1 = vmul.f32 %v6126_v45, %v5806_v28  ;;  %v5075_v42 = vunpack.c.h.bf16 %v4457_v24  ;;  %v5076_v52 = vunpack.c.l.bf16 %v4457_v24  ;;  %v11980_v24 = vpop.f32.mrf.mxu0  ;;  %7867 = vmatmul.msk.bf16.gmra.mxu0 %vm425_vm0, %v14263_v7 }
 0x33b   : > { %v7242_v62 = vadd.f32 %v11914_v11, %v6847_v41  ;;  %v7273_v4 = vadd.f32 %v11917_v15, %v6848_v19  ;;  %v4808_v30 = vpack.c.bf16 %v4805_v56, %v4807_v43  ;;  %v3826_v13 = vunpack.c.h.bf16 %v3623_v10  ;;  %14262 = vst [vmem:[#allocation26_spill] sm:$0xff] %v11980_v24 }
 0x33c   : > { %v6694_v37 = vpack.c.bf16 %v6446_v1, %v6445_v36  ;;  %8554 = vrcp.f32 %v5075_v42  ;;  %v4145_v22 = vadd.f32 1.0, %v3825_v46  ;;  %v3265_v35 = vmul.f32 1.442695, %v2783_v40  ;;  %v14264_v42 = vld [vmem:[#allocation18_spill] sm:$0xff] }
 0x33d   : > { %v6057_v28 = vunpack.c.l.bf16 %v4808_v30  ;;  %v6058_v57 = vunpack.c.h.bf16 %v4808_v30  ;;  %8556 = vrcp.f32 %v5076_v52  ;;  %v4146_v44 = vadd.f32 1.0, %v3826_v13 }
 0x33e   : > { %v6925_v34 = vunpack.c.l.bf16 %v6694_v37  ;;  %v6926_v51 = vunpack.c.h.bf16 %v6694_v37  ;;  %8558 = vpow2.f32 %v3265_v35  ;;  %v3267_v45 = vmul.f32 1.442695, %v2784_v17 }
 0x33f   : > { %v6377_v11 = vmul.f32 %v6057_v28, %v5737_v18  ;;  %v6378_v15 = vmul.f32 %v6058_v57, %v5738_v2  ;;  %v4423_v10 = vpack.c.bf16 %v4146_v44, %v4145_v22  ;;  %v2715_v56 = vunpack.c.l.bf16 %v2508_v32  ;;  %v14265_v18 = vld [vmem:[#allocation19_spill] sm:$0xff]  ;;  %v12007_v44 = vpop.f32.mrf.mxu3 }
 0x340   : > { %v11985_v41 = vadd.f32 %v11942_v0, %v6925_v34  ;;  %v11988_v40 = vadd.f32 %v11945_v54, %v6926_v51  ;;  %8560 = vpow2.f32 %v3267_v45  ;;  %v2716_v19 = vunpack.c.h.bf16 %v2508_v32  ;;  %v14266_v34 = vld [vmem:[#allocation8_spill] sm:$0xff] }
 0x341   : > { %v6660_v43 = vpack.c.bf16 %v6378_v15, %v6377_v11  ;;  %v4837_v46 = vunpack.c.h.bf16 %v4423_v10  ;;  %v4838_v17 = vunpack.c.l.bf16 %v4423_v10  ;;  %v3129_v36 = vmul.f32 1.442695, %v2715_v56  ;;  %7844 = vmatmul.msk.bf16.gmra.mxu3 %vm425_vm0, %v14266_v34 }
 0x342   : > { %v8555_v1 = vpop.eup %8554  ;;  %v11992_v52 = vadd.f32 %v14264_v42, %v14252_v6  ;;  %v11996_v2 = vadd.f32 %v14265_v18, %v14252_v6  ;;  %v3131_v0 = vmul.f32 1.442695, %v2716_v19  ;;  %v1641_v54 = vadd.f32 %v11924_v26, %v11082_v31 }
 0x343   : > { %v8557_v30 = vpop.eup %8556  ;;  %v6857_v13 = vunpack.c.l.bf16 %v6660_v43  ;;  %v6858_v32 = vunpack.c.h.bf16 %v6660_v43  ;;  %v5078_v37 = vmul.f32 %v8555_v1, %v10522_v20  ;;  %8562 = vrcp.f32 %v4837_v46 }
 0x344   : > { %v8559_v22 = vpop.eup %8558  ;;  %v5080_v35 = vmul.f32 %v8557_v30, %v10525_v16  ;;  %8564 = vrcp.f32 %v4838_v17  ;;  %v12003_v28 = vpack.c.bf16 %v11757_v14, %v1641_v54  ;;  %v1891_v57 = vadd.f32 %v11950_v38, %v11436_v27 }
 0x345   : > { %v12011_v26 = vadd.f32 %v7242_v62, %v6857_v13  ;;  %v12013_v51 = vadd.f32 %v7273_v4, %v6858_v32  ;;  %8566 = vpow2.f32 %v3129_v36  ;;  %v1802_v45 = vadd.f32 %v11930_v47, %v11441_v21  ;;  %v12023_v4 = vpop.f32.mrf.mxu1 }
 0x346   : > { %v8561_v11 = vpop.eup %8560  ;;  %v5081_v15 = vpack.c.bf16 %v5078_v37, %v5080_v35  ;;  %v5815_v14 = vunpack.c.l.bf16 %v11911_v33  ;;  %8568 = vpow2.f32 %v3131_v0  ;;  %v2547_v38 = vxor.u32 2147516416, %v12003_v28 }
 0x347   : > { %v5816_v10 = vunpack.c.h.bf16 %v11911_v33  ;;  %v5747_v56 = vunpack.c.l.bf16 %v11919_v60  ;;  %v3662_v19 = vpack.c.bf16 %v8561_v11, %v8559_v22  ;;  %v12021_v62 = vpack.c.bf16 %v1891_v57, %v1802_v45 }
 0x348   : > { %v6135_v43 = vunpack.c.l.bf16 %v5081_v15  ;;  %v6136_v46 = vunpack.c.h.bf16 %v5081_v15  ;;  %v2793_v17 = vunpack.c.l.bf16 %v2547_v38  ;;  %v2794_v47 = vunpack.c.h.bf16 %v2547_v38 }
 0x349   : > { %v8563_v36 = vpop.eup %8562  ;;  %v5748_v1 = vunpack.c.h.bf16 %v11919_v60  ;;  %v3903_v42 = vunpack.c.l.bf16 %v3662_v19  ;;  %v3904_v18 = vunpack.c.h.bf16 %v3662_v19  ;;  %v2513_v0 = vxor.u32 2147516416, %v12021_v62 }
 0x34a   : > { %v8565_v54 = vpop.eup %8564  ;;  %v6455_v33 = vmul.f32 %v6135_v43, %v5815_v14  ;;  %v6456_v30 = vmul.f32 %v6136_v46, %v5816_v10  ;;  %v4840_v13 = vmul.f32 %v8563_v36, %v10522_v20  ;;  %v3285_v32 = vmul.f32 1.442695, %v2793_v17 }
 0x34b   : > { %v8567_v37 = vpop.eup %8566  ;;  %v4842_v22 = vmul.f32 %v8565_v54, %v10525_v16  ;;  %v4223_v35 = vadd.f32 1.0, %v3903_v42  ;;  %v4224_v57 = vadd.f32 1.0, %v3904_v18  ;;  %v3287_v45 = vmul.f32 1.442695, %v2794_v47 }
 0x34c   : > { %v8569_v11 = vpop.eup %8568  ;;  %v6699_v15 = vpack.c.bf16 %v6456_v30, %v6455_v33  ;;  %8570 = vpow2.f32 %v3285_v32  ;;  %v2725_v60 = vunpack.c.l.bf16 %v2513_v0  ;;  %v2726_v38 = vunpack.c.h.bf16 %v2513_v0  ;;  %v14267_v33 = vld [vmem:[#allocation20_spill] sm:$0xff] }
 0x34d   : > { %v4843_v19 = vpack.c.bf16 %v4840_v13, %v4842_v22  ;;  %v4462_v7 = vpack.c.bf16 %v4224_v57, %v4223_v35  ;;  %v3628_v8 = vpack.c.bf16 %v8569_v11, %v8567_v37  ;;  %8572 = vpow2.f32 %v3287_v45  ;;  %v12039_v37 = vpop.f32.mrf.mxu2  ;;  %v12041_v22 = vpop.f32.mrf.mxu1  ;;  %7873 = vmatmul.msk.bf16.gmra.mxu1 %vm425_vm0, %v9981_v39 }
 0x34e   : > { %v6935_v14 = vunpack.c.l.bf16 %v6699_v15  ;;  %v6936_v10 = vunpack.c.h.bf16 %v6699_v15  ;;  %v3149_v43 = vmul.f32 1.442695, %v2725_v60  ;;  %v3151_v46 = vmul.f32 1.442695, %v2726_v38 }
 0x34f   : > { %v6067_v17 = vunpack.c.l.bf16 %v4843_v19  ;;  %v6068_v36 = vunpack.c.h.bf16 %v4843_v19  ;;  %v5110_v24 = vunpack.c.h.bf16 %v4462_v7  ;;  %v5111_v54 = vunpack.c.l.bf16 %v4462_v7 }
 0x350   : > { %v12030_v42 = vadd.f32 %v11985_v41, %v6935_v14  ;;  %v12033_v47 = vadd.f32 %v11988_v40, %v6936_v10  ;;  %v3835_v18 = vunpack.c.l.bf16 %v3628_v8  ;;  %v3836_v0 = vunpack.c.h.bf16 %v3628_v8 }
 0x351   : > { %v12037_v30 = vadd.f32 %v14267_v33, %v14252_v6  ;;  %v6387_v13 = vmul.f32 %v6067_v17, %v5747_v56  ;;  %v6388_v32 = vmul.f32 %v6068_v36, %v5748_v1  ;;  %8574 = vrcp.f32 %v5110_v24  ;;  %v14268_v1 = vld [vmem:[#allocation22_spill] sm:$0xff] }
 0x352   : > { %v8571_v7 = vpop.eup %8570  ;;  %8576 = vrcp.f32 %v5111_v54  ;;  %v4155_v41 = vadd.f32 1.0, %v3835_v18  ;;  %v4156_v40 = vadd.f32 1.0, %v3836_v0  ;;  %v1804_v8 = vadd.f32 %v11936_v49, %v11441_v21  ;;  %v12068_v18 = vpop.f32.mrf.mxu0 }
 0x353   : > { %v8573_v35 = vpop.eup %8572  ;;  %v6665_v57 = vpack.c.bf16 %v6388_v32, %v6387_v13  ;;  %8578 = vpow2.f32 %v3149_v43  ;;  %v1644_v24 = vadd.f32 %v11972_v5, %v11082_v31  ;;  %v1893_v56 = vadd.f32 %v11974_v50, %v11436_v27  ;;  %14269 = vst [vmem:[#allocation27_spill] sm:$0xff] %v12068_v18 }
 0x354   : > { %v12053_v45 = vadd.f32 %v14268_v1, %v14252_v6  ;;  %v4428_v11 = vpack.c.bf16 %v4156_v40, %v4155_v41  ;;  %v3667_v15 = vpack.c.bf16 %v8573_v35, %v8571_v7  ;;  %8580 = vpow2.f32 %v3151_v46 }
 0x355   : > { %v6867_v60 = vunpack.c.l.bf16 %v6665_v57  ;;  %v6868_v38 = vunpack.c.h.bf16 %v6665_v57  ;;  %v12056_v49 = vpack.c.bf16 %v11890_v9, %v1644_v24  ;;  %v12058_v19 = vpack.c.bf16 %v1893_v56, %v1804_v8 }
 0x356   : > { %v4872_v14 = vunpack.c.h.bf16 %v4428_v11  ;;  %v4873_v10 = vunpack.c.l.bf16 %v4428_v11  ;;  %v3913_v5 = vunpack.c.l.bf16 %v3667_v15  ;;  %v3914_v43 = vunpack.c.h.bf16 %v3667_v15  ;;  %v12075_v15 = vpop.f32.mrf.mxu2  ;;  %7889 = vmatmul.msk.bf16.gmra.mxu2 %vm425_vm0, %v9981_v39 }
 0x357   : > { %v8575_v17 = vpop.eup %8574  ;;  %v12061_v50 = vadd.f32 %v12011_v26, %v6867_v60  ;;  %v12064_v36 = vadd.f32 %v12013_v51, %v6868_v38  ;;  %v5825_v46 = vunpack.c.l.bf16 %v11958_v58  ;;  %v2552_v54 = vxor.u32 2147516416, %v12056_v49 }
 0x358   : > { %v8577_v9 = vpop.eup %8576  ;;  %v5113_v0 = vmul.f32 %v8575_v17, %v10522_v20  ;;  %8582 = vrcp.f32 %v4872_v14  ;;  %v4233_v33 = vadd.f32 1.0, %v3913_v5  ;;  %v4234_v13 = vadd.f32 1.0, %v3914_v43 }
 0x359   : > { %v8579_v32 = vpop.eup %8578  ;;  %v5115_v7 = vmul.f32 %v8577_v9, %v10525_v16  ;;  %8584 = vrcp.f32 %v4873_v10  ;;  %v2803_v26 = vunpack.c.l.bf16 %v2552_v54  ;;  %v2804_v41 = vunpack.c.h.bf16 %v2552_v54  ;;  %v12079_v54 = vpop.f32.mrf.mxu3 }
 0x35a   : > { %v8581_v51 = vpop.eup %8580  ;;  %v5826_v40 = vunpack.c.h.bf16 %v11958_v58  ;;  %v5757_v8 = vunpack.c.l.bf16 %v11961_v61  ;;  %v4467_v35 = vpack.c.bf16 %v4234_v13, %v4233_v33  ;;  %v2518_v57 = vxor.u32 2147516416, %v12058_v19 }
 0x35b   : > { %v5116_v24 = vpack.c.bf16 %v5113_v0, %v5115_v7  ;;  %v3633_v56 = vpack.c.bf16 %v8581_v51, %v8579_v32  ;;  %v3305_v1 = vmul.f32 1.442695, %v2803_v26  ;;  %v3307_v11 = vmul.f32 1.442695, %v2804_v41 }
 0x35c   : > { %v5145_v60 = vunpack.c.h.bf16 %v4467_v35  ;;  %v5146_v38 = vunpack.c.l.bf16 %v4467_v35  ;;  %v2735_v14 = vunpack.c.l.bf16 %v2518_v57  ;;  %v2736_v10 = vunpack.c.h.bf16 %v2518_v57 }
 0x35d   : > { %v6145_v5 = vunpack.c.l.bf16 %v5116_v24  ;;  %v6146_v58 = vunpack.c.h.bf16 %v5116_v24  ;;  %v3845_v43 = vunpack.c.l.bf16 %v3633_v56  ;;  %v3846_v17 = vunpack.c.h.bf16 %v3633_v56  ;;  %v12087_v56 = vpop.f32.mrf.mxu0 }
 0x35e   : > { %v8583_v9 = vpop.eup %8582  ;;  %v5758_v0 = vunpack.c.h.bf16 %v11961_v61  ;;  %8586 = vrcp.f32 %v5145_v60  ;;  %v3169_v33 = vmul.f32 1.442695, %v2735_v14  ;;  %v3171_v13 = vmul.f32 1.442695, %v2736_v10  ;;  %14270 = vst [vmem:[#allocation29_spill] sm:$0xff] %v12087_v56  ;;  %v14271_v60 = vld [vmem:[#allocation5_spill] sm:$0xff] }
 0x35f   : > { %v8585_v32 = vpop.eup %8584  ;;  %v6465_v7 = vmul.f32 %v6145_v5, %v5825_v46  ;;  %v6466_v26 = vmul.f32 %v6146_v58, %v5826_v40  ;;  %v4875_v39 = vmul.f32 %v8583_v9, %v10522_v20  ;;  %8588 = vrcp.f32 %v5146_v38  ;;  %7868 = vmatmul.msk.bf16.gmra.mxu0 %vm425_vm0, %v14271_v60 }
 0x360   : > { %v4877_v41 = vmul.f32 %v8585_v32, %v10525_v16  ;;  %v4165_v51 = vadd.f32 1.0, %v3845_v43  ;;  %v4166_v35 = vadd.f32 1.0, %v3846_v17  ;;  %8590 = vpow2.f32 %v3305_v1 }
 0x361   : > { %v6704_v57 = vpack.c.bf16 %v6466_v26, %v6465_v7  ;;  %v5835_v24 = vunpack.c.l.bf16 %v12003_v28  ;;  %8592 = vpow2.f32 %v3307_v11  ;;  %v1646_v61 = vadd.f32 %v12007_v44, %v11082_v31 }
 0x362   : > { %v4878_v46 = vpack.c.bf16 %v4875_v39, %v4877_v41  ;;  %v4433_v40 = vpack.c.bf16 %v4166_v35, %v4165_v51  ;;  %8594 = vpow2.f32 %v3169_v33  ;;  %v1896_v38 = vadd.f32 %v12039_v37, %v11436_v27  ;;  %v12107_v35 = vpop.f32.mrf.mxu3 }
 0x363   : > { %v6945_v14 = vunpack.c.l.bf16 %v6704_v57  ;;  %v6946_v1 = vunpack.c.h.bf16 %v6704_v57  ;;  %8596 = vpow2.f32 %v3171_v13  ;;  %v12094_v10 = vpack.c.bf16 %v11894_v63, %v1646_v61 }
 0x364   : > { %v8587_v11 = vpop.eup %8586  ;;  %v6077_v5 = vunpack.c.l.bf16 %v4878_v46  ;;  %v6078_v44 = vunpack.c.h.bf16 %v4878_v46  ;;  %v4907_v58 = vunpack.c.h.bf16 %v4433_v40  ;;  %v4908_v43 = vunpack.c.l.bf16 %v4433_v40 }
 0x365   : > { %v8589_v17 = vpop.eup %8588  ;;  %v12097_v9 = vadd.f32 %v12030_v42, %v6945_v14  ;;  %v12100_v33 = vadd.f32 %v12033_v47, %v6946_v1  ;;  %v5148_v37 = vmul.f32 %v8587_v11, %v10522_v20  ;;  %v2557_v32 = vxor.u32 2147516416, %v12094_v10  ;;  %v14272_v47 = vld [vmem:[#allocation9_spill] sm:$0xff] }
 0x366   : > { %v8591_v13 = vpop.eup %8590  ;;  %v6397_v7 = vmul.f32 %v6077_v5, %v5757_v8  ;;  %v6398_v63 = vmul.f32 %v6078_v44, %v5758_v0  ;;  %v5150_v26 = vmul.f32 %v8589_v17, %v10525_v16  ;;  %8598 = vrcp.f32 %v4907_v58  ;;  %7845 = vmatmul.msk.bf16.gmra.mxu3 %vm425_vm0, %v14272_v47  ;;  %v12115_v17 = vpop.f32.mrf.mxu1 }
 0x367   : > { %v8593_v39 = vpop.eup %8592  ;;  %8600 = vrcp.f32 %v4908_v43  ;;  %v1807_v41 = vadd.f32 %v12023_v4, %v11441_v21  ;;  %v2813_v42 = vunpack.c.l.bf16 %v2557_v32  ;;  %v2814_v51 = vunpack.c.h.bf16 %v2557_v32 }
 0x368   : > { %v8595_v57 = vpop.eup %8594  ;;  %v6670_v61 = vpack.c.bf16 %v6398_v63, %v6397_v7  ;;  %v5151_v46 = vpack.c.bf16 %v5148_v37, %v5150_v26  ;;  %v5836_v8 = vunpack.c.h.bf16 %v12003_v28  ;;  %v3672_v0 = vpack.c.bf16 %v8593_v39, %v8591_v13 }
 0x369   : > { %v8597_v40 = vpop.eup %8596  ;;  %v5767_v14 = vunpack.c.l.bf16 %v12021_v62  ;;  %v3325_v1 = vmul.f32 1.442695, %v2813_v42  ;;  %v3327_v11 = vmul.f32 1.442695, %v2814_v51  ;;  %v12113_v5 = vpack.c.bf16 %v1896_v38, %v1807_v41 }
 0x36a   : > { %v6877_v4 = vunpack.c.l.bf16 %v6670_v61  ;;  %v6878_v44 = vunpack.c.h.bf16 %v6670_v61  ;;  %v6155_v58 = vunpack.c.l.bf16 %v5151_v46  ;;  %v6156_v43 = vunpack.c.h.bf16 %v5151_v46 }
 0x36b   : > { %v3923_v32 = vunpack.c.l.bf16 %v3672_v0  ;;  %v3924_v60 = vunpack.c.h.bf16 %v3672_v0  ;;  %v3638_v7 = vpack.c.bf16 %v8597_v40, %v8595_v57  ;;  %8602 = vpow2.f32 %v3325_v1 }
 0x36c   : > { %v8599_v37 = vpop.eup %8598  ;;  %v12118_v28 = vadd.f32 %v12061_v50, %v6877_v4  ;;  %v12121_v13 = vadd.f32 %v12064_v36, %v6878_v44  ;;  %v6475_v63 = vmul.f32 %v6155_v58, %v5835_v24  ;;  %v6476_v38 = vmul.f32 %v6156_v43, %v5836_v8 }
 0x36d   : > { %v8601_v26 = vpop.eup %8600  ;;  %v4910_v39 = vmul.f32 %v8599_v37, %v10522_v20  ;;  %v4243_v41 = vadd.f32 1.0, %v3923_v32  ;;  %v4244_v42 = vadd.f32 1.0, %v3924_v60  ;;  %v3855_v51 = vunpack.c.l.bf16 %v3638_v7  ;;  %v12127_v37 = vpop.f32.mrf.mxu2 }
 0x36e   : > { %v6709_v61 = vpack.c.bf16 %v6476_v38, %v6475_v63  ;;  %v4912_v46 = vmul.f32 %v8601_v26, %v10525_v16  ;;  %v3856_v57 = vunpack.c.h.bf16 %v3638_v7  ;;  %8604 = vpow2.f32 %v3327_v11 }
 0x36f   : > { %v5768_v0 = vunpack.c.h.bf16 %v12021_v62  ;;  %v4472_v50 = vpack.c.bf16 %v4244_v42, %v4243_v41  ;;  %v4175_v40 = vadd.f32 1.0, %v3855_v51  ;;  %v2523_v36 = vxor.u32 2147516416, %v12113_v5  ;;  %v14273_v42 = vld [vmem:[#allocation21_spill] sm:$0xff] }
 0x370   : > { %v6955_v1 = vunpack.c.l.bf16 %v6709_v61  ;;  %v6956_v24 = vunpack.c.h.bf16 %v6709_v61  ;;  %v4913_v8 = vpack.c.bf16 %v4910_v39, %v4912_v46  ;;  %v4176_v4 = vadd.f32 1.0, %v3856_v57  ;;  %v12139_v57 = vpop.f32.mrf.mxu1  ;;  %7874 = vmatmul.msk.bf16.gmra.mxu1 %vm425_vm0, %v10066_v3 }
 0x371   : > { %v8603_v44 = vpop.eup %8602  ;;  %v5180_v58 = vunpack.c.h.bf16 %v4472_v50  ;;  %v5181_v43 = vunpack.c.l.bf16 %v4472_v50  ;;  %v2745_v60 = vunpack.c.l.bf16 %v2523_v36  ;;  %v2746_v32 = vunpack.c.h.bf16 %v2523_v36 }
 0x372   : > { %v12130_v7 = vadd.f32 %v12097_v9, %v6955_v1  ;;  %v12133_v62 = vadd.f32 %v12100_v33, %v6956_v24  ;;  %v6087_v11 = vunpack.c.l.bf16 %v4913_v8  ;;  %v6088_v63 = vunpack.c.h.bf16 %v4913_v8 }
 0x373   : > { %8606 = vrcp.f32 %v5180_v58  ;;  %v4438_v38 = vpack.c.bf16 %v4176_v4, %v4175_v40  ;;  %v3189_v26 = vmul.f32 1.442695, %v2745_v60  ;;  %v3191_v39 = vmul.f32 1.442695, %v2746_v32 }
 0x374   : > { %v8605_v41 = vpop.eup %8604  ;;  %v12137_v51 = vadd.f32 %v14273_v42, %v14252_v6  ;;  %v6407_v61 = vmul.f32 %v6087_v11, %v5767_v14  ;;  %v6408_v46 = vmul.f32 %v6088_v63, %v5768_v0  ;;  %8608 = vrcp.f32 %v5181_v43 }
 0x375   : > { %v4942_v9 = vunpack.c.h.bf16 %v4438_v38  ;;  %v4943_v33 = vunpack.c.l.bf16 %v4438_v38  ;;  %v3677_v50 = vpack.c.bf16 %v8605_v41, %v8603_v44  ;;  %8610 = vpow2.f32 %v3189_v26 }
 0x376   : > { %v6675_v40 = vpack.c.bf16 %v6408_v46, %v6407_v61  ;;  %8612 = vpow2.f32 %v3191_v39  ;;  %v1809_v36 = vadd.f32 %v12041_v22, %v11441_v21  ;;  %v1649_v1 = vadd.f32 %v12079_v54, %v11082_v31  ;;  %v12168_v46 = vpop.f32.mrf.mxu2  ;;  %7890 = vmatmul.msk.bf16.gmra.mxu2 %vm425_vm0, %v10066_v3 }
 0x377   : > { %8614 = vrcp.f32 %v4942_v9  ;;  %v3933_v14 = vunpack.c.l.bf16 %v3677_v50  ;;  %v3934_v0 = vunpack.c.h.bf16 %v3677_v50  ;;  %v1898_v24 = vadd.f32 %v12075_v15, %v11436_v27 }
 0x378   : > { %v6887_v8 = vunpack.c.l.bf16 %v6675_v40  ;;  %v6888_v4 = vunpack.c.h.bf16 %v6675_v40  ;;  %8616 = vrcp.f32 %v4943_v33  ;;  %v12150_v44 = vpack.c.bf16 %v11908_v48, %v1649_v1  ;;  %v12163_v48 = vpop.f32.mrf.mxu0 }
 0x379   : > { %v8607_v58 = vpop.eup %8606  ;;  %v5845_v43 = vunpack.c.l.bf16 %v12056_v49  ;;  %v4253_v60 = vadd.f32 1.0, %v3933_v14  ;;  %v4254_v22 = vadd.f32 1.0, %v3934_v0  ;;  %v12153_v32 = vpack.c.bf16 %v1898_v24, %v1809_v36  ;;  %14274 = vst [vmem:[#allocation4_spill] sm:$0xff] %v12163_v48 }
 0x37a   : > { %v8609_v54 = vpop.eup %8608  ;;  %v12156_v11 = vadd.f32 %v12118_v28, %v6887_v8  ;;  %v12159_v63 = vadd.f32 %v12121_v13, %v6888_v4  ;;  %v5183_v15 = vmul.f32 %v8607_v58, %v10522_v20  ;;  %v2562_v38 = vxor.u32 2147516416, %v12150_v44 }
 0x37b   : > { %v8611_v26 = vpop.eup %8610  ;;  %v5185_v39 = vmul.f32 %v8609_v54, %v10525_v16  ;;  %v5846_v41 = vunpack.c.h.bf16 %v12056_v49  ;;  %v5777_v42 = vunpack.c.l.bf16 %v12058_v19  ;;  %v4477_v61 = vpack.c.bf16 %v4254_v22, %v4253_v60  ;;  %v12175_v60 = vpop.f32.mrf.mxu3 }
 0x37c   : > { %v8613_v28 = vpop.eup %8612  ;;  %v5778_v13 = vunpack.c.h.bf16 %v12058_v19  ;;  %v2823_v9 = vunpack.c.l.bf16 %v2562_v38  ;;  %v2824_v33 = vunpack.c.h.bf16 %v2562_v38  ;;  %v2528_v50 = vxor.u32 2147516416, %v12153_v32 }
 0x37d   : > { %v8615_v40 = vpop.eup %8614  ;;  %v5186_v36 = vpack.c.bf16 %v5183_v15, %v5185_v39  ;;  %v5215_v1 = vunpack.c.h.bf16 %v4477_v61  ;;  %v5216_v14 = vunpack.c.l.bf16 %v4477_v61  ;;  %v3643_v49 = vpack.c.bf16 %v8613_v28, %v8611_v26 }
 0x37e   : > { %v8617_v0 = vpop.eup %8616  ;;  %v4945_v24 = vmul.f32 %v8615_v40, %v10522_v20  ;;  %v3345_v8 = vmul.f32 1.442695, %v2823_v9  ;;  %v3347_v4 = vmul.f32 1.442695, %v2824_v33  ;;  %v2755_v58 = vunpack.c.l.bf16 %v2528_v50 }
 0x37f   : > { %v6165_v3 = vunpack.c.l.bf16 %v5186_v36  ;;  %v6166_v22 = vunpack.c.h.bf16 %v5186_v36  ;;  %v4947_v19 = vmul.f32 %v8617_v0, %v10525_v16  ;;  %8618 = vrcp.f32 %v5215_v1  ;;  %v14275_v36 = vld [vmem:[#allocation24_spill] sm:$0xff] }
 0x380   : > { %8620 = vrcp.f32 %v5216_v14  ;;  %v3865_v54 = vunpack.c.l.bf16 %v3643_v49  ;;  %v3866_v38 = vunpack.c.h.bf16 %v3643_v49  ;;  %v2756_v15 = vunpack.c.h.bf16 %v2528_v50 }
 0x381   : > { %v6485_v39 = vmul.f32 %v6165_v3, %v5845_v43  ;;  %v6486_v61 = vmul.f32 %v6166_v22, %v5846_v41  ;;  %v4948_v26 = vpack.c.bf16 %v4945_v24, %v4947_v19  ;;  %8622 = vpow2.f32 %v3345_v8  ;;  %v12183_v43 = vpop.f32.mrf.mxu0  ;;  %v14277_v41 = vld [vmem:[#allocation6_spill] sm:$0xff] }
 0x382   : > { %v4185_v28 = vadd.f32 1.0, %v3865_v54  ;;  %v4186_v40 = vadd.f32 1.0, %v3866_v38  ;;  %8624 = vpow2.f32 %v3347_v4  ;;  %v3209_v9 = vmul.f32 1.442695, %v2755_v58  ;;  %14276 = vst [vmem:[#allocation16_spill] sm:$0xff] %v12183_v43  ;;  %7869 = vmatmul.msk.bf16.gmra.mxu0 %vm425_vm0, %v14277_v41 }
 0x383   : > { %v6714_v33 = vpack.c.bf16 %v6486_v61, %v6485_v39  ;;  %v6097_v48 = vunpack.c.l.bf16 %v4948_v26  ;;  %v6098_v56 = vunpack.c.h.bf16 %v4948_v26  ;;  %v3211_v18 = vmul.f32 1.442695, %v2756_v15 }
 0x384   : > { %v12180_v0 = vadd.f32 %v14275_v36, %v14252_v6  ;;  %v5855_v1 = vunpack.c.l.bf16 %v12094_v10  ;;  %v4443_v14 = vpack.c.bf16 %v4186_v40, %v4185_v28  ;;  %8626 = vpow2.f32 %v3209_v9 }
 0x385   : > { %v8619_v50 = vpop.eup %8618  ;;  %v6965_v49 = vunpack.c.l.bf16 %v6714_v33  ;;  %v6966_v24 = vunpack.c.h.bf16 %v6714_v33  ;;  %v6417_v8 = vmul.f32 %v6097_v48, %v5777_v42  ;;  %v6418_v4 = vmul.f32 %v6098_v56, %v5778_v13  ;;  %v14278_v13 = vld [vmem:[#allocation10_spill] sm:$0xff] }
 0x386   : > { %v8621_v58 = vpop.eup %8620  ;;  %v5218_v3 = vmul.f32 %v8619_v50, %v10522_v20  ;;  %v4977_v22 = vunpack.c.h.bf16 %v4443_v14  ;;  %v4978_v19 = vunpack.c.l.bf16 %v4443_v14  ;;  %8628 = vpow2.f32 %v3211_v18  ;;  %v12197_v18 = vpop.f32.mrf.mxu3  ;;  %7846 = vmatmul.msk.bf16.gmra.mxu3 %vm425_vm0, %v14278_v13 }
 0x387   : > { %v8623_v54 = vpop.eup %8622  ;;  %v7192_v38 = vadd.f32 %v12130_v7, %v6965_v49  ;;  %v7223_v15 = vadd.f32 %v12133_v62, %v6966_v24  ;;  %v6680_v39 = vpack.c.bf16 %v6418_v4, %v6417_v8  ;;  %v5220_v61 = vmul.f32 %v8621_v58, %v10525_v16  ;;  %v12215_v58 = vpop.f32.mrf.mxu1 }
 0x388   : > { %v8625_v26 = vpop.eup %8624  ;;  %8630 = vrcp.f32 %v4977_v22  ;;  %v1812_v48 = vadd.f32 %v12115_v17, %v11441_v21  ;;  %v1651_v56 = vadd.f32 %v12107_v35, %v11082_v31  ;;  %v1901_v42 = vadd.f32 %v12127_v37, %v11436_v27 }
 0x389   : > { %v6897_v7 = vunpack.c.l.bf16 %v6680_v39  ;;  %v6898_v62 = vunpack.c.h.bf16 %v6680_v39  ;;  %v5221_v28 = vpack.c.bf16 %v5218_v3, %v5220_v61  ;;  %8632 = vrcp.f32 %v4978_v19 }
 0x38a   : > { %v8627_v40 = vpop.eup %8626  ;;  %v5856_v9 = vunpack.c.h.bf16 %v12094_v10  ;;  %v3682_v33 = vpack.c.bf16 %v8625_v26, %v8623_v54  ;;  %v12203_v17 = vpack.c.bf16 %v11992_v52, %v1651_v56  ;;  %v12205_v35 = vpack.c.bf16 %v1901_v42, %v1812_v48 }
 0x38b   : > { %v12208_v37 = vadd.f32 %v12156_v11, %v6897_v7  ;;  %v12211_v36 = vadd.f32 %v12159_v63, %v6898_v62  ;;  %v6175_v14 = vunpack.c.l.bf16 %v5221_v28  ;;  %v6176_v50 = vunpack.c.h.bf16 %v5221_v28 }
 0x38c   : > { %v8629_v49 = vpop.eup %8628  ;;  %v5787_v24 = vunpack.c.l.bf16 %v12113_v5  ;;  %v3943_v8 = vunpack.c.l.bf16 %v3682_v33  ;;  %v3944_v4 = vunpack.c.h.bf16 %v3682_v33  ;;  %v2567_v10 = vxor.u32 2147516416, %v12203_v17 }
 0x38d   : > { %v6495_v52 = vmul.f32 %v6175_v14, %v5855_v1  ;;  %v6496_v3 = vmul.f32 %v6176_v50, %v5856_v9  ;;  %v5788_v22 = vunpack.c.h.bf16 %v12113_v5  ;;  %v3648_v11 = vpack.c.bf16 %v8629_v49, %v8627_v40 }
 0x38e   : > { %v8631_v19 = vpop.eup %8630  ;;  %v4263_v54 = vadd.f32 1.0, %v3943_v8  ;;  %v4264_v63 = vadd.f32 1.0, %v3944_v4  ;;  %v2833_v39 = vunpack.c.l.bf16 %v2567_v10  ;;  %v2834_v61 = vunpack.c.h.bf16 %v2567_v10  ;;  %v12220_v4 = vpop.f32.mrf.mxu2 }
 0x38f   : > { %v8633_v26 = vpop.eup %8632  ;;  %v6719_v48 = vpack.c.bf16 %v6496_v3, %v6495_v52  ;;  %v4980_v56 = vmul.f32 %v8631_v19, %v10522_v20  ;;  %v3875_v42 = vunpack.c.l.bf16 %v3648_v11  ;;  %v3876_v7 = vunpack.c.h.bf16 %v3648_v11 }
 0x390   : > { %v4982_v62 = vmul.f32 %v8633_v26, %v10525_v16  ;;  %v4482_v28 = vpack.c.bf16 %v4264_v63, %v4263_v54  ;;  %v3365_v33 = vmul.f32 1.442695, %v2833_v39  ;;  %v3367_v1 = vmul.f32 1.442695, %v2834_v61 }
 0x391   : > { %v6975_v9 = vunpack.c.l.bf16 %v6719_v48  ;;  %v6976_v14 = vunpack.c.h.bf16 %v6719_v48  ;;  %v4195_v5 = vadd.f32 1.0, %v3875_v42  ;;  %v4196_v40 = vadd.f32 1.0, %v3876_v7 }
 0x392   : > { %v4983_v50 = vpack.c.bf16 %v4980_v56, %v4982_v62  ;;  %v5250_v49 = vunpack.c.h.bf16 %v4482_v28  ;;  %v5251_v8 = vunpack.c.l.bf16 %v4482_v28  ;;  %8634 = vpow2.f32 %v3365_v33 }
 0x393   : > { %v12222_v10 = vadd.f32 %v7192_v38, %v6975_v9  ;;  %v12224_v52 = vadd.f32 %v7223_v15, %v6976_v14  ;;  %v4448_v3 = vpack.c.bf16 %v4196_v40, %v4195_v5  ;;  %8636 = vpow2.f32 %v3367_v1  ;;  %v12231_v15 = vpop.f32.mrf.mxu1  ;;  %7875 = vmatmul.msk.bf16.gmra.mxu1 %vm425_vm0, %v10126_v59 }
 0x394   : > { %v6107_v11 = vunpack.c.l.bf16 %v4983_v50  ;;  %v6108_v19 = vunpack.c.h.bf16 %v4983_v50  ;;  %8638 = vrcp.f32 %v5250_v49  ;;  %v2533_v54 = vxor.u32 2147516416, %v12205_v35 }
 0x395   : > { %v12229_v63 = vadd.f32 %v11698_v25, %v14252_v6  ;;  %8640 = vrcp.f32 %v5251_v8  ;;  %v5012_v39 = vunpack.c.h.bf16 %v4448_v3  ;;  %v5013_v61 = vunpack.c.l.bf16 %v4448_v3  ;;  %v12254_v3 = vpop.f32.mrf.mxu0 }
 0x396   : > { %v6427_v26 = vmul.f32 %v6107_v11, %v5787_v24  ;;  %v6428_v48 = vmul.f32 %v6108_v19, %v5788_v22  ;;  %v2765_v38 = vunpack.c.l.bf16 %v2533_v54  ;;  %v2766_v56 = vunpack.c.h.bf16 %v2533_v54  ;;  %14280 = vst [vmem:[#allocation15_spill] sm:$0xff] %v12254_v3 }
 0x397   : > { %8642 = vrcp.f32 %v5012_v39  ;;  %v1814_v42 = vadd.f32 %v12139_v57, %v11441_v21  ;;  %v1654_v25 = vadd.f32 %v12175_v60, %v11082_v31  ;;  %v1903_v7 = vadd.f32 %v12168_v46, %v11436_v27  ;;  %v12263_v39 = vpop.f32.mrf.mxu2  ;;  %7891 = vmatmul.msk.bf16.gmra.mxu2 %vm425_vm0, %v10126_v59 }
 0x398   : > { %v8635_v62 = vpop.eup %8634  ;;  %v6685_v24 = vpack.c.bf16 %v6428_v48, %v6427_v26  ;;  %8644 = vrcp.f32 %v5013_v61  ;;  %v3229_v22 = vmul.f32 1.442695, %v2765_v38  ;;  %v3231_v28 = vmul.f32 1.442695, %v2766_v56 }
 0x399   : > { %v8637_v33 = vpop.eup %8636  ;;  %v12243_v1 = vadd.f32 %v11772_v53, %v14252_v6  ;;  %v5865_v9 = vunpack.c.l.bf16 %v12150_v44  ;;  %v12247_v57 = vpack.c.bf16 %v11996_v2, %v1654_v25  ;;  %v12249_v14 = vpack.c.bf16 %v1903_v7, %v1814_v42 }
 0x39a   : > { %v8639_v60 = vpop.eup %8638  ;;  %v6907_v5 = vunpack.c.l.bf16 %v6685_v24  ;;  %v6908_v46 = vunpack.c.h.bf16 %v6685_v24  ;;  %v3687_v40 = vpack.c.bf16 %v8637_v33, %v8635_v62  ;;  %8646 = vpow2.f32 %v3229_v22 }
 0x39b   : > { %14279 = vst [vmem:[#allocation17_spill] sm:$0xff] %v12243_v1  ;;  %v8641_v50 = vpop.eup %8640  ;;  %v5253_v49 = vmul.f32 %v8639_v60, %v10522_v20  ;;  %v5866_v8 = vunpack.c.h.bf16 %v12150_v44  ;;  %8648 = vpow2.f32 %v3231_v28  ;;  %v2572_v53 = vxor.u32 2147516416, %v12247_v57  ;;  %v12271_v28 = vpop.f32.mrf.mxu3 }
 0x39c   : > { %v12257_v2 = vadd.f32 %v12208_v37, %v6907_v5  ;;  %v12260_v11 = vadd.f32 %v12211_v36, %v6908_v46  ;;  %v5255_v19 = vmul.f32 %v8641_v50, %v10525_v16  ;;  %v3953_v54 = vunpack.c.l.bf16 %v3687_v40 }
 0x39d   : > { %v8643_v44 = vpop.eup %8642  ;;  %v5797_v61 = vunpack.c.l.bf16 %v12153_v32  ;;  %v3954_v26 = vunpack.c.h.bf16 %v3687_v40  ;;  %v2843_v48 = vunpack.c.l.bf16 %v2572_v53  ;;  %v2844_v38 = vunpack.c.h.bf16 %v2572_v53 }
 0x39e   : > { %v8645_v56 = vpop.eup %8644  ;;  %v5256_v37 = vpack.c.bf16 %v5253_v49, %v5255_v19  ;;  %v5015_v42 = vmul.f32 %v8643_v44, %v10522_v20  ;;  %v4273_v36 = vadd.f32 1.0, %v3953_v54  ;;  %v2538_v25 = vxor.u32 2147516416, %v12249_v14 }
 0x39f   : > { %v5017_v7 = vmul.f32 %v8645_v56, %v10525_v16  ;;  %v4274_v62 = vadd.f32 1.0, %v3954_v26  ;;  %v3385_v24 = vmul.f32 1.442695, %v2843_v48  ;;  %v3387_v22 = vmul.f32 1.442695, %v2844_v38 }
 0x3a0   : > { %v8647_v59 = vpop.eup %8646  ;;  %v6185_v33 = vunpack.c.l.bf16 %v5256_v37  ;;  %v6186_v60 = vunpack.c.h.bf16 %v5256_v37  ;;  %v5798_v5 = vunpack.c.h.bf16 %v12153_v32  ;;  %v2775_v46 = vunpack.c.l.bf16 %v2538_v25 }
 0x3a1   : > { %v8649_v40 = vpop.eup %8648  ;;  %v5018_v50 = vpack.c.bf16 %v5015_v42, %v5017_v7  ;;  %v4487_v49 = vpack.c.bf16 %v4274_v62, %v4273_v36  ;;  %8650 = vpow2.f32 %v3385_v24  ;;  %v2776_v53 = vunpack.c.h.bf16 %v2538_v25  ;;  %v12274_v42 = vpop.f32.mrf.mxu0  ;;  %v14281_v36 = vld [vmem:[#allocation7_spill] sm:$0xff] }
 0x3a2   : > { %v6505_v19 = vmul.f32 %v6185_v33, %v5865_v9  ;;  %v6506_v54 = vmul.f32 %v6186_v60, %v5866_v8  ;;  %v3653_v44 = vpack.c.bf16 %v8649_v40, %v8647_v59  ;;  %8652 = vpow2.f32 %v3387_v22  ;;  %7870 = vmatmul.msk.bf16.gmra.mxu0 %vm425_vm0, %v14281_v36 }
 0x3a3   : > { %v6117_v26 = vunpack.c.l.bf16 %v5018_v50  ;;  %v6118_v48 = vunpack.c.h.bf16 %v5018_v50  ;;  %v5285_v38 = vunpack.c.h.bf16 %v4487_v49  ;;  %v5286_v56 = vunpack.c.l.bf16 %v4487_v49 }
 0x3a4   : > { %v6724_v41 = vpack.c.bf16 %v6506_v54, %v6505_v19  ;;  %v3885_v3 = vunpack.c.l.bf16 %v3653_v44  ;;  %v3886_v43 = vunpack.c.h.bf16 %v3653_v44  ;;  %v3249_v37 = vmul.f32 1.442695, %v2775_v46 }
 0x3a5   : > { %v6437_v1 = vmul.f32 %v6117_v26, %v5797_v61  ;;  %v6438_v32 = vmul.f32 %v6118_v48, %v5798_v5  ;;  %8654 = vrcp.f32 %v5285_v38  ;;  %v3251_v13 = vmul.f32 1.442695, %v2776_v53 }
 0x3a6   : > { %v6985_v9 = vunpack.c.l.bf16 %v6724_v41  ;;  %v6986_v8 = vunpack.c.h.bf16 %v6724_v41  ;;  %8656 = vrcp.f32 %v5286_v56  ;;  %v4205_v25 = vadd.f32 1.0, %v3885_v3 }
 0x3a7   : > { %v8651_v7 = vpop.eup %8650  ;;  %v12280_v62 = vadd.f32 %v11793_v12, %v14252_v6  ;;  %v6690_v24 = vpack.c.bf16 %v6438_v32, %v6437_v1  ;;  %v4206_v22 = vadd.f32 1.0, %v3886_v43  ;;  %8658 = vpow2.f32 %v3249_v37  ;;  %v12290_v12 = vpop.f32.mrf.mxu3  ;;  %v14282_v1 = vld [vmem:[#allocation11_spill] sm:$0xff] }
 0x3a8   : > { %v8653_v61 = vpop.eup %8652  ;;  %v12283_v59 = vadd.f32 %v12222_v10, %v6985_v9  ;;  %v12286_v33 = vadd.f32 %v12224_v52, %v6986_v8  ;;  %8660 = vpow2.f32 %v3251_v13  ;;  %v1656_v41 = vadd.f32 %v12197_v18, %v11082_v31  ;;  %7847 = vmatmul.msk.bf16.gmra.mxu3 %vm425_vm0, %v14282_v1 }
 0x3a9   : > { %v6917_v3 = vunpack.c.l.bf16 %v6690_v24  ;;  %v6918_v60 = vunpack.c.h.bf16 %v6690_v24  ;;  %v4453_v5 = vpack.c.bf16 %v4206_v22, %v4205_v25  ;;  %v3692_v46 = vpack.c.bf16 %v8653_v61, %v8651_v7  ;;  %v12320_v61 = vpop.f32.mrf.mxu1 }
 0x3aa   : > { %v12296_v43 = vadd.f32 %v11868_v55, %v14252_v6  ;;  %v5875_v10 = vunpack.c.l.bf16 %v12203_v17  ;;  %v12300_v13 = vpack.c.bf16 %v12037_v30, %v1656_v41  ;;  %v1906_v18 = vadd.f32 %v12220_v4, %v11436_v27 }
 0x3ab   : > { %v8655_v52 = vpop.eup %8654  ;;  %v12305_v40 = vadd.f32 %v12257_v2, %v6917_v3  ;;  %v12308_v50 = vadd.f32 %v12260_v11, %v6918_v60  ;;  %v5047_v49 = vunpack.c.h.bf16 %v4453_v5  ;;  %v5048_v53 = vunpack.c.l.bf16 %v4453_v5 }
 0x3ac   : > { %v8657_v19 = vpop.eup %8656  ;;  %v5288_v55 = vmul.f32 %v8655_v52, %v10522_v20  ;;  %v3963_v54 = vunpack.c.l.bf16 %v3692_v46  ;;  %v3964_v44 = vunpack.c.h.bf16 %v3692_v46  ;;  %v2577_v30 = vxor.u32 2147516416, %v12300_v13 }
 0x3ad   : > { %v8659_v26 = vpop.eup %8658  ;;  %v5290_v48 = vmul.f32 %v8657_v19, %v10525_v16  ;;  %v5876_v4 = vunpack.c.h.bf16 %v12203_v17  ;;  %8662 = vrcp.f32 %v5047_v49  ;;  %v1817_v2 = vadd.f32 %v12215_v58, %v11441_v21 }
 0x3ae   : > { %v8661_v11 = vpop.eup %8660  ;;  %8664 = vrcp.f32 %v5048_v53  ;;  %v4283_v38 = vadd.f32 1.0, %v3963_v54  ;;  %v4284_v56 = vadd.f32 1.0, %v3964_v44  ;;  %v2853_v37 = vunpack.c.l.bf16 %v2577_v30 }
 0x3af   : > { %v5291_v32 = vpack.c.bf16 %v5288_v55, %v5290_v48  ;;  %v3658_v9 = vpack.c.bf16 %v8661_v11, %v8659_v26  ;;  %v2854_v8 = vunpack.c.h.bf16 %v2577_v30  ;;  %v12316_v25 = vpack.c.bf16 %v1906_v18, %v1817_v2 }
 0x3b0   : > { %v5807_v7 = vunpack.c.l.bf16 %v12205_v35  ;;  %v5808_v24 = vunpack.c.h.bf16 %v12205_v35  ;;  %v4492_v22 = vpack.c.bf16 %v4284_v56, %v4283_v38  ;;  %v3405_v17 = vmul.f32 1.442695, %v2853_v37  ;;  %v12329_v38 = vpop.f32.mrf.mxu2 }
 0x3b1   : > { %v6195_v41 = vunpack.c.l.bf16 %v5291_v32  ;;  %v6196_v58 = vunpack.c.h.bf16 %v5291_v32  ;;  %v3895_v3 = vunpack.c.l.bf16 %v3658_v9  ;;  %v3896_v60 = vunpack.c.h.bf16 %v3658_v9 }
 0x3b2   : > { %v5320_v5 = vunpack.c.h.bf16 %v4492_v22  ;;  %v5321_v46 = vunpack.c.l.bf16 %v4492_v22  ;;  %8666 = vpow2.f32 %v3405_v17  ;;  %v3407_v52 = vmul.f32 1.442695, %v2854_v8 }
 0x3b3   : > { %v8663_v49 = vpop.eup %8662  ;;  %v6515_v53 = vmul.f32 %v6195_v41, %v5875_v10  ;;  %v6516_v18 = vmul.f32 %v6196_v58, %v5876_v4  ;;  %v4215_v19 = vadd.f32 1.0, %v3895_v3  ;;  %v4216_v55 = vadd.f32 1.0, %v3896_v60 }
 0x3b4   : > { %v8665_v54 = vpop.eup %8664  ;;  %v5050_v35 = vmul.f32 %v8663_v49, %v10522_v20  ;;  %8668 = vrcp.f32 %v5320_v5  ;;  %v2543_v44 = vxor.u32 2147516416, %v12316_v25  ;;  %v1659_v30 = vadd.f32 %v12271_v28, %v11082_v31 }
 0x3b5   : > { %v6729_v26 = vpack.c.bf16 %v6516_v18, %v6515_v53  ;;  %v5052_v48 = vmul.f32 %v8665_v54, %v10525_v16  ;;  %8670 = vrcp.f32 %v5321_v46  ;;  %v4458_v2 = vpack.c.bf16 %v4216_v55, %v4215_v19  ;;  %v12344_v53 = vpop.f32.mrf.mxu1  ;;  %7876 = vmatmul.msk.bf16.gmra.mxu1 %vm425_vm0, %v14266_v34 }
 0x3b6   : > { %8672 = vpow2.f32 %v3407_v52  ;;  %v2785_v11 = vunpack.c.l.bf16 %v2543_v44  ;;  %v2786_v10 = vunpack.c.h.bf16 %v2543_v44  ;;  %v1908_v4 = vadd.f32 %v12263_v39, %v11436_v27 }
 0x3b7   : > { %v6995_v56 = vunpack.c.l.bf16 %v6729_v26  ;;  %v6996_v37 = vunpack.c.h.bf16 %v6729_v26  ;;  %v5053_v32 = vpack.c.bf16 %v5050_v35, %v5052_v48  ;;  %v5082_v9 = vunpack.c.h.bf16 %v4458_v2 }
 0x3b8   : > { %v8667_v8 = vpop.eup %8666  ;;  %v5083_v22 = vunpack.c.l.bf16 %v4458_v2  ;;  %v3269_v28 = vmul.f32 1.442695, %v2785_v11  ;;  %v3271_v17 = vmul.f32 1.442695, %v2786_v10  ;;  %v12332_v41 = vpack.c.bf16 %v12053_v45, %v1659_v30 }
 0x3b9   : > { %v12335_v58 = vadd.f32 %v12283_v59, %v6995_v56  ;;  %v12338_v3 = vadd.f32 %v12286_v33, %v6996_v37  ;;  %v6127_v39 = vunpack.c.l.bf16 %v5053_v32  ;;  %v6128_v60 = vunpack.c.h.bf16 %v5053_v32 }
 0x3ba   : > { %v8669_v5 = vpop.eup %8668  ;;  %v5885_v46 = vunpack.c.l.bf16 %v12247_v57  ;;  %8674 = vrcp.f32 %v5082_v9  ;;  %v1819_v52 = vadd.f32 %v12231_v15, %v11441_v21  ;;  %v2582_v49 = vxor.u32 2147516416, %v12332_v41 }
 0x3bb   : > { %v8671_v45 = vpop.eup %8670  ;;  %v6447_v59 = vmul.f32 %v6127_v39, %v5807_v7  ;;  %v6448_v33 = vmul.f32 %v6128_v60, %v5808_v24  ;;  %v5323_v18 = vmul.f32 %v8669_v5, %v10522_v20  ;;  %8676 = vrcp.f32 %v5083_v22 }
 0x3bc   : > { %v8673_v19 = vpop.eup %8672  ;;  %v5325_v55 = vmul.f32 %v8671_v45, %v10525_v16  ;;  %8678 = vpow2.f32 %v3269_v28  ;;  %v2863_v54 = vunpack.c.l.bf16 %v2582_v49  ;;  %v2864_v35 = vunpack.c.h.bf16 %v2582_v49  ;;  %v12354_v28 = vpop.f32.mrf.mxu3 }
 0x3bd   : > { %v6695_v15 = vpack.c.bf16 %v6448_v33, %v6447_v59  ;;  %v3697_v44 = vpack.c.bf16 %v8673_v19, %v8667_v8  ;;  %8680 = vpow2.f32 %v3271_v17  ;;  %v12350_v30 = vpack.c.bf16 %v1908_v4, %v1819_v52  ;;  %v12356_v8 = vpop.f32.mrf.mxu2  ;;  %7892 = vmatmul.msk.bf16.gmra.mxu2 %vm425_vm0, %v14266_v34 }
 0x3be   : > { %v5326_v26 = vpack.c.bf16 %v5323_v18, %v5325_v55  ;;  %v5886_v48 = vunpack.c.h.bf16 %v12247_v57  ;;  %v3425_v2 = vmul.f32 1.442695, %v2863_v54  ;;  %v3427_v7 = vmul.f32 1.442695, %v2864_v35 }
 0x3bf   : > { %v6927_v24 = vunpack.c.l.bf16 %v6695_v15  ;;  %v6928_v11 = vunpack.c.h.bf16 %v6695_v15  ;;  %v3973_v10 = vunpack.c.l.bf16 %v3697_v44  ;;  %v3974_v56 = vunpack.c.h.bf16 %v3697_v44 }
 0x3c0   : > { %v8675_v37 = vpop.eup %8674  ;;  %v6205_v32 = vunpack.c.l.bf16 %v5326_v26  ;;  %v6206_v9 = vunpack.c.h.bf16 %v5326_v26  ;;  %8682 = vpow2.f32 %v3425_v2  ;;  %v2548_v22 = vxor.u32 2147516416, %v12350_v30 }
 0x3c1   : > { %v8677_v57 = vpop.eup %8676  ;;  %v7250_v4 = vadd.f32 %v12305_v40, %v6927_v24  ;;  %v7281_v17 = vadd.f32 %v12308_v50, %v6928_v11  ;;  %v5085_v39 = vmul.f32 %v8675_v37, %v10522_v20  ;;  %v4293_v60 = vadd.f32 1.0, %v3973_v10 }
 0x3c2   : > { %v8679_v5 = vpop.eup %8678  ;;  %v6525_v52 = vmul.f32 %v6205_v32, %v5885_v46  ;;  %v6526_v49 = vmul.f32 %v6206_v9, %v5886_v48  ;;  %v5087_v45 = vmul.f32 %v8677_v57, %v10525_v16  ;;  %v4294_v59 = vadd.f32 1.0, %v3974_v56 }
 0x3c3   : > { %v8681_v33 = vpop.eup %8680  ;;  %v12366_v18 = vadd.f32 %v11900_v29, %v14252_v6  ;;  %8684 = vpow2.f32 %v3427_v7  ;;  %v2795_v34 = vunpack.c.l.bf16 %v2548_v22  ;;  %v2796_v19 = vunpack.c.h.bf16 %v2548_v22 }
 0x3c4   : > { %v6734_v40 = vpack.c.bf16 %v6526_v49, %v6525_v52  ;;  %v5088_v55 = vpack.c.bf16 %v5085_v39, %v5087_v45  ;;  %v4497_v50 = vpack.c.bf16 %v4294_v59, %v4293_v60  ;;  %v3663_v54 = vpack.c.bf16 %v8681_v33, %v8679_v5  ;;  %v12379_v49 = vpop.f32.mrf.mxu3 }
 0x3c5   : > { %v5817_v35 = vunpack.c.l.bf16 %v12249_v14  ;;  %v5818_v46 = vunpack.c.h.bf16 %v12249_v14  ;;  %v3289_v15 = vmul.f32 1.442695, %v2795_v34  ;;  %v3291_v44 = vmul.f32 1.442695, %v2796_v19 }
 0x3c6   : > { %v8683_v26 = vpop.eup %8682  ;;  %v7005_v48 = vunpack.c.l.bf16 %v6734_v40  ;;  %v7006_v2 = vunpack.c.h.bf16 %v6734_v40  ;;  %v6137_v24 = vunpack.c.l.bf16 %v5088_v55  ;;  %v6138_v11 = vunpack.c.h.bf16 %v5088_v55 }
 0x3c7   : > { %v5355_v6 = vunpack.c.h.bf16 %v4497_v50  ;;  %v5356_v29 = vunpack.c.l.bf16 %v4497_v50  ;;  %v3905_v7 = vunpack.c.l.bf16 %v3663_v54  ;;  %v3906_v10 = vunpack.c.h.bf16 %v3663_v54 }
 0x3c8   : > { %v12371_v56 = vadd.f32 %v12335_v58, %v7005_v48  ;;  %v12374_v37 = vadd.f32 %v12338_v3, %v7006_v2  ;;  %v6457_v32 = vmul.f32 %v6137_v24, %v5817_v35  ;;  %v6458_v9 = vmul.f32 %v6138_v11, %v5818_v46  ;;  %v14283_v58 = vld [vmem:[#allocation12_spill] sm:$0xff] }
 0x3c9   : > { %v8685_v14 = vpop.eup %8684  ;;  %8686 = vrcp.f32 %v5355_v6  ;;  %v4225_v22 = vadd.f32 1.0, %v3905_v7  ;;  %v4226_v57 = vadd.f32 1.0, %v3906_v10  ;;  %v1661_v39 = vadd.f32 %v12290_v12, %v11082_v31  ;;  %7848 = vmatmul.msk.bf16.gmra.mxu3 %vm425_vm0, %v14283_v58 }
 0x3ca   : > { %v6700_v60 = vpack.c.bf16 %v6458_v9, %v6457_v32  ;;  %8688 = vrcp.f32 %v5356_v29  ;;  %v5895_v5 = vunpack.c.l.bf16 %v12300_v13  ;;  %v3702_v52 = vpack.c.bf16 %v8685_v14, %v8683_v26 }
 0x3cb   : > { %v4463_v3 = vpack.c.bf16 %v4226_v57, %v4225_v22  ;;  %8690 = vpow2.f32 %v3289_v15  ;;  %v12384_v45 = vpack.c.bf16 %v12137_v51, %v1661_v39  ;;  %v1911_v59 = vadd.f32 %v12329_v38, %v11436_v27 }
 0x3cc   : > { %v6937_v33 = vunpack.c.l.bf16 %v6700_v60  ;;  %v6938_v12 = vunpack.c.h.bf16 %v6700_v60  ;;  %v3983_v34 = vunpack.c.l.bf16 %v3702_v52  ;;  %v3984_v19 = vunpack.c.h.bf16 %v3702_v52 }
 0x3cd   : > { %v5117_v40 = vunpack.c.h.bf16 %v4463_v3  ;;  %v5118_v55 = vunpack.c.l.bf16 %v4463_v3  ;;  %8692 = vpow2.f32 %v3291_v44  ;;  %v2587_v50 = vxor.u32 2147516416, %v12384_v45 }
 0x3ce   : > { %v12389_v54 = vadd.f32 %v7250_v4, %v6937_v33  ;;  %v12391_v35 = vadd.f32 %v7281_v17, %v6938_v12  ;;  %v4303_v46 = vadd.f32 1.0, %v3983_v34  ;;  %v4304_v15 = vadd.f32 1.0, %v3984_v19  ;;  %v12397_v4 = vpop.f32.mrf.mxu1 }
 0x3cf   : > { %v8687_v51 = vpop.eup %8686  ;;  %8694 = vrcp.f32 %v5117_v40  ;;  %v1822_v38 = vadd.f32 %v12320_v61, %v11441_v21  ;;  %v2873_v26 = vunpack.c.l.bf16 %v2587_v50  ;;  %v2874_v48 = vunpack.c.h.bf16 %v2587_v50 }
 0x3d0   : > { %v8689_v2 = vpop.eup %8688  ;;  %v5358_v24 = vmul.f32 %v8687_v51, %v10522_v20  ;;  %v5896_v44 = vunpack.c.h.bf16 %v12300_v13  ;;  %8696 = vrcp.f32 %v5118_v55  ;;  %v4502_v11 = vpack.c.bf16 %v4304_v15, %v4303_v46  ;;  %v12413_v51 = vpop.f32.mrf.mxu2 }
 0x3d1   : > { %v8691_v17 = vpop.eup %8690  ;;  %v5360_v6 = vmul.f32 %v8689_v2, %v10525_v16  ;;  %v5827_v29 = vunpack.c.l.bf16 %v12316_v25  ;;  %v3445_v7 = vmul.f32 1.442695, %v2873_v26  ;;  %v12401_v10 = vpack.c.bf16 %v1911_v59, %v1822_v38 }
 0x3d2   : > { %v5390_v61 = vunpack.c.h.bf16 %v4502_v11  ;;  %v5391_v32 = vunpack.c.l.bf16 %v4502_v11  ;;  %v3447_v9 = vmul.f32 1.442695, %v2874_v48  ;;  %v1664_v14 = vadd.f32 %v12354_v28, %v11082_v31 }
 0x3d3   : > { %v8693_v22 = vpop.eup %8692  ;;  %v5361_v13 = vpack.c.bf16 %v5358_v24, %v5360_v6  ;;  %v5828_v57 = vunpack.c.h.bf16 %v12316_v25  ;;  %8698 = vpow2.f32 %v3445_v7  ;;  %v2553_v39 = vxor.u32 2147516416, %v12401_v10 }
 0x3d4   : > { %8700 = vrcp.f32 %v5390_v61  ;;  %v5905_v60 = vunpack.c.l.bf16 %v12332_v41  ;;  %v3668_v52 = vpack.c.bf16 %v8693_v22, %v8691_v17  ;;  %v12409_v3 = vpack.c.bf16 %v12180_v0, %v1664_v14 }
 0x3d5   : > { %v8695_v59 = vpop.eup %8694  ;;  %v6215_v33 = vunpack.c.l.bf16 %v5361_v13  ;;  %v6216_v12 = vunpack.c.h.bf16 %v5361_v13  ;;  %8702 = vrcp.f32 %v5391_v32  ;;  %v2805_v34 = vunpack.c.l.bf16 %v2553_v39 }
 0x3d6   : > { %v8697_v28 = vpop.eup %8696  ;;  %v5120_v19 = vmul.f32 %v8695_v59, %v10522_v20  ;;  %v3915_v40 = vunpack.c.l.bf16 %v3668_v52  ;;  %v3916_v25 = vunpack.c.h.bf16 %v3668_v52  ;;  %8704 = vpow2.f32 %v3447_v9  ;;  %v12417_v32 = vpop.f32.mrf.mxu1  ;;  %7877 = vmatmul.msk.bf16.gmra.mxu1 %vm425_vm0, %v14272_v47 }
 0x3d7   : > { %v6535_v55 = vmul.f32 %v6215_v33, %v5895_v5  ;;  %v6536_v50 = vmul.f32 %v6216_v12, %v5896_v44  ;;  %v5122_v46 = vmul.f32 %v8697_v28, %v10525_v16  ;;  %v2806_v15 = vunpack.c.h.bf16 %v2553_v39 }
 0x3d8   : > { %v4235_v0 = vadd.f32 1.0, %v3915_v40  ;;  %v4236_v38 = vadd.f32 1.0, %v3916_v25  ;;  %v3309_v26 = vmul.f32 1.442695, %v2805_v34  ;;  %v2592_v48 = vxor.u32 2147516416, %v12409_v3 }
 0x3d9   : > { %v8699_v2 = vpop.eup %8698  ;;  %v6739_v24 = vpack.c.bf16 %v6536_v50, %v6535_v55  ;;  %v5123_v11 = vpack.c.bf16 %v5120_v19, %v5122_v46  ;;  %v5906_v17 = vunpack.c.h.bf16 %v12332_v41  ;;  %v3311_v6 = vmul.f32 1.442695, %v2806_v15 }
 0x3da   : > { %v8701_v7 = vpop.eup %8700  ;;  %v4468_v61 = vpack.c.bf16 %v4236_v38, %v4235_v0  ;;  %8706 = vpow2.f32 %v3309_v26  ;;  %v2883_v5 = vunpack.c.l.bf16 %v2592_v48  ;;  %v2884_v44 = vunpack.c.h.bf16 %v2592_v48 }
 0x3db   : > { %v8703_v9 = vpop.eup %8702  ;;  %v7015_v14 = vunpack.c.l.bf16 %v6739_v24  ;;  %v7016_v22 = vunpack.c.h.bf16 %v6739_v24  ;;  %v6147_v13 = vunpack.c.l.bf16 %v5123_v11  ;;  %v6148_v39 = vunpack.c.h.bf16 %v5123_v11 }
 0x3dc   : > { %v8705_v52 = vpop.eup %8704  ;;  %v5393_v59 = vmul.f32 %v8701_v7, %v10522_v20  ;;  %v5395_v33 = vmul.f32 %v8703_v9, %v10525_v16  ;;  %v5152_v12 = vunpack.c.h.bf16 %v4468_v61  ;;  %v5153_v34 = vunpack.c.l.bf16 %v4468_v61 }
 0x3dd   : > { %v7197_v28 = vadd.f32 %v12371_v56, %v7015_v14  ;;  %v7228_v19 = vadd.f32 %v12374_v37, %v7016_v22  ;;  %v6467_v40 = vmul.f32 %v6147_v13, %v5827_v29  ;;  %v6468_v25 = vmul.f32 %v6148_v39, %v5828_v57  ;;  %v12429_v29 = vpop.f32.mrf.mxu2  ;;  %7893 = vmatmul.msk.bf16.gmra.mxu2 %vm425_vm0, %v14272_v47  ;;  %v12448_v47 = vld [vmem:[%s14025_s4] sm:$0xff] }
 0x3de   : > { %v5396_v55 = vpack.c.bf16 %v5393_v59, %v5395_v33  ;;  %8708 = vrcp.f32 %v5152_v12  ;;  %v3707_v50 = vpack.c.bf16 %v8705_v52, %v8699_v2  ;;  %v1824_v46 = vadd.f32 %v12344_v53, %v11441_v21 }
 0x3df   : > { %v6705_v15 = vpack.c.bf16 %v6468_v25, %v6467_v40  ;;  %8710 = vrcp.f32 %v5153_v34  ;;  %v3465_v0 = vmul.f32 1.442695, %v2883_v5  ;;  %v3467_v38 = vmul.f32 1.442695, %v2884_v44 }
 0x3e0   : > { %v8707_v26 = vpop.eup %8706  ;;  %v6225_v48 = vunpack.c.l.bf16 %v5396_v55  ;;  %v6226_v24 = vunpack.c.h.bf16 %v5396_v55  ;;  %v3993_v11 = vunpack.c.l.bf16 %v3707_v50  ;;  %v3994_v7 = vunpack.c.h.bf16 %v3707_v50 }
 0x3e1   : > { %v6947_v56 = vunpack.c.l.bf16 %v6705_v15  ;;  %v6948_v61 = vunpack.c.h.bf16 %v6705_v15  ;;  %8712 = vpow2.f32 %v3311_v6  ;;  %v1913_v37 = vadd.f32 %v12356_v8, %v11436_v27  ;;  %v12443_v8 = vpop.f32.mrf.mxu3 }
 0x3e2   : > { %v6545_v53 = vmul.f32 %v6225_v48, %v5905_v60  ;;  %v6546_v57 = vmul.f32 %v6226_v24, %v5906_v17  ;;  %v4313_v2 = vadd.f32 1.0, %v3993_v11  ;;  %v4314_v5 = vadd.f32 1.0, %v3994_v7 }
 0x3e3   : > { %v12436_v44 = vadd.f32 %v12389_v54, %v6947_v56  ;;  %v12439_v9 = vadd.f32 %v12391_v35, %v6948_v61  ;;  %8714 = vpow2.f32 %v3465_v0  ;;  %v12441_v6 = vpack.c.bf16 %v1913_v37, %v1824_v46 }
 0x3e4   : > { %v8709_v14 = vpop.eup %8708  ;;  %v12451_v41 = vperm.slane %v12448_v47, 7  ;;  %v6744_v60 = vpack.c.bf16 %v6546_v57, %v6545_v53  ;;  %v4507_v54 = vpack.c.bf16 %v4314_v5, %v4313_v2  ;;  %8716 = vpow2.f32 %v3467_v38 }
 0x3e5   : > { %v8711_v17 = vpop.eup %8710  ;;  %v5155_v35 = vmul.f32 %v8709_v14, %v10522_v20  ;;  %v5837_v22 = vunpack.c.l.bf16 %v12350_v30  ;;  %v5838_v13 = vunpack.c.h.bf16 %v12350_v30  ;;  %v2558_v39 = vxor.u32 2147516416, %v12441_v6 }
 0x3e6   : > { %v7025_v52 = vunpack.c.l.bf16 %v6744_v60  ;;  %v7026_v59 = vunpack.c.h.bf16 %v6744_v60  ;;  %v5157_v33 = vmul.f32 %v8711_v17, %v10525_v16  ;;  %v5425_v12 = vunpack.c.h.bf16 %v4507_v54 }
 0x3e7   : > { %v8713_v34 = vpop.eup %8712  ;;  %v5426_v40 = vunpack.c.l.bf16 %v4507_v54  ;;  %v5915_v25 = vunpack.c.l.bf16 %v12384_v45  ;;  %v2815_v55 = vunpack.c.l.bf16 %v2558_v39  ;;  %v2816_v50 = vunpack.c.h.bf16 %v2558_v39 }
 0x3e8   : > { %v12459_v46 = vadd.f32 %v7197_v28, %v7025_v52  ;;  %v12461_v15 = vadd.f32 %v7228_v19, %v7026_v59  ;;  %v5158_v0 = vpack.c.bf16 %v5155_v35, %v5157_v33  ;;  %8718 = vrcp.f32 %v5425_v12  ;;  %v14284_v35 = vld [vmem:[#allocation13_spill] sm:$0xff] }
 0x3e9   : > { %v8715_v30 = vpop.eup %8714  ;;  %8720 = vrcp.f32 %v5426_v40  ;;  %v3673_v38 = vpack.c.bf16 %v8713_v34, %v8707_v26  ;;  %v3329_v48 = vmul.f32 1.442695, %v2815_v55  ;;  %v3331_v24 = vmul.f32 1.442695, %v2816_v50  ;;  %v12469_v17 = vpop.f32.mrf.mxu3  ;;  %7849 = vmatmul.msk.bf16.gmra.mxu3 %vm425_vm0, %v14284_v35 }
 0x3ea   : > { %v8717_v11 = vpop.eup %8716  ;;  %v6157_v7 = vunpack.c.l.bf16 %v5158_v0  ;;  %v6158_v56 = vunpack.c.h.bf16 %v5158_v0  ;;  %v5916_v61 = vunpack.c.h.bf16 %v12384_v45  ;;  %v1666_v37 = vadd.f32 %v12379_v49, %v11082_v31 }
 0x3eb   : > { %v3925_v53 = vunpack.c.l.bf16 %v3673_v38  ;;  %v3926_v28 = vunpack.c.h.bf16 %v3673_v38  ;;  %v3712_v57 = vpack.c.bf16 %v8717_v11, %v8715_v30  ;;  %8722 = vpow2.f32 %v3329_v48 }
 0x3ec   : > { %v6477_v19 = vmul.f32 %v6157_v7, %v5837_v22  ;;  %v6478_v2 = vmul.f32 %v6158_v56, %v5838_v13  ;;  %8724 = vpow2.f32 %v3331_v24  ;;  %v12467_v5 = vpack.c.bf16 %v12229_v63, %v1666_v37  ;;  %v12478_v13 = vpop.f32.mrf.mxu1 }
 0x3ed   : > { %v4245_v26 = vadd.f32 1.0, %v3925_v53  ;;  %v4246_v14 = vadd.f32 1.0, %v3926_v28  ;;  %v4003_v60 = vunpack.c.l.bf16 %v3712_v57  ;;  %v4004_v54 = vunpack.c.h.bf16 %v3712_v57 }
 0x3ee   : > { %v8719_v49 = vpop.eup %8718  ;;  %v6710_v39 = vpack.c.bf16 %v6478_v2, %v6477_v19  ;;  %v1827_v52 = vadd.f32 %v12397_v4, %v11441_v21  ;;  %v2597_v22 = vxor.u32 2147516416, %v12467_v5  ;;  %v1916_v63 = vadd.f32 %v12413_v51, %v11436_v27 }
 0x3ef   : > { %v8721_v59 = vpop.eup %8720  ;;  %v5428_v33 = vmul.f32 %v8719_v49, %v10522_v20  ;;  %v4473_v12 = vpack.c.bf16 %v4246_v14, %v4245_v26  ;;  %v4323_v34 = vadd.f32 1.0, %v4003_v60  ;;  %v4324_v40 = vadd.f32 1.0, %v4004_v54 }
 0x3f0   : > { %v6957_v55 = vunpack.c.l.bf16 %v6710_v39  ;;  %v6958_v50 = vunpack.c.h.bf16 %v6710_v39  ;;  %v5430_v0 = vmul.f32 %v8721_v59, %v10525_v16  ;;  %v2893_v30 = vunpack.c.l.bf16 %v2597_v22 }
 0x3f1   : > { %v8723_v38 = vpop.eup %8722  ;;  %v5187_v4 = vunpack.c.h.bf16 %v4473_v12  ;;  %v5188_v48 = vunpack.c.l.bf16 %v4473_v12  ;;  %v4512_v24 = vpack.c.bf16 %v4324_v40, %v4323_v34  ;;  %v2894_v11 = vunpack.c.h.bf16 %v2597_v22  ;;  %v14285_v12 = vld [vmem:[#allocation26_spill] sm:$0xff] }
 0x3f2   : > { %v8725_v7 = vpop.eup %8724  ;;  %v12483_v51 = vadd.f32 %v12436_v44, %v6957_v55  ;;  %v12486_v56 = vadd.f32 %v12439_v9, %v6958_v50  ;;  %v5431_v37 = vpack.c.bf16 %v5428_v33, %v5430_v0  ;;  %v3485_v53 = vmul.f32 1.442695, %v2893_v30  ;;  %v14286_v40 = vld [vmem:[#allocation10_spill] sm:$0xff] }
 0x3f3   : > { %8726 = vrcp.f32 %v5187_v4  ;;  %v5460_v28 = vunpack.c.h.bf16 %v4512_v24  ;;  %v5461_v57 = vunpack.c.l.bf16 %v4512_v24  ;;  %v3678_v19 = vpack.c.bf16 %v8725_v7, %v8723_v38 }
 0x3f4   : > { %v6235_v2 = vunpack.c.l.bf16 %v5431_v37  ;;  %v6236_v26 = vunpack.c.h.bf16 %v5431_v37  ;;  %8728 = vrcp.f32 %v5188_v48  ;;  %v3487_v14 = vmul.f32 1.442695, %v2894_v11 }
 0x3f5   : > { %8730 = vrcp.f32 %v5460_v28  ;;  %v3935_v60 = vunpack.c.l.bf16 %v3678_v19  ;;  %v3936_v54 = vunpack.c.h.bf16 %v3678_v19  ;;  %v12488_v49 = vpack.c.bf16 %v1916_v63, %v1827_v52 }
 0x3f6   : > { %v12492_v44 = vadd.f32 %v11965_v23, %v12451_v41  ;;  %v6555_v9 = vmul.f32 %v6235_v2, %v5915_v25  ;;  %v6556_v39 = vmul.f32 %v6236_v26, %v5916_v61  ;;  %8732 = vrcp.f32 %v5461_v57  ;;  %v12502_v23 = vpop.f32.mrf.mxu1  ;;  %7878 = vmatmul.msk.bf16.gmra.mxu1 %vm425_vm0, %v14286_v40  ;;  %v12515_v26 = vpop.f32.mrf.mxu2 }
 0x3f7   : > { %v4255_v22 = vadd.f32 1.0, %v3935_v60  ;;  %v4256_v59 = vadd.f32 1.0, %v3936_v54  ;;  %8734 = vpow2.f32 %v3485_v53  ;;  %v2563_v33 = vxor.u32 2147516416, %v12488_v49  ;;  %v14287_v54 = vld [vmem:[#allocation17_spill] sm:$0xff] }
 0x3f8   : > { %v12499_v34 = vadd.f32 %v14285_v12, %v12451_v41  ;;  %v6749_v52 = vpack.c.bf16 %v6556_v39, %v6555_v9  ;;  %v5847_v63 = vunpack.c.l.bf16 %v12401_v10  ;;  %8736 = vpow2.f32 %v3487_v14 }
 0x3f9   : > { %v8727_v45 = vpop.eup %8726  ;;  %v5848_v25 = vunpack.c.h.bf16 %v12401_v10  ;;  %v4478_v61 = vpack.c.bf16 %v4256_v59, %v4255_v22  ;;  %v2825_v55 = vunpack.c.l.bf16 %v2563_v33  ;;  %v2826_v50 = vunpack.c.h.bf16 %v2563_v33 }
 0x3fa   : > { %v8729_v0 = vpop.eup %8728  ;;  %v7035_v30 = vunpack.c.l.bf16 %v6749_v52  ;;  %v7036_v38 = vunpack.c.h.bf16 %v6749_v52  ;;  %v5190_v4 = vmul.f32 %v8727_v45, %v10522_v20  ;;  %v1669_v48 = vadd.f32 %v12443_v8, %v11082_v31 }
 0x3fb   : > { %v8731_v24 = vpop.eup %8730  ;;  %v5192_v11 = vmul.f32 %v8729_v0, %v10525_v16  ;;  %v5925_v7 = vunpack.c.l.bf16 %v12409_v3  ;;  %v5222_v37 = vunpack.c.h.bf16 %v4478_v61  ;;  %v5223_v53 = vunpack.c.l.bf16 %v4478_v61 }
 0x3fc   : > { %v8733_v28 = vpop.eup %8732  ;;  %v7199_v10 = vadd.f32 %v12459_v46, %v7035_v30  ;;  %v7230_v57 = vadd.f32 %v12461_v15, %v7036_v38  ;;  %v5463_v19 = vmul.f32 %v8731_v24, %v10522_v20  ;;  %v3349_v2 = vmul.f32 1.442695, %v2825_v55 }
 0x3fd   : > { %v8735_v14 = vpop.eup %8734  ;;  %v5193_v60 = vpack.c.bf16 %v5190_v4, %v5192_v11  ;;  %v5465_v8 = vmul.f32 %v8733_v28, %v10525_v16  ;;  %8738 = vrcp.f32 %v5222_v37  ;;  %v12519_v9 = vpack.c.bf16 %v14287_v54, %v1669_v48 }
 0x3fe   : > { %v8737_v39 = vpop.eup %8736  ;;  %v5926_v22 = vunpack.c.h.bf16 %v12409_v3  ;;  %8740 = vrcp.f32 %v5223_v53  ;;  %v5857_v46 = vunpack.c.l.bf16 %v12441_v6  ;;  %v3351_v15 = vmul.f32 1.442695, %v2826_v50 }
 0x3ff   : > { %v6167_v59 = vunpack.c.l.bf16 %v5193_v60  ;;  %v6168_v33 = vunpack.c.h.bf16 %v5193_v60  ;;  %v5466_v12 = vpack.c.bf16 %v5463_v19, %v5465_v8  ;;  %v3717_v52 = vpack.c.bf16 %v8737_v39, %v8735_v14 }
 0x400   : > { %8742 = vpow2.f32 %v3349_v2  ;;  %v1829_v45 = vadd.f32 %v12417_v32, %v11441_v21  ;;  %v2602_v61 = vxor.u32 2147516416, %v12519_v9  ;;  %v1918_v55 = vadd.f32 %v12429_v29, %v11436_v27 }
 0x401   : > { %v6487_v0 = vmul.f32 %v6167_v59, %v5847_v63  ;;  %v6488_v30 = vmul.f32 %v6168_v33, %v5848_v25  ;;  %v6245_v3 = vunpack.c.l.bf16 %v5466_v12  ;;  %v6246_v38 = vunpack.c.h.bf16 %v5466_v12 }
 0x402   : > { %v4013_v4 = vunpack.c.l.bf16 %v3717_v52  ;;  %v4014_v48 = vunpack.c.h.bf16 %v3717_v52  ;;  %8744 = vpow2.f32 %v3351_v15  ;;  %v2903_v50 = vunpack.c.l.bf16 %v2602_v61 }
 0x403   : > { %v8739_v24 = vpop.eup %8738  ;;  %v6715_v11 = vpack.c.bf16 %v6488_v30, %v6487_v0  ;;  %v6565_v37 = vmul.f32 %v6245_v3, %v5925_v7  ;;  %v6566_v53 = vmul.f32 %v6246_v38, %v5926_v22  ;;  %v2904_v28 = vunpack.c.h.bf16 %v2602_v61  ;;  %v12532_v7 = vpop.f32.mrf.mxu2  ;;  %7894 = vmatmul.msk.bf16.gmra.mxu2 %vm425_vm0, %v14286_v40 }
 0x404   : > { %v8741_v19 = vpop.eup %8740  ;;  %v5225_v32 = vmul.f32 %v8739_v24, %v10522_v20  ;;  %v4333_v2 = vadd.f32 1.0, %v4013_v4  ;;  %v4334_v14 = vadd.f32 1.0, %v4014_v48  ;;  %v3505_v60 = vmul.f32 1.442695, %v2903_v50  ;;  %v12538_v61 = vpop.f32.mrf.mxu3 }
 0x405   : > { %v6967_v29 = vunpack.c.l.bf16 %v6715_v11  ;;  %v6968_v63 = vunpack.c.h.bf16 %v6715_v11  ;;  %v6754_v25 = vpack.c.bf16 %v6566_v53, %v6565_v37  ;;  %v5227_v8 = vmul.f32 %v8741_v19, %v10525_v16  ;;  %v14288_v53 = vld [vmem:[#allocation27_spill] sm:$0xff] }
 0x406   : > { %v8743_v54 = vpop.eup %8742  ;;  %v4517_v39 = vpack.c.bf16 %v4334_v14, %v4333_v2  ;;  %8746 = vpow2.f32 %v3505_v60  ;;  %v3507_v15 = vmul.f32 1.442695, %v2904_v28  ;;  %v12530_v59 = vpack.c.bf16 %v1918_v55, %v1829_v45 }
 0x407   : > { %v7254_v22 = vadd.f32 %v12483_v51, %v6967_v29  ;;  %v7285_v33 = vadd.f32 %v12486_v56, %v6968_v63  ;;  %v7045_v12 = vunpack.c.l.bf16 %v6754_v25  ;;  %v7046_v52 = vunpack.c.h.bf16 %v6754_v25 }
 0x408   : > { %v8745_v0 = vpop.eup %8744  ;;  %v5228_v30 = vpack.c.bf16 %v5225_v32, %v5227_v8  ;;  %v5495_v3 = vunpack.c.h.bf16 %v4517_v39  ;;  %v5496_v38 = vunpack.c.l.bf16 %v4517_v39  ;;  %8748 = vpow2.f32 %v3507_v15 }
 0x409   : > { %v12540_v45 = vadd.f32 %v7199_v10, %v7045_v12  ;;  %v12542_v55 = vadd.f32 %v7230_v57, %v7046_v52  ;;  %v3683_v4 = vpack.c.bf16 %v8745_v0, %v8743_v54  ;;  %v2568_v40 = vxor.u32 2147516416, %v12530_v59 }
 0x40a   : > { %v5858_v51 = vunpack.c.h.bf16 %v12441_v6  ;;  %v6177_v48 = vunpack.c.l.bf16 %v5228_v30  ;;  %v6178_v56 = vunpack.c.h.bf16 %v5228_v30  ;;  %8750 = vrcp.f32 %v5495_v3 }
 0x40b   : > { %8752 = vrcp.f32 %v5496_v38  ;;  %v3945_v50 = vunpack.c.l.bf16 %v3683_v4  ;;  %v3946_v24 = vunpack.c.h.bf16 %v3683_v4  ;;  %v2835_v11 = vunpack.c.l.bf16 %v2568_v40  ;;  %v12564_v4 = vpop.f32.mrf.mxu1 }
 0x40c   : > { %v8747_v37 = vpop.eup %8746  ;;  %v12548_v28 = vadd.f32 %v14288_v53, %v12451_v41  ;;  %v6497_v10 = vmul.f32 %v6177_v48, %v5857_v46  ;;  %v6498_v57 = vmul.f32 %v6178_v56, %v5858_v51  ;;  %v2836_v19 = vunpack.c.h.bf16 %v2568_v40  ;;  %v14289_v40 = vld [vmem:[#allocation14_spill] sm:$0xff] }
 0x40d   : > { %v4265_v32 = vadd.f32 1.0, %v3945_v50  ;;  %v4266_v2 = vadd.f32 1.0, %v3946_v24  ;;  %v3369_v14 = vmul.f32 1.442695, %v2835_v11  ;;  %v1671_v60 = vadd.f32 %v12469_v17, %v11082_v31 }
 0x40e   : > { %v8749_v29 = vpop.eup %8748  ;;  %v6720_v63 = vpack.c.bf16 %v6498_v57, %v6497_v10  ;;  %v3371_v25 = vmul.f32 1.442695, %v2836_v19  ;;  %v1832_v8 = vadd.f32 %v12478_v13, %v11441_v21  ;;  %v1921_v54 = vadd.f32 %v12515_v26, %v11436_v27  ;;  %v12566_v26 = vpop.f32.mrf.mxu3  ;;  %7850 = vmatmul.msk.bf16.gmra.mxu3 %vm425_vm0, %v14289_v40 }
 0x40f   : > { %v4483_v39 = vpack.c.bf16 %v4266_v2, %v4265_v32  ;;  %v3722_v6 = vpack.c.bf16 %v8749_v29, %v8747_v37  ;;  %8754 = vpow2.f32 %v3369_v14  ;;  %v12559_v46 = vpack.c.bf16 %v12280_v62, %v1671_v60 }
 0x410   : > { %v8751_v15 = vpop.eup %8750  ;;  %v6977_v12 = vunpack.c.l.bf16 %v6720_v63  ;;  %v6978_v52 = vunpack.c.h.bf16 %v6720_v63  ;;  %8756 = vpow2.f32 %v3371_v25  ;;  %v12561_v17 = vpack.c.bf16 %v1921_v54, %v1832_v8 }
 0x411   : > { %v8753_v0 = vpop.eup %8752  ;;  %v5498_v30 = vmul.f32 %v8751_v15, %v10522_v20  ;;  %v5257_v3 = vunpack.c.h.bf16 %v4483_v39  ;;  %v5258_v13 = vunpack.c.l.bf16 %v4483_v39  ;;  %v4023_v38 = vunpack.c.l.bf16 %v3722_v6 }
 0x412   : > { %v12570_v62 = vadd.f32 %v7254_v22, %v6977_v12  ;;  %v12572_v51 = vadd.f32 %v7285_v33, %v6978_v52  ;;  %v5500_v48 = vmul.f32 %v8753_v0, %v10525_v16  ;;  %v4024_v56 = vunpack.c.h.bf16 %v3722_v6 }
 0x413   : > { %v5935_v50 = vunpack.c.l.bf16 %v12467_v5  ;;  %8758 = vrcp.f32 %v5257_v3  ;;  %v4343_v24 = vadd.f32 1.0, %v4023_v38  ;;  %v2607_v11 = vxor.u32 2147516416, %v12559_v46 }
 0x414   : > { %v5501_v37 = vpack.c.bf16 %v5498_v30, %v5500_v48  ;;  %v5936_v53 = vunpack.c.h.bf16 %v12467_v5  ;;  %8760 = vrcp.f32 %v5258_v13  ;;  %v4344_v10 = vadd.f32 1.0, %v4024_v56  ;;  %v12582_v56 = vpop.f32.mrf.mxu2 }
 0x415   : > { %v8755_v57 = vpop.eup %8754  ;;  %v5867_v22 = vunpack.c.l.bf16 %v12488_v49  ;;  %v2913_v19 = vunpack.c.l.bf16 %v2607_v11  ;;  %v2914_v33 = vunpack.c.h.bf16 %v2607_v11  ;;  %v2573_v32 = vxor.u32 2147516416, %v12561_v17 }
 0x416   : > { %v8757_v2 = vpop.eup %8756  ;;  %v6255_v14 = vunpack.c.l.bf16 %v5501_v37  ;;  %v6256_v60 = vunpack.c.h.bf16 %v5501_v37  ;;  %v5868_v29 = vunpack.c.h.bf16 %v12488_v49  ;;  %v4522_v63 = vpack.c.bf16 %v4344_v10, %v4343_v24  ;;  %v12585_v37 = vpop.f32.mrf.mxu1  ;;  %7879 = vmatmul.msk.bf16.gmra.mxu1 %vm425_vm0, %v14282_v1 }
 0x417   : > { %v3688_v25 = vpack.c.bf16 %v8757_v2, %v8755_v57  ;;  %v3525_v8 = vmul.f32 1.442695, %v2913_v19  ;;  %v3527_v54 = vmul.f32 1.442695, %v2914_v33  ;;  %v2845_v39 = vunpack.c.l.bf16 %v2573_v32 }
 0x418   : > { %v6575_v5 = vmul.f32 %v6255_v14, %v5935_v50  ;;  %v6576_v6 = vmul.f32 %v6256_v60, %v5936_v53  ;;  %v5530_v15 = vunpack.c.h.bf16 %v4522_v63  ;;  %v5531_v12 = vunpack.c.l.bf16 %v4522_v63 }
 0x419   : > { %v8759_v52 = vpop.eup %8758  ;;  %v3955_v0 = vunpack.c.l.bf16 %v3688_v25  ;;  %v3956_v30 = vunpack.c.h.bf16 %v3688_v25  ;;  %8762 = vpow2.f32 %v3525_v8  ;;  %v2846_v3 = vunpack.c.h.bf16 %v2573_v32 }
 0x41a   : > { %v8761_v13 = vpop.eup %8760  ;;  %v6759_v38 = vpack.c.bf16 %v6576_v6, %v6575_v5  ;;  %v5260_v48 = vmul.f32 %v8759_v52, %v10522_v20  ;;  %8764 = vrcp.f32 %v5530_v15  ;;  %v3389_v49 = vmul.f32 1.442695, %v2845_v39 }
 0x41b   : > { %v5262_v24 = vmul.f32 %v8761_v13, %v10525_v16  ;;  %8766 = vrcp.f32 %v5531_v12  ;;  %v4275_v50 = vadd.f32 1.0, %v3955_v0  ;;  %v4276_v11 = vadd.f32 1.0, %v3956_v30 }
 0x41c   : > { %v7055_v53 = vunpack.c.l.bf16 %v6759_v38  ;;  %v7056_v10 = vunpack.c.h.bf16 %v6759_v38  ;;  %8768 = vpow2.f32 %v3527_v54  ;;  %v3391_v57 = vmul.f32 1.442695, %v2846_v3 }
 0x41d   : > { %v5263_v19 = vpack.c.bf16 %v5260_v48, %v5262_v24  ;;  %v5945_v33 = vunpack.c.l.bf16 %v12519_v9  ;;  %v4488_v32 = vpack.c.bf16 %v4276_v11, %v4275_v50  ;;  %8770 = vpow2.f32 %v3389_v49  ;;  %v12615_v11 = vpop.f32.mrf.mxu2  ;;  %7895 = vmatmul.msk.bf16.gmra.mxu2 %vm425_vm0, %v14282_v1 }
 0x41e   : > { %v12591_v2 = vadd.f32 %v12540_v45, %v7055_v53  ;;  %v12594_v14 = vadd.f32 %v12542_v55, %v7056_v10  ;;  %8772 = vpow2.f32 %v3391_v57  ;;  %v1674_v60 = vadd.f32 %v12538_v61, %v11082_v31 }
 0x41f   : > { %v8763_v63 = vpop.eup %8762  ;;  %v6187_v25 = vunpack.c.l.bf16 %v5263_v19  ;;  %v6188_v8 = vunpack.c.h.bf16 %v5263_v19  ;;  %v5292_v54 = vunpack.c.h.bf16 %v4488_v32  ;;  %v5293_v39 = vunpack.c.l.bf16 %v4488_v32 }
 0x420   : > { %v8765_v5 = vpop.eup %8764  ;;  %v5946_v6 = vunpack.c.h.bf16 %v12519_v9  ;;  %v1834_v15 = vadd.f32 %v12502_v23, %v11441_v21  ;;  %v12602_v45 = vpack.c.bf16 %v12296_v43, %v1674_v60  ;;  %v1923_v55 = vadd.f32 %v12532_v7, %v11436_v27 }
 0x421   : > { %v8767_v12 = vpop.eup %8766  ;;  %v6507_v52 = vmul.f32 %v6187_v25, %v5867_v22  ;;  %v6508_v61 = vmul.f32 %v6188_v8, %v5868_v29  ;;  %v5533_v0 = vmul.f32 %v8765_v5, %v10522_v20  ;;  %8774 = vrcp.f32 %v5292_v54  ;;  %v12619_v25 = vpop.f32.mrf.mxu3 }
 0x422   : > { %v8769_v30 = vpop.eup %8768  ;;  %v5535_v3 = vmul.f32 %v8767_v12, %v10525_v16  ;;  %8776 = vrcp.f32 %v5293_v39  ;;  %v5877_v9 = vunpack.c.l.bf16 %v12530_v59  ;;  %v2612_v23 = vxor.u32 2147516416, %v12602_v45 }
 0x423   : > { %v8771_v13 = vpop.eup %8770  ;;  %v6725_v43 = vpack.c.bf16 %v6508_v61, %v6507_v52  ;;  %v5878_v38 = vunpack.c.h.bf16 %v12530_v59  ;;  %v3727_v48 = vpack.c.bf16 %v8769_v30, %v8763_v63  ;;  %v12611_v7 = vpack.c.bf16 %v1923_v55, %v1834_v15 }
 0x424   : > { %v8773_v22 = vpop.eup %8772  ;;  %v5536_v29 = vpack.c.bf16 %v5533_v0, %v5535_v3  ;;  %v2923_v49 = vunpack.c.l.bf16 %v2612_v23  ;;  %v2924_v24 = vunpack.c.h.bf16 %v2612_v23  ;;  %v1676_v50 = vadd.f32 %v12566_v26, %v11082_v31 }
 0x425   : > { %v6987_v53 = vunpack.c.l.bf16 %v6725_v43  ;;  %v6988_v10 = vunpack.c.h.bf16 %v6725_v43  ;;  %v4033_v57 = vunpack.c.l.bf16 %v3727_v48  ;;  %v4034_v19 = vunpack.c.h.bf16 %v3727_v48 }
 0x426   : > { %v6265_v59 = vunpack.c.l.bf16 %v5536_v29  ;;  %v6266_v32 = vunpack.c.h.bf16 %v5536_v29  ;;  %v3693_v60 = vpack.c.bf16 %v8773_v22, %v8771_v13  ;;  %v3545_v63 = vmul.f32 1.442695, %v2923_v49 }
 0x427   : > { %v8775_v8 = vpop.eup %8774  ;;  %v12622_v54 = vadd.f32 %v12570_v62, %v6987_v53  ;;  %v12625_v31 = vadd.f32 %v12572_v51, %v6988_v10  ;;  %v4353_v26 = vadd.f32 1.0, %v4033_v57  ;;  %v4354_v39 = vadd.f32 1.0, %v4034_v19 }
 0x428   : > { %v8777_v1 = vpop.eup %8776  ;;  %v6585_v5 = vmul.f32 %v6265_v59, %v5945_v33  ;;  %v6586_v15 = vmul.f32 %v6266_v32, %v5946_v6  ;;  %v5295_v55 = vmul.f32 %v8775_v8, %v10522_v20  ;;  %v3965_v12 = vunpack.c.l.bf16 %v3693_v60  ;;  %v14290_v8 = vld [vmem:[#allocation29_spill] sm:$0xff] }
 0x429   : > { %v5297_v52 = vmul.f32 %v8777_v1, %v10525_v16  ;;  %v4527_v61 = vpack.c.bf16 %v4354_v39, %v4353_v26  ;;  %v3966_v0 = vunpack.c.h.bf16 %v3693_v60  ;;  %8778 = vpow2.f32 %v3545_v63  ;;  %v14291_v39 = vld [vmem:[#allocation4_spill] sm:$0xff] }
 0x42a   : > { %v6764_v30 = vpack.c.bf16 %v6586_v15, %v6585_v5  ;;  %v4285_v3 = vadd.f32 1.0, %v3965_v12  ;;  %v3547_v62 = vmul.f32 1.442695, %v2924_v24  ;;  %v2578_v23 = vxor.u32 2147516416, %v12611_v7  ;;  %v12644_v15 = vpop.f32.mrf.mxu3 }
 0x42b   : > { %v5298_v51 = vpack.c.bf16 %v5295_v55, %v5297_v52  ;;  %v5565_v13 = vunpack.c.h.bf16 %v4527_v61  ;;  %v5566_v43 = vunpack.c.l.bf16 %v4527_v61  ;;  %v4286_v48 = vadd.f32 1.0, %v3966_v0 }
 0x42c   : > { %v7065_v22 = vunpack.c.l.bf16 %v6764_v30  ;;  %v7066_v33 = vunpack.c.h.bf16 %v6764_v30  ;;  %8780 = vpow2.f32 %v3547_v62  ;;  %v2855_v6 = vunpack.c.l.bf16 %v2578_v23 }
 0x42d   : > { %v6197_v29 = vunpack.c.l.bf16 %v5298_v51  ;;  %v6198_v49 = vunpack.c.h.bf16 %v5298_v51  ;;  %8782 = vrcp.f32 %v5565_v13  ;;  %v4493_v53 = vpack.c.bf16 %v4286_v48, %v4285_v3 }
 0x42e   : > { %v12631_v10 = vadd.f32 %v12591_v2, %v7065_v22  ;;  %v12634_v57 = vadd.f32 %v12594_v14, %v7066_v33  ;;  %8784 = vrcp.f32 %v5566_v43  ;;  %v2856_v24 = vunpack.c.h.bf16 %v2578_v23  ;;  %v14292_v14 = vld [vmem:[#allocation3_spill] sm:$0xff]  ;;  %v12670_v33 = vpop.f32.mrf.mxu1 }
 0x42f   : > { %v8779_v19 = vpop.eup %8778  ;;  %v6517_v59 = vmul.f32 %v6197_v29, %v5877_v9  ;;  %v6518_v32 = vmul.f32 %v6198_v49, %v5878_v38  ;;  %v5327_v60 = vunpack.c.h.bf16 %v4493_v53  ;;  %v5328_v63 = vunpack.c.l.bf16 %v4493_v53  ;;  %7851 = vmatmul.msk.bf16.gmra.mxu3 %vm425_vm0, %v14292_v14  ;;  %v14293_v9 = vld [vmem:[#allocation16_spill] sm:$0xff] }
 0x430   : > { %v12638_v26 = vadd.f32 %v14290_v8, %v12451_v41  ;;  %v12642_v1 = vadd.f32 %v14291_v39, %v12451_v41  ;;  %v3409_v2 = vmul.f32 1.442695, %v2855_v6  ;;  %v3411_v5 = vmul.f32 1.442695, %v2856_v24 }
 0x431   : > { %v12650_v38 = vadd.f32 %v14293_v9, %v12451_v41  ;;  %v6730_v55 = vpack.c.bf16 %v6518_v32, %v6517_v59  ;;  %8786 = vrcp.f32 %v5327_v60  ;;  %v12653_v12 = vpack.c.bf16 %v12366_v18, %v1676_v50 }
 0x432   : > { %v8781_v52 = vpop.eup %8780  ;;  %v5955_v61 = vunpack.c.l.bf16 %v12559_v46  ;;  %v5956_v0 = vunpack.c.h.bf16 %v12559_v46  ;;  %8788 = vrcp.f32 %v5328_v63  ;;  %v1926_v30 = vadd.f32 %v12582_v56, %v11436_v27 }
 0x433   : > { %v8783_v3 = vpop.eup %8782  ;;  %v6997_v62 = vunpack.c.l.bf16 %v6730_v55  ;;  %v6998_v23 = vunpack.c.h.bf16 %v6730_v55  ;;  %v3732_v51 = vpack.c.bf16 %v8781_v52, %v8779_v19  ;;  %8790 = vpow2.f32 %v3409_v2 }
 0x434   : > { %v8785_v13 = vpop.eup %8784  ;;  %v5568_v43 = vmul.f32 %v8783_v3, %v10522_v20  ;;  %8792 = vpow2.f32 %v3411_v5  ;;  %v1837_v18 = vadd.f32 %v12564_v4, %v11441_v21  ;;  %v2617_v50 = vxor.u32 2147516416, %v12653_v12 }
 0x435   : > { %v12664_v46 = vadd.f32 %v12622_v54, %v6997_v62  ;;  %v12667_v48 = vadd.f32 %v12625_v31, %v6998_v23  ;;  %v5570_v56 = vmul.f32 %v8785_v13, %v10525_v16  ;;  %v4043_v22 = vunpack.c.l.bf16 %v3732_v51 }
 0x436   : > { %v4044_v6 = vunpack.c.h.bf16 %v3732_v51  ;;  %v2933_v29 = vunpack.c.l.bf16 %v2617_v50  ;;  %v2934_v49 = vunpack.c.h.bf16 %v2617_v50  ;;  %v12673_v53 = vperm.slane %v12448_v47, 6 }
 0x437   : > { %v8787_v4 = vpop.eup %8786  ;;  %v5571_v24 = vpack.c.bf16 %v5568_v43, %v5570_v56  ;;  %v5887_v19 = vunpack.c.l.bf16 %v12561_v17  ;;  %v4363_v54 = vadd.f32 1.0, %v4043_v22  ;;  %v12676_v59 = vpack.c.bf16 %v1926_v30, %v1837_v18 }
 0x438   : > { %v8789_v31 = vpop.eup %8788  ;;  %v5330_v32 = vmul.f32 %v8787_v4, %v10522_v20  ;;  %v4364_v60 = vadd.f32 1.0, %v4044_v6  ;;  %v3565_v63 = vmul.f32 1.442695, %v2933_v29  ;;  %v3567_v8 = vmul.f32 1.442695, %v2934_v49 }
 0x439   : > { %v8791_v39 = vpop.eup %8790  ;;  %v6275_v2 = vunpack.c.l.bf16 %v5571_v24  ;;  %v6276_v5 = vunpack.c.h.bf16 %v5571_v24  ;;  %v5332_v9 = vmul.f32 %v8789_v31, %v10525_v16  ;;  %v2583_v47 = vxor.u32 2147516416, %v12676_v59 }
 0x43a   : > { %v8793_v55 = vpop.eup %8792  ;;  %v5888_v52 = vunpack.c.h.bf16 %v12561_v17  ;;  %v4532_v3 = vpack.c.bf16 %v4364_v60, %v4363_v54  ;;  %8794 = vpow2.f32 %v3565_v63  ;;  %v1955_v30 = vadd.f32 %v12619_v25, %v12673_v53 }
 0x43b   : > { %v6595_v62 = vmul.f32 %v6275_v2, %v5955_v61  ;;  %v6596_v23 = vmul.f32 %v6276_v5, %v5956_v0  ;;  %v5333_v51 = vpack.c.bf16 %v5330_v32, %v5332_v9  ;;  %v3698_v13 = vpack.c.bf16 %v8793_v55, %v8791_v39  ;;  %v12684_v61 = vpop.f32.mrf.mxu1  ;;  %7880 = vmatmul.msk.bf16.gmra.mxu1 %vm425_vm0, %v14283_v58 }
 0x43c   : > { %v5600_v43 = vunpack.c.h.bf16 %v4532_v3  ;;  %v5601_v18 = vunpack.c.l.bf16 %v4532_v3  ;;  %8796 = vpow2.f32 %v3567_v8  ;;  %v2865_v50 = vunpack.c.l.bf16 %v2583_v47 }
 0x43d   : > { %v6769_v56 = vpack.c.bf16 %v6596_v23, %v6595_v62  ;;  %v6207_v22 = vunpack.c.l.bf16 %v5333_v51  ;;  %v6208_v6 = vunpack.c.h.bf16 %v5333_v51  ;;  %v3975_v29 = vunpack.c.l.bf16 %v3698_v13 }
 0x43e   : > { %8798 = vrcp.f32 %v5600_v43  ;;  %v3976_v49 = vunpack.c.h.bf16 %v3698_v13  ;;  %v2866_v17 = vunpack.c.h.bf16 %v2583_v47  ;;  %v3429_v4 = vmul.f32 1.442695, %v2865_v50 }
 0x43f   : > { %v7075_v24 = vunpack.c.l.bf16 %v6769_v56  ;;  %v7076_v54 = vunpack.c.h.bf16 %v6769_v56  ;;  %v6527_v31 = vmul.f32 %v6207_v22, %v5887_v19  ;;  %v6528_v25 = vmul.f32 %v6208_v6, %v5888_v52  ;;  %v12694_v19 = vpop.f32.mrf.mxu2 }
 0x440   : > { %v8795_v0 = vpop.eup %8794  ;;  %8800 = vrcp.f32 %v5601_v18  ;;  %v4295_v32 = vadd.f32 1.0, %v3975_v29  ;;  %v4296_v60 = vadd.f32 1.0, %v3976_v49  ;;  %v3431_v63 = vmul.f32 1.442695, %v2866_v17 }
 0x441   : > { %v12689_v8 = vadd.f32 %v12631_v10, %v7075_v24  ;;  %v12692_v39 = vadd.f32 %v12634_v57, %v7076_v54  ;;  %v6735_v2 = vpack.c.bf16 %v6528_v25, %v6527_v31  ;;  %8802 = vpow2.f32 %v3429_v4 }
 0x442   : > { %v8797_v5 = vpop.eup %8796  ;;  %v5965_v9 = vunpack.c.l.bf16 %v12602_v45  ;;  %v4498_v47 = vpack.c.bf16 %v4296_v60, %v4295_v32  ;;  %8804 = vpow2.f32 %v3431_v63  ;;  %v12698_v55 = vpack.c.bf16 %v12492_v44, %v1955_v30 }
 0x443   : > { %v7007_v52 = vunpack.c.l.bf16 %v6735_v2  ;;  %v7008_v3 = vunpack.c.h.bf16 %v6735_v2  ;;  %v3737_v62 = vpack.c.bf16 %v8797_v5, %v8795_v0  ;;  %v1839_v10 = vadd.f32 %v12585_v37, %v11441_v21 }
 0x444   : > { %v8799_v57 = vpop.eup %8798  ;;  %v5362_v23 = vunpack.c.h.bf16 %v4498_v47  ;;  %v5363_v51 = vunpack.c.l.bf16 %v4498_v47  ;;  %v2464_v13 = vxor.u32 2147516416, %v12698_v55  ;;  %v1928_v43 = vadd.f32 %v12615_v11, %v11436_v27 }
 0x445   : > { %v12706_v18 = vadd.f32 %v12664_v46, %v7007_v52  ;;  %v12709_v44 = vadd.f32 %v12667_v48, %v7008_v3  ;;  %v5603_v30 = vmul.f32 %v8799_v57, %v10522_v20  ;;  %v4053_v50 = vunpack.c.l.bf16 %v3737_v62 }
 0x446   : > { %v8801_v56 = vpop.eup %8800  ;;  %8806 = vrcp.f32 %v5362_v23  ;;  %v4054_v37 = vunpack.c.h.bf16 %v3737_v62  ;;  %v2627_v22 = vunpack.c.l.bf16 %v2464_v13  ;;  %v2628_v6 = vunpack.c.h.bf16 %v2464_v13 }
 0x447   : > { %v8803_v29 = vpop.eup %8802  ;;  %v5605_v49 = vmul.f32 %v8801_v56, %v10525_v16  ;;  %v5966_v17 = vunpack.c.h.bf16 %v12602_v45  ;;  %8808 = vrcp.f32 %v5363_v51  ;;  %v4373_v11 = vadd.f32 1.0, %v4053_v50  ;;  %v12721_v3 = vpop.f32.mrf.mxu2  ;;  %7896 = vmatmul.msk.bf16.gmra.mxu2 %vm425_vm0, %v14283_v58 }
 0x448   : > { %v8805_v46 = vpop.eup %8804  ;;  %v4374_v4 = vadd.f32 1.0, %v4054_v37  ;;  %v2953_v24 = vmul.f32 1.442695, %v2627_v22  ;;  %v2955_v48 = vmul.f32 1.442695, %v2628_v6  ;;  %v12714_v54 = vpack.c.bf16 %v1928_v43, %v1839_v10 }
 0x449   : > { %v5606_v31 = vpack.c.bf16 %v5603_v30, %v5605_v49  ;;  %v5897_v25 = vunpack.c.l.bf16 %v12611_v7  ;;  %v5898_v0 = vunpack.c.h.bf16 %v12611_v7  ;;  %v3703_v32 = vpack.c.bf16 %v8805_v46, %v8803_v29  ;;  %v12726_v30 = vpop.f32.mrf.mxu3 }
 0x44a   : > { %v4537_v60 = vpack.c.bf16 %v4374_v4, %v4373_v11  ;;  %8810 = vpow2.f32 %v2953_v24  ;;  %v2588_v63 = vxor.u32 2147516416, %v12714_v54  ;;  %v1957_v45 = vadd.f32 %v12644_v15, %v12673_v53 }
 0x44b   : > { %v6285_v2 = vunpack.c.l.bf16 %v5606_v31  ;;  %v6286_v5 = vunpack.c.h.bf16 %v5606_v31  ;;  %v3985_v47 = vunpack.c.l.bf16 %v3703_v32  ;;  %v3986_v52 = vunpack.c.h.bf16 %v3703_v32 }
 0x44c   : > { %v8807_v62 = vpop.eup %8806  ;;  %v5635_v10 = vunpack.c.h.bf16 %v4537_v60  ;;  %v5636_v7 = vunpack.c.l.bf16 %v4537_v60  ;;  %8812 = vpow2.f32 %v2955_v48  ;;  %v2875_v57 = vunpack.c.l.bf16 %v2588_v63 }
 0x44d   : > { %v8809_v23 = vpop.eup %8808  ;;  %v6605_v51 = vmul.f32 %v6285_v2, %v5965_v9  ;;  %v6606_v13 = vmul.f32 %v6286_v5, %v5966_v17  ;;  %v5365_v43 = vmul.f32 %v8807_v62, %v10522_v20  ;;  %v4305_v15 = vadd.f32 1.0, %v3985_v47 }
 0x44e   : > { %v5367_v50 = vmul.f32 %v8809_v23, %v10525_v16  ;;  %8814 = vrcp.f32 %v5635_v10  ;;  %v4306_v56 = vadd.f32 1.0, %v3986_v52  ;;  %v2876_v37 = vunpack.c.h.bf16 %v2588_v63 }
 0x44f   : > { %v6774_v22 = vpack.c.bf16 %v6606_v13, %v6605_v51  ;;  %8816 = vrcp.f32 %v5636_v7  ;;  %v5975_v58 = vunpack.c.l.bf16 %v12653_v12  ;;  %v3449_v6 = vmul.f32 1.442695, %v2875_v57 }
 0x450   : > { %v8811_v29 = vpop.eup %8810  ;;  %v5368_v49 = vpack.c.bf16 %v5365_v43, %v5367_v50  ;;  %v4503_v11 = vpack.c.bf16 %v4306_v56, %v4305_v15  ;;  %v3451_v9 = vmul.f32 1.442695, %v2876_v37  ;;  %v12731_v17 = vpack.c.bf16 %v12499_v34, %v1957_v45  ;;  %v14294_v56 = vld [vmem:[#allocation5_spill] sm:$0xff] }
 0x451   : > { %v7085_v46 = vunpack.c.l.bf16 %v6774_v22  ;;  %v7086_v4 = vunpack.c.h.bf16 %v6774_v22  ;;  %8818 = vpow2.f32 %v3449_v6  ;;  %v1931_v24 = vadd.f32 %v12694_v19, %v11436_v27  ;;  %v12747_v50 = vpop.f32.mrf.mxu3  ;;  %7852 = vmatmul.msk.bf16.gmra.mxu3 %vm425_vm0, %v14294_v56 }
 0x452   : > { %v8813_v48 = vpop.eup %8812  ;;  %v6217_v31 = vunpack.c.l.bf16 %v5368_v49  ;;  %v6218_v32 = vunpack.c.h.bf16 %v5368_v49  ;;  %v5397_v60 = vunpack.c.h.bf16 %v4503_v11  ;;  %v5398_v63 = vunpack.c.l.bf16 %v4503_v11  ;;  %v12751_v49 = vpop.f32.mrf.mxu1 }
 0x453   : > { %v12736_v2 = vadd.f32 %v12689_v8, %v7085_v46  ;;  %v12739_v5 = vadd.f32 %v12692_v39, %v7086_v4  ;;  %v3584_v47 = vpack.c.bf16 %v8813_v48, %v8811_v29  ;;  %8820 = vpow2.f32 %v3451_v9 }
 0x454   : > { %v8815_v34 = vpop.eup %8814  ;;  %v6537_v45 = vmul.f32 %v6217_v31, %v5897_v25  ;;  %v6538_v52 = vmul.f32 %v6218_v32, %v5898_v0  ;;  %8822 = vrcp.f32 %v5397_v60  ;;  %v2469_v62 = vxor.u32 2147516416, %v12731_v17 }
 0x455   : > { %v8817_v19 = vpop.eup %8816  ;;  %v5638_v10 = vmul.f32 %v8815_v34, %v10522_v20  ;;  %8824 = vrcp.f32 %v5398_v63  ;;  %v3747_v7 = vunpack.c.l.bf16 %v3584_v47  ;;  %v3748_v57 = vunpack.c.h.bf16 %v3584_v47 }
 0x456   : > { %v6740_v23 = vpack.c.bf16 %v6538_v52, %v6537_v45  ;;  %v5640_v8 = vmul.f32 %v8817_v19, %v10525_v16  ;;  %v2637_v51 = vunpack.c.l.bf16 %v2469_v62  ;;  %v2638_v39 = vunpack.c.h.bf16 %v2469_v62 }
 0x457   : > { %v8819_v13 = vpop.eup %8818  ;;  %v5976_v43 = vunpack.c.h.bf16 %v12653_v12  ;;  %v4067_v15 = vadd.f32 1.0, %v3747_v7  ;;  %v4068_v25 = vadd.f32 1.0, %v3748_v57  ;;  %v1842_v0 = vadd.f32 %v12670_v33, %v11441_v21 }
 0x458   : > { %v7017_v37 = vunpack.c.l.bf16 %v6740_v23  ;;  %v7018_v22 = vunpack.c.h.bf16 %v6740_v23  ;;  %v5641_v6 = vpack.c.bf16 %v5638_v10, %v5640_v8  ;;  %v2973_v29 = vmul.f32 1.442695, %v2637_v51  ;;  %v12766_v8 = vpop.f32.mrf.mxu2 }
 0x459   : > { %v8821_v11 = vpop.eup %8820  ;;  %v5907_v9 = vunpack.c.l.bf16 %v12676_v59  ;;  %v4384_v12 = vpack.c.bf16 %v4068_v25, %v4067_v15  ;;  %v2975_v46 = vmul.f32 1.442695, %v2638_v39  ;;  %v12754_v4 = vpack.c.bf16 %v1931_v24, %v1842_v0  ;;  %v14295_v0 = vld [vmem:[#allocation15_spill] sm:$0xff] }
 0x45a   : > { %v8823_v48 = vpop.eup %8822  ;;  %v12757_v33 = vadd.f32 %v12706_v18, %v7017_v37  ;;  %v12760_v31 = vadd.f32 %v12709_v44, %v7018_v22  ;;  %v6295_v32 = vunpack.c.l.bf16 %v5641_v6  ;;  %v6296_v60 = vunpack.c.h.bf16 %v5641_v6 }
 0x45b   : > { %v8825_v63 = vpop.eup %8824  ;;  %v5400_v47 = vmul.f32 %v8823_v48, %v10522_v20  ;;  %v4564_v34 = vunpack.c.h.bf16 %v4384_v12  ;;  %v4565_v45 = vunpack.c.l.bf16 %v4384_v12  ;;  %v3708_v52 = vpack.c.bf16 %v8821_v11, %v8819_v13 }
 0x45c   : > { %v6615_v62 = vmul.f32 %v6295_v32, %v5975_v58  ;;  %v6616_v19 = vmul.f32 %v6296_v60, %v5976_v43  ;;  %v5402_v24 = vmul.f32 %v8825_v63, %v10525_v16  ;;  %8826 = vpow2.f32 %v2973_v29 }
 0x45d   : > { %8828 = vrcp.f32 %v4564_v34  ;;  %v3995_v10 = vunpack.c.l.bf16 %v3708_v52  ;;  %v3996_v18 = vunpack.c.h.bf16 %v3708_v52  ;;  %v2593_v7 = vxor.u32 2147516416, %v12754_v4 }
 0x45e   : > { %v6779_v44 = vpack.c.bf16 %v6616_v19, %v6615_v62  ;;  %v5403_v57 = vpack.c.bf16 %v5400_v47, %v5402_v24  ;;  %v5908_v23 = vunpack.c.h.bf16 %v12676_v59  ;;  %8830 = vrcp.f32 %v4565_v45 }
 0x45f   : > { %v4315_v51 = vadd.f32 1.0, %v3995_v10  ;;  %v4316_v39 = vadd.f32 1.0, %v3996_v18  ;;  %8832 = vpow2.f32 %v2975_v46  ;;  %v2885_v58 = vunpack.c.l.bf16 %v2593_v7  ;;  %v12774_v46 = vpop.f32.mrf.mxu1  ;;  %7881 = vmatmul.msk.bf16.gmra.mxu1 %vm425_vm0, %v14284_v35 }
 0x460   : > { %v7095_v13 = vunpack.c.l.bf16 %v6779_v44  ;;  %v7096_v43 = vunpack.c.h.bf16 %v6779_v44  ;;  %v6227_v15 = vunpack.c.l.bf16 %v5403_v57  ;;  %v6228_v25 = vunpack.c.h.bf16 %v5403_v57 }
 0x461   : > { %v12770_v37 = vadd.f32 %v14295_v0, %v12451_v41  ;;  %v4508_v22 = vpack.c.bf16 %v4316_v39, %v4315_v51  ;;  %v2886_v6 = vunpack.c.h.bf16 %v2593_v7  ;;  %v3469_v29 = vmul.f32 1.442695, %v2885_v58  ;;  %v12797_v39 = vpop.f32.mrf.mxu2  ;;  %7897 = vmatmul.msk.bf16.gmra.mxu2 %vm425_vm0, %v14284_v35 }
 0x462   : > { %v8827_v11 = vpop.eup %8826  ;;  %v7205_v59 = vadd.f32 %v12736_v2, %v7095_v13  ;;  %v7236_v12 = vadd.f32 %v12739_v5, %v7096_v43  ;;  %v6547_v48 = vmul.f32 %v6227_v15, %v5907_v9  ;;  %v6548_v32 = vmul.f32 %v6228_v25, %v5908_v23 }
 0x463   : > { %v8829_v60 = vpop.eup %8828  ;;  %v5432_v63 = vunpack.c.h.bf16 %v4508_v22  ;;  %v5433_v47 = vunpack.c.l.bf16 %v4508_v22  ;;  %8834 = vpow2.f32 %v3469_v29  ;;  %v3471_v34 = vmul.f32 1.442695, %v2886_v6 }
 0x464   : > { %v8831_v45 = vpop.eup %8830  ;;  %v6745_v52 = vpack.c.bf16 %v6548_v32, %v6547_v48  ;;  %v4567_v2 = vmul.f32 %v8829_v60, %v10522_v20  ;;  %v1844_v9 = vadd.f32 %v12684_v61, %v11441_v21  ;;  %v1960_v19 = vadd.f32 %v12726_v30, %v12673_v53  ;;  %7435 = vst [vmem:[%s11653_s13 + $0x10] sm:$0xff] %v7205_v59  ;;  %v1964_v48 = vpop.f32.mrf.mxu3 }
 0x465   : > { %v8833_v62 = vpop.eup %8832  ;;  %v4569_v5 = vmul.f32 %v8831_v45, %v10525_v16  ;;  %8836 = vrcp.f32 %v5432_v63  ;;  %7436 = vst [vmem:[%s11653_s13 + $0x18] sm:$0xff] %v7236_v12  ;;  %v1933_v57 = vadd.f32 %v12721_v3, %v11436_v27  ;;  %v5669_v3 = vunpack.c.l.bf16 %v12698_v55 }
 0x466   : > { %v7027_v24 = vunpack.c.l.bf16 %v6745_v52  ;;  %v7028_v10 = vunpack.c.h.bf16 %v6745_v52  ;;  %8838 = vrcp.f32 %v5433_v47  ;;  %v3589_v18 = vpack.c.bf16 %v8833_v62, %v8827_v11 }
 0x467   : > { %v4570_v7 = vpack.c.bf16 %v4567_v2, %v4569_v5  ;;  %8840 = vpow2.f32 %v3471_v34  ;;  %v12787_v44 = vpack.c.bf16 %v12548_v28, %v1960_v19  ;;  %v12803_v28 = vadd.f32 %v12274_v42, %v12451_v41 }
 0x468   : > { %v12792_v23 = vadd.f32 %v12757_v33, %v7027_v24  ;;  %v12795_v61 = vadd.f32 %v12760_v31, %v7028_v10  ;;  %v3757_v30 = vunpack.c.l.bf16 %v3589_v18  ;;  %v3758_v51 = vunpack.c.h.bf16 %v3589_v18 }
 0x469   : > { %v8835_v58 = vpop.eup %8834  ;;  %v5670_v33 = vunpack.c.h.bf16 %v12698_v55  ;;  %v2474_v13 = vxor.u32 2147516416, %v12787_v44  ;;  %v5917_v31 = vunpack.c.l.bf16 %v12714_v54  ;;  %v12809_v25 = vpack.c.bf16 %v1933_v57, %v1844_v9 }
 0x46a   : > { %v4077_v43 = vadd.f32 1.0, %v3757_v30  ;;  %v4078_v15 = vadd.f32 1.0, %v3758_v51  ;;  %v5989_v22 = vunpack.c.l.bf16 %v4570_v7  ;;  %v5990_v35 = vunpack.c.h.bf16 %v4570_v7 }
 0x46b   : > { %v8837_v0 = vpop.eup %8836  ;;  %v2647_v6 = vunpack.c.l.bf16 %v2474_v13  ;;  %v2648_v29 = vunpack.c.h.bf16 %v2474_v13  ;;  %v5918_v59 = vunpack.c.h.bf16 %v12714_v54  ;;  %v2598_v55 = vxor.u32 2147516416, %v12809_v25 }
 0x46c   : > { %v8839_v11 = vpop.eup %8838  ;;  %v5435_v42 = vmul.f32 %v8837_v0, %v10522_v20  ;;  %v4389_v12 = vpack.c.bf16 %v4078_v15, %v4077_v43  ;;  %v5679_v63 = vunpack.c.l.bf16 %v12731_v17  ;;  %v6309_v5 = vmul.f32 %v5989_v22, %v5669_v3 }
 0x46d   : > { %v8841_v32 = vpop.eup %8840  ;;  %v5437_v60 = vmul.f32 %v8839_v11, %v10525_v16  ;;  %v2993_v47 = vmul.f32 1.442695, %v2647_v6  ;;  %v2995_v34 = vmul.f32 1.442695, %v2648_v29  ;;  %v2895_v62 = vunpack.c.l.bf16 %v2598_v55 }
 0x46e   : > { %v4599_v45 = vunpack.c.h.bf16 %v4389_v12  ;;  %v4600_v52 = vunpack.c.l.bf16 %v4389_v12  ;;  %v3713_v2 = vpack.c.bf16 %v8841_v32, %v8835_v58  ;;  %v6310_v9 = vmul.f32 %v5990_v35, %v5670_v33  ;;  %v12828_v32 = vpop.f32.mrf.mxu3 }
 0x46f   : > { %v5438_v19 = vpack.c.bf16 %v5435_v42, %v5437_v60  ;;  %8842 = vpow2.f32 %v2993_v47  ;;  %v2896_v10 = vunpack.c.h.bf16 %v2598_v55  ;;  %v3489_v57 = vmul.f32 1.442695, %v2895_v62  ;;  %v14296_v60 = vld [vmem:[#allocation6_spill] sm:$0xff] }
 0x470   : > { %8844 = vrcp.f32 %v4599_v45  ;;  %v4005_v54 = vunpack.c.l.bf16 %v3713_v2  ;;  %v4006_v24 = vunpack.c.h.bf16 %v3713_v2  ;;  %v5680_v58 = vunpack.c.h.bf16 %v12731_v17  ;;  %7853 = vmatmul.msk.bf16.gmra.mxu3 %vm425_vm0, %v14296_v60  ;;  %v2063_v2 = vpop.f32.mrf.mxu0 }
 0x471   : > { %v6237_v18 = vunpack.c.l.bf16 %v5438_v19  ;;  %v6238_v7 = vunpack.c.h.bf16 %v5438_v19  ;;  %8846 = vrcp.f32 %v4600_v52  ;;  %v3491_v13 = vmul.f32 1.442695, %v2896_v10 }
 0x472   : > { %v4325_v30 = vadd.f32 1.0, %v4005_v54  ;;  %v4326_v51 = vadd.f32 1.0, %v4006_v24  ;;  %8848 = vpow2.f32 %v2995_v34  ;;  %v5927_v33 = vunpack.c.l.bf16 %v12754_v4  ;;  %v12848_v54 = vpop.f32.mrf.mxu1 }
 0x473   : > { %v6557_v43 = vmul.f32 %v6237_v18, %v5917_v31  ;;  %v6558_v15 = vmul.f32 %v6238_v7, %v5918_v59  ;;  %8850 = vpow2.f32 %v3489_v57  ;;  %v5928_v0 = vunpack.c.h.bf16 %v12754_v4 }
 0x474   : > { %v4513_v3 = vpack.c.bf16 %v4326_v51, %v4325_v30  ;;  %8852 = vpow2.f32 %v3491_v13  ;;  %v12819_v35 = vpack.c.bf16 %v6310_v9, %v6309_v5  ;;  %v1962_v29 = vadd.f32 %v12747_v50, %v12673_v53 }
 0x475   : > { %v8843_v22 = vpop.eup %8842  ;;  %v6750_v6 = vpack.c.bf16 %v6558_v15, %v6557_v43  ;;  %v1936_v31 = vadd.f32 %v12766_v8, %v11436_v27  ;;  %v1847_v12 = vadd.f32 %v12751_v49, %v11441_v21  ;;  %v1965_v55 = vadd.f32 %v1964_v48, %v12673_v53 }
 0x476   : > { %v8845_v11 = vpop.eup %8844  ;;  %v5467_v42 = vunpack.c.h.bf16 %v4513_v3  ;;  %v5468_v59 = vunpack.c.l.bf16 %v4513_v3  ;;  %v12834_v8 = vpack.c.bf16 %v12638_v26, %v1962_v29  ;;  %v6789_v10 = vunpack.c.l.bf16 %v12819_v35 }
 0x477   : > { %v8847_v47 = vpop.eup %8846  ;;  %v7037_v34 = vunpack.c.l.bf16 %v6750_v6  ;;  %v7038_v45 = vunpack.c.h.bf16 %v6750_v6  ;;  %v4602_v50 = vmul.f32 %v8845_v11, %v10522_v20  ;;  %v12837_v49 = vpack.c.bf16 %v1936_v31, %v1847_v12 }
 0x478   : > { %v8849_v52 = vpop.eup %8848  ;;  %v4604_v62 = vmul.f32 %v8847_v47, %v10525_v16  ;;  %8854 = vrcp.f32 %v5467_v42  ;;  %v12840_v48 = vpack.c.bf16 %v12642_v1, %v1965_v55  ;;  %v6790_v18 = vunpack.c.h.bf16 %v12819_v35  ;;  %v2065_v17 = vpop.f32.mrf.mxu0 }
 0x479   : > { %v8851_v5 = vpop.eup %8850  ;;  %v12843_v9 = vadd.f32 %v12792_v23, %v7037_v34  ;;  %v12846_v19 = vadd.f32 %v12795_v61, %v7038_v45  ;;  %8856 = vrcp.f32 %v5468_v59  ;;  %v3594_v26 = vpack.c.bf16 %v8849_v52, %v8843_v22 }
 0x47a   : > { %v8853_v24 = vpop.eup %8852  ;;  %v4605_v7 = vpack.c.bf16 %v4602_v50, %v4604_v62  ;;  %v2479_v1 = vxor.u32 2147516416, %v12834_v8  ;;  %v2603_v23 = vxor.u32 2147516416, %v12837_v49 }
 0x47b   : > { %v3767_v57 = vunpack.c.l.bf16 %v3594_v26  ;;  %v3768_v30 = vunpack.c.h.bf16 %v3594_v26  ;;  %v3718_v51 = vpack.c.bf16 %v8853_v24, %v8851_v5 }
 0x47c   : > { %v5999_v13 = vunpack.c.l.bf16 %v4605_v7  ;;  %v6000_v61 = vunpack.c.h.bf16 %v4605_v7  ;;  %v2657_v43 = vunpack.c.l.bf16 %v2479_v1  ;;  %v2658_v15 = vunpack.c.h.bf16 %v2479_v1 }
 0x47d   : > { %v4087_v3 = vadd.f32 1.0, %v3767_v57  ;;  %v4088_v22 = vadd.f32 1.0, %v3768_v30  ;;  %v4015_v6 = vunpack.c.l.bf16 %v3718_v51  ;;  %v4016_v29 = vunpack.c.h.bf16 %v3718_v51 }
 0x47e   : > { %v8855_v31 = vpop.eup %8854  ;;  %v6319_v35 = vmul.f32 %v5999_v13, %v5679_v63  ;;  %v6320_v11 = vmul.f32 %v6000_v61, %v5680_v58  ;;  %v3013_v42 = vmul.f32 1.442695, %v2657_v43  ;;  %v3015_v59 = vmul.f32 1.442695, %v2658_v15  ;;  %v12858_v13 = vpop.f32.mrf.mxu1  ;;  %7882 = vmatmul.msk.bf16.gmra.mxu1 %vm425_vm0, %v14289_v40 }
 0x47f   : > { %v8857_v12 = vpop.eup %8856  ;;  %v5470_v55 = vmul.f32 %v8855_v31, %v10522_v20  ;;  %v4394_v47 = vpack.c.bf16 %v4088_v22, %v4087_v3  ;;  %v4335_v34 = vadd.f32 1.0, %v4015_v6  ;;  %v4336_v45 = vadd.f32 1.0, %v4016_v29 }
 0x480   : > { %v6631_v50 = vpack.c.bf16 %v6320_v11, %v6319_v35  ;;  %v5472_v52 = vmul.f32 %v8857_v12, %v10525_v16  ;;  %8858 = vpow2.f32 %v3013_v42  ;;  %v2905_v62 = vunpack.c.l.bf16 %v2603_v23  ;;  %v12877_v35 = vpop.f32.mrf.mxu2 }
 0x481   : > { %v4634_v5 = vunpack.c.h.bf16 %v4394_v47  ;;  %v4635_v26 = vunpack.c.l.bf16 %v4394_v47  ;;  %v4518_v24 = vpack.c.bf16 %v4336_v45, %v4335_v34  ;;  %8860 = vpow2.f32 %v3015_v59 }
 0x482   : > { %v6799_v63 = vunpack.c.l.bf16 %v6631_v50  ;;  %v6800_v58 = vunpack.c.h.bf16 %v6631_v50  ;;  %v5473_v7 = vpack.c.bf16 %v5470_v55, %v5472_v52  ;;  %v2906_v1 = vunpack.c.h.bf16 %v2603_v23 }
 0x483   : > { %8862 = vrcp.f32 %v4634_v5  ;;  %v5502_v57 = vunpack.c.h.bf16 %v4518_v24  ;;  %v5503_v30 = vunpack.c.l.bf16 %v4518_v24  ;;  %v3509_v51 = vmul.f32 1.442695, %v2905_v62 }
 0x484   : > { %v12862_v61 = vadd.f32 %v6799_v63, %v6789_v10  ;;  %v12864_v43 = vadd.f32 %v6800_v58, %v6790_v18  ;;  %v6247_v15 = vunpack.c.l.bf16 %v5473_v7  ;;  %v6248_v3 = vunpack.c.h.bf16 %v5473_v7 }
 0x485   : > { %v12867_v22 = vadd.f32 %v2063_v2, %v12451_v41  ;;  %v12870_v23 = vadd.f32 %v2065_v17, %v12451_v41  ;;  %8864 = vrcp.f32 %v4635_v26  ;;  %v3511_v6 = vmul.f32 1.442695, %v2906_v1 }
 0x486   : > { %v8859_v29 = vpop.eup %8858  ;;  %v6567_v31 = vmul.f32 %v6247_v15, %v5927_v33  ;;  %v6568_v10 = vmul.f32 %v6248_v3, %v5928_v0  ;;  %8866 = vrcp.f32 %v5502_v57  ;;  %v2484_v18 = vxor.u32 2147516416, %v12840_v48 }
 0x487   : > { %v8861_v11 = vpop.eup %8860  ;;  %v5689_v2 = vunpack.c.l.bf16 %v12787_v44  ;;  %8868 = vrcp.f32 %v5503_v30  ;;  %v1849_v42 = vadd.f32 %v12774_v46, %v11441_v21  ;;  %v1938_v59 = vadd.f32 %v12797_v39, %v11436_v27 }
 0x488   : > { %v6755_v12 = vpack.c.bf16 %v6568_v10, %v6567_v31  ;;  %v3599_v33 = vpack.c.bf16 %v8861_v11, %v8859_v29  ;;  %8870 = vpow2.f32 %v3509_v51  ;;  %v2667_v4 = vunpack.c.l.bf16 %v2484_v18 }
 0x489   : > { %v8863_v0 = vpop.eup %8862  ;;  %v5690_v55 = vunpack.c.h.bf16 %v12787_v44  ;;  %8872 = vpow2.f32 %v3511_v6  ;;  %v2668_v47 = vunpack.c.h.bf16 %v2484_v18  ;;  %v12885_v34 = vpack.c.bf16 %v1938_v59, %v1849_v42 }
 0x48a   : > { %v7047_v45 = vunpack.c.l.bf16 %v6755_v12  ;;  %v7048_v50 = vunpack.c.h.bf16 %v6755_v12  ;;  %v4637_v52 = vmul.f32 %v8863_v0, %v10522_v20  ;;  %v3777_v62 = vunpack.c.l.bf16 %v3599_v33 }
 0x48b   : > { %v8865_v46 = vpop.eup %8864  ;;  %v3778_v5 = vunpack.c.h.bf16 %v3599_v33  ;;  %v3033_v26 = vmul.f32 1.442695, %v2667_v4  ;;  %v3035_v39 = vmul.f32 1.442695, %v2668_v47  ;;  %v2608_v24 = vxor.u32 2147516416, %v12885_v34  ;;  %v12900_v33 = vpop.f32.mrf.mxu2  ;;  %7898 = vmatmul.msk.bf16.gmra.mxu2 %vm425_vm0, %v14289_v40 }
 0x48c   : > { %v8867_v17 = vpop.eup %8866  ;;  %v12890_v63 = vadd.f32 %v12843_v9, %v7047_v45  ;;  %v12893_v44 = vadd.f32 %v12846_v19, %v7048_v50  ;;  %v4639_v58 = vmul.f32 %v8865_v46, %v10525_v16  ;;  %v4097_v7 = vadd.f32 1.0, %v3777_v62 }
 0x48d   : > { %v8869_v1 = vpop.eup %8868  ;;  %v5505_v57 = vmul.f32 %v8867_v17, %v10522_v20  ;;  %v4098_v30 = vadd.f32 1.0, %v3778_v5  ;;  %8874 = vpow2.f32 %v3033_v26  ;;  %v2915_v51 = vunpack.c.l.bf16 %v2608_v24 }
 0x48e   : > { %v8871_v15 = vpop.eup %8870  ;;  %v4640_v3 = vpack.c.bf16 %v4637_v52, %v4639_v58  ;;  %v5507_v6 = vmul.f32 %v8869_v1, %v10525_v16  ;;  %8876 = vpow2.f32 %v3035_v39  ;;  %v2916_v29 = vunpack.c.h.bf16 %v2608_v24  ;;  %v12906_v39 = vpop.f32.mrf.mxu3 }
 0x48f   : > { %v8873_v9 = vpop.eup %8872  ;;  %v5937_v31 = vunpack.c.l.bf16 %v12809_v25  ;;  %v5938_v19 = vunpack.c.h.bf16 %v12809_v25  ;;  %v4399_v10 = vpack.c.bf16 %v4098_v30, %v4097_v7  ;;  %v3529_v18 = vmul.f32 1.442695, %v2915_v51 }
 0x490   : > { %v6009_v11 = vunpack.c.l.bf16 %v4640_v3  ;;  %v6010_v42 = vunpack.c.h.bf16 %v4640_v3  ;;  %v5508_v59 = vpack.c.bf16 %v5505_v57, %v5507_v6  ;;  %v3723_v12 = vpack.c.bf16 %v8873_v9, %v8871_v15 }
 0x491   : > { %v4669_v4 = vunpack.c.h.bf16 %v4399_v10  ;;  %v4670_v0 = vunpack.c.l.bf16 %v4399_v10  ;;  %8878 = vpow2.f32 %v3529_v18  ;;  %v3531_v47 = vmul.f32 1.442695, %v2916_v29 }
 0x492   : > { %v6329_v45 = vmul.f32 %v6009_v11, %v5689_v2  ;;  %v6330_v50 = vmul.f32 %v6010_v42, %v5690_v55  ;;  %v6257_v52 = vunpack.c.l.bf16 %v5508_v59  ;;  %v6258_v62 = vunpack.c.h.bf16 %v5508_v59 }
 0x493   : > { %v8875_v25 = vpop.eup %8874  ;;  %8880 = vrcp.f32 %v4669_v4  ;;  %v4025_v46 = vunpack.c.l.bf16 %v3723_v12  ;;  %v4026_v5 = vunpack.c.h.bf16 %v3723_v12  ;;  %v1852_v26 = vadd.f32 %v12848_v54, %v11441_v21 }
 0x494   : > { %v8877_v24 = vpop.eup %8876  ;;  %v6636_v17 = vpack.c.bf16 %v6330_v50, %v6329_v45  ;;  %v6577_v40 = vmul.f32 %v6257_v52, %v5937_v31  ;;  %v6578_v58 = vmul.f32 %v6258_v62, %v5938_v19  ;;  %8882 = vrcp.f32 %v4670_v0 }
 0x495   : > { %v4345_v7 = vadd.f32 1.0, %v4025_v46  ;;  %v4346_v1 = vadd.f32 1.0, %v4026_v5  ;;  %v3604_v2 = vpack.c.bf16 %v8877_v24, %v8875_v25  ;;  %8884 = vpow2.f32 %v3531_v47 }
 0x496   : > { %v6809_v55 = vunpack.c.l.bf16 %v6636_v17  ;;  %v6810_v57 = vunpack.c.h.bf16 %v6636_v17  ;;  %v6760_v30 = vpack.c.bf16 %v6578_v58, %v6577_v40  ;;  %v1967_v51 = vadd.f32 %v12828_v32, %v12673_v53  ;;  %v12936_v24 = vpop.f32.mrf.mxu3  ;;  %7854 = vmatmul.msk.bf16.gmra.mxu3 %vm425_vm0, %v14281_v36 }
 0x497   : > { %v8879_v15 = vpop.eup %8878  ;;  %v4523_v3 = vpack.c.bf16 %v4346_v1, %v4345_v7  ;;  %v3787_v54 = vunpack.c.l.bf16 %v3604_v2  ;;  %v3788_v6 = vunpack.c.h.bf16 %v3604_v2  ;;  %v1941_v29 = vadd.f32 %v12877_v35, %v11436_v27 }
 0x498   : > { %v12913_v9 = vadd.f32 %v12862_v61, %v6809_v55  ;;  %v12916_v31 = vadd.f32 %v12864_v43, %v6810_v57  ;;  %v7057_v19 = vunpack.c.l.bf16 %v6760_v30  ;;  %v7058_v10 = vunpack.c.h.bf16 %v6760_v30  ;;  %v12928_v43 = vpop.f32.mrf.mxu1  ;;  %v2068_v55 = vpop.f32.mrf.mxu0 }
 0x499   : > { %v8881_v18 = vpop.eup %8880  ;;  %v5537_v11 = vunpack.c.h.bf16 %v4523_v3  ;;  %v5538_v42 = vunpack.c.l.bf16 %v4523_v3  ;;  %v4107_v59 = vadd.f32 1.0, %v3787_v54  ;;  %v4108_v32 = vadd.f32 1.0, %v3788_v6 }
 0x49a   : > { %v8883_v12 = vpop.eup %8882  ;;  %v12919_v4 = vadd.f32 %v12890_v63, %v7057_v19  ;;  %v12922_v0 = vadd.f32 %v12893_v44, %v7058_v10  ;;  %v4672_v61 = vmul.f32 %v8881_v18, %v10522_v20  ;;  %v12926_v35 = vpack.c.bf16 %v12650_v38, %v1967_v51 }
 0x49b   : > { %v8885_v47 = vpop.eup %8884  ;;  %v4674_v45 = vmul.f32 %v8883_v12, %v10525_v16  ;;  %8886 = vrcp.f32 %v5537_v11  ;;  %v4404_v50 = vpack.c.bf16 %v4108_v32, %v4107_v59  ;;  %v12931_v52 = vpack.c.bf16 %v1941_v29, %v1852_v26  ;;  %v12941_v29 = vpop.f32.mrf.mxu2 }
 0x49c   : > { %v5699_v63 = vunpack.c.l.bf16 %v12834_v8  ;;  %8888 = vrcp.f32 %v5538_v42  ;;  %v3728_v62 = vpack.c.bf16 %v8885_v47, %v8879_v15  ;;  %v2489_v44 = vxor.u32 2147516416, %v12926_v35 }
 0x49d   : > { %v4675_v25 = vpack.c.bf16 %v4672_v61, %v4674_v45  ;;  %v5700_v46 = vunpack.c.h.bf16 %v12834_v8  ;;  %v4704_v38 = vunpack.c.h.bf16 %v4404_v50  ;;  %v4705_v5 = vunpack.c.l.bf16 %v4404_v50 }
 0x49e   : > { %v4035_v17 = vunpack.c.l.bf16 %v3728_v62  ;;  %v4036_v40 = vunpack.c.h.bf16 %v3728_v62  ;;  %v2677_v26 = vunpack.c.l.bf16 %v2489_v44  ;;  %v2678_v58 = vunpack.c.h.bf16 %v2489_v44 }
 0x49f   : > { %v6019_v7 = vunpack.c.l.bf16 %v4675_v25  ;;  %v6020_v1 = vunpack.c.h.bf16 %v4675_v25  ;;  %8890 = vrcp.f32 %v4704_v38  ;;  %v2613_v2 = vxor.u32 2147516416, %v12931_v52 }
 0x4a0   : > { %8892 = vrcp.f32 %v4705_v5  ;;  %v4355_v57 = vadd.f32 1.0, %v4035_v17  ;;  %v4356_v8 = vadd.f32 1.0, %v4036_v40  ;;  %v3053_v30 = vmul.f32 1.442695, %v2677_v26  ;;  %v12948_v50 = vpop.f32.mrf.mxu1  ;;  %7883 = vmatmul.msk.bf16.gmra.mxu1 %vm425_vm0, %v14292_v14 }
 0x4a1   : > { %v8887_v51 = vpop.eup %8886  ;;  %v6339_v15 = vmul.f32 %v6019_v7, %v5699_v63  ;;  %v6340_v3 = vmul.f32 %v6020_v1, %v5700_v46  ;;  %v3055_v54 = vmul.f32 1.442695, %v2678_v58  ;;  %v2925_v6 = vunpack.c.l.bf16 %v2613_v2 }
 0x4a2   : > { %v8889_v19 = vpop.eup %8888  ;;  %v5540_v10 = vmul.f32 %v8887_v51, %v10522_v20  ;;  %v4528_v18 = vpack.c.bf16 %v4356_v8, %v4355_v57  ;;  %8894 = vpow2.f32 %v3053_v30  ;;  %v2926_v11 = vunpack.c.h.bf16 %v2613_v2 }
 0x4a3   : > { %v6641_v42 = vpack.c.bf16 %v6340_v3, %v6339_v15  ;;  %v5542_v59 = vmul.f32 %v8889_v19, %v10525_v16  ;;  %8896 = vpow2.f32 %v3055_v54  ;;  %v3549_v32 = vmul.f32 1.442695, %v2925_v6 }
 0x4a4   : > { %v12946_v12 = vadd.f32 %v2068_v55, %v12451_v41  ;;  %v5572_v61 = vunpack.c.h.bf16 %v4528_v18  ;;  %v5573_v47 = vunpack.c.l.bf16 %v4528_v18  ;;  %v3551_v45 = vmul.f32 1.442695, %v2926_v11 }
 0x4a5   : > { %v8891_v63 = vpop.eup %8890  ;;  %v6819_v62 = vunpack.c.l.bf16 %v6641_v42  ;;  %v6820_v44 = vunpack.c.h.bf16 %v6641_v42  ;;  %v5543_v25 = vpack.c.bf16 %v5540_v10, %v5542_v59  ;;  %8898 = vpow2.f32 %v3549_v32 }
 0x4a6   : > { %v8893_v46 = vpop.eup %8892  ;;  %v5947_v38 = vunpack.c.l.bf16 %v12837_v49  ;;  %v5948_v5 = vunpack.c.h.bf16 %v12837_v49  ;;  %v4707_v17 = vmul.f32 %v8891_v63, %v10522_v20  ;;  %8900 = vrcp.f32 %v5572_v61 }
 0x4a7   : > { %v7301_v40 = vadd.f32 %v12913_v9, %v6819_v62  ;;  %v7332_v26 = vadd.f32 %v12916_v31, %v6820_v44  ;;  %v6267_v58 = vunpack.c.l.bf16 %v5543_v25  ;;  %v6268_v7 = vunpack.c.h.bf16 %v5543_v25  ;;  %v2070_v9 = vpop.f32.mrf.mxu0 }
 0x4a8   : > { %v8895_v1 = vpop.eup %8894  ;;  %v4709_v2 = vmul.f32 %v8893_v46, %v10525_v16  ;;  %v5709_v55 = vunpack.c.l.bf16 %v12840_v48  ;;  %8902 = vrcp.f32 %v5573_v47  ;;  %v1970_v57 = vadd.f32 %v12906_v39, %v12673_v53 }
 0x4a9   : > { %v8897_v8 = vpop.eup %8896  ;;  %v6587_v49 = vmul.f32 %v6267_v58, %v5947_v38  ;;  %v6588_v30 = vmul.f32 %v6268_v7, %v5948_v5  ;;  %v5710_v51 = vunpack.c.h.bf16 %v12840_v48  ;;  %8904 = vpow2.f32 %v3551_v45  ;;  %v12971_v48 = vpop.f32.mrf.mxu2  ;;  %7899 = vmatmul.msk.bf16.gmra.mxu2 %vm425_vm0, %v14292_v14 }
 0x4aa   : > { %v4710_v15 = vpack.c.bf16 %v4707_v17, %v4709_v2  ;;  %v5957_v31 = vunpack.c.l.bf16 %v12885_v34  ;;  %v3609_v3 = vpack.c.bf16 %v8897_v8, %v8895_v1  ;;  %v12964_v54 = vpack.c.bf16 %v12770_v37, %v1970_v57 }
 0x4ab   : > { %v8899_v6 = vpop.eup %8898  ;;  %v6765_v19 = vpack.c.bf16 %v6588_v30, %v6587_v49  ;;  %v5958_v10 = vunpack.c.h.bf16 %v12885_v34  ;;  %v1854_v39 = vadd.f32 %v12858_v13, %v11441_v21  ;;  %v1943_v18 = vadd.f32 %v12900_v33, %v11436_v27 }
 0x4ac   : > { %v8901_v11 = vpop.eup %8900  ;;  %v6029_v42 = vunpack.c.l.bf16 %v4710_v15  ;;  %v6030_v59 = vunpack.c.h.bf16 %v4710_v15  ;;  %v3797_v37 = vunpack.c.l.bf16 %v3609_v3  ;;  %v3798_v32 = vunpack.c.h.bf16 %v3609_v3 }
 0x4ad   : > { %v7067_v61 = vunpack.c.l.bf16 %v6765_v19  ;;  %v7068_v47 = vunpack.c.h.bf16 %v6765_v19  ;;  %v5575_v34 = vmul.f32 %v8901_v11, %v10522_v20  ;;  %v2494_v45 = vxor.u32 2147516416, %v12964_v54 }
 0x4ae   : > { %v8903_v21 = vpop.eup %8902  ;;  %v6349_v13 = vmul.f32 %v6029_v42, %v5709_v55  ;;  %v6350_v63 = vmul.f32 %v6030_v59, %v5710_v51  ;;  %v4117_v27 = vadd.f32 1.0, %v3797_v37  ;;  %v4118_v33 = vadd.f32 1.0, %v3798_v32 }
 0x4af   : > { %v8905_v62 = vpop.eup %8904  ;;  %v7264_v44 = vadd.f32 %v12919_v4, %v7067_v61  ;;  %v7295_v14 = vadd.f32 %v12922_v0, %v7068_v47  ;;  %v5577_v25 = vmul.f32 %v8903_v21, %v10525_v16  ;;  %v2687_v46 = vunpack.c.l.bf16 %v2494_v45  ;;  %v2073_v3 = vpop.f32.mrf.mxu0 }
 0x4b0   : > { %v6646_v38 = vpack.c.bf16 %v6350_v63, %v6349_v13  ;;  %v4409_v5 = vpack.c.bf16 %v4118_v33, %v4117_v27  ;;  %v3733_v17 = vpack.c.bf16 %v8905_v62, %v8899_v6  ;;  %v2688_v58 = vunpack.c.h.bf16 %v2494_v45 }
 0x4b1   : > { %v5578_v7 = vpack.c.bf16 %v5575_v34, %v5577_v25  ;;  %v3073_v1 = vmul.f32 1.442695, %v2687_v46  ;;  %v12980_v2 = vpack.c.bf16 %v1943_v18, %v1854_v39  ;;  %v1972_v55 = vadd.f32 %v12936_v24, %v12673_v53  ;;  %v1240_v39 = vld [vmem:[%s14025_s4 + $0x8] sm:$0x3] }
 0x4b2   : > { %v6829_v57 = vunpack.c.l.bf16 %v6646_v38  ;;  %v6830_v8 = vunpack.c.h.bf16 %v6646_v38  ;;  %v4739_v49 = vunpack.c.h.bf16 %v4409_v5  ;;  %v4740_v4 = vunpack.c.l.bf16 %v4409_v5 }
 0x4b3   : > { %v6277_v30 = vunpack.c.l.bf16 %v5578_v7  ;;  %v6278_v0 = vunpack.c.h.bf16 %v5578_v7  ;;  %v4045_v51 = vunpack.c.l.bf16 %v3733_v17  ;;  %v4046_v15 = vunpack.c.h.bf16 %v3733_v17 }
 0x4b4   : > { %v12984_v19 = vadd.f32 %v7301_v40, %v6829_v57  ;;  %v12986_v6 = vadd.f32 %v7332_v26, %v6830_v8  ;;  %8906 = vrcp.f32 %v4739_v49  ;;  %v3075_v11 = vmul.f32 1.442695, %v2688_v58 }
 0x4b5   : > { %v6597_v24 = vmul.f32 %v6277_v30, %v5957_v31  ;;  %v6598_v18 = vmul.f32 %v6278_v0, %v5958_v10  ;;  %8908 = vrcp.f32 %v4740_v4  ;;  %v4365_v42 = vadd.f32 1.0, %v4045_v51 }
 0x4b6   : > { %v12992_v59 = vadd.f32 %v2070_v9, %v12451_v41  ;;  %v4366_v37 = vadd.f32 1.0, %v4046_v15  ;;  %8910 = vpow2.f32 %v3073_v1  ;;  %v2618_v40 = vxor.u32 2147516416, %v12980_v2 }
 0x4b7   : > { %v12996_v26 = vadd.f32 %v2073_v3, %v12451_v41  ;;  %v6770_v32 = vpack.c.bf16 %v6598_v18, %v6597_v24  ;;  %8912 = vpow2.f32 %v3075_v11  ;;  %v12998_v61 = vperm.slane %v1240_v39, 0  ;;  %v1974_v18 = vpop.f32.mrf.mxu3 }
 0x4b8   : > { %v4533_v47 = vpack.c.bf16 %v4366_v37, %v4365_v42  ;;  %v2935_v34 = vunpack.c.l.bf16 %v2618_v40  ;;  %v2936_v31 = vunpack.c.h.bf16 %v2618_v40  ;;  %v13001_v10 = vpack.c.bf16 %v12803_v28, %v1972_v55  ;;  %v13024_v42 = vpop.f32.mrf.mxu1 }
 0x4b9   : > { %v7077_v45 = vunpack.c.l.bf16 %v6770_v32  ;;  %v7078_v9 = vunpack.c.h.bf16 %v6770_v32  ;;  %v5719_v21 = vunpack.c.l.bf16 %v12926_v35  ;;  %v13004_v13 = vperm.slane %v1240_v39, 1 }
 0x4ba   : > { %v8907_v63 = vpop.eup %8906  ;;  %v5607_v27 = vunpack.c.h.bf16 %v4533_v47  ;;  %v5608_v33 = vunpack.c.l.bf16 %v4533_v47  ;;  %v3569_v62 = vmul.f32 1.442695, %v2935_v34  ;;  %v3571_v25 = vmul.f32 1.442695, %v2936_v31 }
 0x4bb   : > { %v8909_v46 = vpop.eup %8908  ;;  %v13006_v38 = vadd.f32 %v7264_v44, %v7077_v45  ;;  %v13008_v5 = vadd.f32 %v7295_v14, %v7078_v9  ;;  %v4742_v17 = vmul.f32 %v8907_v63, %v10522_v20  ;;  %v2499_v28 = vxor.u32 2147516416, %v13001_v10 }
 0x4bc   : > { %v8911_v58 = vpop.eup %8910  ;;  %v4744_v7 = vmul.f32 %v8909_v46, %v10525_v16  ;;  %v5720_v1 = vunpack.c.h.bf16 %v12926_v35  ;;  %8914 = vrcp.f32 %v5607_v27  ;;  %v2133_v55 = vadd.f32 %v12928_v43, %v12998_v61 }
 0x4bd   : > { %v8913_v57 = vpop.eup %8912  ;;  %8916 = vrcp.f32 %v5608_v33  ;;  %v2697_v8 = vunpack.c.l.bf16 %v2499_v28  ;;  %v2698_v44 = vunpack.c.h.bf16 %v2499_v28  ;;  %v2222_v14 = vadd.f32 %v12941_v29, %v13004_v13 }
 0x4be   : > { %v4745_v49 = vpack.c.bf16 %v4742_v17, %v4744_v7  ;;  %v5967_v4 = vunpack.c.l.bf16 %v12931_v52  ;;  %v3614_v30 = vpack.c.bf16 %v8913_v57, %v8911_v58  ;;  %8918 = vpow2.f32 %v3569_v62 }
 0x4bf   : > { %8920 = vpow2.f32 %v3571_v25  ;;  %v3093_v0 = vmul.f32 1.442695, %v2697_v8  ;;  %v3095_v51 = vmul.f32 1.442695, %v2698_v44  ;;  %v13019_v35 = vpack.c.bf16 %v2222_v14, %v2133_v55 }
 0x4c0   : > { %v6039_v15 = vunpack.c.l.bf16 %v4745_v49  ;;  %v6040_v3 = vunpack.c.h.bf16 %v4745_v49  ;;  %v3807_v43 = vunpack.c.l.bf16 %v3614_v30  ;;  %v3808_v11 = vunpack.c.h.bf16 %v3614_v30 }
 0x4c1   : > { %v5968_v39 = vunpack.c.h.bf16 %v12931_v52  ;;  %v5729_v24 = vunpack.c.l.bf16 %v12964_v54  ;;  %8922 = vpow2.f32 %v3093_v0  ;;  %v2465_v29 = vxor.u32 2147516416, %v13019_v35 }
 0x4c2   : > { %v8915_v37 = vpop.eup %8914  ;;  %v6359_v40 = vmul.f32 %v6039_v15, %v5719_v21  ;;  %v6360_v32 = vmul.f32 %v6040_v3, %v5720_v1  ;;  %v4127_v47 = vadd.f32 1.0, %v3807_v43  ;;  %v4128_v34 = vadd.f32 1.0, %v3808_v11 }
 0x4c3   : > { %v8917_v31 = vpop.eup %8916  ;;  %v5610_v45 = vmul.f32 %v8915_v37, %v10522_v20  ;;  %8924 = vpow2.f32 %v3095_v51  ;;  %v2629_v9 = vunpack.c.l.bf16 %v2465_v29  ;;  %v2630_v63 = vunpack.c.h.bf16 %v2465_v29 }
 0x4c4   : > { %v8919_v52 = vpop.eup %8918  ;;  %v6651_v27 = vpack.c.bf16 %v6360_v32, %v6359_v40  ;;  %v5612_v33 = vmul.f32 %v8917_v31, %v10525_v16  ;;  %v4414_v62 = vpack.c.bf16 %v4128_v34, %v4127_v47  ;;  %v1975_v25 = vadd.f32 %v1974_v18, %v12673_v53  ;;  %v13041_v47 = vpop.f32.mrf.mxu1  ;;  %7884 = vmatmul.msk.bf16.gmra.mxu1 %vm425_vm0, %v14294_v56 }
 0x4c5   : > { %v8921_v46 = vpop.eup %8920  ;;  %v5730_v17 = vunpack.c.h.bf16 %v12964_v54  ;;  %v5977_v21 = vunpack.c.l.bf16 %v12980_v2  ;;  %v2957_v28 = vmul.f32 1.442695, %v2629_v9  ;;  %v2959_v58 = vmul.f32 1.442695, %v2630_v63  ;;  %v2226_v9 = vpop.f32.mrf.mxu2 }
 0x4c6   : > { %v6839_v7 = vunpack.c.l.bf16 %v6651_v27  ;;  %v6840_v1 = vunpack.c.h.bf16 %v6651_v27  ;;  %v5613_v55 = vpack.c.bf16 %v5610_v45, %v5612_v33  ;;  %v4774_v57 = vunpack.c.h.bf16 %v4414_v62 }
 0x4c7   : > { %v8923_v8 = vpop.eup %8922  ;;  %v4775_v44 = vunpack.c.l.bf16 %v4414_v62  ;;  %v3738_v14 = vpack.c.bf16 %v8921_v46, %v8919_v52  ;;  %8926 = vpow2.f32 %v2957_v28  ;;  %v13032_v49 = vpack.c.bf16 %v12867_v22, %v1975_v25 }
 0x4c8   : > { %v13035_v30 = vadd.f32 %v12984_v19, %v6839_v7  ;;  %v13038_v0 = vadd.f32 %v12986_v6, %v6840_v1  ;;  %v6287_v51 = vunpack.c.l.bf16 %v5613_v55  ;;  %v6288_v15 = vunpack.c.h.bf16 %v5613_v55 }
 0x4c9   : > { %v8925_v3 = vpop.eup %8924  ;;  %8928 = vrcp.f32 %v4774_v57  ;;  %v4055_v43 = vunpack.c.l.bf16 %v3738_v14  ;;  %v4056_v11 = vunpack.c.h.bf16 %v3738_v14  ;;  %v2504_v29 = vxor.u32 2147516416, %v13032_v49 }
 0x4ca   : > { %v6607_v18 = vmul.f32 %v6287_v51, %v5967_v4  ;;  %v6608_v37 = vmul.f32 %v6288_v15, %v5968_v39  ;;  %8930 = vrcp.f32 %v4775_v44  ;;  %v3619_v40 = vpack.c.bf16 %v8925_v3, %v8923_v8 }
 0x4cb   : > { %v4375_v22 = vadd.f32 1.0, %v4055_v43  ;;  %v4376_v32 = vadd.f32 1.0, %v4056_v11  ;;  %8932 = vpow2.f32 %v2959_v58  ;;  %v2707_v19 = vunpack.c.l.bf16 %v2504_v29 }
 0x4cc   : > { %v5978_v6 = vunpack.c.h.bf16 %v12980_v2  ;;  %v3817_v34 = vunpack.c.l.bf16 %v3619_v40  ;;  %v3818_v31 = vunpack.c.h.bf16 %v3619_v40  ;;  %v2708_v45 = vunpack.c.h.bf16 %v2504_v29  ;;  %v1976_v40 = vpop.f32.mrf.mxu3  ;;  %v13081_v54 = vpop.f32.mrf.mxu1 }
 0x4cd   : > { %v8927_v63 = vpop.eup %8926  ;;  %v13046_v4 = vpack.c.bf16 %v6608_v37, %v6607_v18  ;;  %v4538_v39 = vpack.c.bf16 %v4376_v32, %v4375_v22  ;;  %v3113_v52 = vmul.f32 1.442695, %v2707_v19  ;;  %v2224_v27 = vadd.f32 %v12971_v48, %v13004_v13 }
 0x4ce   : > { %v4137_v33 = vadd.f32 1.0, %v3817_v34  ;;  %v4138_v62 = vadd.f32 1.0, %v3818_v31  ;;  %v5739_v25 = vunpack.c.l.bf16 %v13001_v10  ;;  %v5740_v46 = vunpack.c.h.bf16 %v13001_v10 }
 0x4cf   : > { %v8929_v28 = vpop.eup %8928  ;;  %v5642_v58 = vunpack.c.h.bf16 %v4538_v39  ;;  %v5643_v7 = vunpack.c.l.bf16 %v4538_v39  ;;  %v2135_v1 = vadd.f32 %v12948_v50, %v12998_v61  ;;  %v3115_v55 = vmul.f32 1.442695, %v2708_v45 }
 0x4d0   : > { %v8931_v57 = vpop.eup %8930  ;;  %v4777_v8 = vmul.f32 %v8929_v28, %v10522_v20  ;;  %v4419_v44 = vpack.c.bf16 %v4138_v62, %v4137_v33  ;;  %v5671_v14 = vunpack.c.l.bf16 %v13019_v35  ;;  %8934 = vpow2.f32 %v3113_v52  ;;  %v13065_v62 = vpop.f32.mrf.mxu2  ;;  %7900 = vmatmul.msk.bf16.gmra.mxu2 %vm425_vm0, %v14294_v56 }
 0x4d1   : > { %v8933_v48 = vpop.eup %8932  ;;  %v7087_v51 = vunpack.c.l.bf16 %v13046_v4  ;;  %v4779_v15 = vmul.f32 %v8931_v57, %v10525_v16  ;;  %8936 = vrcp.f32 %v5642_v58  ;;  %v13058_v3 = vpack.c.bf16 %v2224_v27, %v2135_v1 }
 0x4d2   : > { %8938 = vrcp.f32 %v5643_v7  ;;  %v4809_v43 = vunpack.c.h.bf16 %v4419_v44  ;;  %v4810_v11 = vunpack.c.l.bf16 %v4419_v44  ;;  %v3585_v50 = vpack.c.bf16 %v8933_v48, %v8927_v63 }
 0x4d3   : > { %v7088_v29 = vunpack.c.h.bf16 %v13046_v4  ;;  %v4780_v18 = vpack.c.bf16 %v4777_v8, %v4779_v15  ;;  %8940 = vpow2.f32 %v3115_v55  ;;  %v2470_v37 = vxor.u32 2147516416, %v13058_v3 }
 0x4d4   : > { %8942 = vrcp.f32 %v4809_v43  ;;  %v3749_v22 = vunpack.c.l.bf16 %v3585_v50  ;;  %v3750_v32 = vunpack.c.h.bf16 %v3585_v50  ;;  %v2138_v19 = vadd.f32 %v13024_v42, %v12998_v61 }
 0x4d5   : > { %v6049_v34 = vunpack.c.l.bf16 %v4780_v18  ;;  %v6050_v31 = vunpack.c.h.bf16 %v4780_v18  ;;  %8944 = vrcp.f32 %v4810_v11  ;;  %v2639_v45 = vunpack.c.l.bf16 %v2470_v37 }
 0x4d6   : > { %v8935_v39 = vpop.eup %8934  ;;  %v4069_v52 = vadd.f32 1.0, %v3749_v22  ;;  %v4070_v63 = vadd.f32 1.0, %v3750_v32  ;;  %v2640_v27 = vunpack.c.h.bf16 %v2470_v37  ;;  %v1977_v33 = vadd.f32 %v1976_v40, %v12673_v53 }
 0x4d7   : > { %v8937_v28 = vpop.eup %8936  ;;  %v6369_v58 = vmul.f32 %v6049_v34, %v5729_v24  ;;  %v6370_v42 = vmul.f32 %v6050_v31, %v5730_v17  ;;  %v2977_v7 = vmul.f32 1.442695, %v2639_v45  ;;  %v2227_v1 = vadd.f32 %v2226_v9, %v13004_v13 }
 0x4d8   : > { %v8939_v55 = vpop.eup %8938  ;;  %v5645_v57 = vmul.f32 %v8937_v28, %v10522_v20  ;;  %v4385_v8 = vpack.c.bf16 %v4070_v63, %v4069_v52  ;;  %v2979_v44 = vmul.f32 1.442695, %v2640_v27  ;;  %v13076_v48 = vpack.c.bf16 %v12870_v23, %v1977_v33 }
 0x4d9   : > { %v8941_v15 = vpop.eup %8940  ;;  %v6656_v56 = vpack.c.bf16 %v6370_v42, %v6369_v58  ;;  %v5647_v43 = vmul.f32 %v8939_v55, %v10525_v16  ;;  %8946 = vpow2.f32 %v2977_v7  ;;  %v13079_v24 = vpack.c.bf16 %v2227_v1, %v2138_v19  ;;  %v2075_v58 = vpop.f32.mrf.mxu0 }
 0x4da   : > { %v8943_v17 = vpop.eup %8942  ;;  %v4571_v11 = vunpack.c.h.bf16 %v4385_v8  ;;  %v4572_v9 = vunpack.c.l.bf16 %v4385_v8  ;;  %v3624_v50 = vpack.c.bf16 %v8941_v15, %v8935_v39  ;;  %8948 = vpow2.f32 %v2979_v44 }
 0x4db   : > { %v8945_v18 = vpop.eup %8944  ;;  %v6849_v37 = vunpack.c.l.bf16 %v6656_v56  ;;  %v6850_v40 = vunpack.c.h.bf16 %v6656_v56  ;;  %v5648_v22 = vpack.c.bf16 %v5645_v57, %v5647_v43  ;;  %v4812_v23 = vmul.f32 %v8943_v17, %v10522_v20 }
 0x4dc   : > { %v4814_v32 = vmul.f32 %v8945_v18, %v10525_v16  ;;  %8950 = vrcp.f32 %v4571_v11  ;;  %v3827_v34 = vunpack.c.l.bf16 %v3624_v50  ;;  %v3828_v31 = vunpack.c.h.bf16 %v3624_v50 }
 0x4dd   : > { %v7304_v19 = vadd.f32 %v13035_v30, %v6849_v37  ;;  %v7335_v45 = vadd.f32 %v13038_v0, %v6850_v40  ;;  %v6297_v52 = vunpack.c.l.bf16 %v5648_v22  ;;  %v6298_v63 = vunpack.c.h.bf16 %v5648_v22 }
 0x4de   : > { %v4815_v27 = vpack.c.bf16 %v4812_v23, %v4814_v32  ;;  %8952 = vrcp.f32 %v4572_v9  ;;  %v4147_v39 = vadd.f32 1.0, %v3827_v34  ;;  %v4148_v33 = vadd.f32 1.0, %v3828_v31  ;;  %v13103_v9 = vpop.f32.mrf.mxu1  ;;  %7885 = vmatmul.msk.bf16.gmra.mxu1 %vm425_vm0, %v14296_v60 }
 0x4df   : > { %v8947_v28 = vpop.eup %8946  ;;  %v7266_v42 = vadd.f32 %v13006_v38, %v7087_v51  ;;  %v6617_v7 = vmul.f32 %v6297_v52, %v5977_v21  ;;  %v6618_v30 = vmul.f32 %v6298_v63, %v5978_v6  ;;  %v2509_v0 = vxor.u32 2147516416, %v13076_v48  ;;  %v13108_v52 = vpop.f32.mrf.mxu2 }
 0x4e0   : > { %v8949_v1 = vpop.eup %8948  ;;  %v7297_v55 = vadd.f32 %v13008_v5, %v7088_v29  ;;  %v6059_v57 = vunpack.c.l.bf16 %v4815_v27  ;;  %v6060_v8 = vunpack.c.h.bf16 %v4815_v27  ;;  %v4424_v44 = vpack.c.bf16 %v4148_v33, %v4147_v39 }
 0x4e1   : > { %v6780_v15 = vpack.c.bf16 %v6618_v30, %v6617_v7  ;;  %v3590_v56 = vpack.c.bf16 %v8949_v1, %v8947_v28  ;;  %v2717_v43 = vunpack.c.l.bf16 %v2509_v0  ;;  %v2718_v38 = vunpack.c.h.bf16 %v2509_v0  ;;  %v1979_v28 = vpop.f32.mrf.mxu3 }
 0x4e2   : > { %v8951_v51 = vpop.eup %8950  ;;  %v6379_v21 = vmul.f32 %v6059_v57, %v5739_v25  ;;  %v6380_v2 = vmul.f32 %v6060_v8, %v5740_v46  ;;  %v4844_v6 = vunpack.c.h.bf16 %v4424_v44  ;;  %v4845_v17 = vunpack.c.l.bf16 %v4424_v44 }
 0x4e3   : > { %v7097_v11 = vunpack.c.l.bf16 %v6780_v15  ;;  %v7098_v4 = vunpack.c.h.bf16 %v6780_v15  ;;  %v4574_v5 = vmul.f32 %v8951_v51, %v10522_v20  ;;  %v3759_v29 = vunpack.c.l.bf16 %v3590_v56 }
 0x4e4   : > { %v8953_v50 = vpop.eup %8952  ;;  %v6661_v18 = vpack.c.bf16 %v6380_v2, %v6379_v21  ;;  %8954 = vrcp.f32 %v4844_v6  ;;  %v3760_v37 = vunpack.c.h.bf16 %v3590_v56  ;;  %v3133_v25 = vmul.f32 1.442695, %v2717_v43 }
 0x4e5   : > { %v7267_v40 = vadd.f32 %v7266_v42, %v7097_v11  ;;  %v7298_v10 = vadd.f32 %v7297_v55, %v7098_v4  ;;  %v4576_v46 = vmul.f32 %v8953_v50, %v10525_v16  ;;  %8956 = vrcp.f32 %v4845_v17  ;;  %v2078_v42 = vpop.f32.mrf.mxu0 }
 0x4e6   : > { %v6859_v22 = vunpack.c.l.bf16 %v6661_v18  ;;  %v6860_v23 = vunpack.c.h.bf16 %v6661_v18  ;;  %v4079_v32 = vadd.f32 1.0, %v3759_v29  ;;  %v4080_v34 = vadd.f32 1.0, %v3760_v37 }
 0x4e7   : > { %v4577_v31 = vpack.c.bf16 %v4574_v5, %v4576_v46  ;;  %8958 = vpow2.f32 %v3133_v25  ;;  %v3135_v33 = vmul.f32 1.442695, %v2718_v38  ;;  %7437 = vst [vmem:[%s11653_s13 + $0x20] sm:$0xff] %v7267_v40  ;;  %v5672_v7 = vunpack.c.h.bf16 %v13019_v35 }
 0x4e8   : > { %v13110_v63 = vadd.f32 %v7304_v19, %v6859_v22  ;;  %v13112_v27 = vadd.f32 %v7335_v45, %v6860_v23  ;;  %v4390_v39 = vpack.c.bf16 %v4080_v34, %v4079_v32  ;;  %v2475_v1 = vxor.u32 2147516416, %v13079_v24  ;;  %7438 = vst [vmem:[%s11653_s13 + $0x28] sm:$0xff] %v7298_v10  ;;  %v13145_v22 = vpop.f32.mrf.mxu2  ;;  %7901 = vmatmul.msk.bf16.gmra.mxu2 %vm425_vm0, %v14296_v60 }
 0x4e9   : > { %v5991_v30 = vunpack.c.l.bf16 %v4577_v31  ;;  %v5992_v0 = vunpack.c.h.bf16 %v4577_v31  ;;  %v13118_v57 = vadd.f32 %v2075_v58, %v12451_v41  ;;  %8960 = vpow2.f32 %v3135_v33  ;;  %v1981_v31 = vpop.f32.mrf.mxu3 }
 0x4ea   : > { %v8955_v55 = vpop.eup %8954  ;;  %v4606_v19 = vunpack.c.h.bf16 %v4390_v39  ;;  %v4607_v8 = vunpack.c.l.bf16 %v4390_v39  ;;  %v2649_v43 = vunpack.c.l.bf16 %v2475_v1  ;;  %v13125_v38 = vadd.f32 %v2078_v42, %v12451_v41 }
 0x4eb   : > { %v8957_v45 = vpop.eup %8956  ;;  %v6311_v44 = vmul.f32 %v5991_v30, %v5671_v14  ;;  %v6312_v15 = vmul.f32 %v5992_v0, %v5672_v7  ;;  %v4847_v56 = vmul.f32 %v8955_v55, %v10522_v20  ;;  %v2650_v58 = vunpack.c.h.bf16 %v2475_v1 }
 0x4ec   : > { %v4849_v51 = vmul.f32 %v8957_v45, %v10525_v16  ;;  %8962 = vrcp.f32 %v4606_v19  ;;  %v5749_v2 = vunpack.c.l.bf16 %v13032_v49  ;;  %v5750_v6 = vunpack.c.h.bf16 %v13032_v49 }
 0x4ed   : > { %v8959_v21 = vpop.eup %8958  ;;  %8964 = vrcp.f32 %v4607_v8  ;;  %v2997_v17 = vmul.f32 1.442695, %v2649_v43  ;;  %v2999_v14 = vmul.f32 1.442695, %v2650_v58  ;;  %v1980_v11 = vadd.f32 %v1979_v28, %v12673_v53 }
 0x4ee   : > { %v4850_v35 = vpack.c.bf16 %v4847_v56, %v4849_v51  ;;  %v2229_v4 = vadd.f32 %v13065_v62, %v13004_v13  ;;  %v13133_v5 = vpack.c.bf16 %v6312_v15, %v6311_v44  ;;  %v5681_v29 = vunpack.c.l.bf16 %v13058_v3 }
 0x4ef   : > { %8966 = vpow2.f32 %v2997_v17  ;;  %v2140_v50 = vadd.f32 %v13041_v47, %v12998_v61  ;;  %v8961_v18 = vpop.eup %8960  ;;  %v13139_v25 = vpack.c.bf16 %v12946_v12, %v1980_v11  ;;  %v5682_v40 = vunpack.c.h.bf16 %v13058_v3 }
 0x4f0   : > { %v6069_v37 = vunpack.c.l.bf16 %v4850_v35  ;;  %v6070_v49 = vunpack.c.h.bf16 %v4850_v35  ;;  %8968 = vpow2.f32 %v2999_v14  ;;  %v3629_v10 = vpack.c.bf16 %v8961_v18, %v8959_v21 }
 0x4f1   : > { %v5759_v62 = vunpack.c.l.bf16 %v13076_v48  ;;  %v13143_v46 = vpack.c.bf16 %v2229_v4, %v2140_v50  ;;  %v5760_v34 = vunpack.c.h.bf16 %v13076_v48  ;;  %v2514_v12 = vxor.u32 2147516416, %v13139_v25 }
 0x4f2   : > { %v8963_v47 = vpop.eup %8962  ;;  %v6389_v23 = vmul.f32 %v6069_v37, %v5749_v2  ;;  %v6390_v32 = vmul.f32 %v6070_v49, %v5750_v6  ;;  %v6791_v3 = vunpack.c.l.bf16 %v13133_v5  ;;  %v3837_v28 = vunpack.c.l.bf16 %v3629_v10 }
 0x4f3   : > { %v8965_v39 = vpop.eup %8964  ;;  %v4609_v33 = vmul.f32 %v8963_v47, %v10522_v20  ;;  %v3838_v42 = vunpack.c.h.bf16 %v3629_v10  ;;  %v2727_v0 = vunpack.c.l.bf16 %v2514_v12  ;;  %v2728_v60 = vunpack.c.h.bf16 %v2514_v12 }
 0x4f4   : > { %v6666_v7 = vpack.c.bf16 %v6390_v32, %v6389_v23  ;;  %v4611_v30 = vmul.f32 %v8965_v39, %v10525_v16  ;;  %v4157_v55 = vadd.f32 1.0, %v3837_v28  ;;  %v2480_v8 = vxor.u32 2147516416, %v13143_v46 }
 0x4f5   : > { %v8967_v1 = vpop.eup %8966  ;;  %v4158_v19 = vadd.f32 1.0, %v3838_v42  ;;  %v1982_v45 = vadd.f32 %v1981_v31, %v12673_v53  ;;  %v3153_v51 = vmul.f32 1.442695, %v2727_v0  ;;  %v3155_v2 = vmul.f32 1.442695, %v2728_v60  ;;  %v1984_v0 = vpop.f32.mrf.mxu3 }
 0x4f6   : > { %v8969_v44 = vpop.eup %8968  ;;  %v6869_v15 = vunpack.c.l.bf16 %v6666_v7  ;;  %v6870_v56 = vunpack.c.h.bf16 %v6666_v7  ;;  %v4612_v43 = vpack.c.bf16 %v4609_v33, %v4611_v30  ;;  %v2659_v6 = vunpack.c.l.bf16 %v2480_v8 }
 0x4f7   : > { %v4429_v58 = vpack.c.bf16 %v4158_v19, %v4157_v55  ;;  %v3595_v21 = vpack.c.bf16 %v8969_v44, %v8967_v1  ;;  %8970 = vpow2.f32 %v3153_v51  ;;  %v2660_v47 = vunpack.c.h.bf16 %v2480_v8  ;;  %v13179_v44 = vpop.f32.mrf.mxu1 }
 0x4f8   : > { %v13157_v17 = vadd.f32 %v13110_v63, %v6869_v15  ;;  %v13160_v35 = vadd.f32 %v13112_v27, %v6870_v56  ;;  %v6001_v14 = vunpack.c.l.bf16 %v4612_v43  ;;  %v6002_v11 = vunpack.c.h.bf16 %v4612_v43 }
 0x4f9   : > { %v4879_v4 = vunpack.c.h.bf16 %v4429_v58  ;;  %v4880_v50 = vunpack.c.l.bf16 %v4429_v58  ;;  %v3769_v18 = vunpack.c.l.bf16 %v3595_v21  ;;  %v3770_v37 = vunpack.c.h.bf16 %v3595_v21 }
 0x4fa   : > { %v6321_v49 = vmul.f32 %v6001_v14, %v5681_v29  ;;  %v6322_v10 = vmul.f32 %v6002_v11, %v5682_v40  ;;  %v3017_v12 = vmul.f32 1.442695, %v2659_v6  ;;  %v6792_v63 = vunpack.c.h.bf16 %v13133_v5 }
 0x4fb   : > { %8972 = vrcp.f32 %v4879_v4  ;;  %v4089_v23 = vadd.f32 1.0, %v3769_v18  ;;  %v4090_v32 = vadd.f32 1.0, %v3770_v37  ;;  %v3019_v27 = vmul.f32 1.442695, %v2660_v47 }
 0x4fc   : > { %v6632_v31 = vpack.c.bf16 %v6322_v10, %v6321_v49  ;;  %8974 = vrcp.f32 %v4880_v50  ;;  %v13164_v33 = vpack.c.bf16 %v12992_v59, %v1982_v45  ;;  %v2232_v29 = vadd.f32 %v13108_v52, %v13004_v13 }
 0x4fd   : > { %v4395_v39 = vpack.c.bf16 %v4090_v32, %v4089_v23  ;;  %8976 = vpow2.f32 %v3155_v2  ;;  %v2143_v42 = vadd.f32 %v13081_v54, %v12998_v61  ;;  %v8971_v60 = vpop.eup %8970  ;;  %v5691_v55 = vunpack.c.l.bf16 %v13079_v24 }
 0x4fe   : > { %v6801_v40 = vunpack.c.l.bf16 %v6632_v31  ;;  %v6802_v28 = vunpack.c.h.bf16 %v6632_v31  ;;  %8978 = vpow2.f32 %v3017_v12  ;;  %v2519_v5 = vxor.u32 2147516416, %v13164_v33 }
 0x4ff   : > { %v4641_v7 = vunpack.c.h.bf16 %v4395_v39  ;;  %v4642_v30 = vunpack.c.l.bf16 %v4395_v39  ;;  %8980 = vpow2.f32 %v3019_v27  ;;  %v5692_v52 = vunpack.c.h.bf16 %v13079_v24 }
 0x500   : > { %v13171_v1 = vadd.f32 %v6801_v40, %v6791_v3  ;;  %v13173_v59 = vadd.f32 %v6802_v28, %v6792_v63  ;;  %v2737_v8 = vunpack.c.l.bf16 %v2519_v5  ;;  %v2738_v45 = vunpack.c.h.bf16 %v2519_v5 }
 0x501   : > { %v8973_v19 = vpop.eup %8972  ;;  %8982 = vrcp.f32 %v4641_v7  ;;  %v13177_v54 = vpack.c.bf16 %v2232_v29, %v2143_v42  ;;  %v5769_v3 = vunpack.c.l.bf16 %v13139_v25  ;;  %v1985_v43 = vadd.f32 %v1984_v0, %v12673_v53 }
 0x502   : > { %v8975_v15 = vpop.eup %8974  ;;  %v4882_v56 = vmul.f32 %v8973_v19, %v10522_v20  ;;  %8984 = vrcp.f32 %v4642_v30  ;;  %v3173_v21 = vmul.f32 1.442695, %v2737_v8  ;;  %v3175_v2 = vmul.f32 1.442695, %v2738_v45 }
 0x503   : > { %v8977_v51 = vpop.eup %8976  ;;  %v4884_v58 = vmul.f32 %v8975_v15, %v10525_v16  ;;  %v2485_v6 = vxor.u32 2147516416, %v13177_v54  ;;  %v5770_v4 = vunpack.c.h.bf16 %v13139_v25  ;;  %v5701_v50 = vunpack.c.l.bf16 %v13143_v46 }
 0x504   : > { %v8979_v14 = vpop.eup %8978  ;;  %v3634_v11 = vpack.c.bf16 %v8977_v51, %v8971_v60  ;;  %v13189_v18 = vpack.c.bf16 %v12996_v26, %v1985_v43  ;;  %8986 = vpow2.f32 %v3173_v21  ;;  %v13200_v21 = vpop.f32.mrf.mxu1  ;;  %7886 = vmatmul.msk.bf16.gmra.mxu1 %vm425_vm0, %v14281_v36 }
 0x505   : > { %v8981_v37 = vpop.eup %8980  ;;  %v4885_v49 = vpack.c.bf16 %v4882_v56, %v4884_v58  ;;  %v2669_v10 = vunpack.c.l.bf16 %v2485_v6  ;;  %v2670_v47 = vunpack.c.h.bf16 %v2485_v6  ;;  %8988 = vpow2.f32 %v3175_v2  ;;  %v13198_v58 = vpop.f32.mrf.mxu2 }
 0x506   : > { %v3847_v23 = vunpack.c.l.bf16 %v3634_v11  ;;  %v3848_v32 = vunpack.c.h.bf16 %v3634_v11  ;;  %v3600_v12 = vpack.c.bf16 %v8981_v37, %v8979_v14  ;;  %v2524_v45 = vxor.u32 2147516416, %v13189_v18 }
 0x507   : > { %v8983_v63 = vpop.eup %8982  ;;  %v6079_v31 = vunpack.c.l.bf16 %v4885_v49  ;;  %v6080_v27 = vunpack.c.h.bf16 %v4885_v49  ;;  %v3037_v39 = vmul.f32 1.442695, %v2669_v10  ;;  %v3039_v29 = vmul.f32 1.442695, %v2670_v47 }
 0x508   : > { %v8985_v40 = vpop.eup %8984  ;;  %v4644_v28 = vmul.f32 %v8983_v63, %v10522_v20  ;;  %v4167_v42 = vadd.f32 1.0, %v3847_v23  ;;  %v4168_v26 = vadd.f32 1.0, %v3848_v32  ;;  %v3779_v7 = vunpack.c.l.bf16 %v3600_v12 }
 0x509   : > { %v6399_v30 = vmul.f32 %v6079_v31, %v5759_v62  ;;  %v6400_v5 = vmul.f32 %v6080_v27, %v5760_v34  ;;  %v4646_v0 = vmul.f32 %v8985_v40, %v10525_v16  ;;  %v3780_v60 = vunpack.c.h.bf16 %v3600_v12 }
 0x50a   : > { %v4434_v19 = vpack.c.bf16 %v4168_v26, %v4167_v42  ;;  %v4099_v8 = vadd.f32 1.0, %v3779_v7  ;;  %8990 = vpow2.f32 %v3037_v39  ;;  %v8987_v15 = vpop.eup %8986  ;;  %v2747_v2 = vunpack.c.l.bf16 %v2524_v45  ;;  %v13214_v7 = vpop.f32.mrf.mxu0 }
 0x50b   : > { %v6671_v56 = vpack.c.bf16 %v6400_v5, %v6399_v30  ;;  %v4647_v43 = vpack.c.bf16 %v4644_v28, %v4646_v0  ;;  %v4100_v51 = vadd.f32 1.0, %v3780_v60  ;;  %8992 = vpow2.f32 %v3039_v29  ;;  %v8989_v48 = vpop.eup %8988 }
 0x50c   : > { %v4914_v62 = vunpack.c.h.bf16 %v4434_v19  ;;  %v4915_v34 = vunpack.c.l.bf16 %v4434_v19  ;;  %v2748_v6 = vunpack.c.h.bf16 %v2524_v45  ;;  %v3639_v47 = vpack.c.bf16 %v8989_v48, %v8987_v15 }
 0x50d   : > { %v6879_v14 = vunpack.c.l.bf16 %v6671_v56  ;;  %v6880_v11 = vunpack.c.h.bf16 %v6671_v56  ;;  %v6011_v37 = vunpack.c.l.bf16 %v4647_v43  ;;  %v6012_v49 = vunpack.c.h.bf16 %v4647_v43 }
 0x50e   : > { %8994 = vrcp.f32 %v4914_v62  ;;  %v4400_v10 = vpack.c.bf16 %v4100_v51, %v4099_v8  ;;  %v3193_v23 = vmul.f32 1.442695, %v2747_v2  ;;  %v3857_v40 = vunpack.c.l.bf16 %v3639_v47  ;;  %v13225_v51 = vpop.f32.mrf.mxu2  ;;  %7902 = vmatmul.msk.bf16.gmra.mxu2 %vm425_vm0, %v14281_v36 }
 0x50f   : > { %v13205_v32 = vadd.f32 %v13157_v17, %v6879_v14  ;;  %v13208_v12 = vadd.f32 %v13160_v35, %v6880_v11  ;;  %v6331_v63 = vmul.f32 %v6011_v37, %v5691_v55  ;;  %v6332_v31 = vmul.f32 %v6012_v49, %v5692_v52 }
 0x510   : > { %v8991_v27 = vpop.eup %8990  ;;  %8996 = vrcp.f32 %v4915_v34  ;;  %v4676_v39 = vunpack.c.h.bf16 %v4400_v10  ;;  %v4677_v29 = vunpack.c.l.bf16 %v4400_v10  ;;  %v3858_v26 = vunpack.c.h.bf16 %v3639_v47 }
 0x511   : > { %v8993_v28 = vpop.eup %8992  ;;  %v6637_v42 = vpack.c.bf16 %v6332_v31, %v6331_v63  ;;  %8998 = vpow2.f32 %v3193_v23  ;;  %v3195_v17 = vmul.f32 1.442695, %v2748_v6  ;;  %v5702_v35 = vunpack.c.h.bf16 %v13143_v46  ;;  %v1986_v6 = vpop.f32.mrf.mxu3 }
 0x512   : > { %9000 = vrcp.f32 %v4676_v39  ;;  %v4177_v30 = vadd.f32 1.0, %v3857_v40  ;;  %v3605_v55 = vpack.c.bf16 %v8993_v28, %v8991_v27  ;;  %v4178_v52 = vadd.f32 1.0, %v3858_v26 }
 0x513   : > { %v6811_v5 = vunpack.c.l.bf16 %v6637_v42  ;;  %v6812_v24 = vunpack.c.h.bf16 %v6637_v42  ;;  %9002 = vrcp.f32 %v4677_v29  ;;  %v5779_v60 = vunpack.c.l.bf16 %v13164_v33 }
 0x514   : > { %v8995_v0 = vpop.eup %8994  ;;  %v3789_v19 = vunpack.c.l.bf16 %v3605_v55  ;;  %v3790_v8 = vunpack.c.h.bf16 %v3605_v55  ;;  %9004 = vpow2.f32 %v3195_v17  ;;  %v4439_v43 = vpack.c.bf16 %v4178_v52, %v4177_v30  ;;  %v2083_v55 = vpop.f32.mrf.mxu0 }
 0x515   : > { %v13219_v45 = vadd.f32 %v13171_v1, %v6811_v5  ;;  %v13222_v15 = vadd.f32 %v13173_v59, %v6812_v24  ;;  %v4917_v56 = vmul.f32 %v8995_v0, %v10522_v20  ;;  %v2145_v2 = vadd.f32 %v13103_v9, %v12998_v61 }
 0x516   : > { %v8997_v48 = vpop.eup %8996  ;;  %v4109_v62 = vadd.f32 1.0, %v3789_v19  ;;  %v4110_v34 = vadd.f32 1.0, %v3790_v8  ;;  %v2234_v1 = vadd.f32 %v13145_v22, %v13004_v13  ;;  %v4949_v11 = vunpack.c.h.bf16 %v4439_v43 }
 0x517   : > { %v8999_v59 = vpop.eup %8998  ;;  %v4919_v14 = vmul.f32 %v8997_v48, %v10525_v16  ;;  %v4950_v37 = vunpack.c.l.bf16 %v4439_v43  ;;  %v5780_v49 = vunpack.c.h.bf16 %v13164_v33  ;;  %v5711_v36 = vunpack.c.l.bf16 %v13177_v54 }
 0x518   : > { %v9001_v10 = vpop.eup %9000  ;;  %v4405_v47 = vpack.c.bf16 %v4110_v34, %v4109_v62  ;;  %v5712_v23 = vunpack.c.h.bf16 %v13177_v54  ;;  %v13237_v63 = vpack.c.bf16 %v2234_v1, %v2145_v2  ;;  %9006 = vrcp.f32 %v4949_v11 }
 0x519   : > { %v9003_v9 = vpop.eup %9002  ;;  %v4920_v31 = vpack.c.bf16 %v4917_v56, %v4919_v14  ;;  %v4679_v22 = vmul.f32 %v9001_v10, %v10522_v20  ;;  %v1987_v27 = vadd.f32 %v1986_v6, %v12673_v53  ;;  %9008 = vrcp.f32 %v4950_v37 }
 0x51a   : > { %v9005_v39 = vpop.eup %9004  ;;  %v4681_v29 = vmul.f32 %v9003_v9, %v10525_v16  ;;  %v4711_v40 = vunpack.c.h.bf16 %v4405_v47  ;;  %v4712_v28 = vunpack.c.l.bf16 %v4405_v47  ;;  %v2490_v30 = vxor.u32 2147516416, %v13237_v63 }
 0x51b   : > { %v6089_v42 = vunpack.c.l.bf16 %v4920_v31  ;;  %v6090_v26 = vunpack.c.h.bf16 %v4920_v31  ;;  %v3644_v17 = vpack.c.bf16 %v9005_v39, %v8999_v59  ;;  %v2148_v24 = vadd.f32 %v13179_v44, %v12998_v61 }
 0x51c   : > { %v4682_v5 = vpack.c.bf16 %v4679_v22, %v4681_v29  ;;  %9010 = vrcp.f32 %v4711_v40  ;;  %v2237_v52 = vadd.f32 %v13198_v58, %v13004_v13  ;;  %v2679_v62 = vunpack.c.l.bf16 %v2490_v30 }
 0x51d   : > { %v6409_v0 = vmul.f32 %v6089_v42, %v5769_v3  ;;  %v6410_v19 = vmul.f32 %v6090_v26, %v5770_v4  ;;  %9012 = vrcp.f32 %v4712_v28  ;;  %v3867_v8 = vunpack.c.l.bf16 %v3644_v17 }
 0x51e   : > { %v6021_v56 = vunpack.c.l.bf16 %v4682_v5  ;;  %v6022_v43 = vunpack.c.h.bf16 %v4682_v5  ;;  %v3868_v48 = vunpack.c.h.bf16 %v3644_v17  ;;  %v9007_v34 = vpop.eup %9006  ;;  %v2680_v6 = vunpack.c.h.bf16 %v2490_v30  ;;  %v13265_v5 = vpop.f32.mrf.mxu0 }
 0x51f   : > { %v6676_v2 = vpack.c.bf16 %v6410_v19, %v6409_v0  ;;  %v4187_v1 = vadd.f32 1.0, %v3867_v8  ;;  %v13252_v44 = vpack.c.bf16 %v13118_v57, %v1987_v27  ;;  %v9009_v58 = vpop.eup %9008  ;;  %v4952_v4 = vmul.f32 %v9007_v34, %v10522_v20 }
 0x520   : > { %v6341_v3 = vmul.f32 %v6021_v56, %v5701_v50  ;;  %v6342_v25 = vmul.f32 %v6022_v43, %v5702_v35  ;;  %v4188_v59 = vadd.f32 1.0, %v3868_v48  ;;  %v4954_v37 = vmul.f32 %v9009_v58, %v10525_v16 }
 0x521   : > { %v6889_v14 = vunpack.c.l.bf16 %v6676_v2  ;;  %v6890_v11 = vunpack.c.h.bf16 %v6676_v2  ;;  %v3057_v10 = vmul.f32 1.442695, %v2679_v62  ;;  %v3059_v57 = vmul.f32 1.442695, %v2680_v6 }
 0x522   : > { %v9011_v47 = vpop.eup %9010  ;;  %v6642_v9 = vpack.c.bf16 %v6342_v25, %v6341_v3  ;;  %v4444_v31 = vpack.c.bf16 %v4188_v59, %v4187_v1  ;;  %v2529_v22 = vxor.u32 2147516416, %v13252_v44  ;;  %v4955_v35 = vpack.c.bf16 %v4952_v4, %v4954_v37 }
 0x523   : > { %v9013_v27 = vpop.eup %9012  ;;  %v7308_v50 = vadd.f32 %v13205_v32, %v6889_v14  ;;  %v7339_v46 = vadd.f32 %v13208_v12, %v6890_v11  ;;  %v4714_v39 = vmul.f32 %v9011_v47, %v10522_v20  ;;  %9014 = vpow2.f32 %v3057_v10 }
 0x524   : > { %v6821_v29 = vunpack.c.l.bf16 %v6642_v9  ;;  %v6822_v40 = vunpack.c.h.bf16 %v6642_v9  ;;  %v4716_v28 = vmul.f32 %v9013_v27, %v10525_v16  ;;  %v4984_v42 = vunpack.c.h.bf16 %v4444_v31 }
 0x525   : > { %v6099_v26 = vunpack.c.l.bf16 %v4955_v35  ;;  %v6100_v17 = vunpack.c.h.bf16 %v4955_v35  ;;  %v4985_v30 = vunpack.c.l.bf16 %v4444_v31  ;;  %v2757_v56 = vunpack.c.l.bf16 %v2529_v22 }
 0x526   : > { %v7363_v0 = vadd.f32 %v13219_v45, %v6821_v29  ;;  %v7394_v32 = vadd.f32 %v13222_v15, %v6822_v40  ;;  %v4717_v19 = vpack.c.bf16 %v4714_v39, %v4716_v28  ;;  %9016 = vrcp.f32 %v4984_v42  ;;  %v2088_v27 = vpop.f32.mrf.mxu0 }
 0x527   : > { %v6419_v12 = vmul.f32 %v6099_v26, %v5779_v60  ;;  %v6420_v8 = vmul.f32 %v6100_v17, %v5780_v49  ;;  %9018 = vrcp.f32 %v4985_v30  ;;  %v2758_v62 = vunpack.c.h.bf16 %v2529_v22 }
 0x528   : > { %v6031_v43 = vunpack.c.l.bf16 %v4717_v19  ;;  %v6032_v48 = vunpack.c.h.bf16 %v4717_v19  ;;  %9020 = vpow2.f32 %v3059_v57  ;;  %v13275_v34 = vadd.f32 %v13214_v7, %v12451_v41 }
 0x529   : > { %v13278_v45 = vadd.f32 %v2083_v55, %v12451_v41  ;;  %v6681_v15 = vpack.c.bf16 %v6420_v8, %v6419_v12  ;;  %v3213_v2 = vmul.f32 1.442695, %v2757_v56  ;;  %v3215_v49 = vmul.f32 1.442695, %v2758_v62  ;;  %v9015_v6 = vpop.eup %9014 }
 0x52a   : > { %v6351_v60 = vmul.f32 %v6031_v43, %v5711_v36  ;;  %v6352_v33 = vmul.f32 %v6032_v48, %v5712_v23  ;;  %v13284_v1 = vpack.c.bf16 %v2237_v52, %v2148_v24  ;;  %v5789_v7 = vunpack.c.l.bf16 %v13189_v18  ;;  %v1989_v36 = vpop.f32.mrf.mxu3 }
 0x52b   : > { %v6899_v58 = vunpack.c.l.bf16 %v6681_v15  ;;  %v6900_v3 = vunpack.c.h.bf16 %v6681_v15  ;;  %9022 = vpow2.f32 %v3213_v2  ;;  %v5790_v4 = vunpack.c.h.bf16 %v13189_v18  ;;  %v2152_v2 = vpop.f32.mrf.mxu1 }
 0x52c   : > { %v9017_v25 = vpop.eup %9016  ;;  %v6647_v55 = vpack.c.bf16 %v6352_v33, %v6351_v60  ;;  %9024 = vpow2.f32 %v3215_v49  ;;  %v2495_v59 = vxor.u32 2147516416, %v13284_v1  ;;  %v2150_v52 = vadd.f32 %v13200_v21, %v12998_v61 }
 0x52d   : > { %v9019_v14 = vpop.eup %9018  ;;  %v7309_v54 = vadd.f32 %v7308_v50, %v6899_v58  ;;  %v7340_v23 = vadd.f32 %v7339_v46, %v6900_v3  ;;  %v4987_v24 = vmul.f32 %v9017_v25, %v10522_v20  ;;  %v1990_v57 = vadd.f32 %v1989_v36, %v12673_v53 }
 0x52e   : > { %v9021_v11 = vpop.eup %9020  ;;  %v6831_v37 = vunpack.c.l.bf16 %v6647_v55  ;;  %v6832_v10 = vunpack.c.h.bf16 %v6647_v55  ;;  %v4989_v47 = vmul.f32 %v9019_v14, %v10525_v16  ;;  %v2689_v9 = vunpack.c.l.bf16 %v2495_v59  ;;  %v2241_v55 = vpop.f32.mrf.mxu2 }
 0x52f   : > { %v3610_v31 = vpack.c.bf16 %v9021_v11, %v9015_v6  ;;  %v2690_v18 = vunpack.c.h.bf16 %v2495_v59  ;;  %v2239_v22 = vadd.f32 %v13225_v51, %v13004_v13  ;;  %v13301_v42 = vpack.c.bf16 %v13125_v38, %v1990_v57 }
 0x530   : > { %v13296_v50 = vadd.f32 %v7363_v0, %v6831_v37  ;;  %v13298_v46 = vadd.f32 %v7394_v32, %v6832_v10  ;;  %v4990_v35 = vpack.c.bf16 %v4987_v24, %v4989_v47  ;;  %v3077_v21 = vmul.f32 1.442695, %v2689_v9  ;;  %v2090_v47 = vpop.f32.mrf.mxu0 }
 0x531   : > { %v9023_v39 = vpop.eup %9022  ;;  %v3799_v29 = vunpack.c.l.bf16 %v3610_v31  ;;  %v3800_v40 = vunpack.c.h.bf16 %v3610_v31  ;;  %v3079_v28 = vmul.f32 1.442695, %v2690_v18  ;;  %v13303_v19 = vpack.c.bf16 %v2239_v22, %v2150_v52 }
 0x532   : > { %v9025_v26 = vpop.eup %9024  ;;  %v6109_v17 = vunpack.c.l.bf16 %v4990_v35  ;;  %v6110_v30 = vunpack.c.h.bf16 %v4990_v35  ;;  %9026 = vpow2.f32 %v3077_v21  ;;  %v13307_v32 = vadd.f32 %v13265_v5, %v12451_v41  ;;  %v1991_v58 = vpop.f32.mrf.mxu3 }
 0x533   : > { %v4119_v51 = vadd.f32 1.0, %v3799_v29  ;;  %v4120_v0 = vadd.f32 1.0, %v3800_v40  ;;  %v3649_v12 = vpack.c.bf16 %v9025_v26, %v9023_v39  ;;  %9028 = vpow2.f32 %v3079_v28 }
 0x534   : > { %v6429_v8 = vmul.f32 %v6109_v17, %v5789_v7  ;;  %v6430_v56 = vmul.f32 %v6110_v30, %v5790_v4  ;;  %v2534_v43 = vxor.u32 2147516416, %v13301_v42  ;;  %v13311_v38 = vadd.f32 %v2088_v27, %v12451_v41 }
 0x535   : > { %v4410_v48 = vpack.c.bf16 %v4120_v0, %v4119_v51  ;;  %v3877_v62 = vunpack.c.l.bf16 %v3649_v12  ;;  %v3878_v15 = vunpack.c.h.bf16 %v3649_v12  ;;  %v2500_v6 = vxor.u32 2147516416, %v13303_v19  ;;  %v2154_v12 = vpop.f32.mrf.mxu1 }
 0x536   : > { %v6686_v60 = vpack.c.bf16 %v6430_v56, %v6429_v8  ;;  %v2767_v33 = vunpack.c.l.bf16 %v2534_v43  ;;  %v2768_v49 = vunpack.c.h.bf16 %v2534_v43  ;;  %v13319_v29 = vadd.f32 %v2090_v47, %v12451_v41 }
 0x537   : > { %v4746_v3 = vunpack.c.h.bf16 %v4410_v48  ;;  %v4747_v5 = vunpack.c.l.bf16 %v4410_v48  ;;  %v4197_v25 = vadd.f32 1.0, %v3877_v62  ;;  %v4198_v7 = vadd.f32 1.0, %v3878_v15 }
 0x538   : > { %v9027_v4 = vpop.eup %9026  ;;  %v6909_v59 = vunpack.c.l.bf16 %v6686_v60  ;;  %v6910_v36 = vunpack.c.h.bf16 %v6686_v60  ;;  %v3233_v14 = vmul.f32 1.442695, %v2767_v33  ;;  %v3235_v24 = vmul.f32 1.442695, %v2768_v49  ;;  %v2243_v49 = vpop.f32.mrf.mxu2 }
 0x539   : > { %v9029_v52 = vpop.eup %9028  ;;  %9030 = vrcp.f32 %v4746_v3  ;;  %v4449_v11 = vpack.c.bf16 %v4198_v7, %v4197_v25  ;;  %v2699_v37 = vunpack.c.l.bf16 %v2500_v6  ;;  %v2700_v10 = vunpack.c.h.bf16 %v2500_v6 }
 0x53a   : > { %v13314_v9 = vadd.f32 %v7309_v54, %v6909_v59  ;;  %v13316_v31 = vadd.f32 %v7340_v23, %v6910_v36  ;;  %9032 = vrcp.f32 %v4747_v5  ;;  %v3615_v18 = vpack.c.bf16 %v9029_v52, %v9027_v4  ;;  %v1994_v48 = vpop.f32.mrf.mxu3 }
 0x53b   : > { %v5019_v57 = vunpack.c.h.bf16 %v4449_v11  ;;  %v5020_v22 = vunpack.c.l.bf16 %v4449_v11  ;;  %9034 = vpow2.f32 %v3233_v14  ;;  %v3097_v27 = vmul.f32 1.442695, %v2699_v37 }
 0x53c   : > { %v3809_v35 = vunpack.c.l.bf16 %v3615_v18  ;;  %v3810_v21 = vunpack.c.h.bf16 %v3615_v18  ;;  %9036 = vpow2.f32 %v3235_v24  ;;  %v3099_v39 = vmul.f32 1.442695, %v2700_v10 }
 0x53d   : > { %v5721_v40 = vunpack.c.l.bf16 %v13237_v63  ;;  %v5722_v54 = vunpack.c.h.bf16 %v13237_v63  ;;  %9038 = vrcp.f32 %v5019_v57  ;;  %v5799_v23 = vunpack.c.l.bf16 %v13252_v44 }
 0x53e   : > { %9040 = vrcp.f32 %v5020_v22  ;;  %v4129_v28 = vadd.f32 1.0, %v3809_v35  ;;  %v4130_v26 = vadd.f32 1.0, %v3810_v21  ;;  %v2153_v30 = vadd.f32 %v2152_v2, %v12998_v61 }
 0x53f   : > { %v9031_v17 = vpop.eup %9030  ;;  %9042 = vpow2.f32 %v3097_v27  ;;  %v1992_v51 = vadd.f32 %v1991_v58, %v12673_v53  ;;  %v2242_v0 = vadd.f32 %v2241_v55, %v13004_v13  ;;  %v5800_v63 = vunpack.c.h.bf16 %v13252_v44 }
 0x540   : > { %v9033_v8 = vpop.eup %9032  ;;  %v4749_v56 = vmul.f32 %v9031_v17, %v10522_v20  ;;  %v4415_v43 = vpack.c.bf16 %v4130_v26, %v4129_v28  ;;  %9044 = vpow2.f32 %v3099_v39  ;;  %v5731_v60 = vunpack.c.l.bf16 %v13284_v1 }
 0x541   : > { %v9035_v62 = vpop.eup %9034  ;;  %v4751_v15 = vmul.f32 %v9033_v8, %v10525_v16  ;;  %v13332_v2 = vpack.c.bf16 %v13275_v34, %v1992_v51  ;;  %v13334_v33 = vpack.c.bf16 %v2242_v0, %v2153_v30  ;;  %v5732_v5 = vunpack.c.h.bf16 %v13284_v1 }
 0x542   : > { %v9037_v6 = vpop.eup %9036  ;;  %v4781_v58 = vunpack.c.h.bf16 %v4415_v43  ;;  %v4782_v3 = vunpack.c.l.bf16 %v4415_v43  ;;  %v13338_v25 = vadd.f32 %v2154_v12, %v12998_v61  ;;  %v13342_v36 = vadd.f32 %v1994_v48, %v12673_v53 }
 0x543   : > { %v9039_v7 = vpop.eup %9038  ;;  %v4752_v55 = vpack.c.bf16 %v4749_v56, %v4751_v15  ;;  %v3654_v4 = vpack.c.bf16 %v9037_v6, %v9035_v62  ;;  %v2539_v59 = vxor.u32 2147516416, %v13332_v2  ;;  %v2505_v24 = vxor.u32 2147516416, %v13334_v33 }
 0x544   : > { %v9041_v34 = vpop.eup %9040  ;;  %v5022_v14 = vmul.f32 %v9039_v7, %v10522_v20  ;;  %9046 = vrcp.f32 %v4781_v58  ;;  %v13347_v52 = vadd.f32 %v2243_v49, %v13004_v13 }
 0x545   : > { %v9043_v11 = vpop.eup %9042  ;;  %v6041_v37 = vunpack.c.l.bf16 %v4752_v55  ;;  %v6042_v10 = vunpack.c.h.bf16 %v4752_v55  ;;  %v5024_v47 = vmul.f32 %v9041_v34, %v10525_v16  ;;  %9048 = vrcp.f32 %v4782_v3 }
 0x546   : > { %v9045_v18 = vpop.eup %9044  ;;  %v3887_v57 = vunpack.c.l.bf16 %v3654_v4  ;;  %v3888_v22 = vunpack.c.h.bf16 %v3654_v4  ;;  %v2777_v27 = vunpack.c.l.bf16 %v2539_v59  ;;  %v2778_v35 = vunpack.c.h.bf16 %v2539_v59 }
 0x547   : > { %v6361_v21 = vmul.f32 %v6041_v37, %v5721_v40  ;;  %v6362_v39 = vmul.f32 %v6042_v10, %v5722_v54  ;;  %v5025_v28 = vpack.c.bf16 %v5022_v14, %v5024_v47  ;;  %v3620_v26 = vpack.c.bf16 %v9045_v18, %v9043_v11 }
 0x548   : > { %v4207_v17 = vadd.f32 1.0, %v3887_v57  ;;  %v4208_v30 = vadd.f32 1.0, %v3888_v22  ;;  %v3253_v51 = vmul.f32 1.442695, %v2777_v27  ;;  %v3255_v0 = vmul.f32 1.442695, %v2778_v35  ;;  %v2093_v22 = vpop.f32.mrf.mxu0 }
 0x549   : > { %v6652_v12 = vpack.c.bf16 %v6362_v39, %v6361_v21  ;;  %v6119_v8 = vunpack.c.l.bf16 %v5025_v28  ;;  %v6120_v56 = vunpack.c.h.bf16 %v5025_v28  ;;  %v3819_v43 = vunpack.c.l.bf16 %v3620_v26 }
 0x54a   : > { %v9047_v48 = vpop.eup %9046  ;;  %v4454_v62 = vpack.c.bf16 %v4208_v30, %v4207_v17  ;;  %v3820_v15 = vunpack.c.h.bf16 %v3620_v26  ;;  %9050 = vpow2.f32 %v3253_v51  ;;  %v2709_v49 = vunpack.c.l.bf16 %v2505_v24 }
 0x54b   : > { %v9049_v6 = vpop.eup %9048  ;;  %v6841_v58 = vunpack.c.l.bf16 %v6652_v12  ;;  %v6842_v3 = vunpack.c.h.bf16 %v6652_v12  ;;  %v6439_v40 = vmul.f32 %v6119_v8, %v5799_v23  ;;  %v6440_v54 = vmul.f32 %v6120_v56, %v5800_v63 }
 0x54c   : > { %v4784_v7 = vmul.f32 %v9047_v48, %v10522_v20  ;;  %v4786_v55 = vmul.f32 %v9049_v6, %v10525_v16  ;;  %v5054_v4 = vunpack.c.h.bf16 %v4454_v62  ;;  %v5055_v59 = vunpack.c.l.bf16 %v4454_v62 }
 0x54d   : > { %v7365_v34 = vadd.f32 %v13296_v50, %v6841_v58  ;;  %v7396_v14 = vadd.f32 %v13298_v46, %v6842_v3  ;;  %v6691_v11 = vpack.c.bf16 %v6440_v54, %v6439_v40  ;;  %v4139_v37 = vadd.f32 1.0, %v3819_v43 }
 0x54e   : > { %v4787_v10 = vpack.c.bf16 %v4784_v7, %v4786_v55  ;;  %9052 = vrcp.f32 %v5054_v4  ;;  %v4140_v47 = vadd.f32 1.0, %v3820_v15  ;;  %v2710_v18 = vunpack.c.h.bf16 %v2505_v24 }
 0x54f   : > { %v6919_v57 = vunpack.c.l.bf16 %v6691_v11  ;;  %v6920_v44 = vunpack.c.h.bf16 %v6691_v11  ;;  %9054 = vrcp.f32 %v5055_v59  ;;  %v3117_v23 = vmul.f32 1.442695, %v2709_v49 }
 0x550   : > { %v9051_v63 = vpop.eup %9050  ;;  %v6051_v27 = vunpack.c.l.bf16 %v4787_v10  ;;  %v6052_v35 = vunpack.c.h.bf16 %v4787_v10  ;;  %v4420_v21 = vpack.c.bf16 %v4140_v47, %v4139_v37  ;;  %9056 = vpow2.f32 %v3255_v0 }
 0x551   : > { %v13357_v50 = vadd.f32 %v13314_v9, %v6919_v57  ;;  %v13360_v46 = vadd.f32 %v13316_v31, %v6920_v44  ;;  %9058 = vpow2.f32 %v3117_v23  ;;  %v3119_v39 = vmul.f32 1.442695, %v2710_v18 }
 0x552   : > { %v6371_v24 = vmul.f32 %v6051_v27, %v5731_v60  ;;  %v6372_v28 = vmul.f32 %v6052_v35, %v5732_v5  ;;  %v4816_v26 = vunpack.c.h.bf16 %v4420_v21  ;;  %v4817_v17 = vunpack.c.l.bf16 %v4420_v21 }
 0x553   : > { %v13367_v30 = vadd.f32 %v2093_v22, %v12451_v41  ;;  %v5809_v51 = vunpack.c.l.bf16 %v13301_v42  ;;  %9060 = vpow2.f32 %v3119_v39  ;;  %v13372_v9 = vpack.c.bf16 %v13278_v45, %v13342_v36 }
 0x554   : > { %v9053_v31 = vpop.eup %9052  ;;  %v6657_v0 = vpack.c.bf16 %v6372_v28, %v6371_v24  ;;  %v5810_v12 = vunpack.c.h.bf16 %v13301_v42  ;;  %9062 = vrcp.f32 %v4816_v26  ;;  %v13377_v1 = vpack.c.bf16 %v13347_v52, %v13338_v25 }
 0x555   : > { %v9055_v60 = vpop.eup %9054  ;;  %v5057_v5 = vmul.f32 %v9053_v31, %v10522_v20  ;;  %9064 = vrcp.f32 %v4817_v17  ;;  %v5741_v8 = vunpack.c.l.bf16 %v13303_v19  ;;  %v2544_v56 = vxor.u32 2147516416, %v13372_v9  ;;  %v1996_v17 = vpop.f32.mrf.mxu3 }
 0x556   : > { %v9057_v43 = vpop.eup %9056  ;;  %v6851_v45 = vunpack.c.l.bf16 %v6657_v0  ;;  %v6852_v36 = vunpack.c.h.bf16 %v6657_v0  ;;  %v5059_v48 = vmul.f32 %v9055_v60, %v10525_v16  ;;  %v5742_v42 = vunpack.c.h.bf16 %v13303_v19 }
 0x557   : > { %v9059_v62 = vpop.eup %9058  ;;  %v3659_v15 = vpack.c.bf16 %v9057_v43, %v9051_v63  ;;  %v2787_v49 = vunpack.c.l.bf16 %v2544_v56  ;;  %v2788_v25 = vunpack.c.h.bf16 %v2544_v56  ;;  %v2510_v52 = vxor.u32 2147516416, %v13377_v1 }
 0x558   : > { %v13385_v6 = vadd.f32 %v7365_v34, %v6851_v45  ;;  %v13387_v58 = vadd.f32 %v7396_v14, %v6852_v36  ;;  %v5060_v3 = vpack.c.bf16 %v5057_v5, %v5059_v48  ;;  %v5819_v40 = vunpack.c.l.bf16 %v13332_v2 }
 0x559   : > { %v9061_v54 = vpop.eup %9060  ;;  %v3897_v7 = vunpack.c.l.bf16 %v3659_v15  ;;  %v3898_v55 = vunpack.c.h.bf16 %v3659_v15  ;;  %v3273_v4 = vmul.f32 1.442695, %v2787_v49  ;;  %v3275_v59 = vmul.f32 1.442695, %v2788_v25 }
 0x55a   : > { %v9063_v11 = vpop.eup %9062  ;;  %v6129_v19 = vunpack.c.l.bf16 %v5060_v3  ;;  %v6130_v37 = vunpack.c.h.bf16 %v5060_v3  ;;  %v3625_v10 = vpack.c.bf16 %v9061_v54, %v9059_v62  ;;  %v2719_v47 = vunpack.c.l.bf16 %v2510_v52  ;;  %v2157_v3 = vpop.f32.mrf.mxu1 }
 0x55b   : > { %v9065_v18 = vpop.eup %9064  ;;  %v4819_v57 = vmul.f32 %v9063_v11, %v10522_v20  ;;  %v4217_v34 = vadd.f32 1.0, %v3897_v7  ;;  %v4218_v44 = vadd.f32 1.0, %v3898_v55  ;;  %9066 = vpow2.f32 %v3273_v4  ;;  %v2246_v54 = vpop.f32.mrf.mxu2 }
 0x55c   : > { %v6449_v14 = vmul.f32 %v6129_v19, %v5809_v51  ;;  %v6450_v23 = vmul.f32 %v6130_v37, %v5810_v12  ;;  %v4821_v63 = vmul.f32 %v9065_v18, %v10525_v16  ;;  %v3829_v22 = vunpack.c.l.bf16 %v3625_v10 }
 0x55d   : > { %v4459_v27 = vpack.c.bf16 %v4218_v44, %v4217_v34  ;;  %v3830_v35 = vunpack.c.h.bf16 %v3625_v10  ;;  %9068 = vpow2.f32 %v3275_v59  ;;  %v2720_v21 = vunpack.c.h.bf16 %v2510_v52 }
 0x55e   : > { %v6696_v39 = vpack.c.bf16 %v6450_v23, %v6449_v14  ;;  %v4822_v24 = vpack.c.bf16 %v4819_v57, %v4821_v63  ;;  %v5820_v28 = vunpack.c.h.bf16 %v13332_v2  ;;  %v4149_v26 = vadd.f32 1.0, %v3829_v22  ;;  %v1999_v22 = vpop.f32.mrf.mxu3 }
 0x55f   : > { %v5089_v31 = vunpack.c.h.bf16 %v4459_v27  ;;  %v5090_v0 = vunpack.c.l.bf16 %v4459_v27  ;;  %v4150_v60 = vadd.f32 1.0, %v3830_v35  ;;  %v3137_v5 = vmul.f32 1.442695, %v2719_v47 }
 0x560   : > { %v6929_v56 = vunpack.c.l.bf16 %v6696_v39  ;;  %v6930_v51 = vunpack.c.h.bf16 %v6696_v39  ;;  %v6061_v12 = vunpack.c.l.bf16 %v4822_v24  ;;  %v6062_v43 = vunpack.c.h.bf16 %v4822_v24 }
 0x561   : > { %v9067_v45 = vpop.eup %9066  ;;  %9070 = vrcp.f32 %v5089_v31  ;;  %v4425_v36 = vpack.c.bf16 %v4150_v60, %v4149_v26  ;;  %v3139_v48 = vmul.f32 1.442695, %v2720_v21  ;;  %v1997_v62 = vadd.f32 %v1996_v17, %v12673_v53 }
 0x562   : > { %v13395_v15 = vadd.f32 %v13357_v50, %v6929_v56  ;;  %v13398_v49 = vadd.f32 %v13360_v46, %v6930_v51  ;;  %v6381_v25 = vmul.f32 %v6061_v12, %v5741_v8  ;;  %v6382_v52 = vmul.f32 %v6062_v43, %v5742_v42 }
 0x563   : > { %v9069_v7 = vpop.eup %9068  ;;  %9072 = vrcp.f32 %v5090_v0  ;;  %v4851_v55 = vunpack.c.h.bf16 %v4425_v36  ;;  %v4852_v4 = vunpack.c.l.bf16 %v4425_v36  ;;  %v13401_v59 = vpack.c.bf16 %v13307_v32, %v1997_v62 }
 0x564   : > { %v6662_v11 = vpack.c.bf16 %v6382_v52, %v6381_v25  ;;  %v5751_v19 = vunpack.c.l.bf16 %v13334_v33  ;;  %v3664_v37 = vpack.c.bf16 %v9069_v7, %v9067_v45  ;;  %9074 = vpow2.f32 %v3137_v5 }
 0x565   : > { %9076 = vrcp.f32 %v4851_v55  ;;  %v2158_v50 = vadd.f32 %v2157_v3, %v12998_v61  ;;  %v2549_v46 = vxor.u32 2147516416, %v13401_v59  ;;  %v2247_v8 = vadd.f32 %v2246_v54, %v13004_v13 }
 0x566   : > { %v6861_v42 = vunpack.c.l.bf16 %v6662_v11  ;;  %v6862_v10 = vunpack.c.h.bf16 %v6662_v11  ;;  %9078 = vrcp.f32 %v4852_v4  ;;  %v3907_v47 = vunpack.c.l.bf16 %v3664_v37 }
 0x567   : > { %v9071_v18 = vpop.eup %9070  ;;  %v3908_v57 = vunpack.c.h.bf16 %v3664_v37  ;;  %9080 = vpow2.f32 %v3139_v48  ;;  %v2797_v32 = vunpack.c.l.bf16 %v2549_v46  ;;  %v2798_v34 = vunpack.c.h.bf16 %v2549_v46 }
 0x568   : > { %v13408_v44 = vadd.f32 %v13385_v6, %v6861_v42  ;;  %v13411_v14 = vadd.f32 %v13387_v58, %v6862_v10  ;;  %v5092_v23 = vmul.f32 %v9071_v18, %v10522_v20  ;;  %v4227_v63 = vadd.f32 1.0, %v3907_v47 }
 0x569   : > { %v9073_v27 = vpop.eup %9072  ;;  %v4228_v35 = vadd.f32 1.0, %v3908_v57  ;;  %v3293_v21 = vmul.f32 1.442695, %v2797_v32  ;;  %v3295_v39 = vmul.f32 1.442695, %v2798_v34  ;;  %v13414_v24 = vpack.c.bf16 %v2247_v8, %v2158_v50 }
 0x56a   : > { %v9075_v26 = vpop.eup %9074  ;;  %v5094_v17 = vmul.f32 %v9073_v27, %v10525_v16  ;;  %v5752_v31 = vunpack.c.h.bf16 %v13334_v33  ;;  %v5829_v6 = vunpack.c.l.bf16 %v13372_v9  ;;  %v5830_v58 = vunpack.c.h.bf16 %v13372_v9 }
 0x56b   : > { %v9077_v0 = vpop.eup %9076  ;;  %v4464_v60 = vpack.c.bf16 %v4228_v35, %v4227_v63  ;;  %9082 = vpow2.f32 %v3293_v21  ;;  %v2515_v5 = vxor.u32 2147516416, %v13414_v24  ;;  %v2000_v56 = vadd.f32 %v1999_v22, %v12673_v53 }
 0x56c   : > { %v9079_v51 = vpop.eup %9078  ;;  %v5095_v12 = vpack.c.bf16 %v5092_v23, %v5094_v17  ;;  %v4854_v43 = vmul.f32 %v9077_v0, %v10522_v20  ;;  %v5761_v45 = vunpack.c.l.bf16 %v13377_v1  ;;  %9084 = vpow2.f32 %v3295_v39 }
 0x56d   : > { %v9081_v36 = vpop.eup %9080  ;;  %v4856_v48 = vmul.f32 %v9079_v51, %v10525_v16  ;;  %v5124_v62 = vunpack.c.h.bf16 %v4464_v60  ;;  %v5125_v25 = vunpack.c.l.bf16 %v4464_v60  ;;  %v2729_v52 = vunpack.c.l.bf16 %v2515_v5 }
 0x56e   : > { %v6139_v3 = vunpack.c.l.bf16 %v5095_v12  ;;  %v6140_v54 = vunpack.c.h.bf16 %v5095_v12  ;;  %v3630_v7 = vpack.c.bf16 %v9081_v36, %v9075_v26  ;;  %v2730_v55 = vunpack.c.h.bf16 %v2515_v5 }
 0x56f   : > { %v4857_v4 = vpack.c.bf16 %v4854_v43, %v4856_v48  ;;  %9086 = vrcp.f32 %v5124_v62  ;;  %v3157_v11 = vmul.f32 1.442695, %v2729_v52  ;;  %v13426_v37 = vpack.c.bf16 %v13311_v38, %v2000_v56  ;;  %v2248_v48 = vpop.f32.mrf.mxu2 }
 0x570   : > { %v6459_v50 = vmul.f32 %v6139_v3, %v5819_v40  ;;  %v6460_v46 = vmul.f32 %v6140_v54, %v5820_v28  ;;  %9088 = vrcp.f32 %v5125_v25  ;;  %v3839_v8 = vunpack.c.l.bf16 %v3630_v7 }
 0x571   : > { %v9083_v42 = vpop.eup %9082  ;;  %v6071_v10 = vunpack.c.l.bf16 %v4857_v4  ;;  %v6072_v47 = vunpack.c.h.bf16 %v4857_v4  ;;  %v3840_v18 = vunpack.c.h.bf16 %v3630_v7  ;;  %9090 = vpow2.f32 %v3157_v11  ;;  %v2159_v7 = vpop.f32.mrf.mxu1 }
 0x572   : > { %v9085_v57 = vpop.eup %9084  ;;  %v6701_v32 = vpack.c.bf16 %v6460_v46, %v6459_v50  ;;  %v4159_v34 = vadd.f32 1.0, %v3839_v8  ;;  %v3159_v23 = vmul.f32 1.442695, %v2730_v55  ;;  %v2554_v38 = vxor.u32 2147516416, %v13426_v37 }
 0x573   : > { %v6391_v63 = vmul.f32 %v6071_v10, %v5751_v19  ;;  %v6392_v40 = vmul.f32 %v6072_v47, %v5752_v31  ;;  %v4160_v22 = vadd.f32 1.0, %v3840_v18  ;;  %v3669_v2 = vpack.c.bf16 %v9085_v57, %v9083_v42  ;;  %v2001_v10 = vpop.f32.mrf.mxu3 }
 0x574   : > { %v6939_v28 = vunpack.c.l.bf16 %v6701_v32  ;;  %v6940_v27 = vunpack.c.h.bf16 %v6701_v32  ;;  %9092 = vpow2.f32 %v3159_v23  ;;  %v2807_v35 = vunpack.c.l.bf16 %v2554_v38 }
 0x575   : > { %v9087_v21 = vpop.eup %9086  ;;  %v6667_v39 = vpack.c.bf16 %v6392_v40, %v6391_v63  ;;  %v4430_v26 = vpack.c.bf16 %v4160_v22, %v4159_v34  ;;  %v3917_v17 = vunpack.c.l.bf16 %v3669_v2  ;;  %v3918_v0 = vunpack.c.h.bf16 %v3669_v2 }
 0x576   : > { %v9089_v60 = vpop.eup %9088  ;;  %v7313_v5 = vadd.f32 %v13395_v15, %v6939_v28  ;;  %v7344_v56 = vadd.f32 %v13398_v49, %v6940_v27  ;;  %v5127_v33 = vmul.f32 %v9087_v21, %v10522_v20  ;;  %v2808_v19 = vunpack.c.h.bf16 %v2554_v38 }
 0x577   : > { %v9091_v31 = vpop.eup %9090  ;;  %v6871_v51 = vunpack.c.l.bf16 %v6667_v39  ;;  %v6872_v12 = vunpack.c.h.bf16 %v6667_v39  ;;  %v5129_v43 = vmul.f32 %v9089_v60, %v10525_v16  ;;  %v4886_v36 = vunpack.c.h.bf16 %v4430_v26 }
 0x578   : > { %v4887_v62 = vunpack.c.l.bf16 %v4430_v26  ;;  %v4237_v25 = vadd.f32 1.0, %v3917_v17  ;;  %v4238_v52 = vadd.f32 1.0, %v3918_v0  ;;  %v3313_v3 = vmul.f32 1.442695, %v2807_v35 }
 0x579   : > { %v13440_v54 = vadd.f32 %v13408_v44, %v6871_v51  ;;  %v13443_v15 = vadd.f32 %v13411_v14, %v6872_v12  ;;  %v5130_v49 = vpack.c.bf16 %v5127_v33, %v5129_v43  ;;  %9094 = vrcp.f32 %v4886_v36 }
 0x57a   : > { %v9093_v55 = vpop.eup %9092  ;;  %9096 = vrcp.f32 %v4887_v62  ;;  %v4469_v4 = vpack.c.bf16 %v4238_v52, %v4237_v25  ;;  %v3315_v11 = vmul.f32 1.442695, %v2808_v19  ;;  %v2249_v50 = vadd.f32 %v2248_v48, %v13004_v13 }
 0x57b   : > { %v6149_v46 = vunpack.c.l.bf16 %v5130_v49  ;;  %v6150_v8 = vunpack.c.h.bf16 %v5130_v49  ;;  %v3635_v42 = vpack.c.bf16 %v9093_v55, %v9091_v31  ;;  %9098 = vpow2.f32 %v3313_v3 }
 0x57c   : > { %v5159_v47 = vunpack.c.h.bf16 %v4469_v4  ;;  %v5160_v44 = vunpack.c.l.bf16 %v4469_v4  ;;  %v2160_v18 = vadd.f32 %v2159_v7, %v12998_v61  ;;  %9100 = vpow2.f32 %v3315_v11 }
 0x57d   : > { %v6469_v14 = vmul.f32 %v6149_v46, %v5829_v6  ;;  %v6470_v57 = vmul.f32 %v6150_v8, %v5830_v58  ;;  %v3849_v32 = vunpack.c.l.bf16 %v3635_v42  ;;  %v3850_v34 = vunpack.c.h.bf16 %v3635_v42 }
 0x57e   : > { %v5762_v23 = vunpack.c.h.bf16 %v13377_v1  ;;  %9102 = vrcp.f32 %v5159_v47  ;;  %v13452_v38 = vpack.c.bf16 %v2249_v50, %v2160_v18  ;;  %v2002_v63 = vadd.f32 %v2001_v10, %v12673_v53 }
 0x57f   : > { %v9095_v40 = vpop.eup %9094  ;;  %v6706_v22 = vpack.c.bf16 %v6470_v57, %v6469_v14  ;;  %9104 = vrcp.f32 %v5160_v44  ;;  %v4169_v2 = vadd.f32 1.0, %v3849_v32  ;;  %v4170_v28 = vadd.f32 1.0, %v3850_v34  ;;  %v2162_v44 = vpop.f32.mrf.mxu1 }
 0x580   : > { %v9097_v27 = vpop.eup %9096  ;;  %v4889_v6 = vmul.f32 %v9095_v40, %v10522_v20  ;;  %v5839_v9 = vunpack.c.l.bf16 %v13401_v59  ;;  %v5840_v58 = vunpack.c.h.bf16 %v13401_v59  ;;  %v2520_v35 = vxor.u32 2147516416, %v13452_v38 }
 0x581   : > { %v9099_v21 = vpop.eup %9098  ;;  %v6949_v39 = vunpack.c.l.bf16 %v6706_v22  ;;  %v6950_v26 = vunpack.c.h.bf16 %v6706_v22  ;;  %v4891_v17 = vmul.f32 %v9097_v27, %v10525_v16  ;;  %v4435_v0 = vpack.c.bf16 %v4170_v28, %v4169_v2 }
 0x582   : > { %v9101_v60 = vpop.eup %9100  ;;  %v5771_v33 = vunpack.c.l.bf16 %v13414_v24  ;;  %v2739_v19 = vunpack.c.l.bf16 %v2520_v35  ;;  %v2740_v31 = vunpack.c.h.bf16 %v2520_v35  ;;  %v13462_v51 = vpack.c.bf16 %v13319_v29, %v2002_v63 }
 0x583   : > { %v13464_v12 = vadd.f32 %v7313_v5, %v6949_v39  ;;  %v13466_v43 = vadd.f32 %v7344_v56, %v6950_v26  ;;  %v4892_v59 = vpack.c.bf16 %v4889_v6, %v4891_v17  ;;  %v4921_v36 = vunpack.c.h.bf16 %v4435_v0  ;;  %v2251_v56 = vpop.f32.mrf.mxu2  ;;  %v2004_v26 = vpop.f32.mrf.mxu3 }
 0x584   : > { %v9103_v48 = vpop.eup %9102  ;;  %v4922_v62 = vunpack.c.l.bf16 %v4435_v0  ;;  %v3674_v25 = vpack.c.bf16 %v9101_v60, %v9099_v21  ;;  %v3177_v52 = vmul.f32 1.442695, %v2739_v19  ;;  %v3179_v3 = vmul.f32 1.442695, %v2740_v31 }
 0x585   : > { %v9105_v49 = vpop.eup %9104  ;;  %v6081_v7 = vunpack.c.l.bf16 %v4892_v59  ;;  %v6082_v55 = vunpack.c.h.bf16 %v4892_v59  ;;  %v5162_v4 = vmul.f32 %v9103_v48, %v10522_v20  ;;  %9106 = vrcp.f32 %v4921_v36 }
 0x586   : > { %v5164_v29 = vmul.f32 %v9105_v49, %v10525_v16  ;;  %9108 = vrcp.f32 %v4922_v62  ;;  %v3927_v5 = vunpack.c.l.bf16 %v3674_v25  ;;  %v3928_v11 = vunpack.c.h.bf16 %v3674_v25 }
 0x587   : > { %v6401_v50 = vmul.f32 %v6081_v7, %v5761_v45  ;;  %v6402_v46 = vmul.f32 %v6082_v55, %v5762_v23  ;;  %9110 = vpow2.f32 %v3177_v52  ;;  %v2559_v8 = vxor.u32 2147516416, %v13462_v51 }
 0x588   : > { %v5165_v42 = vpack.c.bf16 %v5162_v4, %v5164_v29  ;;  %v4247_v10 = vadd.f32 1.0, %v3927_v5  ;;  %v4248_v47 = vadd.f32 1.0, %v3928_v11  ;;  %9112 = vpow2.f32 %v3179_v3 }
 0x589   : > { %v6672_v18 = vpack.c.bf16 %v6402_v46, %v6401_v50  ;;  %v5772_v14 = vunpack.c.h.bf16 %v13414_v24  ;;  %v2817_v57 = vunpack.c.l.bf16 %v2559_v8  ;;  %v2252_v32 = vadd.f32 %v2251_v56, %v13004_v13 }
 0x58a   : > { %v6159_v34 = vunpack.c.l.bf16 %v5165_v42  ;;  %v6160_v63 = vunpack.c.h.bf16 %v5165_v42  ;;  %v4474_v40 = vpack.c.bf16 %v4248_v47, %v4247_v10  ;;  %v2818_v1 = vunpack.c.h.bf16 %v2559_v8  ;;  %v2164_v8 = vpop.f32.mrf.mxu1 }
 0x58b   : > { %v9107_v45 = vpop.eup %9106  ;;  %v6881_v23 = vunpack.c.l.bf16 %v6672_v18  ;;  %v6882_v22 = vunpack.c.h.bf16 %v6672_v18  ;;  %v2163_v2 = vadd.f32 %v2162_v44, %v12998_v61  ;;  %v3333_v28 = vmul.f32 1.442695, %v2817_v57  ;;  %v2253_v24 = vpop.f32.mrf.mxu2 }
 0x58c   : > { %v9109_v27 = vpop.eup %9108  ;;  %v6479_v6 = vmul.f32 %v6159_v34, %v5839_v9  ;;  %v6480_v35 = vmul.f32 %v6160_v63, %v5840_v58  ;;  %v4924_v21 = vmul.f32 %v9107_v45, %v10522_v20  ;;  %v5194_v39 = vunpack.c.h.bf16 %v4474_v40 }
 0x58d   : > { %v9111_v17 = vpop.eup %9110  ;;  %v7369_v0 = vadd.f32 %v13440_v54, %v6881_v23  ;;  %v7400_v60 = vadd.f32 %v13443_v15, %v6882_v22  ;;  %v4926_v19 = vmul.f32 %v9109_v27, %v10525_v16  ;;  %v5195_v31 = vunpack.c.l.bf16 %v4474_v40 }
 0x58e   : > { %v9113_v59 = vpop.eup %9112  ;;  %v6711_v36 = vpack.c.bf16 %v6480_v35, %v6479_v6  ;;  %9114 = vrcp.f32 %v5194_v39  ;;  %v3335_v48 = vmul.f32 1.442695, %v2818_v1  ;;  %v13480_v62 = vpack.c.bf16 %v2252_v32, %v2163_v2 }
 0x58f   : > { %v4927_v9 = vpack.c.bf16 %v4924_v21, %v4926_v19  ;;  %9116 = vrcp.f32 %v5195_v31  ;;  %v3640_v58 = vpack.c.bf16 %v9113_v59, %v9111_v17  ;;  %v2005_v25 = vadd.f32 %v2004_v26, %v12673_v53 }
 0x590   : > { %v6959_v52 = vunpack.c.l.bf16 %v6711_v36  ;;  %v6960_v3 = vunpack.c.h.bf16 %v6711_v36  ;;  %9118 = vpow2.f32 %v3333_v28  ;;  %v2525_v54 = vxor.u32 2147516416, %v13480_v62  ;;  %v13506_v36 = vpop.f32.mrf.mxu0 }
 0x591   : > { %v6091_v15 = vunpack.c.l.bf16 %v4927_v9  ;;  %v6092_v49 = vunpack.c.h.bf16 %v4927_v9  ;;  %v3859_v7 = vunpack.c.l.bf16 %v3640_v58  ;;  %v3860_v55 = vunpack.c.h.bf16 %v3640_v58 }
 0x592   : > { %v13485_v4 = vadd.f32 %v13464_v12, %v6959_v52  ;;  %v13488_v29 = vadd.f32 %v13466_v43, %v6960_v3  ;;  %9120 = vpow2.f32 %v3335_v48  ;;  %v2749_v5 = vunpack.c.l.bf16 %v2525_v54 }
 0x593   : > { %v6411_v11 = vmul.f32 %v6091_v15, %v5771_v33  ;;  %v6412_v56 = vmul.f32 %v6092_v49, %v5772_v14  ;;  %v4179_v50 = vadd.f32 1.0, %v3859_v7  ;;  %v4180_v46 = vadd.f32 1.0, %v3860_v55 }
 0x594   : > { %v9115_v42 = vpop.eup %9114  ;;  %v5849_v10 = vunpack.c.l.bf16 %v13426_v37  ;;  %v5850_v47 = vunpack.c.h.bf16 %v13426_v37  ;;  %v2750_v44 = vunpack.c.h.bf16 %v2525_v54  ;;  %v3197_v12 = vmul.f32 1.442695, %v2749_v5 }
 0x595   : > { %v9117_v18 = vpop.eup %9116  ;;  %v6677_v57 = vpack.c.bf16 %v6412_v56, %v6411_v11  ;;  %v5197_v43 = vmul.f32 %v9115_v42, %v10522_v20  ;;  %v4440_v32 = vpack.c.bf16 %v4180_v46, %v4179_v50  ;;  %v13496_v34 = vpack.c.bf16 %v13367_v30, %v2005_v25 }
 0x596   : > { %v9119_v33 = vpop.eup %9118  ;;  %v5199_v14 = vmul.f32 %v9117_v18, %v10525_v16  ;;  %9122 = vpow2.f32 %v3197_v12  ;;  %v3199_v63 = vmul.f32 1.442695, %v2750_v44  ;;  %v2165_v40 = vadd.f32 %v2164_v8, %v12998_v61  ;;  %v2167_v18 = vpop.f32.mrf.mxu1 }
 0x597   : > { %v6891_v1 = vunpack.c.l.bf16 %v6677_v57  ;;  %v6892_v37 = vunpack.c.h.bf16 %v6677_v57  ;;  %v4956_v45 = vunpack.c.h.bf16 %v4440_v32  ;;  %v4957_v23 = vunpack.c.l.bf16 %v4440_v32 }
 0x598   : > { %v9121_v22 = vpop.eup %9120  ;;  %v5200_v2 = vpack.c.bf16 %v5197_v43, %v5199_v14  ;;  %9124 = vpow2.f32 %v3199_v63  ;;  %v2564_v28 = vxor.u32 2147516416, %v13496_v34  ;;  %v2254_v30 = vadd.f32 %v2253_v24, %v13004_v13  ;;  %v2256_v24 = vpop.f32.mrf.mxu2 }
 0x599   : > { %v13502_v27 = vadd.f32 %v7369_v0, %v6891_v1  ;;  %v13504_v6 = vadd.f32 %v7400_v60, %v6892_v37  ;;  %9126 = vrcp.f32 %v4956_v45  ;;  %v3679_v35 = vpack.c.bf16 %v9121_v22, %v9119_v33 }
 0x59a   : > { %v6169_v21 = vunpack.c.l.bf16 %v5200_v2  ;;  %v6170_v39 = vunpack.c.h.bf16 %v5200_v2  ;;  %9128 = vrcp.f32 %v4957_v23  ;;  %v2827_v26 = vunpack.c.l.bf16 %v2564_v28  ;;  %v13523_v2 = vpop.f32.mrf.mxu0 }
 0x59b   : > { %v3937_v17 = vunpack.c.l.bf16 %v3679_v35  ;;  %v3938_v19 = vunpack.c.h.bf16 %v3679_v35  ;;  %v2828_v31 = vunpack.c.h.bf16 %v2564_v28  ;;  %v13508_v25 = vpack.c.bf16 %v2254_v30, %v2165_v40 }
 0x59c   : > { %v9123_v59 = vpop.eup %9122  ;;  %v6489_v48 = vmul.f32 %v6169_v21, %v5849_v10  ;;  %v6490_v9 = vmul.f32 %v6170_v39, %v5850_v47  ;;  %v3353_v58 = vmul.f32 1.442695, %v2827_v26  ;;  %v5781_v15 = vunpack.c.l.bf16 %v13452_v38 }
 0x59d   : > { %v4257_v0 = vadd.f32 1.0, %v3937_v17  ;;  %v4258_v60 = vadd.f32 1.0, %v3938_v19  ;;  %v3355_v52 = vmul.f32 1.442695, %v2828_v31  ;;  %v2530_v49 = vxor.u32 2147516416, %v13508_v25 }
 0x59e   : > { %v9125_v3 = vpop.eup %9124  ;;  %v6716_v54 = vpack.c.bf16 %v6490_v9, %v6489_v48  ;;  %9130 = vpow2.f32 %v3353_v58  ;;  %v5782_v55 = vunpack.c.h.bf16 %v13452_v38  ;;  %v2168_v45 = vadd.f32 %v2167_v18, %v12998_v61  ;;  %v2006_v9 = vpop.f32.mrf.mxu3 }
 0x59f   : > { %v9127_v7 = vpop.eup %9126  ;;  %v4479_v5 = vpack.c.bf16 %v4258_v60, %v4257_v0  ;;  %v3645_v11 = vpack.c.bf16 %v9125_v3, %v9123_v59  ;;  %9132 = vpow2.f32 %v3355_v52  ;;  %v2759_v42 = vunpack.c.l.bf16 %v2530_v49 }
 0x5a0   : > { %v9129_v56 = vpop.eup %9128  ;;  %v6969_v50 = vunpack.c.l.bf16 %v6716_v54  ;;  %v6970_v46 = vunpack.c.h.bf16 %v6716_v54  ;;  %v4959_v8 = vmul.f32 %v9127_v7, %v10522_v20  ;;  %v2760_v32 = vunpack.c.h.bf16 %v2530_v49 }
 0x5a1   : > { %v4961_v10 = vmul.f32 %v9129_v56, %v10525_v16  ;;  %v5229_v47 = vunpack.c.h.bf16 %v4479_v5  ;;  %v5230_v44 = vunpack.c.l.bf16 %v4479_v5  ;;  %v3869_v12 = vunpack.c.l.bf16 %v3645_v11 }
 0x5a2   : > { %v13516_v57 = vadd.f32 %v13485_v4, %v6969_v50  ;;  %v13519_v38 = vadd.f32 %v13488_v29, %v6970_v46  ;;  %v3870_v43 = vunpack.c.h.bf16 %v3645_v11  ;;  %v3217_v63 = vmul.f32 1.442695, %v2759_v42 }
 0x5a3   : > { %v4962_v33 = vpack.c.bf16 %v4959_v8, %v4961_v10  ;;  %9134 = vrcp.f32 %v5229_v47  ;;  %v4189_v14 = vadd.f32 1.0, %v3869_v12  ;;  %v3219_v37 = vmul.f32 1.442695, %v2760_v32 }
 0x5a4   : > { %v9131_v40 = vpop.eup %9130  ;;  %9136 = vrcp.f32 %v5230_v44  ;;  %v4190_v1 = vadd.f32 1.0, %v3870_v43  ;;  %v2257_v29 = vadd.f32 %v2256_v24, %v13004_v13  ;;  %v2007_v11 = vadd.f32 %v2006_v9, %v12673_v53 }
 0x5a5   : > { %v9133_v23 = vpop.eup %9132  ;;  %v6101_v22 = vunpack.c.l.bf16 %v4962_v33  ;;  %v6102_v4 = vunpack.c.h.bf16 %v4962_v33  ;;  %9138 = vpow2.f32 %v3217_v63  ;;  %v5859_v10 = vunpack.c.l.bf16 %v13462_v51  ;;  %v13541_v33 = vpop.f32.mrf.mxu0 }
 0x5a6   : > { %v4445_v28 = vpack.c.bf16 %v4190_v1, %v4189_v14  ;;  %v3684_v30 = vpack.c.bf16 %v9133_v23, %v9131_v40  ;;  %9140 = vpow2.f32 %v3219_v37  ;;  %v13525_v39 = vpack.c.bf16 %v2257_v29, %v2168_v45  ;;  %v2258_v29 = vpop.f32.mrf.mxu2 }
 0x5a7   : > { %v6421_v35 = vmul.f32 %v6101_v22, %v5781_v15  ;;  %v6422_v21 = vmul.f32 %v6102_v4, %v5782_v55  ;;  %v2096_v55 = vadd.f32 %v13506_v36, %v12451_v41  ;;  %v5860_v47 = vunpack.c.h.bf16 %v13462_v51  ;;  %v2169_v51 = vpop.f32.mrf.mxu1 }
 0x5a8   : > { %v4991_v26 = vunpack.c.h.bf16 %v4445_v28  ;;  %v4992_v17 = vunpack.c.l.bf16 %v4445_v28  ;;  %v3947_v19 = vunpack.c.l.bf16 %v3684_v30  ;;  %v3948_v31 = vunpack.c.h.bf16 %v3684_v30 }
 0x5a9   : > { %v9135_v59 = vpop.eup %9134  ;;  %v6682_v48 = vpack.c.bf16 %v6422_v21, %v6421_v35  ;;  %v2535_v56 = vxor.u32 2147516416, %v13525_v39  ;;  %v5791_v23 = vunpack.c.l.bf16 %v13480_v62  ;;  %v5792_v30 = vunpack.c.h.bf16 %v13480_v62 }
 0x5aa   : > { %v9137_v58 = vpop.eup %9136  ;;  %v5232_v0 = vmul.f32 %v9135_v59, %v10522_v20  ;;  %9142 = vrcp.f32 %v4991_v26  ;;  %v4267_v60 = vadd.f32 1.0, %v3947_v19  ;;  %v4268_v52 = vadd.f32 1.0, %v3948_v31 }
 0x5ab   : > { %v9139_v3 = vpop.eup %9138  ;;  %v6901_v54 = vunpack.c.l.bf16 %v6682_v48  ;;  %v6902_v49 = vunpack.c.h.bf16 %v6682_v48  ;;  %v5234_v15 = vmul.f32 %v9137_v58, %v10525_v16  ;;  %9144 = vrcp.f32 %v4992_v17 }
 0x5ac   : > { %v9141_v7 = vpop.eup %9140  ;;  %v4484_v5 = vpack.c.bf16 %v4268_v52, %v4267_v60  ;;  %v2770_v14 = vunpack.c.h.bf16 %v2535_v56  ;;  %v2170_v31 = vadd.f32 %v2169_v51, %v12998_v61  ;;  %v2259_v9 = vadd.f32 %v2258_v29, %v13004_v13 }
 0x5ad   : > { %v13534_v50 = vadd.f32 %v13502_v27, %v6901_v54  ;;  %v13537_v46 = vadd.f32 %v13504_v6, %v6902_v49  ;;  %v5235_v8 = vpack.c.bf16 %v5232_v0, %v5234_v15  ;;  %v3650_v42 = vpack.c.bf16 %v9141_v7, %v9139_v3 }
 0x5ae   : > { %v5264_v44 = vunpack.c.h.bf16 %v4484_v5  ;;  %v5265_v12 = vunpack.c.l.bf16 %v4484_v5  ;;  %v13543_v27 = vpack.c.bf16 %v2096_v55, %v2007_v11  ;;  %v2769_v6 = vunpack.c.l.bf16 %v2535_v56 }
 0x5af   : > { %v6179_v36 = vunpack.c.l.bf16 %v5235_v8  ;;  %v6180_v18 = vunpack.c.h.bf16 %v5235_v8  ;;  %v3879_v43 = vunpack.c.l.bf16 %v3650_v42  ;;  %v3880_v32 = vunpack.c.h.bf16 %v3650_v42  ;;  %v13558_v8 = vpop.f32.mrf.mxu0 }
 0x5b0   : > { %v9143_v24 = vpop.eup %9142  ;;  %9146 = vrcp.f32 %v5264_v44  ;;  %v3237_v35 = vmul.f32 1.442695, %v2769_v6  ;;  %v3239_v21 = vmul.f32 1.442695, %v2770_v14  ;;  %v2569_v19 = vxor.u32 2147516416, %v13543_v27 }
 0x5b1   : > { %v9145_v63 = vpop.eup %9144  ;;  %v6499_v40 = vmul.f32 %v6179_v36, %v5859_v10  ;;  %v6500_v1 = vmul.f32 %v6180_v18, %v5860_v47  ;;  %v4994_v37 = vmul.f32 %v9143_v24, %v10522_v20  ;;  %9148 = vrcp.f32 %v5265_v12 }
 0x5b2   : > { %v4996_v45 = vmul.f32 %v9145_v63, %v10525_v16  ;;  %v4199_v22 = vadd.f32 1.0, %v3879_v43  ;;  %v4200_v4 = vadd.f32 1.0, %v3880_v32  ;;  %9150 = vpow2.f32 %v3237_v35 }
 0x5b3   : > { %v6721_v28 = vpack.c.bf16 %v6500_v1, %v6499_v40  ;;  %9152 = vpow2.f32 %v3239_v21  ;;  %v2837_v11 = vunpack.c.l.bf16 %v2569_v19  ;;  %v13556_v56 = vpack.c.bf16 %v2259_v9, %v2170_v31 }
 0x5b4   : > { %v4997_v26 = vpack.c.bf16 %v4994_v37, %v4996_v45  ;;  %v4450_v17 = vpack.c.bf16 %v4200_v4, %v4199_v22  ;;  %v2838_v44 = vunpack.c.h.bf16 %v2569_v19  ;;  %v2009_v22 = vpop.f32.mrf.mxu3  ;;  %v2099_v4 = vadd.f32 %v13523_v2, %v12451_v41 }
 0x5b5   : > { %v6979_v59 = vunpack.c.l.bf16 %v6721_v28  ;;  %v6980_v48 = vunpack.c.h.bf16 %v6721_v28  ;;  %v3373_v24 = vmul.f32 1.442695, %v2837_v11  ;;  %v2540_v6 = vxor.u32 2147516416, %v13556_v56 }
 0x5b6   : > { %v9147_v58 = vpop.eup %9146  ;;  %v6111_v0 = vunpack.c.l.bf16 %v4997_v26  ;;  %v6112_v60 = vunpack.c.h.bf16 %v4997_v26  ;;  %v5026_v52 = vunpack.c.h.bf16 %v4450_v17  ;;  %v5027_v3 = vunpack.c.l.bf16 %v4450_v17 }
 0x5b7   : > { %v9149_v54 = vpop.eup %9148  ;;  %v7317_v62 = vadd.f32 %v13516_v57, %v6979_v59  ;;  %v7348_v49 = vadd.f32 %v13519_v38, %v6980_v48  ;;  %v5267_v15 = vmul.f32 %v9147_v58, %v10522_v20  ;;  %v5869_v57 = vunpack.c.l.bf16 %v13496_v34  ;;  %v13572_v2 = vpop.f32.mrf.mxu0 }
 0x5b8   : > { %v6431_v7 = vmul.f32 %v6111_v0, %v5791_v23  ;;  %v6432_v55 = vmul.f32 %v6112_v60, %v5792_v30  ;;  %v5269_v5 = vmul.f32 %v9149_v54, %v10525_v16  ;;  %9154 = vrcp.f32 %v5026_v52  ;;  %v9151_v47 = vpop.eup %9150 }
 0x5b9   : > { %9156 = vrcp.f32 %v5027_v3  ;;  %v5870_v38 = vunpack.c.h.bf16 %v13496_v34  ;;  %v9153_v32 = vpop.eup %9152  ;;  %v3375_v34 = vmul.f32 1.442695, %v2838_v44  ;;  %v5801_v30 = vunpack.c.l.bf16 %v13508_v25 }
 0x5ba   : > { %v6687_v42 = vpack.c.bf16 %v6432_v55, %v6431_v7  ;;  %v5270_v10 = vpack.c.bf16 %v5267_v15, %v5269_v5  ;;  %v3655_v23 = vpack.c.bf16 %v9153_v32, %v9151_v47  ;;  %9158 = vpow2.f32 %v3373_v24  ;;  %v2172_v5 = vpop.f32.mrf.mxu1 }
 0x5bb   : > { %v2010_v19 = vadd.f32 %v2009_v22, %v12673_v53  ;;  %v5802_v31 = vunpack.c.h.bf16 %v13508_v25  ;;  %9160 = vpow2.f32 %v3375_v34  ;;  %v2780_v3 = vunpack.c.h.bf16 %v2540_v6  ;;  %v2261_v25 = vpop.f32.mrf.mxu2 }
 0x5bc   : > { %v6911_v12 = vunpack.c.l.bf16 %v6687_v42  ;;  %v6912_v36 = vunpack.c.h.bf16 %v6687_v42  ;;  %v6189_v18 = vunpack.c.l.bf16 %v5270_v10  ;;  %v6190_v43 = vunpack.c.h.bf16 %v5270_v10  ;;  %v2011_v34 = vpop.f32.mrf.mxu3 }
 0x5bd   : > { %v3890_v35 = vunpack.c.h.bf16 %v3655_v23  ;;  %v13578_v55 = vpack.c.bf16 %v2099_v4, %v2010_v19  ;;  %v3259_v47 = vmul.f32 1.442695, %v2780_v3 }
 0x5be   : > { %v9155_v14 = vpop.eup %9154  ;;  %v7372_v63 = vadd.f32 %v13534_v50, %v6911_v12  ;;  %v7403_v40 = vadd.f32 %v13537_v46, %v6912_v36  ;;  %v6509_v1 = vmul.f32 %v6189_v18, %v5869_v57  ;;  %v6510_v37 = vmul.f32 %v6190_v43, %v5870_v38 }
 0x5bf   : > { %v9157_v51 = vpop.eup %9156  ;;  %v5029_v45 = vmul.f32 %v9155_v14, %v10522_v20  ;;  %v3889_v50 = vunpack.c.l.bf16 %v3655_v23  ;;  %v2779_v46 = vunpack.c.l.bf16 %v2540_v6  ;;  %v4210_v48 = vadd.f32 1.0, %v3890_v35 }
 0x5c0   : > { %v6726_v29 = vpack.c.bf16 %v6510_v37, %v6509_v1  ;;  %v5031_v28 = vmul.f32 %v9157_v51, %v10525_v16  ;;  %v9159_v11 = vpop.eup %9158  ;;  %v2262_v38 = vadd.f32 %v2261_v25, %v13004_v13  ;;  %v2574_v36 = vxor.u32 2147516416, %v13578_v55  ;;  %v13586_v1 = vpop.f32.mrf.mxu0 }
 0x5c1   : > { %v4209_v59 = vadd.f32 1.0, %v3889_v50  ;;  %v3257_v54 = vmul.f32 1.442695, %v2779_v46  ;;  %v5811_v35 = vunpack.c.l.bf16 %v13525_v39 }
 0x5c2   : > { %v6989_v21 = vunpack.c.l.bf16 %v6726_v29  ;;  %v6990_v26 = vunpack.c.h.bf16 %v6726_v29  ;;  %v5032_v17 = vpack.c.bf16 %v5029_v45, %v5031_v28  ;;  %v2847_v37 = vunpack.c.l.bf16 %v2574_v36 }
 0x5c3   : > { %v4455_v52 = vpack.c.bf16 %v4210_v48, %v4209_v59  ;;  %9162 = vpow2.f32 %v3257_v54  ;;  %v2848_v45 = vunpack.c.h.bf16 %v2574_v36 }
 0x5c4   : > { %v13574_v9 = vadd.f32 %v7317_v62, %v6989_v21  ;;  %v13576_v58 = vadd.f32 %v7348_v49, %v6990_v26  ;;  %v6121_v0 = vunpack.c.l.bf16 %v5032_v17  ;;  %v6122_v60 = vunpack.c.h.bf16 %v5032_v17  ;;  %v9161_v62 = vpop.eup %9160 }
 0x5c5   : > { %v5061_v42 = vunpack.c.h.bf16 %v4455_v52  ;;  %v5062_v10 = vunpack.c.l.bf16 %v4455_v52  ;;  %v2173_v49 = vadd.f32 %v2172_v5, %v12998_v61  ;;  %v3689_v24 = vpack.c.bf16 %v9161_v62, %v9159_v11 }
 0x5c6   : > { %v6441_v15 = vmul.f32 %v6121_v0, %v5801_v30  ;;  %v6442_v7 = vmul.f32 %v6122_v60, %v5802_v31  ;;  %v3393_v46 = vmul.f32 1.442695, %v2847_v37  ;;  %v2012_v26 = vadd.f32 %v2011_v34, %v12673_v53 }
 0x5c7   : > { %9164 = vrcp.f32 %v5061_v42  ;;  %v13583_v18 = vpack.c.bf16 %v2262_v38, %v2173_v49  ;;  %v3957_v29 = vunpack.c.l.bf16 %v3689_v24  ;;  %v5812_v31 = vunpack.c.h.bf16 %v13525_v39 }
 0x5c8   : > { %v6692_v57 = vpack.c.bf16 %v6442_v7, %v6441_v15  ;;  %9166 = vrcp.f32 %v5062_v10  ;;  %v3395_v59 = vmul.f32 1.442695, %v2848_v45  ;;  %v13597_v42 = vpop.f32.mrf.mxu0 }
 0x5c9   : > { %9168 = vpow2.f32 %v3259_v47  ;;  %v2545_v6 = vxor.u32 2147516416, %v13583_v18  ;;  %v9163_v14 = vpop.eup %9162  ;;  %v4277_v0 = vadd.f32 1.0, %v3957_v29  ;;  %v2263_v29 = vpop.f32.mrf.mxu2 }
 0x5ca   : > { %v6921_v44 = vunpack.c.l.bf16 %v6692_v57  ;;  %v6922_v12 = vunpack.c.h.bf16 %v6692_v57 }
 0x5cb   : > { %v2789_v23 = vunpack.c.l.bf16 %v2545_v6  ;;  %v2790_v22 = vunpack.c.h.bf16 %v2545_v6 }
 0x5cc   : > { %v7373_v43 = vadd.f32 %v7372_v63, %v6921_v44  ;;  %v7404_v32 = vadd.f32 %v7403_v40, %v6922_v12  ;;  %v2101_v63 = vadd.f32 %v13541_v33, %v12451_v41  ;;  %v3958_v40 = vunpack.c.h.bf16 %v3689_v24 }
 0x5cd   : > { %v9165_v51 = vpop.eup %9164  ;;  %v3277_v17 = vmul.f32 1.442695, %v2789_v23  ;;  %v3279_v48 = vmul.f32 1.442695, %v2790_v22 }
 0x5ce   : > { %v9167_v4 = vpop.eup %9166  ;;  %v5064_v28 = vmul.f32 %v9165_v51, %v10522_v20  ;;  %v4278_v33 = vadd.f32 1.0, %v3958_v40  ;;  %v13595_v5 = vpack.c.bf16 %v2101_v63, %v2012_v26 }
 0x5cf   : > { %v9169_v30 = vpop.eup %9168  ;;  %v5066_v50 = vmul.f32 %v9167_v4, %v10525_v16  ;;  %9170 = vpow2.f32 %v3277_v17  ;;  %v2174_v4 = vpop.f32.mrf.mxu1 }
 0x5d0   : > { %v3660_v21 = vpack.c.bf16 %v9169_v30, %v9163_v14  ;;  %9172 = vpow2.f32 %v3279_v48  ;;  %v4489_v57 = vpack.c.bf16 %v4278_v33, %v4277_v0  ;;  %v2579_v38 = vxor.u32 2147516416, %v13595_v5 }
 0x5d1   : > { %v5067_v19 = vpack.c.bf16 %v5064_v28, %v5066_v50  ;;  %9174 = vpow2.f32 %v3393_v46  ;;  %v2175_v50 = vadd.f32 %v2174_v4, %v12998_v61  ;;  %v2264_v46 = vadd.f32 %v2263_v29, %v13004_v13 }
 0x5d2   : > { %v3899_v60 = vunpack.c.l.bf16 %v3660_v21  ;;  %v3900_v52 = vunpack.c.h.bf16 %v3660_v21  ;;  %9176 = vpow2.f32 %v3395_v59  ;;  %v5299_v45 = vunpack.c.h.bf16 %v4489_v57  ;;  %v13606_v21 = vpop.f32.mrf.mxu0 }
 0x5d3   : > { %v6131_v3 = vunpack.c.l.bf16 %v5067_v19  ;;  %v6132_v54 = vunpack.c.h.bf16 %v5067_v19  ;;  %v2857_v34 = vunpack.c.l.bf16 %v2579_v38  ;;  %v5300_v28 = vunpack.c.l.bf16 %v4489_v57 }
 0x5d4   : > { %v4219_v15 = vadd.f32 1.0, %v3899_v60  ;;  %v4220_v7 = vadd.f32 1.0, %v3900_v52  ;;  %v13609_v59 = vpack.c.bf16 %v2264_v46, %v2175_v50  ;;  %v2104_v48 = vadd.f32 %v13558_v8, %v12451_v41 }
 0x5d5   : > { %v6451_v25 = vmul.f32 %v6131_v3, %v5811_v35  ;;  %v6452_v11 = vmul.f32 %v6132_v54, %v5812_v31  ;;  %v9171_v47 = vpop.eup %9170  ;;  %v2014_v35 = vpop.f32.mrf.mxu3  ;;  %v3413_v26 = vmul.f32 1.442695, %v2857_v34 }
 0x5d6   : > { %v4460_v39 = vpack.c.bf16 %v4220_v7, %v4219_v15  ;;  %v9173_v44 = vpop.eup %9172  ;;  %v2015_v52 = vadd.f32 %v2014_v35, %v12673_v53  ;;  %v2550_v15 = vxor.u32 2147516416, %v13609_v59 }
 0x5d7   : > { %v6697_v10 = vpack.c.bf16 %v6452_v11, %v6451_v25  ;;  %v9175_v24 = vpop.eup %9174  ;;  %v3665_v6 = vpack.c.bf16 %v9173_v44, %v9171_v47  ;;  %v5821_v25 = vunpack.c.l.bf16 %v13556_v56  ;;  %v2177_v46 = vpop.f32.mrf.mxu1 }
 0x5d8   : > { %v5096_v62 = vunpack.c.h.bf16 %v4460_v39  ;;  %v5097_v49 = vunpack.c.l.bf16 %v4460_v39  ;;  %v9177_v14 = vpop.eup %9176  ;;  %v5822_v39 = vunpack.c.h.bf16 %v13556_v56  ;;  %v2800_v8 = vunpack.c.h.bf16 %v2550_v15 }
 0x5d9   : > { %v6931_v12 = vunpack.c.l.bf16 %v6697_v10  ;;  %v6932_v36 = vunpack.c.h.bf16 %v6697_v10  ;;  %v3909_v23 = vunpack.c.l.bf16 %v3665_v6  ;;  %v3910_v22 = vunpack.c.h.bf16 %v3665_v6 }
 0x5da   : > { %9178 = vrcp.f32 %v5096_v62  ;;  %v3694_v30 = vpack.c.bf16 %v9177_v14, %v9175_v24  ;;  %v2799_v10 = vunpack.c.l.bf16 %v2550_v15  ;;  %v3299_v24 = vmul.f32 1.442695, %v2800_v8  ;;  %v13620_v56 = vpop.f32.mrf.mxu0 }
 0x5db   : > { %v13600_v37 = vadd.f32 %v7373_v43, %v6931_v12  ;;  %v13602_v51 = vadd.f32 %v7404_v32, %v6932_v36  ;;  %9180 = vrcp.f32 %v5097_v49  ;;  %v4229_v63 = vadd.f32 1.0, %v3909_v23 }
 0x5dc   : > { %v4230_v40 = vadd.f32 1.0, %v3910_v22  ;;  %9182 = vrcp.f32 %v5299_v45  ;;  %v2858_v32 = vunpack.c.h.bf16 %v2579_v38  ;;  %v3967_v0 = vunpack.c.l.bf16 %v3694_v30 }
 0x5dd   : > { %9184 = vrcp.f32 %v5300_v28  ;;  %v3968_v33 = vunpack.c.h.bf16 %v3694_v30  ;;  %v13618_v49 = vpack.c.bf16 %v2104_v48, %v2015_v52  ;;  %v3297_v36 = vmul.f32 1.442695, %v2799_v10  ;;  %v2266_v30 = vpop.f32.mrf.mxu2 }
 0x5de   : > { %v4465_v31 = vpack.c.bf16 %v4230_v40, %v4229_v63  ;;  %9186 = vpow2.f32 %v3413_v26  ;;  %v3415_v11 = vmul.f32 1.442695, %v2858_v32  ;;  %v4287_v44 = vadd.f32 1.0, %v3967_v0  ;;  %v2016_v26 = vpop.f32.mrf.mxu3 }
 0x5df   : > { %v4288_v12 = vadd.f32 1.0, %v3968_v33  ;;  %v2584_v28 = vxor.u32 2147516416, %v13618_v49  ;;  %v2267_v0 = vadd.f32 %v2266_v30, %v13004_v13  ;;  %v2179_v30 = vpop.f32.mrf.mxu1 }
 0x5e0   : > { %v9179_v43 = vpop.eup %9178  ;;  %v5131_v3 = vunpack.c.h.bf16 %v4465_v31  ;;  %v5132_v54 = vunpack.c.l.bf16 %v4465_v31 }
 0x5e1   : > { %v9181_v17 = vpop.eup %9180  ;;  %v5099_v19 = vmul.f32 %v9179_v43, %v10522_v20  ;;  %v4494_v29 = vpack.c.bf16 %v4288_v12, %v4287_v44  ;;  %v2106_v43 = vadd.f32 %v13572_v2, %v12451_v41 }
 0x5e2   : > { %v5101_v60 = vmul.f32 %v9181_v17, %v10525_v16  ;;  %9188 = vrcp.f32 %v5131_v3  ;;  %v9183_v47 = vpop.eup %9182  ;;  %v5831_v3 = vunpack.c.l.bf16 %v13583_v18 }
 0x5e3   : > { %9190 = vrcp.f32 %v5132_v54  ;;  %v9185_v38 = vpop.eup %9184  ;;  %v5302_v34 = vmul.f32 %v9183_v47, %v10522_v20  ;;  %v5334_v52 = vunpack.c.h.bf16 %v4494_v29  ;;  %v2867_v54 = vunpack.c.l.bf16 %v2584_v28 }
 0x5e4   : > { %v5102_v7 = vpack.c.bf16 %v5099_v19, %v5101_v60  ;;  %9192 = vpow2.f32 %v3415_v11  ;;  %v9187_v45 = vpop.eup %9186  ;;  %v5304_v23 = vmul.f32 %v9185_v38, %v10525_v16  ;;  %v5335_v2 = vunpack.c.l.bf16 %v4494_v29 }
 0x5e5   : > { %9194 = vpow2.f32 %v3297_v36  ;;  %v2017_v11 = vadd.f32 %v2016_v26, %v12673_v53  ;;  %v3433_v12 = vmul.f32 1.442695, %v2867_v54 }
 0x5e6   : > { %v6141_v57 = vunpack.c.l.bf16 %v5102_v7  ;;  %v6142_v62 = vunpack.c.h.bf16 %v5102_v7  ;;  %9196 = vpow2.f32 %v3299_v24  ;;  %v13629_v19 = vpack.c.bf16 %v5302_v34, %v5304_v23 }
 0x5e7   : > { %v5832_v7 = vunpack.c.h.bf16 %v13583_v18  ;;  %9198 = vrcp.f32 %v5334_v52  ;;  %v2118_v18 = vpop.f32.mrf.mxu0 }
 0x5e8   : > { %v6461_v6 = vmul.f32 %v6141_v57, %v5821_v25  ;;  %v6462_v14 = vmul.f32 %v6142_v62, %v5822_v39  ;;  %v9189_v4 = vpop.eup %9188  ;;  %v2178_v25 = vadd.f32 %v2177_v46, %v12998_v61  ;;  %v6199_v8 = vunpack.c.l.bf16 %v13629_v19 }
 0x5e9   : > { %v9191_v63 = vpop.eup %9190  ;;  %v5134_v35 = vmul.f32 %v9189_v4, %v10522_v20  ;;  %v6200_v47 = vunpack.c.h.bf16 %v13629_v19  ;;  %9200 = vrcp.f32 %v5335_v2  ;;  %v5879_v2 = vunpack.c.l.bf16 %v13543_v27 }
 0x5ea   : > { %v6702_v22 = vpack.c.bf16 %v6462_v14, %v6461_v6  ;;  %v5136_v32 = vmul.f32 %v9191_v63, %v10525_v16  ;;  %v9193_v17 = vpop.eup %9192  ;;  %v13640_v62 = vpack.c.bf16 %v2267_v0, %v2178_v25  ;;  %v13642_v6 = vpack.c.bf16 %v2106_v43, %v2017_v11 }
 0x5eb   : > { %v9195_v60 = vpop.eup %9194  ;;  %v3699_v39 = vpack.c.bf16 %v9193_v17, %v9187_v45  ;;  %9202 = vpow2.f32 %v3433_v12 }
 0x5ec   : > { %v6941_v40 = vunpack.c.l.bf16 %v6702_v22  ;;  %v6942_v50 = vunpack.c.h.bf16 %v6702_v22  ;;  %v5137_v33 = vpack.c.bf16 %v5134_v35, %v5136_v32  ;;  %v9197_v15 = vpop.eup %9196  ;;  %v2555_v14 = vxor.u32 2147516416, %v13640_v62  ;;  %v2268_v35 = vpop.f32.mrf.mxu2 }
 0x5ed   : > { %v3670_v57 = vpack.c.bf16 %v9197_v15, %v9195_v60  ;;  %v3977_v45 = vunpack.c.l.bf16 %v3699_v39  ;;  %v3978_v63 = vunpack.c.h.bf16 %v3699_v39  ;;  %v2589_v43 = vxor.u32 2147516416, %v13642_v6  ;;  %v9199_v17 = vpop.eup %9198 }
 0x5ee   : > { %v7375_v31 = vadd.f32 %v13600_v37, %v6941_v40  ;;  %v7406_v48 = vadd.f32 %v13602_v51, %v6942_v50  ;;  %v6151_v37 = vunpack.c.l.bf16 %v5137_v33  ;;  %v6152_v10 = vunpack.c.h.bf16 %v5137_v33 }
 0x5ef   : > { %v2868_v51 = vunpack.c.h.bf16 %v2584_v28  ;;  %v3919_v36 = vunpack.c.l.bf16 %v3670_v57  ;;  %v3920_v24 = vunpack.c.h.bf16 %v3670_v57  ;;  %v2809_v29 = vunpack.c.l.bf16 %v2555_v14  ;;  %v9201_v15 = vpop.eup %9200 }
 0x5f0   : > { %v6471_v38 = vmul.f32 %v6151_v37, %v5831_v3  ;;  %v6472_v44 = vmul.f32 %v6152_v10, %v5832_v7  ;;  %v2810_v28 = vunpack.c.h.bf16 %v2555_v14  ;;  %v2180_v60 = vadd.f32 %v2179_v30, %v12998_v61  ;;  %v2019_v3 = vpop.f32.mrf.mxu3 }
 0x5f1   : > { %v3435_v23 = vmul.f32 1.442695, %v2868_v51  ;;  %v4239_v22 = vadd.f32 1.0, %v3919_v36  ;;  %v4240_v4 = vadd.f32 1.0, %v3920_v24  ;;  %v3317_v32 = vmul.f32 1.442695, %v2809_v29  ;;  %v9203_v39 = vpop.eup %9202 }
 0x5f2   : > { %v6707_v34 = vpack.c.bf16 %v6472_v44, %v6471_v38  ;;  %v3319_v26 = vmul.f32 1.442695, %v2810_v28  ;;  %v2269_v54 = vadd.f32 %v2268_v35, %v13004_v13  ;;  %v4297_v7 = vadd.f32 1.0, %v3977_v45  ;;  %v2120_v38 = vpop.f32.mrf.mxu0 }
 0x5f3   : > { %v4470_v46 = vpack.c.bf16 %v4240_v4, %v4239_v22  ;;  %9204 = vpow2.f32 %v3435_v23  ;;  %v4298_v25 = vadd.f32 1.0, %v3978_v63  ;;  %v2109_v37 = vadd.f32 %v13586_v1, %v12451_v41 }
 0x5f4   : > { %v6951_v40 = vunpack.c.l.bf16 %v6707_v34  ;;  %v6952_v50 = vunpack.c.h.bf16 %v6707_v34  ;;  %9206 = vpow2.f32 %v3317_v32  ;;  %v13654_v11 = vpack.c.bf16 %v2269_v54, %v2180_v60 }
 0x5f5   : > { %v5166_v52 = vunpack.c.h.bf16 %v4470_v46  ;;  %v5167_v33 = vunpack.c.l.bf16 %v4470_v46  ;;  %9208 = vpow2.f32 %v3319_v26  ;;  %v2878_v10 = vunpack.c.h.bf16 %v2589_v43 }
 0x5f6   : > { %v13646_v19 = vadd.f32 %v7375_v31, %v6951_v40  ;;  %v13648_v0 = vadd.f32 %v7406_v48, %v6952_v50  ;;  %v5880_v31 = vunpack.c.h.bf16 %v13543_v27  ;;  %v2877_v48 = vunpack.c.l.bf16 %v2589_v43 }
 0x5f7   : > { %9210 = vrcp.f32 %v5166_v52  ;;  %v2020_v51 = vadd.f32 %v2019_v3, %v12673_v53  ;;  %v2111_v57 = vadd.f32 %v13597_v42, %v12451_v41  ;;  %v6519_v44 = vmul.f32 %v6199_v8, %v5879_v2 }
 0x5f8   : > { %9212 = vrcp.f32 %v5167_v33  ;;  %v6520_v12 = vmul.f32 %v6200_v47, %v5880_v31  ;;  %v2560_v27 = vxor.u32 2147516416, %v13654_v11  ;;  %v13664_v24 = vadd.f32 %v13606_v21, %v12451_v41  ;;  %v2021_v52 = vpop.f32.mrf.mxu3  ;;  %v2271_v33 = vpop.f32.mrf.mxu2 }
 0x5f9   : > { %v9205_v36 = vpop.eup %9204  ;;  %v5337_v14 = vmul.f32 %v9199_v17, %v10522_v20  ;;  %v5339_v1 = vmul.f32 %v9201_v15, %v10525_v16  ;;  %v4499_v45 = vpack.c.bf16 %v4298_v25, %v4297_v7  ;;  %v13670_v23 = vadd.f32 %v13620_v56, %v12451_v41 }
 0x5fa   : > { %v9207_v34 = vpop.eup %9206  ;;  %v13673_v42 = vadd.f32 %v2118_v18, %v12451_v41  ;;  %v3453_v8 = vmul.f32 1.442695, %v2877_v48  ;;  %v2819_v47 = vunpack.c.l.bf16 %v2560_v27  ;;  %v13676_v4 = vadd.f32 %v2120_v38, %v12451_v41  ;;  %v2182_v41 = vpop.f32.mrf.mxu1 }
 0x5fb   : > { %v9209_v22 = vpop.eup %9208  ;;  %v5889_v21 = vunpack.c.l.bf16 %v13578_v55  ;;  %v3455_v29 = vmul.f32 1.442695, %v2878_v10  ;;  %v13679_v28 = vpack.c.bf16 %v2109_v37, %v2020_v51  ;;  %v13681_v63 = vpack.c.bf16 %v6520_v12, %v6519_v44 }
 0x5fc   : > { %v3675_v40 = vpack.c.bf16 %v9209_v22, %v9207_v34  ;;  %v2820_v56 = vunpack.c.h.bf16 %v2560_v27  ;;  %v3337_v50 = vmul.f32 1.442695, %v2819_v47  ;;  %v13683_v18 = vpack.c.bf16 %v5337_v14, %v5339_v1 }
 0x5fd   : > { %v9211_v30 = vpop.eup %9210  ;;  %v5369_v46 = vunpack.c.h.bf16 %v4499_v45  ;;  %v5370_v43 = vunpack.c.l.bf16 %v4499_v45  ;;  %v5841_v17 = vunpack.c.l.bf16 %v13609_v59  ;;  %9214 = vpow2.f32 %v3453_v8 }
 0x5fe   : > { %v9213_v35 = vpop.eup %9212  ;;  %v5169_v32 = vmul.f32 %v9211_v30, %v10522_v20  ;;  %v3929_v60 = vunpack.c.l.bf16 %v3675_v40  ;;  %v3704_v3 = vpack.c.bf16 %v9205_v36, %v9203_v39  ;;  %9216 = vpow2.f32 %v3455_v29 }
 0x5ff   : > { %v5171_v26 = vmul.f32 %v9213_v35, %v10525_v16  ;;  %v3930_v54 = vunpack.c.h.bf16 %v3675_v40  ;;  %v2594_v15 = vxor.u32 2147516416, %v13679_v28  ;;  %9218 = vpow2.f32 %v3337_v50 }
 0x600   : > { %v4249_v7 = vadd.f32 1.0, %v3929_v60  ;;  %v3339_v25 = vmul.f32 1.442695, %v2820_v56  ;;  %v2183_v48 = vadd.f32 %v2182_v41, %v12998_v61  ;;  %v2022_v37 = vadd.f32 %v2021_v52, %v12673_v53 }
 0x601   : > { %v5172_v2 = vpack.c.bf16 %v5169_v32, %v5171_v26  ;;  %v4250_v31 = vadd.f32 1.0, %v3930_v54  ;;  %v2272_v10 = vadd.f32 %v2271_v33, %v13004_v13  ;;  %v5842_v51 = vunpack.c.h.bf16 %v13609_v59 }
 0x602   : > { %9220 = vpow2.f32 %v3339_v25  ;;  %v13693_v12 = vpack.c.bf16 %v2111_v57, %v2022_v37  ;;  %v5890_v14 = vunpack.c.h.bf16 %v13578_v55  ;;  %v3987_v1 = vunpack.c.l.bf16 %v3704_v3 }
 0x603   : > { %v6161_v38 = vunpack.c.l.bf16 %v5172_v2  ;;  %v6162_v44 = vunpack.c.h.bf16 %v5172_v2  ;;  %9222 = vrcp.f32 %v5369_v46  ;;  %v4475_v39 = vpack.c.bf16 %v4250_v31, %v4249_v7  ;;  %v9215_v36 = vpop.eup %9214 }
 0x604   : > { %v13695_v27 = vpack.c.bf16 %v2272_v10, %v2183_v48  ;;  %v9217_v8 = vpop.eup %9216  ;;  %v2887_v29 = vunpack.c.l.bf16 %v2594_v15  ;;  %v2599_v59 = vxor.u32 2147516416, %v13693_v12  ;;  %9224 = vrcp.f32 %v5370_v43 }
 0x605   : > { %v6481_v45 = vmul.f32 %v6161_v38, %v5841_v17  ;;  %v6482_v34 = vmul.f32 %v6162_v44, %v5842_v51  ;;  %v5201_v47 = vunpack.c.h.bf16 %v4475_v39  ;;  %v5202_v22 = vunpack.c.l.bf16 %v4475_v39  ;;  %v9219_v30 = vpop.eup %9218 }
 0x606   : > { %v3988_v40 = vunpack.c.h.bf16 %v3704_v3  ;;  %v2888_v57 = vunpack.c.h.bf16 %v2594_v15  ;;  %v6999_v50 = vunpack.c.l.bf16 %v13681_v63  ;;  %v6209_v35 = vunpack.c.l.bf16 %v13683_v18 }
 0x607   : > { %v6712_v56 = vpack.c.bf16 %v6482_v34, %v6481_v45  ;;  %v6210_v46 = vunpack.c.h.bf16 %v13683_v18  ;;  %9226 = vrcp.f32 %v5201_v47  ;;  %v2897_v17 = vunpack.c.l.bf16 %v2599_v59  ;;  %v2024_v45 = vpop.f32.mrf.mxu3 }
 0x608   : > { %v9221_v32 = vpop.eup %9220  ;;  %9228 = vrcp.f32 %v5202_v22  ;;  %v4307_v52 = vadd.f32 1.0, %v3987_v1  ;;  %v3473_v33 = vmul.f32 1.442695, %v2887_v29  ;;  %v2898_v43 = vunpack.c.h.bf16 %v2599_v59 }
 0x609   : > { %v6961_v41 = vunpack.c.l.bf16 %v6712_v56  ;;  %v6962_v26 = vunpack.c.h.bf16 %v6712_v56  ;;  %v9223_v60 = vpop.eup %9222  ;;  %v3680_v54 = vpack.c.bf16 %v9221_v32, %v9219_v30  ;;  %v4308_v3 = vadd.f32 1.0, %v3988_v40 }
 0x60a   : > { %v3475_v7 = vmul.f32 1.442695, %v2888_v57  ;;  %v6529_v18 = vmul.f32 %v6209_v35, %v5889_v21  ;;  %v3709_v25 = vpack.c.bf16 %v9217_v8, %v9215_v36  ;;  %v9225_v37 = vpop.eup %9224  ;;  %v6530_v10 = vmul.f32 %v6210_v46, %v5890_v14 }
 0x60b   : > { %v13703_v15 = vadd.f32 %v13646_v19, %v6961_v41  ;;  %v13706_v2 = vadd.f32 %v13648_v0, %v6962_v26  ;;  %v3939_v31 = vunpack.c.l.bf16 %v3680_v54  ;;  %v3940_v48 = vunpack.c.h.bf16 %v3680_v54 }
 0x60c   : > { %v5372_v51 = vmul.f32 %v9223_v60, %v10522_v20  ;;  %v3493_v38 = vmul.f32 1.442695, %v2897_v17  ;;  %v2565_v44 = vxor.u32 2147516416, %v13695_v27  ;;  %9230 = vpow2.f32 %v3473_v33 }
 0x60d   : > { %v9227_v39 = vpop.eup %9226  ;;  %v4259_v19 = vadd.f32 1.0, %v3939_v31  ;;  %v4260_v1 = vadd.f32 1.0, %v3940_v48  ;;  %v3495_v0 = vmul.f32 1.442695, %v2898_v43  ;;  %v4504_v47 = vpack.c.bf16 %v4308_v3, %v4307_v52 }
 0x60e   : > { %v9229_v34 = vpop.eup %9228  ;;  %v5204_v55 = vmul.f32 %v9227_v39, %v10522_v20  ;;  %9232 = vpow2.f32 %v3475_v7  ;;  %v2829_v21 = vunpack.c.l.bf16 %v2565_v44  ;;  %v3997_v36 = vunpack.c.l.bf16 %v3709_v25 }
 0x60f   : > { %v5206_v14 = vmul.f32 %v9229_v34, %v10525_v16  ;;  %v4480_v8 = vpack.c.bf16 %v4260_v1, %v4259_v19  ;;  %v2830_v22 = vunpack.c.h.bf16 %v2565_v44  ;;  %v3998_v29 = vunpack.c.h.bf16 %v3709_v25 }
 0x610   : > { %9234 = vpow2.f32 %v3493_v38  ;;  %v3357_v59 = vmul.f32 1.442695, %v2829_v21  ;;  %v2025_v30 = vadd.f32 %v2024_v45, %v12673_v53  ;;  %v5374_v35 = vmul.f32 %v9225_v37, %v10525_v16 }
 0x611   : > { %v5207_v40 = vpack.c.bf16 %v5204_v55, %v5206_v14  ;;  %v5236_v56 = vunpack.c.h.bf16 %v4480_v8  ;;  %v5237_v57 = vunpack.c.l.bf16 %v4480_v8  ;;  %9236 = vpow2.f32 %v3495_v0 }
 0x612   : > { %v5851_v46 = vunpack.c.l.bf16 %v13640_v62  ;;  %9238 = vpow2.f32 %v3357_v59  ;;  %v3359_v32 = vmul.f32 1.442695, %v2830_v22  ;;  %v9231_v41 = vpop.eup %9230  ;;  %v5852_v26 = vunpack.c.h.bf16 %v13640_v62 }
 0x613   : > { %v6171_v17 = vunpack.c.l.bf16 %v5207_v40  ;;  %v6172_v60 = vunpack.c.h.bf16 %v5207_v40  ;;  %9240 = vrcp.f32 %v5236_v56  ;;  %v13718_v33 = vpack.c.bf16 %v6530_v10, %v6529_v18  ;;  %v2184_v40 = vpop.f32.mrf.mxu1 }
 0x614   : > { %v9233_v52 = vpop.eup %9232  ;;  %v5404_v54 = vunpack.c.h.bf16 %v4504_v47  ;;  %9242 = vrcp.f32 %v5237_v57  ;;  %v13721_v43 = vpack.c.bf16 %v13664_v24, %v2025_v30  ;;  %v4317_v3 = vadd.f32 1.0, %v3997_v36  ;;  %v2273_v36 = vpop.f32.mrf.mxu2 }
 0x615   : > { %v4318_v7 = vadd.f32 1.0, %v3998_v29  ;;  %v6491_v25 = vmul.f32 %v6171_v17, %v5851_v46  ;;  %v6492_v31 = vmul.f32 %v6172_v60, %v5852_v26  ;;  %v13723_v37 = vpack.c.bf16 %v5372_v51, %v5374_v35 }
 0x616   : > { %v9235_v48 = vpop.eup %9234  ;;  %v5899_v62 = vunpack.c.l.bf16 %v13595_v5  ;;  %v5405_v38 = vunpack.c.l.bf16 %v4504_v47  ;;  %9244 = vpow2.f32 %v3359_v32  ;;  %v7000_v18 = vunpack.c.h.bf16 %v13681_v63 }
 0x617   : > { %v9237_v44 = vpop.eup %9236  ;;  %v5900_v10 = vunpack.c.h.bf16 %v13595_v5  ;;  %v6717_v39 = vpack.c.bf16 %v6492_v31, %v6491_v25  ;;  %v3714_v19 = vpack.c.bf16 %v9233_v52, %v9231_v41  ;;  %v13731_v1 = vadd.f32 %v13574_v9, %v6999_v50 }
 0x618   : > { %v9239_v24 = vpop.eup %9238  ;;  %v7009_v51 = vunpack.c.l.bf16 %v13718_v33  ;;  %v7010_v0 = vunpack.c.h.bf16 %v13718_v33  ;;  %v2604_v45 = vxor.u32 2147516416, %v13721_v43  ;;  %9246 = vrcp.f32 %v5404_v54 }
 0x619   : > { %v9241_v34 = vpop.eup %9240  ;;  %v4509_v47 = vpack.c.bf16 %v4318_v7, %v4317_v3  ;;  %v6971_v55 = vunpack.c.l.bf16 %v6717_v39  ;;  %v6972_v21 = vunpack.c.h.bf16 %v6717_v39  ;;  %v6219_v8 = vunpack.c.l.bf16 %v13723_v37 }
 0x61a   : > { %v9243_v14 = vpop.eup %9242  ;;  %9248 = vrcp.f32 %v5405_v38  ;;  %v5239_v22 = vmul.f32 %v9241_v34, %v10522_v20  ;;  %v3719_v9 = vpack.c.bf16 %v9237_v44, %v9235_v48  ;;  %v4007_v59 = vunpack.c.l.bf16 %v3714_v19 }
 0x61b   : > { %v7378_v50 = vadd.f32 %v13703_v15, %v6971_v55  ;;  %v7409_v29 = vadd.f32 %v13706_v2, %v6972_v21  ;;  %v4008_v30 = vunpack.c.h.bf16 %v3714_v19  ;;  %v5241_v57 = vmul.f32 %v9243_v14, %v10525_v16 }
 0x61c   : > { %v9245_v56 = vpop.eup %9244  ;;  %v5861_v35 = vunpack.c.l.bf16 %v13654_v11  ;;  %v2907_v46 = vunpack.c.l.bf16 %v2604_v45  ;;  %v2274_v32 = vadd.f32 %v2273_v36, %v13004_v13  ;;  %v5439_v41 = vunpack.c.h.bf16 %v4509_v47 }
 0x61d   : > { %v5862_v26 = vunpack.c.h.bf16 %v13654_v11  ;;  %v3685_v17 = vpack.c.bf16 %v9245_v56, %v9239_v24  ;;  %v2908_v60 = vunpack.c.h.bf16 %v2604_v45  ;;  %v5242_v52 = vpack.c.bf16 %v5239_v22, %v5241_v57 }
 0x61e   : > { %v4017_v15 = vunpack.c.l.bf16 %v3719_v9  ;;  %v4018_v54 = vunpack.c.h.bf16 %v3719_v9  ;;  %v2185_v2 = vadd.f32 %v2184_v40, %v12998_v61  ;;  %v9247_v3 = vpop.eup %9246  ;;  %v4327_v7 = vadd.f32 1.0, %v4007_v59  ;;  %v2026_v9 = vpop.f32.mrf.mxu3 }
 0x61f   : > { %v4328_v25 = vadd.f32 1.0, %v4008_v30  ;;  %v3949_v31 = vunpack.c.l.bf16 %v3685_v17  ;;  %v3950_v48 = vunpack.c.h.bf16 %v3685_v17  ;;  %v6181_v44 = vunpack.c.l.bf16 %v5242_v52 }
 0x620   : > { %v9249_v38 = vpop.eup %9248  ;;  %v6182_v39 = vunpack.c.h.bf16 %v5242_v52  ;;  %v3513_v19 = vmul.f32 1.442695, %v2907_v46  ;;  %v13745_v34 = vpack.c.bf16 %v2274_v32, %v2185_v2  ;;  %v5440_v55 = vunpack.c.l.bf16 %v4509_v47 }
 0x621   : > { %v4269_v11 = vadd.f32 1.0, %v3949_v31  ;;  %v4270_v24 = vadd.f32 1.0, %v3950_v48  ;;  %v3515_v45 = vmul.f32 1.442695, %v2908_v60  ;;  %v6501_v21 = vmul.f32 %v6181_v44, %v5861_v35 }
 0x622   : > { %v6502_v36 = vmul.f32 %v6182_v39, %v5862_v26  ;;  %v4337_v14 = vadd.f32 1.0, %v4017_v15  ;;  %v4338_v22 = vadd.f32 1.0, %v4018_v54  ;;  %v6220_v59 = vunpack.c.h.bf16 %v13723_v37 }
 0x623   : > { %9250 = vrcp.f32 %v5439_v41  ;;  %v4514_v30 = vpack.c.bf16 %v4328_v25, %v4327_v7  ;;  %v4485_v40 = vpack.c.bf16 %v4270_v24, %v4269_v11  ;;  %v5407_v56 = vmul.f32 %v9247_v3, %v10522_v20 }
 0x624   : > { %v6722_v57 = vpack.c.bf16 %v6502_v36, %v6501_v21  ;;  %9252 = vpow2.f32 %v3513_v19  ;;  %v2570_v46 = vxor.u32 2147516416, %v13745_v34  ;;  %v2027_v35 = vadd.f32 %v2026_v9, %v12673_v53 }
 0x625   : > { %v5271_v47 = vunpack.c.h.bf16 %v4485_v40  ;;  %v5272_v32 = vunpack.c.l.bf16 %v4485_v40  ;;  %9254 = vpow2.f32 %v3515_v45  ;;  %v4519_v60 = vpack.c.bf16 %v4338_v22, %v4337_v14 }
 0x626   : > { %9256 = vrcp.f32 %v5440_v55  ;;  %v6981_v26 = vunpack.c.l.bf16 %v6722_v57  ;;  %v6982_v17 = vunpack.c.h.bf16 %v6722_v57  ;;  %v5409_v52 = vmul.f32 %v9249_v38, %v10525_v16 }
 0x627   : > { %v5474_v41 = vunpack.c.h.bf16 %v4514_v30  ;;  %9258 = vrcp.f32 %v5271_v47  ;;  %v13753_v15 = vpack.c.bf16 %v13670_v23, %v2027_v35  ;;  %v2839_v3 = vunpack.c.l.bf16 %v2570_v46  ;;  %v13766_v23 = vpop.f32.mrf.mxu2 }
 0x628   : > { %v13755_v54 = vadd.f32 %v7378_v50, %v6981_v26  ;;  %v13757_v2 = vadd.f32 %v7409_v29, %v6982_v17  ;;  %9260 = vrcp.f32 %v5272_v32  ;;  %v6539_v25 = vmul.f32 %v6219_v8, %v5899_v62  ;;  %v13772_v8 = vpop.f32.mrf.mxu1  ;;  %v2029_v26 = vpop.f32.mrf.mxu3 }
 0x629   : > { %v9251_v7 = vpop.eup %9250  ;;  %v6540_v31 = vmul.f32 %v6220_v59, %v5900_v10  ;;  %v5475_v48 = vunpack.c.l.bf16 %v4514_v30  ;;  %v2609_v38 = vxor.u32 2147516416, %v13753_v15  ;;  %v7350_v29 = vadd.f32 %v13576_v58, %v7000_v18 }
 0x62a   : > { %v9253_v50 = vpop.eup %9252  ;;  %v5909_v44 = vunpack.c.l.bf16 %v13618_v49  ;;  %v5509_v39 = vunpack.c.h.bf16 %v4519_v60  ;;  %v2840_v19 = vunpack.c.h.bf16 %v2570_v46  ;;  %v5410_v37 = vpack.c.bf16 %v5407_v56, %v5409_v52 }
 0x62b   : > { %v9255_v55 = vpop.eup %9254  ;;  %v5510_v62 = vunpack.c.l.bf16 %v4519_v60  ;;  %v2917_v5 = vunpack.c.l.bf16 %v2609_v38  ;;  %v2918_v10 = vunpack.c.h.bf16 %v2609_v38  ;;  %v7320_v24 = vadd.f32 %v13731_v1, %v7009_v51 }
 0x62c   : > { %v9257_v11 = vpop.eup %9256  ;;  %v5910_v63 = vunpack.c.h.bf16 %v13618_v49  ;;  %9262 = vrcp.f32 %v5474_v41  ;;  %v3377_v58 = vmul.f32 1.442695, %v2839_v3  ;;  %v7351_v45 = vadd.f32 %v7350_v29, %v7010_v0 }
 0x62d   : > { %v9259_v18 = vpop.eup %9258  ;;  %v6741_v21 = vpack.c.bf16 %v6540_v31, %v6539_v25  ;;  %9264 = vrcp.f32 %v5475_v48  ;;  %v3533_v36 = vmul.f32 1.442695, %v2917_v5  ;;  %v3724_v9 = vpack.c.bf16 %v9255_v55, %v9253_v50 }
 0x62e   : > { %v9261_v14 = vpop.eup %9260  ;;  %9266 = vrcp.f32 %v5509_v39  ;;  %v5274_v22 = vmul.f32 %v9259_v18, %v10522_v20  ;;  %v3379_v59 = vmul.f32 1.442695, %v2840_v19  ;;  %v6229_v30 = vunpack.c.l.bf16 %v5410_v37 }
 0x62f   : > { %9268 = vrcp.f32 %v5510_v62  ;;  %v5276_v1 = vmul.f32 %v9261_v14, %v10525_v16  ;;  %v3535_v49 = vmul.f32 1.442695, %v2918_v10  ;;  %v6230_v51 = vunpack.c.h.bf16 %v5410_v37  ;;  %v13787_v3 = vpop.f32.mrf.mxu2 }
 0x630   : > { %v5442_v40 = vmul.f32 %v9251_v7, %v10522_v20  ;;  %v5444_v33 = vmul.f32 %v9257_v11, %v10525_v16  ;;  %9270 = vpow2.f32 %v3377_v58  ;;  %v7019_v0 = vunpack.c.l.bf16 %v6741_v21  ;;  %v13790_v19 = vpop.f32.mrf.mxu1 }
 0x631   : > { %v5919_v56 = vunpack.c.l.bf16 %v13642_v6  ;;  %v5277_v57 = vpack.c.bf16 %v5274_v22, %v5276_v1  ;;  %9272 = vpow2.f32 %v3533_v36  ;;  %v5871_v47 = vunpack.c.l.bf16 %v13695_v27 }
 0x632   : > { %v9263_v46 = vpop.eup %9262  ;;  %v5872_v32 = vunpack.c.h.bf16 %v13695_v27  ;;  %v4027_v35 = vunpack.c.l.bf16 %v3724_v9  ;;  %9274 = vpow2.f32 %v3379_v59  ;;  %v4028_v41 = vunpack.c.h.bf16 %v3724_v9 }
 0x633   : > { %v9265_v17 = vpop.eup %9264  ;;  %v6191_v60 = vunpack.c.l.bf16 %v5277_v57  ;;  %v6192_v52 = vunpack.c.h.bf16 %v5277_v57  ;;  %9276 = vpow2.f32 %v3535_v49  ;;  %v7020_v25 = vunpack.c.h.bf16 %v6741_v21 }
 0x634   : > { %v9267_v7 = vpop.eup %9266  ;;  %v6549_v31 = vmul.f32 %v6229_v30, %v5909_v44  ;;  %v6550_v48 = vmul.f32 %v6230_v51, %v5910_v63  ;;  %v5445_v38 = vpack.c.bf16 %v5442_v40, %v5444_v33  ;;  %v5920_v29 = vunpack.c.h.bf16 %v13642_v6 }
 0x635   : > { %v9269_v50 = vpop.eup %9268  ;;  %v6511_v39 = vmul.f32 %v6191_v60, %v5871_v47  ;;  %v6512_v27 = vmul.f32 %v6192_v52, %v5872_v32  ;;  %v2030_v55 = vadd.f32 %v2029_v26, %v12673_v53  ;;  %v7321_v62 = vadd.f32 %v7320_v24, %v7019_v0 }
 0x636   : > { %v9271_v37 = vpop.eup %9270  ;;  %v5477_v5 = vmul.f32 %v9263_v46, %v10522_v20  ;;  %v5479_v10 = vmul.f32 %v9265_v17, %v10525_v16  ;;  %v2277_v44 = vadd.f32 %v13766_v23, %v13004_v13  ;;  %v4347_v58 = vadd.f32 1.0, %v4027_v35 }
 0x637   : > { %v9273_v11 = vpop.eup %9272  ;;  %v6727_v63 = vpack.c.bf16 %v6512_v27, %v6511_v39  ;;  %v4348_v18 = vadd.f32 1.0, %v4028_v41  ;;  %v13798_v6 = vpack.c.bf16 %v13673_v42, %v2030_v55  ;;  %v13800_v36 = vadd.f32 %v7351_v45, %v7020_v25  ;;  %v13819_v52 = vpop.f32.mrf.mxu2 }
 0x638   : > { %v9275_v21 = vpop.eup %9274  ;;  %v13802_v14 = vpack.c.bf16 %v6550_v48, %v6549_v31  ;;  %v6239_v24 = vunpack.c.l.bf16 %v5445_v38  ;;  %v2188_v22 = vadd.f32 %v13772_v8, %v12998_v61  ;;  %v6240_v59 = vunpack.c.h.bf16 %v5445_v38  ;;  %v13824_v38 = vpop.f32.mrf.mxu1 }
 0x639   : > { %v9277_v9 = vpop.eup %9276  ;;  %v6991_v30 = vunpack.c.l.bf16 %v6727_v63  ;;  %v6992_v23 = vunpack.c.h.bf16 %v6727_v63  ;;  %v2614_v1 = vxor.u32 2147516416, %v13798_v6  ;;  %v5480_v49 = vpack.c.bf16 %v5477_v5, %v5479_v10  ;;  %v2031_v55 = vpop.f32.mrf.mxu3 }
 0x63a   : > { %v5512_v51 = vmul.f32 %v9267_v7, %v10522_v20  ;;  %v3729_v42 = vpack.c.bf16 %v9277_v9, %v9273_v11  ;;  %v13808_v40 = vpack.c.bf16 %v2277_v44, %v2188_v22  ;;  %v5514_v45 = vmul.f32 %v9269_v50, %v10525_v16 }
 0x63b   : > { %v13812_v33 = vadd.f32 %v13755_v54, %v6991_v30  ;;  %v13815_v0 = vadd.f32 %v13757_v2, %v6992_v23  ;;  %v4524_v8 = vpack.c.bf16 %v4348_v18, %v4347_v58  ;;  %v7029_v57 = vunpack.c.l.bf16 %v13802_v14 }
 0x63c   : > { %v6559_v46 = vmul.f32 %v6239_v24, %v5919_v56  ;;  %v5929_v47 = vunpack.c.l.bf16 %v13679_v28  ;;  %v3690_v32 = vpack.c.bf16 %v9275_v21, %v9271_v37  ;;  %v6560_v35 = vmul.f32 %v6240_v59, %v5920_v29 }
 0x63d   : > { %v4037_v26 = vunpack.c.l.bf16 %v3729_v42  ;;  %v4038_v17 = vunpack.c.h.bf16 %v3729_v42  ;;  %v2927_v60 = vunpack.c.l.bf16 %v2614_v1  ;;  %v6249_v41 = vunpack.c.l.bf16 %v5480_v49 }
 0x63e   : > { %v6250_v7 = vunpack.c.h.bf16 %v5480_v49  ;;  %v2575_v54 = vxor.u32 2147516416, %v13808_v40  ;;  %v2928_v25 = vunpack.c.h.bf16 %v2614_v1  ;;  %v7030_v2 = vunpack.c.h.bf16 %v13802_v14 }
 0x63f   : > { %v5930_v31 = vunpack.c.h.bf16 %v13679_v28  ;;  %v5515_v48 = vpack.c.bf16 %v5512_v51, %v5514_v45  ;;  %v5544_v56 = vunpack.c.h.bf16 %v4524_v8  ;;  %v7322_v50 = vadd.f32 %v7321_v62, %v7029_v57 }
 0x640   : > { %v3959_v29 = vunpack.c.l.bf16 %v3690_v32  ;;  %v3960_v39 = vunpack.c.h.bf16 %v3690_v32  ;;  %v3553_v27 = vmul.f32 1.442695, %v2927_v60  ;;  %v6751_v37 = vpack.c.bf16 %v6560_v35, %v6559_v46 }
 0x641   : > { %v5545_v5 = vunpack.c.l.bf16 %v4524_v8  ;;  %v4357_v10 = vadd.f32 1.0, %v4037_v26  ;;  %v4358_v44 = vadd.f32 1.0, %v4038_v17  ;;  %v6569_v11 = vmul.f32 %v6249_v41, %v5929_v47  ;;  %v13834_v8 = vpop.f32.mrf.mxu2  ;;  %v13840_v17 = vpop.f32.mrf.mxu1 }
 0x642   : > { %v6570_v63 = vmul.f32 %v6250_v7, %v5930_v31  ;;  %v2849_v58 = vunpack.c.l.bf16 %v2575_v54  ;;  %v3555_v18 = vmul.f32 1.442695, %v2928_v25  ;;  %v6259_v21 = vunpack.c.l.bf16 %v5515_v48 }
 0x643   : > { %9278 = vrcp.f32 %v5544_v56  ;;  %v2850_v28 = vunpack.c.h.bf16 %v2575_v54  ;;  %v2032_v14 = vadd.f32 %v2031_v55, %v12673_v53  ;;  %v6260_v24 = vunpack.c.h.bf16 %v5515_v48 }
 0x644   : > { %v4279_v22 = vadd.f32 1.0, %v3959_v29  ;;  %v4280_v62 = vadd.f32 1.0, %v3960_v39  ;;  %9280 = vpow2.f32 %v3553_v27  ;;  %v5939_v9 = vunpack.c.l.bf16 %v13693_v12 }
 0x645   : > { %v5940_v59 = vunpack.c.h.bf16 %v13693_v12  ;;  %9282 = vrcp.f32 %v5545_v5  ;;  %v4529_v30 = vpack.c.bf16 %v4358_v44, %v4357_v10  ;;  %v7039_v23 = vunpack.c.l.bf16 %v6751_v37 }
 0x646   : > { %v3397_v1 = vmul.f32 1.442695, %v2849_v58  ;;  %9284 = vpow2.f32 %v3555_v18  ;;  %v2279_v49 = vadd.f32 %v13787_v3, %v13004_v13  ;;  %v7040_v51 = vunpack.c.h.bf16 %v6751_v37 }
 0x647   : > { %v6756_v42 = vpack.c.bf16 %v6570_v63, %v6569_v11  ;;  %v3399_v45 = vmul.f32 1.442695, %v2850_v28  ;;  %v13832_v53 = vpack.c.bf16 %v13676_v4, %v2032_v14  ;;  %v6579_v57 = vmul.f32 %v6259_v21, %v5939_v9 }
 0x648   : > { %v6580_v46 = vmul.f32 %v6260_v24, %v5940_v59  ;;  %v4490_v47 = vpack.c.bf16 %v4280_v62, %v4279_v22  ;;  %v2190_v12 = vadd.f32 %v13790_v19, %v12998_v61  ;;  %v7353_v35 = vadd.f32 %v13800_v36, %v7030_v2 }
 0x649   : > { %v9279_v32 = vpop.eup %9278  ;;  %v5579_v26 = vunpack.c.h.bf16 %v4529_v30  ;;  %v2619_v3 = vxor.u32 2147516416, %v13832_v53  ;;  %v7323_v41 = vadd.f32 %v7322_v50, %v7039_v23  ;;  %v5580_v4 = vunpack.c.l.bf16 %v4529_v30  ;;  %v13853_v9 = vpop.f32.mrf.mxu2 }
 0x64a   : > { %v9281_v60 = vpop.eup %9280  ;;  %9286 = vpow2.f32 %v3397_v1  ;;  %v13842_v7 = vpack.c.bf16 %v2279_v49, %v2190_v12  ;;  %v7354_v25 = vadd.f32 %v7353_v35, %v7040_v51  ;;  %v7049_v56 = vunpack.c.l.bf16 %v6756_v42 }
 0x64b   : > { %v9283_v54 = vpop.eup %9282  ;;  %9288 = vpow2.f32 %v3399_v45  ;;  %v2937_v31 = vunpack.c.l.bf16 %v2619_v3  ;;  %v2938_v48 = vunpack.c.h.bf16 %v2619_v3  ;;  %v7050_v29 = vunpack.c.h.bf16 %v6756_v42  ;;  %v2197_v42 = vpop.f32.mrf.mxu1 }
 0x64c   : > { %v9285_v19 = vpop.eup %9284  ;;  %v13844_v36 = vpack.c.bf16 %v6580_v46, %v6579_v57  ;;  %v5306_v2 = vunpack.c.h.bf16 %v4490_v47  ;;  %9290 = vrcp.f32 %v5579_v26  ;;  %v5547_v50 = vmul.f32 %v9279_v32, %v10522_v20 }
 0x64d   : > { %v3734_v39 = vpack.c.bf16 %v9285_v19, %v9281_v60  ;;  %v3573_v27 = vmul.f32 1.442695, %v2937_v31  ;;  %v3575_v55 = vmul.f32 1.442695, %v2938_v48  ;;  %v5549_v37 = vmul.f32 %v9283_v54, %v10525_v16 }
 0x64e   : > { %9292 = vrcp.f32 %v5580_v4  ;;  %v2580_v5 = vxor.u32 2147516416, %v13842_v7  ;;  %v5307_v10 = vunpack.c.l.bf16 %v4490_v47  ;;  %v5949_v58 = vunpack.c.l.bf16 %v13721_v43 }
 0x64f   : > { %v4047_v44 = vunpack.c.l.bf16 %v3734_v39  ;;  %v4048_v11 = vunpack.c.h.bf16 %v3734_v39  ;;  %9294 = vpow2.f32 %v3573_v27  ;;  %v5950_v18 = vunpack.c.h.bf16 %v13721_v43 }
 0x650   : > { %v9287_v63 = vpop.eup %9286  ;;  %v5881_v21 = vunpack.c.l.bf16 %v13745_v34  ;;  %9296 = vpow2.f32 %v3575_v55  ;;  %v7324_v14 = vadd.f32 %v7323_v41, %v7049_v56  ;;  %v7059_v24 = vunpack.c.l.bf16 %v13844_v36 }
 0x651   : > { %v9289_v28 = vpop.eup %9288  ;;  %v4367_v22 = vadd.f32 1.0, %v4047_v44  ;;  %v4368_v62 = vadd.f32 1.0, %v4048_v11  ;;  %v5550_v59 = vpack.c.bf16 %v5547_v50, %v5549_v37  ;;  %9298 = vrcp.f32 %v5306_v2 }
 0x652   : > { %v2859_v30 = vunpack.c.l.bf16 %v2580_v5  ;;  %v2282_v23 = vadd.f32 %v13819_v52, %v13004_v13  ;;  %v9291_v1 = vpop.eup %9290  ;;  %v7355_v49 = vadd.f32 %v7354_v25, %v7050_v29  ;;  %9300 = vrcp.f32 %v5307_v10 }
 0x653   : > { %v4534_v43 = vpack.c.bf16 %v4368_v62, %v4367_v22  ;;  %v2860_v51 = vunpack.c.h.bf16 %v2580_v5  ;;  %v5882_v57 = vunpack.c.h.bf16 %v13745_v34  ;;  %v5959_v46 = vunpack.c.l.bf16 %v13753_v15 }
 0x654   : > { %v9293_v45 = vpop.eup %9292  ;;  %v3695_v47 = vpack.c.bf16 %v9289_v28, %v9287_v63  ;;  %v2193_v12 = vadd.f32 %v13824_v38, %v12998_v61  ;;  %v7060_v35 = vunpack.c.h.bf16 %v13844_v36  ;;  %v5960_v52 = vunpack.c.h.bf16 %v13753_v15  ;;  %v2288_v28 = vpop.f32.mrf.mxu2 }
 0x655   : > { %v9295_v32 = vpop.eup %9294  ;;  %v5614_v26 = vunpack.c.h.bf16 %v4534_v43  ;;  %v5615_v3 = vunpack.c.l.bf16 %v4534_v43  ;;  %v13863_v41 = vadd.f32 %v7324_v14, %v7059_v24  ;;  %v6269_v4 = vunpack.c.l.bf16 %v5550_v59 }
 0x656   : > { %v9297_v60 = vpop.eup %9296  ;;  %v3417_v54 = vmul.f32 1.442695, %v2859_v30  ;;  %v13865_v25 = vpack.c.bf16 %v2282_v23, %v2193_v12  ;;  %v6270_v31 = vunpack.c.h.bf16 %v5550_v59  ;;  %v3419_v48 = vmul.f32 1.442695, %v2860_v51 }
 0x657   : > { %9302 = vrcp.f32 %v5614_v26  ;;  %v3739_v19 = vpack.c.bf16 %v9297_v60, %v9295_v32  ;;  %v9299_v56 = vpop.eup %9298  ;;  %v5582_v38 = vmul.f32 %v9291_v1, %v10522_v20  ;;  %v5584_v29 = vmul.f32 %v9293_v45, %v10525_v16 }
 0x658   : > { %v3969_v36 = vunpack.c.l.bf16 %v3695_v47  ;;  %9304 = vrcp.f32 %v5615_v3  ;;  %v9301_v2 = vpop.eup %9300  ;;  %v3970_v39 = vunpack.c.h.bf16 %v3695_v47  ;;  %v2284_v50 = vadd.f32 %v13834_v8, %v13004_v13 }
 0x659   : > { %v4057_v27 = vunpack.c.l.bf16 %v3739_v19  ;;  %v4058_v55 = vunpack.c.h.bf16 %v3739_v19  ;;  %v13871_v37 = vadd.f32 %v7355_v49, %v7060_v35  ;;  %9306 = vpow2.f32 %v3417_v54  ;;  %v2199_v49 = vpop.f32.mrf.mxu1 }
 0x65a   : > { %v2585_v5 = vxor.u32 2147516416, %v13865_v25  ;;  %v2195_v10 = vadd.f32 %v13840_v17, %v12998_v61  ;;  %v5309_v44 = vmul.f32 %v9299_v56, %v10522_v20  ;;  %v5969_v11 = vunpack.c.l.bf16 %v13798_v6 }
 0x65b   : > { %9308 = vpow2.f32 %v3419_v48  ;;  %v4377_v63 = vadd.f32 1.0, %v4057_v27  ;;  %v6589_v14 = vmul.f32 %v6269_v4, %v5949_v58  ;;  %v5311_v24 = vmul.f32 %v9301_v2, %v10525_v16 }
 0x65c   : > { %v5585_v22 = vpack.c.bf16 %v5582_v38, %v5584_v29  ;;  %v4378_v8 = vadd.f32 1.0, %v4058_v55  ;;  %v6590_v59 = vmul.f32 %v6270_v31, %v5950_v18  ;;  %v4289_v30 = vadd.f32 1.0, %v3969_v36 }
 0x65d   : > { %v9303_v62 = vpop.eup %9302  ;;  %v4290_v23 = vadd.f32 1.0, %v3970_v39  ;;  %v13879_v1 = vpack.c.bf16 %v2284_v50, %v2195_v10  ;;  %v2869_v45 = vunpack.c.l.bf16 %v2585_v5  ;;  %v2287_v47 = vadd.f32 %v13853_v9, %v13004_v13 }
 0x65e   : > { %v9305_v17 = vpop.eup %9304  ;;  %v5617_v43 = vmul.f32 %v9303_v62, %v10522_v20  ;;  %v4539_v51 = vpack.c.bf16 %v4378_v8, %v4377_v63  ;;  %v5970_v12 = vunpack.c.h.bf16 %v13798_v6  ;;  %v2870_v32 = vunpack.c.h.bf16 %v2585_v5  ;;  %v13901_v63 = vpop.f32.mrf.mxu2 }
 0x65f   : > { %v5619_v58 = vmul.f32 %v9305_v17, %v10525_v16  ;;  %v2198_v18 = vadd.f32 %v2197_v42, %v12998_v61  ;;  %v9307_v35 = vpop.eup %9306  ;;  %v6279_v26 = vunpack.c.l.bf16 %v5585_v22  ;;  %v6280_v3 = vunpack.c.h.bf16 %v5585_v22 }
 0x660   : > { %v5649_v60 = vunpack.c.h.bf16 %v4539_v51  ;;  %v5650_v4 = vunpack.c.l.bf16 %v4539_v51  ;;  %v13887_v31 = vpack.c.bf16 %v6590_v59, %v6589_v14  ;;  %v4495_v48 = vpack.c.bf16 %v4290_v23, %v4289_v30 }
 0x661   : > { %v9309_v54 = vpop.eup %9308  ;;  %v5620_v19 = vpack.c.bf16 %v5617_v43, %v5619_v58  ;;  %v2590_v56 = vxor.u32 2147516416, %v13879_v1  ;;  %v13890_v9 = vpack.c.bf16 %v5309_v44, %v5311_v24  ;;  %v3437_v38 = vmul.f32 1.442695, %v2869_v45 }
 0x662   : > { %9310 = vrcp.f32 %v5649_v60  ;;  %v13892_v6 = vpack.c.bf16 %v2287_v47, %v2198_v18  ;;  %v2289_v36 = vadd.f32 %v2288_v28, %v13004_v13  ;;  %v6599_v2 = vmul.f32 %v6279_v26, %v5959_v46 }
 0x663   : > { %v6289_v29 = vunpack.c.l.bf16 %v5620_v19  ;;  %v6290_v42 = vunpack.c.h.bf16 %v5620_v19  ;;  %9312 = vrcp.f32 %v5650_v4  ;;  %v6600_v39 = vmul.f32 %v6280_v3, %v5960_v52  ;;  %v2202_v52 = vpop.f32.mrf.mxu1 }
 0x664   : > { %v3700_v27 = vpack.c.bf16 %v9309_v54, %v9307_v35  ;;  %v3439_v55 = vmul.f32 1.442695, %v2870_v32  ;;  %v7069_v50 = vunpack.c.l.bf16 %v13887_v31  ;;  %v5341_v5 = vunpack.c.h.bf16 %v4495_v48 }
 0x665   : > { %v2879_v10 = vunpack.c.l.bf16 %v2590_v56  ;;  %v2200_v44 = vadd.f32 %v2199_v49, %v12998_v61  ;;  %v7070_v14 = vunpack.c.h.bf16 %v13887_v31  ;;  %v5342_v24 = vunpack.c.l.bf16 %v4495_v48 }
 0x666   : > { %v2880_v28 = vunpack.c.h.bf16 %v2590_v56  ;;  %v2595_v22 = vxor.u32 2147516416, %v13892_v6  ;;  %v6609_v46 = vmul.f32 %v6289_v29, %v5969_v11  ;;  %v6610_v8 = vmul.f32 %v6290_v42, %v5970_v12 }
 0x667   : > { %9314 = vpow2.f32 %v3437_v38  ;;  %v13905_v15 = vpack.c.bf16 %v2289_v36, %v2200_v44  ;;  %v6771_v59 = vpack.c.bf16 %v6600_v39, %v6599_v2  ;;  %v3979_v30 = vunpack.c.l.bf16 %v3700_v27 }
 0x668   : > { %v9311_v62 = vpop.eup %9310  ;;  %v3980_v23 = vunpack.c.h.bf16 %v3700_v27  ;;  %9316 = vpow2.f32 %v3439_v55  ;;  %v5979_v43 = vunpack.c.l.bf16 %v13832_v53  ;;  %v3457_v51 = vmul.f32 1.442695, %v2879_v10  ;;  %v2293_v27 = vpop.f32.mrf.mxu2 }
 0x669   : > { %v9313_v49 = vpop.eup %9312  ;;  %9318 = vrcp.f32 %v5341_v5  ;;  %v5652_v17 = vmul.f32 %v9311_v62, %v10522_v20  ;;  %v5980_v11 = vunpack.c.h.bf16 %v13832_v53  ;;  %v3459_v47 = vmul.f32 1.442695, %v2880_v28 }
 0x66a   : > { %v5654_v45 = vmul.f32 %v9313_v49, %v10525_v16  ;;  %v2889_v58 = vunpack.c.l.bf16 %v2595_v22  ;;  %9320 = vrcp.f32 %v5342_v24  ;;  %v6776_v12 = vpack.c.bf16 %v6610_v8, %v6609_v46 }
 0x66b   : > { %v2890_v32 = vunpack.c.h.bf16 %v2595_v22  ;;  %v2600_v18 = vxor.u32 2147516416, %v13905_v15  ;;  %v7079_v35 = vunpack.c.l.bf16 %v6771_v59  ;;  %v4299_v26 = vadd.f32 1.0, %v3979_v30  ;;  %v2204_v62 = vpop.f32.mrf.mxu1 }
 0x66c   : > { %v4300_v3 = vadd.f32 1.0, %v3980_v23  ;;  %v5655_v60 = vpack.c.bf16 %v5652_v17, %v5654_v45  ;;  %v7080_v54 = vunpack.c.h.bf16 %v6771_v59  ;;  %9322 = vpow2.f32 %v3457_v51 }
 0x66d   : > { %v9315_v4 = vpop.eup %9314  ;;  %v2899_v31 = vunpack.c.l.bf16 %v2600_v18  ;;  %v2900_v48 = vunpack.c.h.bf16 %v2600_v18  ;;  %9324 = vpow2.f32 %v3459_v47  ;;  %v3477_v53 = vmul.f32 1.442695, %v2889_v58 }
 0x66e   : > { %v9317_v19 = vpop.eup %9316  ;;  %v6299_v56 = vunpack.c.l.bf16 %v5655_v60  ;;  %v6300_v38 = vunpack.c.h.bf16 %v5655_v60  ;;  %v7326_v42 = vadd.f32 %v13863_v41, %v7069_v50  ;;  %v7357_v36 = vadd.f32 %v13871_v37, %v7070_v14 }
 0x66f   : > { %v9319_v29 = vpop.eup %9318  ;;  %v7089_v2 = vunpack.c.l.bf16 %v6776_v12  ;;  %v3479_v39 = vmul.f32 1.442695, %v2890_v32  ;;  %v7090_v55 = vunpack.c.h.bf16 %v6776_v12  ;;  %v3497_v44 = vmul.f32 1.442695, %v2899_v31 }
 0x670   : > { %v6619_v5 = vmul.f32 %v6299_v56, %v5979_v43  ;;  %v6620_v10 = vmul.f32 %v6300_v38, %v5980_v11  ;;  %v9321_v24 = vpop.eup %9320  ;;  %v6201_v28 = vunpack.c.l.bf16 %v13890_v9  ;;  %v7327_v22 = vadd.f32 %v7326_v42, %v7079_v35  ;;  %v2296_v56 = vpop.f32.mrf.mxu2 }
 0x671   : > { %v3705_v46 = vpack.c.bf16 %v9317_v19, %v9315_v4  ;;  %v3499_v8 = vmul.f32 1.442695, %v2900_v48  ;;  %v7358_v59 = vadd.f32 %v7357_v36, %v7080_v54  ;;  %v13915_v30 = vpack.c.bf16 %v4300_v3, %v4299_v26 }
 0x672   : > { %v6781_v41 = vpack.c.bf16 %v6620_v10, %v6619_v5  ;;  %9326 = vpow2.f32 %v3477_v53  ;;  %v9323_v37 = vpop.eup %9322  ;;  %v7328_v50 = vadd.f32 %v7327_v22, %v7089_v2  ;;  %v2203_v14 = vadd.f32 %v2202_v52, %v12998_v61 }
 0x673   : > { %9328 = vpow2.f32 %v3479_v39  ;;  %v2292_v23 = vadd.f32 %v13901_v63, %v13004_v13  ;;  %v9325_v49 = vpop.eup %9324  ;;  %v7359_v17 = vadd.f32 %v7358_v59, %v7090_v55  ;;  %v3989_v45 = vunpack.c.l.bf16 %v3705_v46  ;;  %v2207_v10 = vpop.f32.mrf.mxu1 }
 0x674   : > { %v7099_v43 = vunpack.c.l.bf16 %v6781_v41  ;;  %v7100_v51 = vunpack.c.h.bf16 %v6781_v41  ;;  %9330 = vpow2.f32 %v3497_v44  ;;  %v3990_v11 = vunpack.c.h.bf16 %v3705_v46 }
 0x675   : > { %9332 = vpow2.f32 %v3499_v8  ;;  %v13920_v47 = vpack.c.bf16 %v2292_v23, %v2203_v14  ;;  %v6202_v58 = vunpack.c.h.bf16 %v13890_v9  ;;  %v5344_v12 = vmul.f32 %v9319_v29, %v10522_v20 }
 0x676   : > { %v7329_v32 = vadd.f32 %v7328_v50, %v7099_v43  ;;  %v7360_v18 = vadd.f32 %v7359_v17, %v7100_v51  ;;  %v5346_v52 = vmul.f32 %v9321_v24, %v10525_v16  ;;  %v3710_v63 = vpack.c.bf16 %v9325_v49, %v9323_v37 }
 0x677   : > { %v2605_v35 = vxor.u32 2147516416, %v13920_v47  ;;  %v2294_v26 = vadd.f32 %v2293_v27, %v13004_v13  ;;  %v5891_v60 = vunpack.c.l.bf16 %v13808_v40  ;;  %v5892_v4 = vunpack.c.h.bf16 %v13808_v40 }
 0x678   : > { %v9327_v3 = vpop.eup %9326  ;;  %v5376_v9 = vunpack.c.h.bf16 %v13915_v30  ;;  %v4309_v31 = vadd.f32 1.0, %v3989_v45  ;;  %v4310_v48 = vadd.f32 1.0, %v3990_v11  ;;  %v2205_v19 = vadd.f32 %v2204_v62, %v12998_v61  ;;  %7439 = vst [vmem:[%s11653_s13 + $0x30] sm:$0xff] %v7329_v32 }
 0x679   : > { %v9329_v54 = vpop.eup %9328  ;;  %v6521_v53 = vmul.f32 %v6201_v28, %v5881_v21  ;;  %v6522_v29 = vmul.f32 %v6202_v58, %v5882_v57  ;;  %v2909_v42 = vunpack.c.l.bf16 %v2605_v35  ;;  %v2910_v36 = vunpack.c.h.bf16 %v2605_v35  ;;  %7440 = vst [vmem:[%s11653_s13 + $0x38] sm:$0xff] %v7360_v18 }
 0x67a   : > { %v9331_v38 = vpop.eup %9330  ;;  %v5347_v39 = vpack.c.bf16 %v5344_v12, %v5346_v52  ;;  %v3999_v27 = vunpack.c.l.bf16 %v3710_v63  ;;  %v4000_v55 = vunpack.c.h.bf16 %v3710_v63  ;;  %v13937_v5 = vpack.c.bf16 %v2294_v26, %v2205_v19 }
 0x67b   : > { %v9333_v2 = vpop.eup %9332  ;;  %v3715_v44 = vpack.c.bf16 %v9329_v54, %v9327_v3  ;;  %v3517_v24 = vmul.f32 1.442695, %v2909_v42  ;;  %v3519_v22 = vmul.f32 1.442695, %v2910_v36  ;;  %v2297_v46 = vadd.f32 %v2296_v56, %v13004_v13  ;;  %v2298_v42 = vpop.f32.mrf.mxu2 }
 0x67c   : > { %v5377_v21 = vunpack.c.l.bf16 %v13915_v30  ;;  %9334 = vrcp.f32 %v5376_v9  ;;  %v4505_v34 = vpack.c.bf16 %v4310_v48, %v4309_v31  ;;  %v2610_v57 = vxor.u32 2147516416, %v13937_v5 }
 0x67d   : > { %v13942_v28 = vpack.c.bf16 %v6522_v29, %v6521_v53  ;;  %v3720_v8 = vpack.c.bf16 %v9333_v2, %v9331_v38  ;;  %9336 = vpow2.f32 %v3517_v24  ;;  %v2208_v62 = vadd.f32 %v2207_v10, %v12998_v61  ;;  %v2209_v29 = vpop.f32.mrf.mxu1 }
 0x67e   : > { %v4319_v59 = vadd.f32 1.0, %v3999_v27  ;;  %v4320_v41 = vadd.f32 1.0, %v4000_v55  ;;  %9338 = vpow2.f32 %v3519_v22  ;;  %v2919_v37 = vunpack.c.l.bf16 %v2610_v57 }
 0x67f   : > { %v4009_v50 = vunpack.c.l.bf16 %v3715_v44  ;;  %v4010_v14 = vunpack.c.h.bf16 %v3715_v44  ;;  %v2920_v23 = vunpack.c.h.bf16 %v2610_v57  ;;  %v13945_v49 = vpack.c.bf16 %v2297_v46, %v2208_v62 }
 0x680   : > { %v6211_v30 = vunpack.c.l.bf16 %v5347_v39  ;;  %9340 = vrcp.f32 %v5377_v21  ;;  %v5411_v17 = vunpack.c.h.bf16 %v4505_v34  ;;  %v3537_v43 = vmul.f32 1.442695, %v2919_v37 }
 0x681   : > { %v4019_v51 = vunpack.c.l.bf16 %v3720_v8  ;;  %v4020_v45 = vunpack.c.h.bf16 %v3720_v8  ;;  %v3539_v11 = vmul.f32 1.442695, %v2920_v23  ;;  %v2615_v58 = vxor.u32 2147516416, %v13945_v49 }
 0x682   : > { %v9335_v12 = vpop.eup %9334  ;;  %v6212_v32 = vunpack.c.h.bf16 %v5347_v39  ;;  %v5901_v18 = vunpack.c.l.bf16 %v13842_v7  ;;  %v5412_v52 = vunpack.c.l.bf16 %v4505_v34  ;;  %9342 = vpow2.f32 %v3537_v43 }
 0x683   : > { %v9337_v63 = vpop.eup %9336  ;;  %v4510_v35 = vpack.c.bf16 %v4320_v41, %v4319_v59  ;;  %v4329_v26 = vadd.f32 1.0, %v4009_v50  ;;  %v4330_v3 = vadd.f32 1.0, %v4010_v14  ;;  %9344 = vpow2.f32 %v3539_v11 }
 0x684   : > { %v9339_v54 = vpop.eup %9338  ;;  %v6531_v9 = vmul.f32 %v6211_v30, %v5891_v60  ;;  %v5902_v31 = vunpack.c.h.bf16 %v13842_v7  ;;  %v2929_v48 = vunpack.c.l.bf16 %v2615_v58  ;;  %v2930_v19 = vunpack.c.h.bf16 %v2615_v58 }
 0x685   : > { %9346 = vrcp.f32 %v5411_v17  ;;  %v4339_v56 = vadd.f32 1.0, %v4019_v51  ;;  %v4340_v38 = vadd.f32 1.0, %v4020_v45  ;;  %v3725_v53 = vpack.c.bf16 %v9339_v54, %v9337_v63 }
 0x686   : > { %v9341_v36 = vpop.eup %9340  ;;  %v6532_v2 = vmul.f32 %v6212_v32, %v5892_v4  ;;  %9348 = vrcp.f32 %v5412_v52  ;;  %v3557_v39 = vmul.f32 1.442695, %v2929_v48  ;;  %v3559_v27 = vmul.f32 1.442695, %v2930_v19 }
 0x687   : > { %v5446_v55 = vunpack.c.h.bf16 %v4510_v35  ;;  %v4515_v10 = vpack.c.bf16 %v4330_v3, %v4329_v26  ;;  %v4029_v60 = vunpack.c.l.bf16 %v3725_v53  ;;  %v4030_v44 = vunpack.c.h.bf16 %v3725_v53 }
 0x688   : > { %v9343_v24 = vpop.eup %9342  ;;  %v5447_v22 = vunpack.c.l.bf16 %v4510_v35  ;;  %9350 = vpow2.f32 %v3557_v39  ;;  %v2210_v46 = vadd.f32 %v2209_v29, %v12998_v61  ;;  %v2299_v21 = vadd.f32 %v2298_v42, %v13004_v13 }
 0x689   : > { %v9345_v34 = vpop.eup %9344  ;;  %v4520_v57 = vpack.c.bf16 %v4340_v38, %v4339_v56  ;;  %v4349_v8 = vadd.f32 1.0, %v4029_v60  ;;  %v4350_v62 = vadd.f32 1.0, %v4030_v44  ;;  %9352 = vpow2.f32 %v3559_v27 }
 0x68a   : > { %v7001_v40 = vunpack.c.l.bf16 %v13942_v28  ;;  %v5379_v4 = vmul.f32 %v9335_v12, %v10522_v20  ;;  %v3730_v59 = vpack.c.bf16 %v9345_v34, %v9343_v24  ;;  %v13956_v41 = vpack.c.bf16 %v2299_v21, %v2210_v46 }
 0x68b   : > { %v9347_v37 = vpop.eup %9346  ;;  %v5381_v50 = vmul.f32 %v9341_v36, %v10525_v16  ;;  %9354 = vrcp.f32 %v5446_v55  ;;  %v5481_v14 = vunpack.c.h.bf16 %v4515_v10  ;;  %v4525_v61 = vpack.c.bf16 %v4350_v62, %v4349_v8 }
 0x68c   : > { %v9349_v23 = vpop.eup %9348  ;;  %v5482_v13 = vunpack.c.l.bf16 %v4515_v10  ;;  %v4039_v30 = vunpack.c.l.bf16 %v3730_v59  ;;  %v4040_v17 = vunpack.c.h.bf16 %v3730_v59  ;;  %v2620_v43 = vxor.u32 2147516416, %v13956_v41 }
 0x68d   : > { %v7002_v51 = vunpack.c.h.bf16 %v13942_v28  ;;  %v13961_v45 = vpack.c.bf16 %v6532_v2, %v6531_v9  ;;  %9356 = vrcp.f32 %v5447_v22  ;;  %v5516_v11 = vunpack.c.h.bf16 %v4520_v57 }
 0x68e   : > { %v9351_v58 = vpop.eup %9350  ;;  %v5517_v12 = vunpack.c.l.bf16 %v4520_v57  ;;  %v4359_v32 = vadd.f32 1.0, %v4039_v30  ;;  %v4360_v52 = vadd.f32 1.0, %v4040_v17  ;;  %v2939_v63 = vunpack.c.l.bf16 %v2620_v43 }
 0x68f   : > { %v9353_v35 = vpop.eup %9352  ;;  %v5382_v26 = vpack.c.bf16 %v5379_v4, %v5381_v50  ;;  %9358 = vrcp.f32 %v5481_v14  ;;  %v5551_v3 = vunpack.c.h.bf16 %v4525_v61  ;;  %v2940_v54 = vunpack.c.h.bf16 %v2620_v43 }
 0x690   : > { %9360 = vrcp.f32 %v5482_v13  ;;  %v4530_v48 = vpack.c.bf16 %v4360_v52, %v4359_v32  ;;  %v3735_v19 = vpack.c.bf16 %v9353_v35, %v9351_v58  ;;  %v3577_v56 = vmul.f32 1.442695, %v2939_v63 }
 0x691   : > { %v9355_v38 = vpop.eup %9354  ;;  %v5414_v28 = vmul.f32 %v9347_v37, %v10522_v20  ;;  %v5416_v9 = vmul.f32 %v9349_v23, %v10525_v16  ;;  %9362 = vrcp.f32 %v5516_v11  ;;  %v5552_v53 = vunpack.c.l.bf16 %v4525_v61 }
 0x692   : > { %9364 = vrcp.f32 %v5517_v12  ;;  %v4049_v29 = vunpack.c.l.bf16 %v3735_v19  ;;  %v4050_v42 = vunpack.c.h.bf16 %v3735_v19  ;;  %v3579_v36 = vmul.f32 1.442695, %v2940_v54 }
 0x693   : > { %v9357_v2 = vpop.eup %9356  ;;  %v6221_v39 = vunpack.c.l.bf16 %v5382_v26  ;;  %v6222_v27 = vunpack.c.h.bf16 %v5382_v26  ;;  %9366 = vrcp.f32 %v5551_v3  ;;  %v5586_v55 = vunpack.c.h.bf16 %v4530_v48 }
 0x694   : > { %v5587_v10 = vunpack.c.l.bf16 %v4530_v48  ;;  %v4369_v60 = vadd.f32 1.0, %v4049_v29  ;;  %v4370_v44 = vadd.f32 1.0, %v4050_v42  ;;  %9368 = vpow2.f32 %v3577_v56 }
 0x695   : > { %v9359_v24 = vpop.eup %9358  ;;  %v7381_v22 = vadd.f32 %v13812_v33, %v7001_v40  ;;  %v7412_v46 = vadd.f32 %v13815_v0, %v7002_v51  ;;  %v5417_v21 = vpack.c.bf16 %v5414_v28, %v5416_v9  ;;  %9370 = vrcp.f32 %v5552_v53 }
 0x696   : > { %v9361_v34 = vpop.eup %9360  ;;  %v7011_v57 = vunpack.c.l.bf16 %v13961_v45  ;;  %v7012_v8 = vunpack.c.h.bf16 %v13961_v45  ;;  %v4535_v62 = vpack.c.bf16 %v4370_v44, %v4369_v60  ;;  %9372 = vpow2.f32 %v3579_v36 }
 0x697   : > { %v9363_v4 = vpop.eup %9362  ;;  %v6541_v59 = vmul.f32 %v6221_v39, %v5901_v18  ;;  %v5449_v37 = vmul.f32 %v9355_v38, %v10522_v20  ;;  %v5451_v50 = vmul.f32 %v9357_v2, %v10525_v16  ;;  %9374 = vrcp.f32 %v5586_v55 }
 0x698   : > { %v9365_v33 = vpop.eup %9364  ;;  %v6542_v0 = vmul.f32 %v6222_v27, %v5902_v31  ;;  %9376 = vrcp.f32 %v5587_v10  ;;  %v5621_v40 = vunpack.c.h.bf16 %v4535_v62  ;;  %v5622_v14 = vunpack.c.l.bf16 %v4535_v62 }
 0x699   : > { %v9367_v61 = vpop.eup %9366  ;;  %v5911_v23 = vunpack.c.l.bf16 %v13865_v25  ;;  %v5912_v13 = vunpack.c.h.bf16 %v13865_v25  ;;  %v6231_v30 = vunpack.c.l.bf16 %v5417_v21  ;;  %v6232_v17 = vunpack.c.h.bf16 %v5417_v21 }
 0x69a   : > { %v9369_v18 = vpop.eup %9368  ;;  %v5921_v43 = vunpack.c.l.bf16 %v13879_v1  ;;  %v5484_v51 = vmul.f32 %v9359_v24, %v10522_v20  ;;  %v5486_v45 = vmul.f32 %v9361_v34, %v10525_v16  ;;  %9378 = vrcp.f32 %v5621_v40 }
 0x69b   : > { %v9371_v7 = vpop.eup %9370  ;;  %v7382_v31 = vadd.f32 %v7381_v22, %v7011_v57  ;;  %v13980_v11 = vadd.f32 %v7412_v46, %v7012_v8  ;;  %v5452_v58 = vpack.c.bf16 %v5449_v37, %v5451_v50  ;;  %9380 = vrcp.f32 %v5622_v14 }
 0x69c   : > { %v9373_v12 = vpop.eup %9372  ;;  %v13982_v32 = vpack.c.bf16 %v6542_v0, %v6541_v59  ;;  %v5922_v25 = vunpack.c.h.bf16 %v13879_v1  ;;  %v5519_v52 = vmul.f32 %v9363_v4, %v10522_v20  ;;  %v5521_v63 = vmul.f32 %v9365_v33, %v10525_v16 }
 0x69d   : > { %v9375_v35 = vpop.eup %9374  ;;  %v6551_v26 = vmul.f32 %v6231_v30, %v5911_v23  ;;  %v6552_v3 = vmul.f32 %v6232_v17, %v5912_v13  ;;  %v5931_v54 = vunpack.c.l.bf16 %v13892_v6  ;;  %v3740_v48 = vpack.c.bf16 %v9373_v12, %v9369_v18 }
 0x69e   : > { %v9377_v19 = vpop.eup %9376  ;;  %v5487_v56 = vpack.c.bf16 %v5484_v51, %v5486_v45  ;;  %v5932_v38 = vunpack.c.h.bf16 %v13892_v6  ;;  %v5554_v28 = vmul.f32 %v9367_v61, %v10522_v20  ;;  %v5556_v9 = vmul.f32 %v9371_v7, %v10525_v16 }
 0x69f   : > { %v6241_v53 = vunpack.c.l.bf16 %v5452_v58  ;;  %v6242_v1 = vunpack.c.h.bf16 %v5452_v58  ;;  %v4059_v29 = vunpack.c.l.bf16 %v3740_v48  ;;  %v4060_v42 = vunpack.c.h.bf16 %v3740_v48 }
 0x6a0   : > { %v9379_v36 = vpop.eup %9378  ;;  %v7021_v2 = vunpack.c.l.bf16 %v13982_v32  ;;  %v7022_v39 = vunpack.c.h.bf16 %v13982_v32  ;;  %v5522_v27 = vpack.c.bf16 %v5519_v52, %v5521_v63  ;;  %v5941_v55 = vunpack.c.l.bf16 %v13905_v15 }
 0x6a1   : > { %v9381_v10 = vpop.eup %9380  ;;  %v6747_v60 = vpack.c.bf16 %v6552_v3, %v6551_v26  ;;  %v5589_v6 = vmul.f32 %v9375_v35, %v10522_v20  ;;  %v5591_v44 = vmul.f32 %v9377_v19, %v10525_v16  ;;  %v4379_v24 = vadd.f32 1.0, %v4059_v29 }
 0x6a2   : > { %v6251_v22 = vunpack.c.l.bf16 %v5487_v56  ;;  %v6252_v46 = vunpack.c.h.bf16 %v5487_v56  ;;  %v5557_v21 = vpack.c.bf16 %v5554_v28, %v5556_v9  ;;  %v4380_v34 = vadd.f32 1.0, %v4060_v42 }
 0x6a3   : > { %v6561_v57 = vmul.f32 %v6241_v53, %v5921_v43  ;;  %v6562_v8 = vmul.f32 %v6242_v1, %v5922_v25  ;;  %v5624_v62 = vmul.f32 %v9379_v36, %v10522_v20  ;;  %v5626_v4 = vmul.f32 %v9381_v10, %v10525_v16 }
 0x6a4   : > { %v7383_v59 = vadd.f32 %v7382_v31, %v7021_v2  ;;  %v6261_v37 = vunpack.c.l.bf16 %v5522_v27  ;;  %v6262_v50 = vunpack.c.h.bf16 %v5522_v27  ;;  %v4540_v33 = vpack.c.bf16 %v4380_v34, %v4379_v24 }
 0x6a5   : > { %v7031_v0 = vunpack.c.l.bf16 %v6747_v60  ;;  %v7032_v40 = vunpack.c.h.bf16 %v6747_v60  ;;  %v5942_v14 = vunpack.c.h.bf16 %v13905_v15  ;;  %v5592_v61 = vpack.c.bf16 %v5589_v6, %v5591_v44 }
 0x6a6   : > { %v6571_v23 = vmul.f32 %v6251_v22, %v5931_v54  ;;  %v6572_v13 = vmul.f32 %v6252_v46, %v5932_v38  ;;  %v6271_v30 = vunpack.c.l.bf16 %v5557_v21  ;;  %v6272_v17 = vunpack.c.h.bf16 %v5557_v21 }
 0x6a7   : > { %v6752_v18 = vpack.c.bf16 %v6562_v8, %v6561_v57  ;;  %v5627_v43 = vpack.c.bf16 %v5624_v62, %v5626_v4  ;;  %v5656_v51 = vunpack.c.h.bf16 %v4540_v33  ;;  %v5657_v45 = vunpack.c.l.bf16 %v4540_v33 }
 0x6a8   : > { %v6581_v7 = vmul.f32 %v6261_v37, %v5941_v55  ;;  %v6582_v58 = vmul.f32 %v6262_v50, %v5942_v14  ;;  %v5951_v31 = vunpack.c.l.bf16 %v13920_v47  ;;  %v5952_v12 = vunpack.c.h.bf16 %v13920_v47 }
 0x6a9   : > { %v5961_v32 = vunpack.c.l.bf16 %v13937_v5  ;;  %v6281_v25 = vunpack.c.l.bf16 %v5592_v61  ;;  %v6282_v52 = vunpack.c.h.bf16 %v5592_v61  ;;  %9382 = vrcp.f32 %v5656_v51 }
 0x6aa   : > { %v6757_v15 = vpack.c.bf16 %v6572_v13, %v6571_v23  ;;  %v6591_v63 = vmul.f32 %v6271_v30, %v5951_v31  ;;  %v6592_v35 = vmul.f32 %v6272_v17, %v5952_v12  ;;  %9384 = vrcp.f32 %v5657_v45 }
 0x6ab   : > { %v7041_v26 = vunpack.c.l.bf16 %v6752_v18  ;;  %v5962_v3 = vunpack.c.h.bf16 %v13937_v5  ;;  %v6291_v54 = vunpack.c.l.bf16 %v5627_v43  ;;  %v6292_v48 = vunpack.c.h.bf16 %v5627_v43 }
 0x6ac   : > { %v7414_v19 = vadd.f32 %v13980_v11, %v7022_v39  ;;  %v7384_v56 = vadd.f32 %v7383_v59, %v7031_v0  ;;  %v7042_v38 = vunpack.c.h.bf16 %v6752_v18  ;;  %v6762_v28 = vpack.c.bf16 %v6582_v58, %v6581_v7 }
 0x6ad   : > { %v6601_v47 = vmul.f32 %v6281_v25, %v5961_v32  ;;  %v6602_v9 = vmul.f32 %v6282_v52, %v5962_v3  ;;  %v5971_v53 = vunpack.c.l.bf16 %v13945_v49  ;;  %v5972_v1 = vunpack.c.h.bf16 %v13945_v49 }
 0x6ae   : > { %v7415_v29 = vadd.f32 %v7414_v19, %v7032_v40  ;;  %v7051_v42 = vunpack.c.l.bf16 %v6757_v15  ;;  %v7052_v36 = vunpack.c.h.bf16 %v6757_v15  ;;  %v6767_v2 = vpack.c.bf16 %v6592_v35, %v6591_v63 }
 0x6af   : > { %v9383_v27 = vpop.eup %9382  ;;  %v7385_v55 = vadd.f32 %v7384_v56, %v7041_v26  ;;  %v6611_v5 = vmul.f32 %v6291_v54, %v5971_v53  ;;  %v6612_v10 = vmul.f32 %v6292_v48, %v5972_v1  ;;  %v7061_v11 = vunpack.c.l.bf16 %v6762_v28 }
 0x6b0   : > { %v9385_v60 = vpop.eup %9384  ;;  %v7416_v6 = vadd.f32 %v7415_v29, %v7042_v38  ;;  %v7062_v39 = vunpack.c.h.bf16 %v6762_v28  ;;  %v5659_v44 = vmul.f32 %v9383_v27, %v10522_v20  ;;  %v6772_v24 = vpack.c.bf16 %v6602_v9, %v6601_v47 }
 0x6b1   : > { %v5661_v22 = vmul.f32 %v9385_v60, %v10525_v16  ;;  %v7386_v46 = vadd.f32 %v7385_v55, %v7051_v42  ;;  %v7071_v49 = vunpack.c.l.bf16 %v6767_v2  ;;  %v7072_v34 = vunpack.c.h.bf16 %v6767_v2 }
 0x6b2   : > { %v7417_v21 = vadd.f32 %v7416_v6, %v7052_v36  ;;  %v6777_v57 = vpack.c.bf16 %v6612_v10, %v6611_v5  ;;  %v5981_v59 = vunpack.c.l.bf16 %v13956_v41  ;;  %v5982_v37 = vunpack.c.h.bf16 %v13956_v41 }
 0x6b3   : > { %v5662_v8 = vpack.c.bf16 %v5659_v44, %v5661_v22  ;;  %v7387_v62 = vadd.f32 %v7386_v46, %v7061_v11  ;;  %v7081_v50 = vunpack.c.l.bf16 %v6772_v24  ;;  %v7082_v33 = vunpack.c.h.bf16 %v6772_v24 }
 0x6b4   : > { %v7418_v4 = vadd.f32 %v7417_v21, %v7062_v39  ;;  %v7091_v14 = vunpack.c.l.bf16 %v6777_v57  ;;  %v7092_v61 = vunpack.c.h.bf16 %v6777_v57 }
 0x6b5   : > { %v6301_v0 = vunpack.c.l.bf16 %v5662_v8  ;;  %v6302_v40 = vunpack.c.h.bf16 %v5662_v8  ;;  %v7388_v20 = vadd.f32 %v7387_v62, %v7071_v49 }
 0x6b6   : > { %v7419_v16 = vadd.f32 %v7418_v4, %v7072_v34 }
 0x6b7   : > { %v6621_v23 = vmul.f32 %v6301_v0, %v5981_v59  ;;  %v6622_v13 = vmul.f32 %v6302_v40, %v5982_v37  ;;  %v7389_v30 = vadd.f32 %v7388_v20, %v7081_v50 }
 0x6b8   : > { %v7420_v17 = vadd.f32 %v7419_v16, %v7082_v33 }
 0x6b9   : > { %v6782_v18 = vpack.c.bf16 %v6622_v13, %v6621_v23  ;;  %v7390_v43 = vadd.f32 %v7389_v30, %v7091_v14 }
 0x6ba   : > { %v7421_v51 = vadd.f32 %v7420_v17, %v7092_v61 }
 0x6bb   : > { %v7101_v45 = vunpack.c.l.bf16 %v6782_v18  ;;  %v7102_v7 = vunpack.c.h.bf16 %v6782_v18 }
 0x6bd   : > { %v7391_v41 = vadd.f32 %v7390_v43, %v7101_v45  ;;  %v7422_v58 = vadd.f32 %v7421_v51, %v7102_v7 }
 0x6bf   : > { %7441 = vst [vmem:[%s11653_s13 + $0x40] sm:$0xff] %v7391_v41 }
 0x6c0   : > { %7442 = vst [vmem:[%s11653_s13 + $0x48] sm:$0xff] %v7422_v58 }
 0x6c1 PF: > { %s15_s20 = sadd.s32 1, %s9412_s20   ;;  %s14297_s18 = smov %s9408_s19 }
 0x6c2   : > { %p12_p5 = scmp.ge.s32.totalorder %s15_s20, 4   ;;  %s14298_s19 = smov %s14300_s21 }
 0x6c4   :  { %14 = sbr.rel (!%p12_p5) target bundleno = 2 (0x2), region = 74 }

</bundles_post_ra>
